<compile_context>
chip_gen: v5e
topology: v5e:2x2
jax: 0.10.0
libtpu: 0.0.40
codegen_flags: <defaults>
</compile_context>

<pallas_src>
import math

import jax
import jax.numpy as jnp
from jax.experimental import pallas as pl
from jax.experimental.pallas import tpu as pltpu


# ---------------------------------------------------------------------------- helpers

def _sigmoid(x):
    return 1.0 / (1.0 + jnp.exp(-x))


def _softplus(x):
    # numerically safe softplus using only exp/log/where (no log1p dependence)
    return jnp.where(x > 20.0, x, jnp.log(1.0 + jnp.exp(jnp.minimum(x, 20.0))))


# ---------------------------------------------------------------------------- kernels


def ln_inproj_kernel(x_ref, g_ref, b_ref, wx_ref, wz_ref, xo_ref, zo_ref):
    # x_ref: (tm, dim); g/b: (1, dim); wx/wz: (dim, d_inner)
    x = x_ref[...].astype(jnp.float32)
    mu = jnp.mean(x, axis=-1, keepdims=True)
    xc = x - mu
    var = jnp.mean(xc * xc, axis=-1, keepdims=True)
    xn = xc * jax.lax.rsqrt(var + 1e-5) * g_ref[...] + b_ref[...]
    xo_ref[...] = jnp.dot(xn, wx_ref[...], preferred_element_type=jnp.float32).astype(xo_ref.dtype)
    zo_ref[...] = jnp.dot(xn, wz_ref[...], preferred_element_type=jnp.float32).astype(zo_ref.dtype)


def mamba_core_kernel(x_ref, z_ref, convw_ref, convb_ref, bw_ref, cw_ref,
                      dtw_ref, dtb_ref, a_ref, dskip_ref, g_ref, bias_ref,
                      y_ref,
                      dAf_scr, dBuf_scr, dAb_scr, dBub_scr, hf_scr, hb_scr):
    # Per-batch refs:
    #   x, z, y            : (L, d_inner)
    #   convw              : (2, K, d_inner)      convb, dtb, dskip : (2, 1, d_inner)
    #   bw, cw             : (2, d_inner, d_state)
    #   dtw                : (2, d_inner, d_inner)   (x_proj_dt @ dt_proj pre-folded)
    #   a                  : (2, d_state, d_inner)   (already -exp(A_log).T)
    #   g, bias            : (1, d_inner)            (output LayerNorm)
    # Scratch (VMEM): dA/dBu/h history per direction, each (L, d_state, d_inner) f32.
    f32 = jnp.float32
    L, d_inner = x_ref.shape
    d_state = a_ref.shape[1]
    K = convw_ref.shape[1]

    x = x_ref[...].astype(f32)
    z = z_ref[...].astype(f32)

    def shift_down(v, s):           # out[l] = v[l - s]  (zeros for l < s)
        if s == 0:
            return v
        return jnp.concatenate(
            [jnp.zeros((s, v.shape[1]), v.dtype), v[:L - s, :]], axis=0)

    def shift_up(v, s):             # out[l] = v[l + s]  (zeros for l >= L - s)
        if s == 0:
            return v
        return jnp.concatenate(
            [v[s:, :], jnp.zeros((s, v.shape[1]), v.dtype)], axis=0)

    def direction(d_idx, anti_causal, dA_scr, dBu_scr):
        # depthwise conv (causal for fwd, anti-causal == flipped-causal for bwd) + SiLU
        w = convw_ref[d_idx].astype(f32)             # (K, d_inner)
        acc = convb_ref[d_idx].astype(f32) * jnp.ones((L, d_inner), f32)
        for k in range(K):                           # static unroll, K == d_conv
            s = K - 1 - k
            xs = shift_up(x, s) if anti_causal else shift_down(x, s)
            acc = acc + xs * w[k:k + 1, :]
        u = acc * _sigmoid(acc)                      # (L, d_inner), SiLU

        # data-dependent SSM parameters (all batched over L)
        dt = _softplus(
            jnp.dot(u, dtw_ref[d_idx].astype(f32), preferred_element_type=f32)
            + dtb_ref[d_idx].astype(f32))            # (L, d_inner)
        Bm = jnp.dot(u, bw_ref[d_idx].astype(f32), preferred_element_type=f32)  # (L, d_state)
        Cm = jnp.dot(u, cw_ref[d_idx].astype(f32), preferred_element_type=f32)  # (L, d_state)

        A = a_ref[d_idx].astype(f32)                 # (d_state, d_inner)
        dA_scr[...] = jnp.exp(dt[:, None, :] * A[None, :, :])         # (L, d_state, d_inner)
        dBu_scr[...] = Bm[:, :, None] * (dt * u)[:, None, :]          # (L, d_state, d_inner)
        return u, Cm

    u_f, C_f = direction(0, False, dAf_scr, dBuf_scr)
    u_b, C_b = direction(1, True, dAb_scr, dBub_scr)

    # Blocked recurrence: the loop only carries h; 8 timesteps per iteration so
    # loads/stores are full-sublane (8, d_state, d_inner) chunks.
    T = 8 if L % 8 == 0 else 1
    nblk = L // T
    h0 = jnp.zeros((d_state, d_inner), f32)

    def body(t, carry):
        hf, hb = carry
        bf = pl.multiple_of(t * T, T)                # fwd block start (ascending)
        bb = pl.multiple_of(L - (t + 1) * T, T)      # bwd block start (descending)
        dAfb = dAf_scr[pl.ds(bf, T)]
        dBufb = dBuf_scr[pl.ds(bf, T)]
        dAbb = dAb_scr[pl.ds(bb, T)]
        dBubb = dBub_scr[pl.ds(bb, T)]
        hfs = [None] * T
        hbs = [None] * T
        for i in range(T):                           # static unroll
            hf = dAfb[i] * hf + dBufb[i]
            hfs[i] = hf
            j = T - 1 - i                            # bwd processes positions top-down
            hb = dAbb[j] * hb + dBubb[j]
            hbs[j] = hb
        hf_scr[pl.ds(bf, T)] = jnp.stack(hfs, axis=0)
        hb_scr[pl.ds(bb, T)] = jnp.stack(hbs, axis=0)
        return (hf, hb)

    jax.lax.fori_loop(0, nblk, body, (h0, h0))

    # batched C-readout + D*u skip + SiLU(z) gate + bidirectional average
    yf = jnp.sum(hf_scr[...] * C_f[:, :, None], axis=1) + dskip_ref[0].astype(f32) * u_f
    yb = jnp.sum(hb_scr[...] * C_b[:, :, None], axis=1) + dskip_ref[1].astype(f32) * u_b
    y = 0.5 * (yf + yb) * (z * _sigmoid(z))          # if_devide_out=True

    # output LayerNorm over d_inner (use_norm=True)
    mu = jnp.mean(y, axis=-1, keepdims=True)
    yc = y - mu
    var = jnp.mean(yc * yc, axis=-1, keepdims=True)
    yn = yc * jax.lax.rsqrt(var + 1e-5) * g_ref[...].astype(f32) + bias_ref[...].astype(f32)
    y_ref[...] = yn.astype(y_ref.dtype)


def outproj_res_kernel(y_ref, w_ref, skip_ref, o_ref):
    # y_ref: (tm, d_inner)  w_ref: (d_inner, dim)  skip_ref/o_ref: (tm, dim)
    acc = jnp.dot(y_ref[...].astype(jnp.float32), w_ref[...].astype(jnp.float32),
                  preferred_element_type=jnp.float32)
    o_ref[...] = (acc + skip_ref[...].astype(jnp.float32)).astype(o_ref.dtype)


# ---------------------------------------------------------------------------- wrappers


def ln_inproj(x, g, b, wx, wz):
    Bb, L, dim = x.shape
    d_inner = wx.shape[1]
    M = Bb * L
    tm = min(M, 256)
    xf = x.reshape(M, dim)
    xo, zo = pl.pallas_call(
        ln_inproj_kernel,
        out_shape=(jax.ShapeDtypeStruct((M, d_inner), jnp.float32),
                   jax.ShapeDtypeStruct((M, d_inner), jnp.float32)),
        grid=(pl.cdiv(M, tm),),
        in_specs=[
            pl.BlockSpec((tm, dim), lambda i: (i, 0)),
            pl.BlockSpec((1, dim), lambda i: (0, 0)),
            pl.BlockSpec((1, dim), lambda i: (0, 0)),
            pl.BlockSpec((dim, d_inner), lambda i: (0, 0)),
            pl.BlockSpec((dim, d_inner), lambda i: (0, 0)),
        ],
        out_specs=(pl.BlockSpec((tm, d_inner), lambda i: (i, 0)),
                   pl.BlockSpec((tm, d_inner), lambda i: (i, 0))),
        compiler_params=pltpu.CompilerParams(dimension_semantics=("parallel",)),
    )(xf, g.reshape(1, dim), b.reshape(1, dim), wx, wz)
    return xo.reshape(Bb, L, d_inner), zo.reshape(Bb, L, d_inner)


def mamba_core(x_in, z, conv_w, conv_b, B_w, C_w, dt_w, dt_b, A, Dv, out_g, out_b):
    Bb, L, d_inner = x_in.shape
    d_state = A.shape[1]
    K = conv_w.shape[1]
    scr = lambda: pltpu.VMEM((L, d_state, d_inner), jnp.float32)
    return pl.pallas_call(
        mamba_core_kernel,
        out_shape=jax.ShapeDtypeStruct((Bb, L, d_inner), jnp.float32),
        grid=(Bb,),
        in_specs=[
            pl.BlockSpec((None, L, d_inner), lambda i: (i, 0, 0)),      # x
            pl.BlockSpec((None, L, d_inner), lambda i: (i, 0, 0)),      # z
            pl.BlockSpec((2, K, d_inner), lambda i: (0, 0, 0)),         # conv_w
            pl.BlockSpec((2, 1, d_inner), lambda i: (0, 0, 0)),         # conv_b
            pl.BlockSpec((2, d_inner, d_state), lambda i: (0, 0, 0)),   # B weights
            pl.BlockSpec((2, d_inner, d_state), lambda i: (0, 0, 0)),   # C weights
            pl.BlockSpec((2, d_inner, d_inner), lambda i: (0, 0, 0)),   # dt (folded)
            pl.BlockSpec((2, 1, d_inner), lambda i: (0, 0, 0)),         # dt bias
            pl.BlockSpec((2, d_state, d_inner), lambda i: (0, 0, 0)),   # A
            pl.BlockSpec((2, 1, d_inner), lambda i: (0, 0, 0)),         # D
            pl.BlockSpec((1, d_inner), lambda i: (0, 0)),               # out_norm g
            pl.BlockSpec((1, d_inner), lambda i: (0, 0)),               # out_norm b
        ],
        out_specs=pl.BlockSpec((None, L, d_inner), lambda i: (i, 0, 0)),
        scratch_shapes=[scr(), scr(), scr(), scr(), scr(), scr()],
        compiler_params=pltpu.CompilerParams(dimension_semantics=("parallel",)),
    )(x_in, z, conv_w, conv_b, B_w, C_w, dt_w, dt_b, A, Dv, out_g, out_b)


def out_proj_residual(y, w, skip):
    Bb, L, d_inner = y.shape
    dim = w.shape[1]
    M = Bb * L
    tm = min(M, 256)
    out = pl.pallas_call(
        outproj_res_kernel,
        out_shape=jax.ShapeDtypeStruct((M, dim), skip.dtype),
        grid=(pl.cdiv(M, tm),),
        in_specs=[
            pl.BlockSpec((tm, d_inner), lambda i: (i, 0)),
            pl.BlockSpec((d_inner, dim), lambda i: (0, 0)),
            pl.BlockSpec((tm, dim), lambda i: (i, 0)),
        ],
        out_specs=pl.BlockSpec((tm, dim), lambda i: (i, 0)),
        compiler_params=pltpu.CompilerParams(dimension_semantics=("parallel",)),
    )(y.reshape(M, d_inner), w, skip.reshape(M, dim))
    return out.reshape(Bb, L, dim)


# ---------------------------------------------------------------------------- model


def init_params(key, dim, d_state=8, d_conv=4, expand=1):
    # NOTE: arrays only -- all sizes are re-derived from shapes inside the forward.
    d_inner = expand * dim
    dt_rank = math.ceil(dim / 16)
    keys = jax.random.split(key, 8)

    def nrm(k, shape, scale):
        return scale * jax.random.normal(k, shape, jnp.float32)

    def direction(k0, k1, k2):
        return {
            "conv_w": nrm(k0, (d_conv, d_inner), 1.0 / math.sqrt(d_conv)),
            "conv_b": jnp.zeros((d_inner,), jnp.float32),
            "x_proj_w": nrm(k1, (d_inner, dt_rank + 2 * d_state), 1.0 / math.sqrt(d_inner)),
            "dt_proj_w": nrm(k2, (dt_rank, d_inner), dt_rank ** -0.5),
            "dt_proj_b": jnp.full((d_inner,), math.log(math.expm1(0.01)), jnp.float32),
            "A_log": jnp.log(jnp.broadcast_to(
                jnp.arange(1, d_state + 1, dtype=jnp.float32), (d_inner, d_state))),
            "D": jnp.ones((d_inner,), jnp.float32),
        }

    return {
        "ln_g": jnp.ones((dim,), jnp.float32),
        "ln_b": jnp.zeros((dim,), jnp.float32),
        "in_proj_w": nrm(keys[0], (dim, 2 * d_inner), 1.0 / math.sqrt(dim)),
        "fwd": direction(keys[1], keys[2], keys[3]),
        "bwd": direction(keys[4], keys[5], keys[6]),
        "out_norm_g": jnp.ones((d_inner,), jnp.float32),
        "out_norm_b": jnp.zeros((d_inner,), jnp.float32),
        "out_proj_w": nrm(keys[7], (d_inner, dim), 1.0 / math.sqrt(d_inner)),
    }


def single_mamba_block(x, params):
    # x: (B, L, dim)  ->  Mamba(LayerNorm(x)) + x
    Bb, L, dim = x.shape
    pf, pb = params["fwd"], params["bwd"]
    d_inner = pf["D"].shape[0]
    d_state = pf["A_log"].shape[1]
    dt_rank = pf["dt_proj_w"].shape[0]
    skip = x

    # (1) fused pre-norm + in_proj (no flip, no zero biases)
    wx = params["in_proj_w"][:, :d_inner]
    wz = params["in_proj_w"][:, d_inner:]
    x_in, z = ln_inproj(x, params["ln_g"], params["ln_b"], wx, wz)

    # tiny per-direction weight re-packing (x_proj split, x_proj_dt @ dt_proj fold)
    def xsplit(p):
        w = p["x_proj_w"]
        return (w[:, :dt_rank] @ p["dt_proj_w"],          # (d_inner, d_inner)
                w[:, dt_rank:dt_rank + d_state],          # (d_inner, d_state)
                w[:, dt_rank + d_state:])                 # (d_inner, d_state)

    dtwf, Bwf, Cwf = xsplit(pf)
    dtwb, Bwb, Cwb = xsplit(pb)
    st = lambda a, b: jnp.stack([a, b], axis=0)
    conv_w = st(pf["conv_w"], pb["conv_w"])
    conv_b = st(pf["conv_b"], pb["conv_b"]).reshape(2, 1, d_inner)
    dt_w = st(dtwf, dtwb)
    dt_b = st(pf["dt_proj_b"], pb["dt_proj_b"]).reshape(2, 1, d_inner)
    B_w = st(Bwf, Bwb)
    C_w = st(Cwf, Cwb)
    A = st(-jnp.exp(pf["A_log"].astype(jnp.float32)).T,
           -jnp.exp(pb["A_log"].astype(jnp.float32)).T)   # (2, d_state, d_inner)
    Dv = st(pf["D"], pb["D"]).reshape(2, 1, d_inner)

    # (2) fused bidirectional conv + SSM scan + gate + out-norm
    y = mamba_core(x_in, z, conv_w, conv_b, B_w, C_w, dt_w, dt_b, A, Dv,
                   params["out_norm_g"].reshape(1, d_inner),
                   params["out_norm_b"].reshape(1, d_inner))

    # (3) out_proj with the residual add fused in
    return out_proj_residual(y, params["out_proj_w"], skip)


# ---------------------------------------------------------------------------- main

if __name__ == "__main__":
    B, H, W, dim = 2, 8, 8, 32
    L = H * W

    x = jax.random.normal(jax.random.PRNGKey(0), (B, L, dim), jnp.float32)
    params = init_params(jax.random.PRNGKey(1), dim)

    fwd = jax.jit(single_mamba_block)
    out = jax.block_until_ready(fwd(x, params))

    assert out.shape == (B, L, dim)
    assert bool(jnp.all(jnp.isfinite(out)))
    print("KERNEL_OK")
</pallas_src>

<mosaic_0001>
module attributes {stable_mosaic.version = 11 : i64} {
  func.func @ln_inproj_kernel(%arg0: i32, %arg1: memref<128x32xf32, #tpu.memory_space<vmem>>, %arg2: memref<1x32xf32, #tpu.memory_space<vmem>>, %arg3: memref<1x32xf32, #tpu.memory_space<vmem>>, %arg4: memref<32x32xf32, #tpu.memory_space<vmem>>, %arg5: memref<32x32xf32, #tpu.memory_space<vmem>>, %arg6: memref<128x32xf32, #tpu.memory_space<vmem>>, %arg7: memref<128x32xf32, #tpu.memory_space<vmem>>) attributes {dimension_semantics = [#tpu.dimension_semantics<parallel>], iteration_bounds = array<i64: 1>, scalar_prefetch = 0 : i64, scratch_operands = 0 : i64, tpu.core_type = #tpu.core_type<tc>, window_params = [{transform_indices = @transform_0, window_bounds = array<i64: 128, 32>}, {pipeline_mode = #tpu.pipeline_mode<synchronous>, transform_indices = @transform_1, window_bounds = array<i64: 1, 32>}, {pipeline_mode = #tpu.pipeline_mode<synchronous>, transform_indices = @transform_2, window_bounds = array<i64: 1, 32>}, {pipeline_mode = #tpu.pipeline_mode<synchronous>, transform_indices = @transform_3, window_bounds = array<i64: 32, 32>}, {pipeline_mode = #tpu.pipeline_mode<synchronous>, transform_indices = @transform_4, window_bounds = array<i64: 32, 32>}, {transform_indices = @transform_5, window_bounds = array<i64: 128, 32>}, {transform_indices = @transform_6, window_bounds = array<i64: 128, 32>}]} {
    %c0 = arith.constant 0 : index
    %c0_0 = arith.constant 0 : index
    %0 = vector.load %arg1[%c0, %c0_0] : memref<128x32xf32, #tpu.memory_space<vmem>>, vector<128x32xf32>
    %cst = arith.constant dense<0.000000e+00> : vector<128xf32>
    %1 = vector.multi_reduction <add>, %0, %cst [1] : vector<128x32xf32> to vector<128xf32>
    %2 = vector.shape_cast %1 : vector<128xf32> to vector<128x1xf32>
    %cst_1 = arith.constant 3.200000e+01 : f32
    %3 = vector.broadcast %cst_1 : f32 to vector<128x1xf32>
    %4 = arith.divf %2, %3 : vector<128x1xf32>
    %5 = vector.broadcast %4 : vector<128x1xf32> to vector<128x32xf32>
    %6 = arith.subf %0, %5 : vector<128x32xf32>
    %7 = arith.mulf %6, %6 : vector<128x32xf32>
    %cst_2 = arith.constant dense<0.000000e+00> : vector<128xf32>
    %8 = vector.multi_reduction <add>, %7, %cst_2 [1] : vector<128x32xf32> to vector<128xf32>
    %9 = vector.shape_cast %8 : vector<128xf32> to vector<128x1xf32>
    %cst_3 = arith.constant 3.200000e+01 : f32
    %10 = vector.broadcast %cst_3 : f32 to vector<128x1xf32>
    %11 = arith.divf %9, %10 : vector<128x1xf32>
    %cst_4 = arith.constant 9.99999974E-6 : f32
    %12 = vector.broadcast %cst_4 : f32 to vector<128x1xf32>
    %13 = arith.addf %11, %12 : vector<128x1xf32>
    %14 = math.rsqrt %13 : vector<128x1xf32>
    %15 = vector.broadcast %14 : vector<128x1xf32> to vector<128x32xf32>
    %16 = arith.mulf %6, %15 : vector<128x32xf32>
    %c0_5 = arith.constant 0 : index
    %c0_6 = arith.constant 0 : index
    %17 = vector.load %arg2[%c0_5, %c0_6] : memref<1x32xf32, #tpu.memory_space<vmem>>, vector<1x32xf32>
    %18 = vector.broadcast %17 : vector<1x32xf32> to vector<128x32xf32>
    %19 = arith.mulf %16, %18 : vector<128x32xf32>
    %c0_7 = arith.constant 0 : index
    %c0_8 = arith.constant 0 : index
    %20 = vector.load %arg3[%c0_7, %c0_8] : memref<1x32xf32, #tpu.memory_space<vmem>>, vector<1x32xf32>
    %21 = vector.broadcast %20 : vector<1x32xf32> to vector<128x32xf32>
    %22 = arith.addf %19, %21 : vector<128x32xf32>
    %c0_9 = arith.constant 0 : index
    %c0_10 = arith.constant 0 : index
    %23 = vector.load %arg4[%c0_9, %c0_10] : memref<32x32xf32, #tpu.memory_space<vmem>>, vector<32x32xf32>
    %cst_11 = arith.constant dense<0.000000e+00> : vector<128x32xf32>
    %24 = tpu.matmul %22, %23, %cst_11 {dimension_numbers = #tpu.dot_dimension_numbers<[1], [0], [0], [1], [0, 0, 1, 1], [], []>} : vector<128x32xf32>, vector<32x32xf32>, vector<128x32xf32> -> vector<128x32xf32>
    %c0_12 = arith.constant 0 : index
    %c0_13 = arith.constant 0 : index
    %25 = vector.load %arg6[%c0_12, %c0_13] : memref<128x32xf32, #tpu.memory_space<vmem>>, vector<128x32xf32>
    tpu.vector_store %arg6[%c0_12, %c0_13], %24 {strides = array<i32>} : memref<128x32xf32, #tpu.memory_space<vmem>>, vector<128x32xf32>,
    %c0_14 = arith.constant 0 : index
    %c0_15 = arith.constant 0 : index
    %26 = vector.load %arg5[%c0_14, %c0_15] : memref<32x32xf32, #tpu.memory_space<vmem>>, vector<32x32xf32>
    %cst_16 = arith.constant dense<0.000000e+00> : vector<128x32xf32>
    %27 = tpu.matmul %22, %26, %cst_16 {dimension_numbers = #tpu.dot_dimension_numbers<[1], [0], [0], [1], [0, 0, 1, 1], [], []>} : vector<128x32xf32>, vector<32x32xf32>, vector<128x32xf32> -> vector<128x32xf32>
    %c0_17 = arith.constant 0 : index
    %c0_18 = arith.constant 0 : index
    %28 = vector.load %arg7[%c0_17, %c0_18] : memref<128x32xf32, #tpu.memory_space<vmem>>, vector<128x32xf32>
    tpu.vector_store %arg7[%c0_17, %c0_18], %27 {strides = array<i32>} : memref<128x32xf32, #tpu.memory_space<vmem>>, vector<128x32xf32>,
    return
  }
  func.func @transform_0(%arg0: i32) -> (i32, i32) {
    %c0_i32 = arith.constant 0 : i32
    %c0_i32_0 = arith.constant 0 : i32
    return %arg0, %c0_i32 : i32, i32
  }
  func.func @transform_1(%arg0: i32) -> (i32, i32) {
    %c0_i32 = arith.constant 0 : i32
    %c0_i32_0 = arith.constant 0 : i32
    %c0_i32_1 = arith.constant 0 : i32
    return %c0_i32, %c0_i32_0 : i32, i32
  }
  func.func @transform_2(%arg0: i32) -> (i32, i32) {
    %c0_i32 = arith.constant 0 : i32
    %c0_i32_0 = arith.constant 0 : i32
    %c0_i32_1 = arith.constant 0 : i32
    return %c0_i32, %c0_i32_0 : i32, i32
  }
  func.func @transform_3(%arg0: i32) -> (i32, i32) {
    %c0_i32 = arith.constant 0 : i32
    %c0_i32_0 = arith.constant 0 : i32
    %c0_i32_1 = arith.constant 0 : i32
    return %c0_i32, %c0_i32_0 : i32, i32
  }
  func.func @transform_4(%arg0: i32) -> (i32, i32) {
    %c0_i32 = arith.constant 0 : i32
    %c0_i32_0 = arith.constant 0 : i32
    %c0_i32_1 = arith.constant 0 : i32
    return %c0_i32, %c0_i32_0 : i32, i32
  }
  func.func @transform_5(%arg0: i32) -> (i32, i32) {
    %c0_i32 = arith.constant 0 : i32
    %c0_i32_0 = arith.constant 0 : i32
    return %arg0, %c0_i32 : i32, i32
  }
  func.func @transform_6(%arg0: i32) -> (i32, i32) {
    %c0_i32 = arith.constant 0 : i32
    %c0_i32_0 = arith.constant 0 : i32
    return %arg0, %c0_i32 : i32, i32
  }
}

module attributes {stable_mosaic.version = 11 : i64} {
  func.func @mamba_core_kernel(%arg0: i32, %arg1: memref<1x64x32xf32, #tpu.memory_space<vmem>>, %arg2: memref<1x64x32xf32, #tpu.memory_space<vmem>>, %arg3: memref<2x4x32xf32, #tpu.memory_space<vmem>>, %arg4: memref<2x1x32xf32, #tpu.memory_space<vmem>>, %arg5: memref<2x32x8xf32, #tpu.memory_space<vmem>>, %arg6: memref<2x32x8xf32, #tpu.memory_space<vmem>>, %arg7: memref<2x32x32xf32, #tpu.memory_space<vmem>>, %arg8: memref<2x1x32xf32, #tpu.memory_space<vmem>>, %arg9: memref<2x8x32xf32, #tpu.memory_space<vmem>>, %arg10: memref<2x1x32xf32, #tpu.memory_space<vmem>>, %arg11: memref<1x32xf32, #tpu.memory_space<vmem>>, %arg12: memref<1x32xf32, #tpu.memory_space<vmem>>, %arg13: memref<1x64x32xf32, #tpu.memory_space<vmem>>, %arg14: memref<64x8x32xf32, #tpu.memory_space<vmem>>, %arg15: memref<64x8x32xf32, #tpu.memory_space<vmem>>, %arg16: memref<64x8x32xf32, #tpu.memory_space<vmem>>, %arg17: memref<64x8x32xf32, #tpu.memory_space<vmem>>, %arg18: memref<64x8x32xf32, #tpu.memory_space<vmem>>, %arg19: memref<64x8x32xf32, #tpu.memory_space<vmem>>) attributes {dimension_semantics = [#tpu.dimension_semantics<parallel>], iteration_bounds = array<i64: 2>, scalar_prefetch = 0 : i64, scratch_operands = 6 : i64, tpu.core_type = #tpu.core_type<tc>, window_params = [{transform_indices = @transform_0, window_bounds = array<i64: 1, 64, 32>}, {transform_indices = @transform_1, window_bounds = array<i64: 1, 64, 32>}, {pipeline_mode = #tpu.pipeline_mode<synchronous>, transform_indices = @transform_2, window_bounds = array<i64: 2, 4, 32>}, {pipeline_mode = #tpu.pipeline_mode<synchronous>, transform_indices = @transform_3, window_bounds = array<i64: 2, 1, 32>}, {pipeline_mode = #tpu.pipeline_mode<synchronous>, transform_indices = @transform_4, window_bounds = array<i64: 2, 32, 8>}, {pipeline_mode = #tpu.pipeline_mode<synchronous>, transform_indices = @transform_5, window_bounds = array<i64: 2, 32, 8>}, {pipeline_mode = #tpu.pipeline_mode<synchronous>, transform_indices = @transform_6, window_bounds = array<i64: 2, 32, 32>}, {pipeline_mode = #tpu.pipeline_mode<synchronous>, transform_indices = @transform_7, window_bounds = array<i64: 2, 1, 32>}, {pipeline_mode = #tpu.pipeline_mode<synchronous>, transform_indices = @transform_8, window_bounds = array<i64: 2, 8, 32>}, {pipeline_mode = #tpu.pipeline_mode<synchronous>, transform_indices = @transform_9, window_bounds = array<i64: 2, 1, 32>}, {pipeline_mode = #tpu.pipeline_mode<synchronous>, transform_indices = @transform_10, window_bounds = array<i64: 1, 32>}, {pipeline_mode = #tpu.pipeline_mode<synchronous>, transform_indices = @transform_11, window_bounds = array<i64: 1, 32>}, {transform_indices = @transform_12, window_bounds = array<i64: 1, 64, 32>}]} {
    %c0 = arith.constant 0 : index
    %c0_0 = arith.constant 0 : index
    %c0_1 = arith.constant 0 : index
    %0 = vector.load %arg1[%c0, %c0_0, %c0_1] : memref<1x64x32xf32, #tpu.memory_space<vmem>>, vector<1x64x32xf32>
    %1 = vector.shape_cast %0 : vector<1x64x32xf32> to vector<64x32xf32>
    %c0_2 = arith.constant 0 : index
    %c0_3 = arith.constant 0 : index
    %c0_4 = arith.constant 0 : index
    %2 = vector.load %arg2[%c0_2, %c0_3, %c0_4] : memref<1x64x32xf32, #tpu.memory_space<vmem>>, vector<1x64x32xf32>
    %3 = vector.shape_cast %2 : vector<1x64x32xf32> to vector<64x32xf32>
    %c0_5 = arith.constant 0 : index
    %c0_6 = arith.constant 0 : index
    %c0_7 = arith.constant 0 : index
    %4 = vector.load %arg3[%c0_5, %c0_6, %c0_7] : memref<2x4x32xf32, #tpu.memory_space<vmem>>, vector<1x4x32xf32>
    %5 = vector.shape_cast %4 : vector<1x4x32xf32> to vector<4x32xf32>
    %c0_8 = arith.constant 0 : index
    %c0_9 = arith.constant 0 : index
    %c0_10 = arith.constant 0 : index
    %6 = vector.load %arg4[%c0_8, %c0_9, %c0_10] : memref<2x1x32xf32, #tpu.memory_space<vmem>>, vector<1x1x32xf32>
    %7 = vector.shape_cast %6 : vector<1x1x32xf32> to vector<1x32xf32>
    %cst = arith.constant 1.000000e+00 : f32
    %8 = vector.broadcast %cst : f32 to vector<64x32xf32>
    %9 = vector.broadcast %7 : vector<1x32xf32> to vector<64x32xf32>
    %10 = arith.mulf %9, %8 : vector<64x32xf32>
    %cst_11 = arith.constant 0.000000e+00 : f32
    %11 = vector.broadcast %cst_11 : f32 to vector<3x32xf32>
    %12 = vector.extract_strided_slice %1 {offsets = [0, 0], sizes = [61, 32], strides = [1, 1]} : vector<64x32xf32> to vector<61x32xf32>
    %13 = tpu.concatenate %11, %12 in 0 : vector<3x32xf32>, vector<61x32xf32> -> vector<64x32xf32>
    %14 = vector.extract_strided_slice %5 {offsets = [0, 0], sizes = [1, 32], strides = [1, 1]} : vector<4x32xf32> to vector<1x32xf32>
    %15 = vector.broadcast %14 : vector<1x32xf32> to vector<64x32xf32>
    %16 = arith.mulf %13, %15 : vector<64x32xf32>
    %17 = arith.addf %10, %16 : vector<64x32xf32>
    %cst_12 = arith.constant 0.000000e+00 : f32
    %18 = vector.broadcast %cst_12 : f32 to vector<2x32xf32>
    %19 = vector.extract_strided_slice %1 {offsets = [0, 0], sizes = [62, 32], strides = [1, 1]} : vector<64x32xf32> to vector<62x32xf32>
    %20 = tpu.concatenate %18, %19 in 0 : vector<2x32xf32>, vector<62x32xf32> -> vector<64x32xf32>
    %21 = vector.extract_strided_slice %5 {offsets = [1, 0], sizes = [1, 32], strides = [1, 1]} : vector<4x32xf32> to vector<1x32xf32>
    %22 = vector.broadcast %21 : vector<1x32xf32> to vector<64x32xf32>
    %23 = arith.mulf %20, %22 : vector<64x32xf32>
    %24 = arith.addf %17, %23 : vector<64x32xf32>
    %cst_13 = arith.constant 0.000000e+00 : f32
    %25 = vector.broadcast %cst_13 : f32 to vector<1x32xf32>
    %26 = vector.extract_strided_slice %1 {offsets = [0, 0], sizes = [63, 32], strides = [1, 1]} : vector<64x32xf32> to vector<63x32xf32>
    %27 = tpu.concatenate %25, %26 in 0 : vector<1x32xf32>, vector<63x32xf32> -> vector<64x32xf32>
    %28 = vector.extract_strided_slice %5 {offsets = [2, 0], sizes = [1, 32], strides = [1, 1]} : vector<4x32xf32> to vector<1x32xf32>
    %29 = vector.broadcast %28 : vector<1x32xf32> to vector<64x32xf32>
    %30 = arith.mulf %27, %29 : vector<64x32xf32>
    %31 = arith.addf %24, %30 : vector<64x32xf32>
    %32 = vector.extract_strided_slice %5 {offsets = [3, 0], sizes = [1, 32], strides = [1, 1]} : vector<4x32xf32> to vector<1x32xf32>
    %33 = vector.broadcast %32 : vector<1x32xf32> to vector<64x32xf32>
    %34 = arith.mulf %1, %33 : vector<64x32xf32>
    %35 = arith.addf %31, %34 : vector<64x32xf32>
    %cst_14 = arith.constant 0.000000e+00 : f32
    %36 = vector.broadcast %cst_14 : f32 to vector<64x32xf32>
    %37 = arith.subf %36, %35 : vector<64x32xf32>
    %38 = math.exp %37 : vector<64x32xf32>
    %cst_15 = arith.constant 1.000000e+00 : f32
    %39 = vector.broadcast %cst_15 : f32 to vector<64x32xf32>
    %40 = arith.addf %39, %38 : vector<64x32xf32>
    %cst_16 = arith.constant 1.000000e+00 : f32
    %41 = vector.broadcast %cst_16 : f32 to vector<64x32xf32>
    %42 = arith.divf %41, %40 : vector<64x32xf32>
    %43 = arith.mulf %35, %42 : vector<64x32xf32>
    %c0_17 = arith.constant 0 : index
    %c0_18 = arith.constant 0 : index
    %c0_19 = arith.constant 0 : index
    %44 = vector.load %arg7[%c0_17, %c0_18, %c0_19] : memref<2x32x32xf32, #tpu.memory_space<vmem>>, vector<1x32x32xf32>
    %45 = vector.shape_cast %44 : vector<1x32x32xf32> to vector<32x32xf32>
    %cst_20 = arith.constant dense<0.000000e+00> : vector<64x32xf32>
    %46 = tpu.matmul %43, %45, %cst_20 {dimension_numbers = #tpu.dot_dimension_numbers<[1], [0], [0], [1], [0, 0, 1, 1], [], []>} : vector<64x32xf32>, vector<32x32xf32>, vector<64x32xf32> -> vector<64x32xf32>
    %c0_21 = arith.constant 0 : index
    %c0_22 = arith.constant 0 : index
    %c0_23 = arith.constant 0 : index
    %47 = vector.load %arg8[%c0_21, %c0_22, %c0_23] : memref<2x1x32xf32, #tpu.memory_space<vmem>>, vector<1x1x32xf32>
    %48 = vector.shape_cast %47 : vector<1x1x32xf32> to vector<1x32xf32>
    %49 = vector.broadcast %48 : vector<1x32xf32> to vector<64x32xf32>
    %50 = arith.addf %46, %49 : vector<64x32xf32>
    %cst_24 = arith.constant 2.000000e+01 : f32
    %51 = vector.broadcast %cst_24 : f32 to vector<64x32xf32>
    %52 = arith.cmpf ogt, %50, %51 : vector<64x32xf32>
    %cst_25 = arith.constant 2.000000e+01 : f32
    %53 = vector.broadcast %cst_25 : f32 to vector<64x32xf32>
    %54 = arith.minimumf %50, %53 : vector<64x32xf32>
    %55 = math.exp %54 : vector<64x32xf32>
    %cst_26 = arith.constant 1.000000e+00 : f32
    %56 = vector.broadcast %cst_26 : f32 to vector<64x32xf32>
    %57 = arith.addf %56, %55 : vector<64x32xf32>
    %58 = math.log %57 : vector<64x32xf32>
    %59 = arith.select %52, %50, %58 : vector<64x32xi1>, vector<64x32xf32>
    %c0_27 = arith.constant 0 : index
    %c0_28 = arith.constant 0 : index
    %c0_29 = arith.constant 0 : index
    %60 = vector.load %arg5[%c0_27, %c0_28, %c0_29] : memref<2x32x8xf32, #tpu.memory_space<vmem>>, vector<1x32x8xf32>
    %61 = vector.shape_cast %60 : vector<1x32x8xf32> to vector<32x8xf32>
    %cst_30 = arith.constant dense<0.000000e+00> : vector<64x8xf32>
    %62 = tpu.matmul %43, %61, %cst_30 {dimension_numbers = #tpu.dot_dimension_numbers<[1], [0], [0], [1], [0, 0, 1, 1], [], []>} : vector<64x32xf32>, vector<32x8xf32>, vector<64x8xf32> -> vector<64x8xf32>
    %c0_31 = arith.constant 0 : index
    %c0_32 = arith.constant 0 : index
    %c0_33 = arith.constant 0 : index
    %63 = vector.load %arg6[%c0_31, %c0_32, %c0_33] : memref<2x32x8xf32, #tpu.memory_space<vmem>>, vector<1x32x8xf32>
    %64 = vector.shape_cast %63 : vector<1x32x8xf32> to vector<32x8xf32>
    %cst_34 = arith.constant dense<0.000000e+00> : vector<64x8xf32>
    %65 = tpu.matmul %43, %64, %cst_34 {dimension_numbers = #tpu.dot_dimension_numbers<[1], [0], [0], [1], [0, 0, 1, 1], [], []>} : vector<64x32xf32>, vector<32x8xf32>, vector<64x8xf32> -> vector<64x8xf32>
    %c0_35 = arith.constant 0 : index
    %c0_36 = arith.constant 0 : index
    %c0_37 = arith.constant 0 : index
    %66 = vector.load %arg9[%c0_35, %c0_36, %c0_37] : memref<2x8x32xf32, #tpu.memory_space<vmem>>, vector<1x8x32xf32>
    %67 = vector.shape_cast %66 : vector<1x8x32xf32> to vector<8x32xf32>
    %68 = vector.shape_cast %59 : vector<64x32xf32> to vector<64x1x32xf32>
    %69 = vector.shape_cast %67 : vector<8x32xf32> to vector<1x8x32xf32>
    %70 = vector.broadcast %68 : vector<64x1x32xf32> to vector<64x8x32xf32>
    %71 = vector.broadcast %69 : vector<1x8x32xf32> to vector<64x8x32xf32>
    %72 = arith.mulf %70, %71 : vector<64x8x32xf32>
    %73 = math.exp %72 : vector<64x8x32xf32>
    %c0_38 = arith.constant 0 : index
    %c0_39 = arith.constant 0 : index
    %c0_40 = arith.constant 0 : index
    %74 = vector.load %arg14[%c0_38, %c0_39, %c0_40] : memref<64x8x32xf32, #tpu.memory_space<vmem>>, vector<64x8x32xf32>
    tpu.vector_store %arg14[%c0_38, %c0_39, %c0_40], %73 {strides = array<i32>} : memref<64x8x32xf32, #tpu.memory_space<vmem>>, vector<64x8x32xf32>,
    %75 = vector.shape_cast %62 : vector<64x8xf32> to vector<64x8x1xf32>
    %76 = arith.mulf %59, %43 : vector<64x32xf32>
    %77 = vector.shape_cast %76 : vector<64x32xf32> to vector<64x1x32xf32>
    %78 = vector.broadcast %75 : vector<64x8x1xf32> to vector<64x8x32xf32>
    %79 = vector.broadcast %77 : vector<64x1x32xf32> to vector<64x8x32xf32>
    %80 = arith.mulf %78, %79 : vector<64x8x32xf32>
    %c0_41 = arith.constant 0 : index
    %c0_42 = arith.constant 0 : index
    %c0_43 = arith.constant 0 : index
    %81 = vector.load %arg15[%c0_41, %c0_42, %c0_43] : memref<64x8x32xf32, #tpu.memory_space<vmem>>, vector<64x8x32xf32>
    tpu.vector_store %arg15[%c0_41, %c0_42, %c0_43], %80 {strides = array<i32>} : memref<64x8x32xf32, #tpu.memory_space<vmem>>, vector<64x8x32xf32>,
    %c1 = arith.constant 1 : index
    %c0_44 = arith.constant 0 : index
    %c0_45 = arith.constant 0 : index
    %82 = vector.load %arg3[%c1, %c0_44, %c0_45] : memref<2x4x32xf32, #tpu.memory_space<vmem>>, vector<1x4x32xf32>
    %83 = vector.shape_cast %82 : vector<1x4x32xf32> to vector<4x32xf32>
    %c1_46 = arith.constant 1 : index
    %c0_47 = arith.constant 0 : index
    %c0_48 = arith.constant 0 : index
    %84 = vector.load %arg4[%c1_46, %c0_47, %c0_48] : memref<2x1x32xf32, #tpu.memory_space<vmem>>, vector<1x1x32xf32>
    %85 = vector.shape_cast %84 : vector<1x1x32xf32> to vector<1x32xf32>
    %cst_49 = arith.constant 1.000000e+00 : f32
    %86 = vector.broadcast %cst_49 : f32 to vector<64x32xf32>
    %87 = vector.broadcast %85 : vector<1x32xf32> to vector<64x32xf32>
    %88 = arith.mulf %87, %86 : vector<64x32xf32>
    %89 = vector.extract_strided_slice %1 {offsets = [3, 0], sizes = [61, 32], strides = [1, 1]} : vector<64x32xf32> to vector<61x32xf32>
    %cst_50 = arith.constant 0.000000e+00 : f32
    %90 = vector.broadcast %cst_50 : f32 to vector<3x32xf32>
    %91 = tpu.concatenate %89, %90 in 0 : vector<61x32xf32>, vector<3x32xf32> -> vector<64x32xf32>
    %92 = vector.extract_strided_slice %83 {offsets = [0, 0], sizes = [1, 32], strides = [1, 1]} : vector<4x32xf32> to vector<1x32xf32>
    %93 = vector.broadcast %92 : vector<1x32xf32> to vector<64x32xf32>
    %94 = arith.mulf %91, %93 : vector<64x32xf32>
    %95 = arith.addf %88, %94 : vector<64x32xf32>
    %96 = vector.extract_strided_slice %1 {offsets = [2, 0], sizes = [62, 32], strides = [1, 1]} : vector<64x32xf32> to vector<62x32xf32>
    %cst_51 = arith.constant 0.000000e+00 : f32
    %97 = vector.broadcast %cst_51 : f32 to vector<2x32xf32>
    %98 = tpu.concatenate %96, %97 in 0 : vector<62x32xf32>, vector<2x32xf32> -> vector<64x32xf32>
    %99 = vector.extract_strided_slice %83 {offsets = [1, 0], sizes = [1, 32], strides = [1, 1]} : vector<4x32xf32> to vector<1x32xf32>
    %100 = vector.broadcast %99 : vector<1x32xf32> to vector<64x32xf32>
    %101 = arith.mulf %98, %100 : vector<64x32xf32>
    %102 = arith.addf %95, %101 : vector<64x32xf32>
    %103 = vector.extract_strided_slice %1 {offsets = [1, 0], sizes = [63, 32], strides = [1, 1]} : vector<64x32xf32> to vector<63x32xf32>
    %cst_52 = arith.constant 0.000000e+00 : f32
    %104 = vector.broadcast %cst_52 : f32 to vector<1x32xf32>
    %105 = tpu.concatenate %103, %104 in 0 : vector<63x32xf32>, vector<1x32xf32> -> vector<64x32xf32>
    %106 = vector.extract_strided_slice %83 {offsets = [2, 0], sizes = [1, 32], strides = [1, 1]} : vector<4x32xf32> to vector<1x32xf32>
    %107 = vector.broadcast %106 : vector<1x32xf32> to vector<64x32xf32>
    %108 = arith.mulf %105, %107 : vector<64x32xf32>
    %109 = arith.addf %102, %108 : vector<64x32xf32>
    %110 = vector.extract_strided_slice %83 {offsets = [3, 0], sizes = [1, 32], strides = [1, 1]} : vector<4x32xf32> to vector<1x32xf32>
    %111 = vector.broadcast %110 : vector<1x32xf32> to vector<64x32xf32>
    %112 = arith.mulf %1, %111 : vector<64x32xf32>
    %113 = arith.addf %109, %112 : vector<64x32xf32>
    %cst_53 = arith.constant 0.000000e+00 : f32
    %114 = vector.broadcast %cst_53 : f32 to vector<64x32xf32>
    %115 = arith.subf %114, %113 : vector<64x32xf32>
    %116 = math.exp %115 : vector<64x32xf32>
    %cst_54 = arith.constant 1.000000e+00 : f32
    %117 = vector.broadcast %cst_54 : f32 to vector<64x32xf32>
    %118 = arith.addf %117, %116 : vector<64x32xf32>
    %cst_55 = arith.constant 1.000000e+00 : f32
    %119 = vector.broadcast %cst_55 : f32 to vector<64x32xf32>
    %120 = arith.divf %119, %118 : vector<64x32xf32>
    %121 = arith.mulf %113, %120 : vector<64x32xf32>
    %c1_56 = arith.constant 1 : index
    %c0_57 = arith.constant 0 : index
    %c0_58 = arith.constant 0 : index
    %122 = vector.load %arg7[%c1_56, %c0_57, %c0_58] : memref<2x32x32xf32, #tpu.memory_space<vmem>>, vector<1x32x32xf32>
    %123 = vector.shape_cast %122 : vector<1x32x32xf32> to vector<32x32xf32>
    %cst_59 = arith.constant dense<0.000000e+00> : vector<64x32xf32>
    %124 = tpu.matmul %121, %123, %cst_59 {dimension_numbers = #tpu.dot_dimension_numbers<[1], [0], [0], [1], [0, 0, 1, 1], [], []>} : vector<64x32xf32>, vector<32x32xf32>, vector<64x32xf32> -> vector<64x32xf32>
    %c1_60 = arith.constant 1 : index
    %c0_61 = arith.constant 0 : index
    %c0_62 = arith.constant 0 : index
    %125 = vector.load %arg8[%c1_60, %c0_61, %c0_62] : memref<2x1x32xf32, #tpu.memory_space<vmem>>, vector<1x1x32xf32>
    %126 = vector.shape_cast %125 : vector<1x1x32xf32> to vector<1x32xf32>
    %127 = vector.broadcast %126 : vector<1x32xf32> to vector<64x32xf32>
    %128 = arith.addf %124, %127 : vector<64x32xf32>
    %cst_63 = arith.constant 2.000000e+01 : f32
    %129 = vector.broadcast %cst_63 : f32 to vector<64x32xf32>
    %130 = arith.cmpf ogt, %128, %129 : vector<64x32xf32>
    %cst_64 = arith.constant 2.000000e+01 : f32
    %131 = vector.broadcast %cst_64 : f32 to vector<64x32xf32>
    %132 = arith.minimumf %128, %131 : vector<64x32xf32>
    %133 = math.exp %132 : vector<64x32xf32>
    %cst_65 = arith.constant 1.000000e+00 : f32
    %134 = vector.broadcast %cst_65 : f32 to vector<64x32xf32>
    %135 = arith.addf %134, %133 : vector<64x32xf32>
    %136 = math.log %135 : vector<64x32xf32>
    %137 = arith.select %130, %128, %136 : vector<64x32xi1>, vector<64x32xf32>
    %c1_66 = arith.constant 1 : index
    %c0_67 = arith.constant 0 : index
    %c0_68 = arith.constant 0 : index
    %138 = vector.load %arg5[%c1_66, %c0_67, %c0_68] : memref<2x32x8xf32, #tpu.memory_space<vmem>>, vector<1x32x8xf32>
    %139 = vector.shape_cast %138 : vector<1x32x8xf32> to vector<32x8xf32>
    %cst_69 = arith.constant dense<0.000000e+00> : vector<64x8xf32>
    %140 = tpu.matmul %121, %139, %cst_69 {dimension_numbers = #tpu.dot_dimension_numbers<[1], [0], [0], [1], [0, 0, 1, 1], [], []>} : vector<64x32xf32>, vector<32x8xf32>, vector<64x8xf32> -> vector<64x8xf32>
    %c1_70 = arith.constant 1 : index
    %c0_71 = arith.constant 0 : index
    %c0_72 = arith.constant 0 : index
    %141 = vector.load %arg6[%c1_70, %c0_71, %c0_72] : memref<2x32x8xf32, #tpu.memory_space<vmem>>, vector<1x32x8xf32>
    %142 = vector.shape_cast %141 : vector<1x32x8xf32> to vector<32x8xf32>
    %cst_73 = arith.constant dense<0.000000e+00> : vector<64x8xf32>
    %143 = tpu.matmul %121, %142, %cst_73 {dimension_numbers = #tpu.dot_dimension_numbers<[1], [0], [0], [1], [0, 0, 1, 1], [], []>} : vector<64x32xf32>, vector<32x8xf32>, vector<64x8xf32> -> vector<64x8xf32>
    %c1_74 = arith.constant 1 : index
    %c0_75 = arith.constant 0 : index
    %c0_76 = arith.constant 0 : index
    %144 = vector.load %arg9[%c1_74, %c0_75, %c0_76] : memref<2x8x32xf32, #tpu.memory_space<vmem>>, vector<1x8x32xf32>
    %145 = vector.shape_cast %144 : vector<1x8x32xf32> to vector<8x32xf32>
    %146 = vector.shape_cast %137 : vector<64x32xf32> to vector<64x1x32xf32>
    %147 = vector.shape_cast %145 : vector<8x32xf32> to vector<1x8x32xf32>
    %148 = vector.broadcast %146 : vector<64x1x32xf32> to vector<64x8x32xf32>
    %149 = vector.broadcast %147 : vector<1x8x32xf32> to vector<64x8x32xf32>
    %150 = arith.mulf %148, %149 : vector<64x8x32xf32>
    %151 = math.exp %150 : vector<64x8x32xf32>
    %c0_77 = arith.constant 0 : index
    %c0_78 = arith.constant 0 : index
    %c0_79 = arith.constant 0 : index
    %152 = vector.load %arg16[%c0_77, %c0_78, %c0_79] : memref<64x8x32xf32, #tpu.memory_space<vmem>>, vector<64x8x32xf32>
    tpu.vector_store %arg16[%c0_77, %c0_78, %c0_79], %151 {strides = array<i32>} : memref<64x8x32xf32, #tpu.memory_space<vmem>>, vector<64x8x32xf32>,
    %153 = vector.shape_cast %140 : vector<64x8xf32> to vector<64x8x1xf32>
    %154 = arith.mulf %137, %121 : vector<64x32xf32>
    %155 = vector.shape_cast %154 : vector<64x32xf32> to vector<64x1x32xf32>
    %156 = vector.broadcast %153 : vector<64x8x1xf32> to vector<64x8x32xf32>
    %157 = vector.broadcast %155 : vector<64x1x32xf32> to vector<64x8x32xf32>
    %158 = arith.mulf %156, %157 : vector<64x8x32xf32>
    %c0_80 = arith.constant 0 : index
    %c0_81 = arith.constant 0 : index
    %c0_82 = arith.constant 0 : index
    %159 = vector.load %arg17[%c0_80, %c0_81, %c0_82] : memref<64x8x32xf32, #tpu.memory_space<vmem>>, vector<64x8x32xf32>
    tpu.vector_store %arg17[%c0_80, %c0_81, %c0_82], %158 {strides = array<i32>} : memref<64x8x32xf32, #tpu.memory_space<vmem>>, vector<64x8x32xf32>,
    %cst_83 = arith.constant 0.000000e+00 : f32
    %160 = vector.broadcast %cst_83 : f32 to vector<8x32xf32>
    %c0_i32 = arith.constant 0 : i32
    %c8_i32 = arith.constant 8 : i32
    %161 = arith.addi %c0_i32, %c8_i32 : i32
    %c1_i32 = arith.constant 1 : i32
    %162:2 = scf.for %arg20 = %c0_i32 to %161 step %c1_i32 iter_args(%arg21 = %160, %arg22 = %160) -> (vector<8x32xf32>, vector<8x32xf32>)  : i32 {
      %c8_i32_115 = arith.constant 8 : i32
      %220 = arith.muli %arg20, %c8_i32_115 : i32
      %221 = tpu.assume_multiple %220, 8 : i32
      %c1_i32_116 = arith.constant 1 : i32
      %222 = arith.addi %arg20, %c1_i32_116 : i32
      %c8_i32_117 = arith.constant 8 : i32
      %223 = arith.muli %222, %c8_i32_117 : i32
      %c64_i32 = arith.constant 64 : i32
      %224 = arith.subi %c64_i32, %223 : i32
      %225 = tpu.assume_multiple %224, 8 : i32
      %226 = arith.index_cast %221 : i32 to index
      %c0_118 = arith.constant 0 : index
      %c0_119 = arith.constant 0 : index
      %227 = vector.load %arg14[%226, %c0_118, %c0_119] : memref<64x8x32xf32, #tpu.memory_space<vmem>>, vector<8x8x32xf32>
      %228 = arith.index_cast %221 : i32 to index
      %c0_120 = arith.constant 0 : index
      %c0_121 = arith.constant 0 : index
      %229 = vector.load %arg15[%228, %c0_120, %c0_121] : memref<64x8x32xf32, #tpu.memory_space<vmem>>, vector<8x8x32xf32>
      %230 = arith.index_cast %225 : i32 to index
      %c0_122 = arith.constant 0 : index
      %c0_123 = arith.constant 0 : index
      %231 = vector.load %arg16[%230, %c0_122, %c0_123] : memref<64x8x32xf32, #tpu.memory_space<vmem>>, vector<8x8x32xf32>
      %232 = arith.index_cast %225 : i32 to index
      %c0_124 = arith.constant 0 : index
      %c0_125 = arith.constant 0 : index
      %233 = vector.load %arg17[%232, %c0_124, %c0_125] : memref<64x8x32xf32, #tpu.memory_space<vmem>>, vector<8x8x32xf32>
      %234 = vector.extract_strided_slice %227 {offsets = [0, 0, 0], sizes = [1, 8, 32], strides = [1, 1, 1]} : vector<8x8x32xf32> to vector<1x8x32xf32>
      %235 = vector.shape_cast %234 : vector<1x8x32xf32> to vector<8x32xf32>
      %236 = arith.mulf %235, %arg21 : vector<8x32xf32>
      %237 = vector.extract_strided_slice %229 {offsets = [0, 0, 0], sizes = [1, 8, 32], strides = [1, 1, 1]} : vector<8x8x32xf32> to vector<1x8x32xf32>
      %238 = vector.shape_cast %237 : vector<1x8x32xf32> to vector<8x32xf32>
      %239 = arith.addf %236, %238 : vector<8x32xf32>
      %240 = vector.extract_strided_slice %231 {offsets = [7, 0, 0], sizes = [1, 8, 32], strides = [1, 1, 1]} : vector<8x8x32xf32> to vector<1x8x32xf32>
      %241 = vector.shape_cast %240 : vector<1x8x32xf32> to vector<8x32xf32>
      %242 = arith.mulf %241, %arg22 : vector<8x32xf32>
      %243 = vector.extract_strided_slice %233 {offsets = [7, 0, 0], sizes = [1, 8, 32], strides = [1, 1, 1]} : vector<8x8x32xf32> to vector<1x8x32xf32>
      %244 = vector.shape_cast %243 : vector<1x8x32xf32> to vector<8x32xf32>
      %245 = arith.addf %242, %244 : vector<8x32xf32>
      %246 = vector.extract_strided_slice %227 {offsets = [1, 0, 0], sizes = [1, 8, 32], strides = [1, 1, 1]} : vector<8x8x32xf32> to vector<1x8x32xf32>
      %247 = vector.shape_cast %246 : vector<1x8x32xf32> to vector<8x32xf32>
      %248 = arith.mulf %247, %239 : vector<8x32xf32>
      %249 = vector.extract_strided_slice %229 {offsets = [1, 0, 0], sizes = [1, 8, 32], strides = [1, 1, 1]} : vector<8x8x32xf32> to vector<1x8x32xf32>
      %250 = vector.shape_cast %249 : vector<1x8x32xf32> to vector<8x32xf32>
      %251 = arith.addf %248, %250 : vector<8x32xf32>
      %252 = vector.extract_strided_slice %231 {offsets = [6, 0, 0], sizes = [1, 8, 32], strides = [1, 1, 1]} : vector<8x8x32xf32> to vector<1x8x32xf32>
      %253 = vector.shape_cast %252 : vector<1x8x32xf32> to vector<8x32xf32>
      %254 = arith.mulf %253, %245 : vector<8x32xf32>
      %255 = vector.extract_strided_slice %233 {offsets = [6, 0, 0], sizes = [1, 8, 32], strides = [1, 1, 1]} : vector<8x8x32xf32> to vector<1x8x32xf32>
      %256 = vector.shape_cast %255 : vector<1x8x32xf32> to vector<8x32xf32>
      %257 = arith.addf %254, %256 : vector<8x32xf32>
      %258 = vector.extract_strided_slice %227 {offsets = [2, 0, 0], sizes = [1, 8, 32], strides = [1, 1, 1]} : vector<8x8x32xf32> to vector<1x8x32xf32>
      %259 = vector.shape_cast %258 : vector<1x8x32xf32> to vector<8x32xf32>
      %260 = arith.mulf %259, %251 : vector<8x32xf32>
      %261 = vector.extract_strided_slice %229 {offsets = [2, 0, 0], sizes = [1, 8, 32], strides = [1, 1, 1]} : vector<8x8x32xf32> to vector<1x8x32xf32>
      %262 = vector.shape_cast %261 : vector<1x8x32xf32> to vector<8x32xf32>
      %263 = arith.addf %260, %262 : vector<8x32xf32>
      %264 = vector.extract_strided_slice %231 {offsets = [5, 0, 0], sizes = [1, 8, 32], strides = [1, 1, 1]} : vector<8x8x32xf32> to vector<1x8x32xf32>
      %265 = vector.shape_cast %264 : vector<1x8x32xf32> to vector<8x32xf32>
      %266 = arith.mulf %265, %257 : vector<8x32xf32>
      %267 = vector.extract_strided_slice %233 {offsets = [5, 0, 0], sizes = [1, 8, 32], strides = [1, 1, 1]} : vector<8x8x32xf32> to vector<1x8x32xf32>
      %268 = vector.shape_cast %267 : vector<1x8x32xf32> to vector<8x32xf32>
      %269 = arith.addf %266, %268 : vector<8x32xf32>
      %270 = vector.extract_strided_slice %227 {offsets = [3, 0, 0], sizes = [1, 8, 32], strides = [1, 1, 1]} : vector<8x8x32xf32> to vector<1x8x32xf32>
      %271 = vector.shape_cast %270 : vector<1x8x32xf32> to vector<8x32xf32>
      %272 = arith.mulf %271, %263 : vector<8x32xf32>
      %273 = vector.extract_strided_slice %229 {offsets = [3, 0, 0], sizes = [1, 8, 32], strides = [1, 1, 1]} : vector<8x8x32xf32> to vector<1x8x32xf32>
      %274 = vector.shape_cast %273 : vector<1x8x32xf32> to vector<8x32xf32>
      %275 = arith.addf %272, %274 : vector<8x32xf32>
      %276 = vector.extract_strided_slice %231 {offsets = [4, 0, 0], sizes = [1, 8, 32], strides = [1, 1, 1]} : vector<8x8x32xf32> to vector<1x8x32xf32>
      %277 = vector.shape_cast %276 : vector<1x8x32xf32> to vector<8x32xf32>
      %278 = arith.mulf %277, %269 : vector<8x32xf32>
      %279 = vector.extract_strided_slice %233 {offsets = [4, 0, 0], sizes = [1, 8, 32], strides = [1, 1, 1]} : vector<8x8x32xf32> to vector<1x8x32xf32>
      %280 = vector.shape_cast %279 : vector<1x8x32xf32> to vector<8x32xf32>
      %281 = arith.addf %278, %280 : vector<8x32xf32>
      %282 = vector.extract_strided_slice %227 {offsets = [4, 0, 0], sizes = [1, 8, 32], strides = [1, 1, 1]} : vector<8x8x32xf32> to vector<1x8x32xf32>
      %283 = vector.shape_cast %282 : vector<1x8x32xf32> to vector<8x32xf32>
      %284 = arith.mulf %283, %275 : vector<8x32xf32>
      %285 = vector.extract_strided_slice %229 {offsets = [4, 0, 0], sizes = [1, 8, 32], strides = [1, 1, 1]} : vector<8x8x32xf32> to vector<1x8x32xf32>
      %286 = vector.shape_cast %285 : vector<1x8x32xf32> to vector<8x32xf32>
      %287 = arith.addf %284, %286 : vector<8x32xf32>
      %288 = vector.extract_strided_slice %231 {offsets = [3, 0, 0], sizes = [1, 8, 32], strides = [1, 1, 1]} : vector<8x8x32xf32> to vector<1x8x32xf32>
      %289 = vector.shape_cast %288 : vector<1x8x32xf32> to vector<8x32xf32>
      %290 = arith.mulf %289, %281 : vector<8x32xf32>
      %291 = vector.extract_strided_slice %233 {offsets = [3, 0, 0], sizes = [1, 8, 32], strides = [1, 1, 1]} : vector<8x8x32xf32> to vector<1x8x32xf32>
      %292 = vector.shape_cast %291 : vector<1x8x32xf32> to vector<8x32xf32>
      %293 = arith.addf %290, %292 : vector<8x32xf32>
      %294 = vector.extract_strided_slice %227 {offsets = [5, 0, 0], sizes = [1, 8, 32], strides = [1, 1, 1]} : vector<8x8x32xf32> to vector<1x8x32xf32>
      %295 = vector.shape_cast %294 : vector<1x8x32xf32> to vector<8x32xf32>
      %296 = arith.mulf %295, %287 : vector<8x32xf32>
      %297 = vector.extract_strided_slice %229 {offsets = [5, 0, 0], sizes = [1, 8, 32], strides = [1, 1, 1]} : vector<8x8x32xf32> to vector<1x8x32xf32>
      %298 = vector.shape_cast %297 : vector<1x8x32xf32> to vector<8x32xf32>
      %299 = arith.addf %296, %298 : vector<8x32xf32>
      %300 = vector.extract_strided_slice %231 {offsets = [2, 0, 0], sizes = [1, 8, 32], strides = [1, 1, 1]} : vector<8x8x32xf32> to vector<1x8x32xf32>
      %301 = vector.shape_cast %300 : vector<1x8x32xf32> to vector<8x32xf32>
      %302 = arith.mulf %301, %293 : vector<8x32xf32>
      %303 = vector.extract_strided_slice %233 {offsets = [2, 0, 0], sizes = [1, 8, 32], strides = [1, 1, 1]} : vector<8x8x32xf32> to vector<1x8x32xf32>
      %304 = vector.shape_cast %303 : vector<1x8x32xf32> to vector<8x32xf32>
      %305 = arith.addf %302, %304 : vector<8x32xf32>
      %306 = vector.extract_strided_slice %227 {offsets = [6, 0, 0], sizes = [1, 8, 32], strides = [1, 1, 1]} : vector<8x8x32xf32> to vector<1x8x32xf32>
      %307 = vector.shape_cast %306 : vector<1x8x32xf32> to vector<8x32xf32>
      %308 = arith.mulf %307, %299 : vector<8x32xf32>
      %309 = vector.extract_strided_slice %229 {offsets = [6, 0, 0], sizes = [1, 8, 32], strides = [1, 1, 1]} : vector<8x8x32xf32> to vector<1x8x32xf32>
      %310 = vector.shape_cast %309 : vector<1x8x32xf32> to vector<8x32xf32>
      %311 = arith.addf %308, %310 : vector<8x32xf32>
      %312 = vector.extract_strided_slice %231 {offsets = [1, 0, 0], sizes = [1, 8, 32], strides = [1, 1, 1]} : vector<8x8x32xf32> to vector<1x8x32xf32>
      %313 = vector.shape_cast %312 : vector<1x8x32xf32> to vector<8x32xf32>
      %314 = arith.mulf %313, %305 : vector<8x32xf32>
      %315 = vector.extract_strided_slice %233 {offsets = [1, 0, 0], sizes = [1, 8, 32], strides = [1, 1, 1]} : vector<8x8x32xf32> to vector<1x8x32xf32>
      %316 = vector.shape_cast %315 : vector<1x8x32xf32> to vector<8x32xf32>
      %317 = arith.addf %314, %316 : vector<8x32xf32>
      %318 = vector.extract_strided_slice %227 {offsets = [7, 0, 0], sizes = [1, 8, 32], strides = [1, 1, 1]} : vector<8x8x32xf32> to vector<1x8x32xf32>
      %319 = vector.shape_cast %318 : vector<1x8x32xf32> to vector<8x32xf32>
      %320 = arith.mulf %319, %311 : vector<8x32xf32>
      %321 = vector.extract_strided_slice %229 {offsets = [7, 0, 0], sizes = [1, 8, 32], strides = [1, 1, 1]} : vector<8x8x32xf32> to vector<1x8x32xf32>
      %322 = vector.shape_cast %321 : vector<1x8x32xf32> to vector<8x32xf32>
      %323 = arith.addf %320, %322 : vector<8x32xf32>
      %324 = vector.extract_strided_slice %231 {offsets = [0, 0, 0], sizes = [1, 8, 32], strides = [1, 1, 1]} : vector<8x8x32xf32> to vector<1x8x32xf32>
      %325 = vector.shape_cast %324 : vector<1x8x32xf32> to vector<8x32xf32>
      %326 = arith.mulf %325, %317 : vector<8x32xf32>
      %327 = vector.extract_strided_slice %233 {offsets = [0, 0, 0], sizes = [1, 8, 32], strides = [1, 1, 1]} : vector<8x8x32xf32> to vector<1x8x32xf32>
      %328 = vector.shape_cast %327 : vector<1x8x32xf32> to vector<8x32xf32>
      %329 = arith.addf %326, %328 : vector<8x32xf32>
      %330 = vector.shape_cast %239 : vector<8x32xf32> to vector<1x8x32xf32>
      %331 = vector.shape_cast %251 : vector<8x32xf32> to vector<1x8x32xf32>
      %332 = vector.shape_cast %263 : vector<8x32xf32> to vector<1x8x32xf32>
      %333 = vector.shape_cast %275 : vector<8x32xf32> to vector<1x8x32xf32>
      %334 = vector.shape_cast %287 : vector<8x32xf32> to vector<1x8x32xf32>
      %335 = vector.shape_cast %299 : vector<8x32xf32> to vector<1x8x32xf32>
      %336 = vector.shape_cast %311 : vector<8x32xf32> to vector<1x8x32xf32>
      %337 = vector.shape_cast %323 : vector<8x32xf32> to vector<1x8x32xf32>
      %338 = tpu.concatenate %330, %331, %332, %333, %334, %335, %336, %337 in 0 : vector<1x8x32xf32>, vector<1x8x32xf32>, vector<1x8x32xf32>, vector<1x8x32xf32>, vector<1x8x32xf32>, vector<1x8x32xf32>, vector<1x8x32xf32>, vector<1x8x32xf32> -> vector<8x8x32xf32>
      %339 = arith.index_cast %221 : i32 to index
      %c0_126 = arith.constant 0 : index
      %c0_127 = arith.constant 0 : index
      %340 = vector.load %arg18[%339, %c0_126, %c0_127] : memref<64x8x32xf32, #tpu.memory_space<vmem>>, vector<8x8x32xf32>
      tpu.vector_store %arg18[%339, %c0_126, %c0_127], %338 {strides = array<i32>} : memref<64x8x32xf32, #tpu.memory_space<vmem>>, vector<8x8x32xf32>,
      %341 = vector.shape_cast %329 : vector<8x32xf32> to vector<1x8x32xf32>
      %342 = vector.shape_cast %317 : vector<8x32xf32> to vector<1x8x32xf32>
      %343 = vector.shape_cast %305 : vector<8x32xf32> to vector<1x8x32xf32>
      %344 = vector.shape_cast %293 : vector<8x32xf32> to vector<1x8x32xf32>
      %345 = vector.shape_cast %281 : vector<8x32xf32> to vector<1x8x32xf32>
      %346 = vector.shape_cast %269 : vector<8x32xf32> to vector<1x8x32xf32>
      %347 = vector.shape_cast %257 : vector<8x32xf32> to vector<1x8x32xf32>
      %348 = vector.shape_cast %245 : vector<8x32xf32> to vector<1x8x32xf32>
      %349 = tpu.concatenate %341, %342, %343, %344, %345, %346, %347, %348 in 0 : vector<1x8x32xf32>, vector<1x8x32xf32>, vector<1x8x32xf32>, vector<1x8x32xf32>, vector<1x8x32xf32>, vector<1x8x32xf32>, vector<1x8x32xf32>, vector<1x8x32xf32> -> vector<8x8x32xf32>
      %350 = arith.index_cast %225 : i32 to index
      %c0_128 = arith.constant 0 : index
      %c0_129 = arith.constant 0 : index
      %351 = vector.load %arg19[%350, %c0_128, %c0_129] : memref<64x8x32xf32, #tpu.memory_space<vmem>>, vector<8x8x32xf32>
      tpu.vector_store %arg19[%350, %c0_128, %c0_129], %349 {strides = array<i32>} : memref<64x8x32xf32, #tpu.memory_space<vmem>>, vector<8x8x32xf32>,
      scf.yield %323, %329 : vector<8x32xf32>, vector<8x32xf32>
    }
    %c8_i32_84 = arith.constant 8 : i32
    %c0_85 = arith.constant 0 : index
    %c0_86 = arith.constant 0 : index
    %c0_87 = arith.constant 0 : index
    %163 = vector.load %arg18[%c0_85, %c0_86, %c0_87] : memref<64x8x32xf32, #tpu.memory_space<vmem>>, vector<64x8x32xf32>
    %164 = vector.shape_cast %65 : vector<64x8xf32> to vector<64x8x1xf32>
    %165 = vector.broadcast %164 : vector<64x8x1xf32> to vector<64x8x32xf32>
    %166 = arith.mulf %163, %165 : vector<64x8x32xf32>
    %cst_88 = arith.constant dense<0.000000e+00> : vector<64x32xf32>
    %167 = vector.multi_reduction <add>, %166, %cst_88 [1] : vector<64x8x32xf32> to vector<64x32xf32>
    %c0_89 = arith.constant 0 : index
    %c0_90 = arith.constant 0 : index
    %c0_91 = arith.constant 0 : index
    %168 = vector.load %arg10[%c0_89, %c0_90, %c0_91] : memref<2x1x32xf32, #tpu.memory_space<vmem>>, vector<1x1x32xf32>
    %169 = vector.shape_cast %168 : vector<1x1x32xf32> to vector<1x32xf32>
    %170 = vector.broadcast %169 : vector<1x32xf32> to vector<64x32xf32>
    %171 = arith.mulf %170, %43 : vector<64x32xf32>
    %172 = arith.addf %167, %171 : vector<64x32xf32>
    %c0_92 = arith.constant 0 : index
    %c0_93 = arith.constant 0 : index
    %c0_94 = arith.constant 0 : index
    %173 = vector.load %arg19[%c0_92, %c0_93, %c0_94] : memref<64x8x32xf32, #tpu.memory_space<vmem>>, vector<64x8x32xf32>
    %174 = vector.shape_cast %143 : vector<64x8xf32> to vector<64x8x1xf32>
    %175 = vector.broadcast %174 : vector<64x8x1xf32> to vector<64x8x32xf32>
    %176 = arith.mulf %173, %175 : vector<64x8x32xf32>
    %cst_95 = arith.constant dense<0.000000e+00> : vector<64x32xf32>
    %177 = vector.multi_reduction <add>, %176, %cst_95 [1] : vector<64x8x32xf32> to vector<64x32xf32>
    %c1_96 = arith.constant 1 : index
    %c0_97 = arith.constant 0 : index
    %c0_98 = arith.constant 0 : index
    %178 = vector.load %arg10[%c1_96, %c0_97, %c0_98] : memref<2x1x32xf32, #tpu.memory_space<vmem>>, vector<1x1x32xf32>
    %179 = vector.shape_cast %178 : vector<1x1x32xf32> to vector<1x32xf32>
    %180 = vector.broadcast %179 : vector<1x32xf32> to vector<64x32xf32>
    %181 = arith.mulf %180, %121 : vector<64x32xf32>
    %182 = arith.addf %177, %181 : vector<64x32xf32>
    %183 = arith.addf %172, %182 : vector<64x32xf32>
    %cst_99 = arith.constant 5.000000e-01 : f32
    %184 = vector.broadcast %cst_99 : f32 to vector<64x32xf32>
    %185 = arith.mulf %184, %183 : vector<64x32xf32>
    %cst_100 = arith.constant 0.000000e+00 : f32
    %186 = vector.broadcast %cst_100 : f32 to vector<64x32xf32>
    %187 = arith.subf %186, %3 : vector<64x32xf32>
    %188 = math.exp %187 : vector<64x32xf32>
    %cst_101 = arith.constant 1.000000e+00 : f32
    %189 = vector.broadcast %cst_101 : f32 to vector<64x32xf32>
    %190 = arith.addf %189, %188 : vector<64x32xf32>
    %cst_102 = arith.constant 1.000000e+00 : f32
    %191 = vector.broadcast %cst_102 : f32 to vector<64x32xf32>
    %192 = arith.divf %191, %190 : vector<64x32xf32>
    %193 = arith.mulf %3, %192 : vector<64x32xf32>
    %194 = arith.mulf %185, %193 : vector<64x32xf32>
    %cst_103 = arith.constant dense<0.000000e+00> : vector<64xf32>
    %195 = vector.multi_reduction <add>, %194, %cst_103 [1] : vector<64x32xf32> to vector<64xf32>
    %196 = vector.shape_cast %195 : vector<64xf32> to vector<64x1xf32>
    %cst_104 = arith.constant 3.200000e+01 : f32
    %197 = vector.broadcast %cst_104 : f32 to vector<64x1xf32>
    %198 = arith.divf %196, %197 : vector<64x1xf32>
    %199 = vector.broadcast %198 : vector<64x1xf32> to vector<64x32xf32>
    %200 = arith.subf %194, %199 : vector<64x32xf32>
    %201 = arith.mulf %200, %200 : vector<64x32xf32>
    %cst_105 = arith.constant dense<0.000000e+00> : vector<64xf32>
    %202 = vector.multi_reduction <add>, %201, %cst_105 [1] : vector<64x32xf32> to vector<64xf32>
    %203 = vector.shape_cast %202 : vector<64xf32> to vector<64x1xf32>
    %cst_106 = arith.constant 3.200000e+01 : f32
    %204 = vector.broadcast %cst_106 : f32 to vector<64x1xf32>
    %205 = arith.divf %203, %204 : vector<64x1xf32>
    %cst_107 = arith.constant 9.99999974E-6 : f32
    %206 = vector.broadcast %cst_107 : f32 to vector<64x1xf32>
    %207 = arith.addf %205, %206 : vector<64x1xf32>
    %208 = math.rsqrt %207 : vector<64x1xf32>
    %209 = vector.broadcast %208 : vector<64x1xf32> to vector<64x32xf32>
    %210 = arith.mulf %200, %209 : vector<64x32xf32>
    %c0_108 = arith.constant 0 : index
    %c0_109 = arith.constant 0 : index
    %211 = vector.load %arg11[%c0_108, %c0_109] : memref<1x32xf32, #tpu.memory_space<vmem>>, vector<1x32xf32>
    %212 = vector.broadcast %211 : vector<1x32xf32> to vector<64x32xf32>
    %213 = arith.mulf %210, %212 : vector<64x32xf32>
    %c0_110 = arith.constant 0 : index
    %c0_111 = arith.constant 0 : index
    %214 = vector.load %arg12[%c0_110, %c0_111] : memref<1x32xf32, #tpu.memory_space<vmem>>, vector<1x32xf32>
    %215 = vector.broadcast %214 : vector<1x32xf32> to vector<64x32xf32>
    %216 = arith.addf %213, %215 : vector<64x32xf32>
    %c0_112 = arith.constant 0 : index
    %c0_113 = arith.constant 0 : index
    %c0_114 = arith.constant 0 : index
    %217 = vector.load %arg13[%c0_112, %c0_113, %c0_114] : memref<1x64x32xf32, #tpu.memory_space<vmem>>, vector<1x64x32xf32>
    %218 = vector.shape_cast %217 : vector<1x64x32xf32> to vector<64x32xf32>
    %219 = vector.shape_cast %216 : vector<64x32xf32> to vector<1x64x32xf32>
    tpu.vector_store %arg13[%c0_112, %c0_113, %c0_114], %219 {strides = array<i32>} : memref<1x64x32xf32, #tpu.memory_space<vmem>>, vector<1x64x32xf32>,
    return
  }
  func.func @transform_0(%arg0: i32) -> (i32, i32, i32) {
    %c0_i32 = arith.constant 0 : i32
    %c0_i32_0 = arith.constant 0 : i32
    %c0_i32_1 = arith.constant 0 : i32
    return %arg0, %c0_i32, %c0_i32_0 : i32, i32, i32
  }
  func.func @transform_1(%arg0: i32) -> (i32, i32, i32) {
    %c0_i32 = arith.constant 0 : i32
    %c0_i32_0 = arith.constant 0 : i32
    %c0_i32_1 = arith.constant 0 : i32
    return %arg0, %c0_i32, %c0_i32_0 : i32, i32, i32
  }
  func.func @transform_2(%arg0: i32) -> (i32, i32, i32) {
    %c0_i32 = arith.constant 0 : i32
    %c0_i32_0 = arith.constant 0 : i32
    %c0_i32_1 = arith.constant 0 : i32
    %c0_i32_2 = arith.constant 0 : i32
    return %c0_i32, %c0_i32_0, %c0_i32_1 : i32, i32, i32
  }
  func.func @transform_3(%arg0: i32) -> (i32, i32, i32) {
    %c0_i32 = arith.constant 0 : i32
    %c0_i32_0 = arith.constant 0 : i32
    %c0_i32_1 = arith.constant 0 : i32
    %c0_i32_2 = arith.constant 0 : i32
    return %c0_i32, %c0_i32_0, %c0_i32_1 : i32, i32, i32
  }
  func.func @transform_4(%arg0: i32) -> (i32, i32, i32) {
    %c0_i32 = arith.constant 0 : i32
    %c0_i32_0 = arith.constant 0 : i32
    %c0_i32_1 = arith.constant 0 : i32
    %c0_i32_2 = arith.constant 0 : i32
    return %c0_i32, %c0_i32_0, %c0_i32_1 : i32, i32, i32
  }
  func.func @transform_5(%arg0: i32) -> (i32, i32, i32) {
    %c0_i32 = arith.constant 0 : i32
    %c0_i32_0 = arith.constant 0 : i32
    %c0_i32_1 = arith.constant 0 : i32
    %c0_i32_2 = arith.constant 0 : i32
    return %c0_i32, %c0_i32_0, %c0_i32_1 : i32, i32, i32
  }
  func.func @transform_6(%arg0: i32) -> (i32, i32, i32) {
    %c0_i32 = arith.constant 0 : i32
    %c0_i32_0 = arith.constant 0 : i32
    %c0_i32_1 = arith.constant 0 : i32
    %c0_i32_2 = arith.constant 0 : i32
    return %c0_i32, %c0_i32_0, %c0_i32_1 : i32, i32, i32
  }
  func.func @transform_7(%arg0: i32) -> (i32, i32, i32) {
    %c0_i32 = arith.constant 0 : i32
    %c0_i32_0 = arith.constant 0 : i32
    %c0_i32_1 = arith.constant 0 : i32
    %c0_i32_2 = arith.constant 0 : i32
    return %c0_i32, %c0_i32_0, %c0_i32_1 : i32, i32, i32
  }
  func.func @transform_8(%arg0: i32) -> (i32, i32, i32) {
    %c0_i32 = arith.constant 0 : i32
    %c0_i32_0 = arith.constant 0 : i32
    %c0_i32_1 = arith.constant 0 : i32
    %c0_i32_2 = arith.constant 0 : i32
    return %c0_i32, %c0_i32_0, %c0_i32_1 : i32, i32, i32
  }
  func.func @transform_9(%arg0: i32) -> (i32, i32, i32) {
    %c0_i32 = arith.constant 0 : i32
    %c0_i32_0 = arith.constant 0 : i32
    %c0_i32_1 = arith.constant 0 : i32
    %c0_i32_2 = arith.constant 0 : i32
    return %c0_i32, %c0_i32_0, %c0_i32_1 : i32, i32, i32
  }
  func.func @transform_10(%arg0: i32) -> (i32, i32) {
    %c0_i32 = arith.constant 0 : i32
    %c0_i32_0 = arith.constant 0 : i32
    %c0_i32_1 = arith.constant 0 : i32
    return %c0_i32, %c0_i32_0 : i32, i32
  }
  func.func @transform_11(%arg0: i32) -> (i32, i32) {
    %c0_i32 = arith.constant 0 : i32
    %c0_i32_0 = arith.constant 0 : i32
    %c0_i32_1 = arith.constant 0 : i32
    return %c0_i32, %c0_i32_0 : i32, i32
  }
  func.func @transform_12(%arg0: i32) -> (i32, i32, i32) {
    %c0_i32 = arith.constant 0 : i32
    %c0_i32_0 = arith.constant 0 : i32
    %c0_i32_1 = arith.constant 0 : i32
    return %arg0, %c0_i32, %c0_i32_0 : i32, i32, i32
  }
}

module attributes {stable_mosaic.version = 11 : i64} {
  func.func @outproj_res_kernel(%arg0: i32, %arg1: memref<128x32xf32, #tpu.memory_space<vmem>>, %arg2: memref<32x32xf32, #tpu.memory_space<vmem>>, %arg3: memref<128x32xf32, #tpu.memory_space<vmem>>, %arg4: memref<128x32xf32, #tpu.memory_space<vmem>>) attributes {dimension_semantics = [#tpu.dimension_semantics<parallel>], iteration_bounds = array<i64: 1>, scalar_prefetch = 0 : i64, scratch_operands = 0 : i64, tpu.core_type = #tpu.core_type<tc>, window_params = [{transform_indices = @transform_0, window_bounds = array<i64: 128, 32>}, {pipeline_mode = #tpu.pipeline_mode<synchronous>, transform_indices = @transform_1, window_bounds = array<i64: 32, 32>}, {transform_indices = @transform_2, window_bounds = array<i64: 128, 32>}, {transform_indices = @transform_3, window_bounds = array<i64: 128, 32>}]} {
    %c0 = arith.constant 0 : index
    %c0_0 = arith.constant 0 : index
    %0 = vector.load %arg1[%c0, %c0_0] : memref<128x32xf32, #tpu.memory_space<vmem>>, vector<128x32xf32>
    %c0_1 = arith.constant 0 : index
    %c0_2 = arith.constant 0 : index
    %1 = vector.load %arg2[%c0_1, %c0_2] : memref<32x32xf32, #tpu.memory_space<vmem>>, vector<32x32xf32>
    %cst = arith.constant dense<0.000000e+00> : vector<128x32xf32>
    %2 = tpu.matmul %0, %1, %cst {dimension_numbers = #tpu.dot_dimension_numbers<[1], [0], [0], [1], [0, 0, 1, 1], [], []>} : vector<128x32xf32>, vector<32x32xf32>, vector<128x32xf32> -> vector<128x32xf32>
    %c0_3 = arith.constant 0 : index
    %c0_4 = arith.constant 0 : index
    %3 = vector.load %arg3[%c0_3, %c0_4] : memref<128x32xf32, #tpu.memory_space<vmem>>, vector<128x32xf32>
    %4 = arith.addf %2, %3 : vector<128x32xf32>
    %c0_5 = arith.constant 0 : index
    %c0_6 = arith.constant 0 : index
    %5 = vector.load %arg4[%c0_5, %c0_6] : memref<128x32xf32, #tpu.memory_space<vmem>>, vector<128x32xf32>
    tpu.vector_store %arg4[%c0_5, %c0_6], %4 {strides = array<i32>} : memref<128x32xf32, #tpu.memory_space<vmem>>, vector<128x32xf32>,
    return
  }
  func.func @transform_0(%arg0: i32) -> (i32, i32) {
    %c0_i32 = arith.constant 0 : i32
    %c0_i32_0 = arith.constant 0 : i32
    return %arg0, %c0_i32 : i32, i32
  }
  func.func @transform_1(%arg0: i32) -> (i32, i32) {
    %c0_i32 = arith.constant 0 : i32
    %c0_i32_0 = arith.constant 0 : i32
    %c0_i32_1 = arith.constant 0 : i32
    return %c0_i32, %c0_i32_0 : i32, i32
  }
  func.func @transform_2(%arg0: i32) -> (i32, i32) {
    %c0_i32 = arith.constant 0 : i32
    %c0_i32_0 = arith.constant 0 : i32
    return %arg0, %c0_i32 : i32, i32
  }
  func.func @transform_3(%arg0: i32) -> (i32, i32) {
    %c0_i32 = arith.constant 0 : i32
    %c0_i32_0 = arith.constant 0 : i32
    return %arg0, %c0_i32 : i32, i32
  }
}

</mosaic_0001>

<bundles_post_ra>
// kernel: single_mamba_block.5
= control target key start
LH: loop header
LB: loop body
LE: loop exit
PB: predicated region body
PF: predicated region fallthrough
CT: control target
= control target key end

     0   :  { %vm50_vm0 = vcmask 261120   ;;  %s420_s1 = inlined_call_operand.vmem [shape: f32[32,32], index: 1, kind: input, shape index: {}]   ;;  %s421_s0 = inlined_call_operand.vmem [shape: f32[128,32], index: 0, kind: input, shape index: {}]   ;;  %s422_s2 = inlined_call_operand.vmem [shape: f32[128,32], index: 2, kind: input, shape index: {}]   ;;  %s423_s3 = inlined_call_operand.vmem [shape: f32[128,32], index: 3, kind: output, shape index: {}]  }
   0x1   :  { %v33_v0 = vld [vmem:[%s420_s1 + $0x18] sm:$0xff]  ;;  %v32_v1 = vld [vmem:[%s420_s1 + $0x10] sm:$0xff]  ;;  %v31_v2 = vld [vmem:[%s420_s1 + $0x8] sm:$0xff] }
   0x2   :  { %201 = vmatpush.msra.mxu2 %v33_v0  ;;  %202 = vmatpush.msra.mxu3 %v33_v0  ;;  %v30_v3 = vld [vmem:[%s420_s1] sm:$0xff]  ;;  %v23_v8 = vld [vmem:[%s421_s0 + $0x48] sm:$0xff]  ;;  %v24_v12 = vld [vmem:[%s421_s0 + $0x50] sm:$0xff] }
   0x3   :  { %111 = vmatpush.msra.mxu0 %v33_v0  ;;  %200 = vmatpush.msra.mxu1 %v33_v0  ;;  %v22_v4 = vld [vmem:[%s421_s0 + $0x40] sm:$0xff]  ;;  %v27_v9 = vld [vmem:[%s421_s0 + $0x68] sm:$0xff]  ;;  %v28_v13 = vld [vmem:[%s421_s0 + $0x70] sm:$0xff] }
   0x4   :  { %204 = vmatpush.msra.mxu2 %v32_v1  ;;  %205 = vmatpush.msra.mxu3 %v32_v1  ;;  %v26_v5 = vld [vmem:[%s421_s0 + $0x60] sm:$0xff]  ;;  %v15_v10 = vld [vmem:[%s421_s0 + $0x8] sm:$0xff]  ;;  %v16_v14 = vld [vmem:[%s421_s0 + $0x10] sm:$0xff] }
   0x5   :  { %112 = vmatpush.msra.mxu0 %v32_v1  ;;  %203 = vmatpush.msra.mxu1 %v32_v1  ;;  %v14_v6 = vld [vmem:[%s421_s0] sm:$0xff]  ;;  %v19_v11 = vld [vmem:[%s421_s0 + $0x28] sm:$0xff]  ;;  %v20_v15 = vld [vmem:[%s421_s0 + $0x30] sm:$0xff] }
   0x6   :  { %207 = vmatpush.msra.mxu2 %v31_v2  ;;  %208 = vmatpush.msra.mxu3 %v31_v2  ;;  %v18_v7 = vld [vmem:[%s421_s0 + $0x20] sm:$0xff]  ;;  %v25_v16 = vld [vmem:[%s421_s0 + $0x58] sm:$0xff]  ;;  %v35_v32 = vld [vmem:[%s422_s2 + $0x8] sm:$0xff] }
   0x7   :  { %113 = vmatpush.msra.mxu0 %v31_v2  ;;  %206 = vmatpush.msra.mxu1 %v31_v2  ;;  %v29_v17 = vld [vmem:[%s421_s0 + $0x78] sm:$0xff]  ;;  %v34_v20 = vld [vmem:[%s422_s2] sm:$0xff]  ;;  %v39_v33 = vld [vmem:[%s422_s2 + $0x28] sm:$0xff] }
   0x8   :  { %210 = vmatpush.msra.mxu2 %v30_v3  ;;  %211 = vmatpush.msra.mxu3 %v30_v3  ;;  %v17_v18 = vld [vmem:[%s421_s0 + $0x18] sm:$0xff]  ;;  %v38_v21 = vld [vmem:[%s422_s2 + $0x20] sm:$0xff]  ;;  %v43_v38 = vld [vmem:[%s422_s2 + $0x48] sm:$0xff] }
   0x9   :  { %192 = vmatmul.msk.f32.vlgmr.msra.gmra.mxu2 %vm50_vm0, %v22_v4  ;;  %196 = vmatmul.msk.f32.vlgmr.msra.gmra.mxu3 %vm50_vm0, %v26_v5  ;;  %v21_v19 = vld [vmem:[%s421_s0 + $0x38] sm:$0xff]  ;;  %v42_v26 = vld [vmem:[%s422_s2 + $0x40] sm:$0xff]  ;;  %v47_v39 = vld [vmem:[%s422_s2 + $0x68] sm:$0xff] }
   0xa   :  { %114 = vmatpush.msra.mxu0 %v30_v3  ;;  %209 = vmatpush.msra.mxu1 %v30_v3  ;;  %v46_v27 = vld [vmem:[%s422_s2 + $0x60] sm:$0xff]  ;;  %v36_v44 = vld [vmem:[%s422_s2 + $0x10] sm:$0xff]  ;;  %v37_v56 = vld [vmem:[%s422_s2 + $0x18] sm:$0xff] }
   0xb   :  { %184 = vmatmul.msk.f32.vlgmr.msra.gmra.mxu0 %vm50_vm0, %v14_v6  ;;  %188 = vmatmul.msk.f32.vlgmr.msra.gmra.mxu1 %vm50_vm0, %v18_v7  ;;  %v40_v45 = vld [vmem:[%s422_s2 + $0x30] sm:$0xff]  ;;  %v41_v57 = vld [vmem:[%s422_s2 + $0x38] sm:$0xff] }
   0xc   :  { %v44_v50 = vld [vmem:[%s422_s2 + $0x50] sm:$0xff]  ;;  %v45_v62 = vld [vmem:[%s422_s2 + $0x58] sm:$0xff] }
   0xd   :  { %v48_v51 = vld [vmem:[%s422_s2 + $0x70] sm:$0xff]  ;;  %v49_v63 = vld [vmem:[%s422_s2 + $0x78] sm:$0xff] }
  0x11   :  { %193 = vmatmul.msk.f32.gmra.mxu2 %vm50_vm0, %v23_v8  ;;  %197 = vmatmul.msk.f32.gmra.mxu3 %vm50_vm0, %v27_v9 }
  0x13   :  { %185 = vmatmul.msk.f32.gmra.mxu0 %vm50_vm0, %v15_v10  ;;  %189 = vmatmul.msk.f32.gmra.mxu1 %vm50_vm0, %v19_v11 }
  0x19   :  { %194 = vmatmul.msk.f32.gmra.mxu2 %vm50_vm0, %v24_v12  ;;  %198 = vmatmul.msk.f32.gmra.mxu3 %vm50_vm0, %v28_v13 }
  0x1b   :  { %186 = vmatmul.msk.f32.gmra.mxu0 %vm50_vm0, %v16_v14  ;;  %190 = vmatmul.msk.f32.gmra.mxu1 %vm50_vm0, %v20_v15 }
  0x21   :  { %195 = vmatmul.msk.f32.gmra.mxu2 %vm50_vm0, %v25_v16  ;;  %199 = vmatmul.msk.f32.gmra.mxu3 %vm50_vm0, %v29_v17 }
  0x23   :  { %187 = vmatmul.msk.f32.gmra.mxu0 %vm50_vm0, %v17_v18  ;;  %191 = vmatmul.msk.f32.gmra.mxu1 %vm50_vm0, %v21_v19 }
  0x88   :  { %v116_v22 = vpop.f32.mrf.mxu0  ;;  %v128_v23 = vpop.f32.mrf.mxu1 }
  0x89   :  { %v117_v24 = vadd.f32 %v116_v22, %v34_v20  ;;  %v129_v25 = vadd.f32 %v128_v23, %v38_v21 }
  0x8b   :  { %164 = vst.msk [vmem:[%s423_s3] sm:$0xff] %vm50_vm0, %v117_v24 }
  0x8c   :  { %168 = vst.msk [vmem:[%s423_s3 + $0x20] sm:$0xff] %vm50_vm0, %v129_v25  ;;  %v140_v28 = vpop.f32.mrf.mxu2  ;;  %v152_v29 = vpop.f32.mrf.mxu3 }
  0x8d   :  { %v141_v30 = vadd.f32 %v140_v28, %v42_v26  ;;  %v153_v31 = vadd.f32 %v152_v29, %v46_v27 }
  0x8f   :  { %172 = vst.msk [vmem:[%s423_s3 + $0x40] sm:$0xff] %vm50_vm0, %v141_v30 }
  0x90   :  { %176 = vst.msk [vmem:[%s423_s3 + $0x60] sm:$0xff] %vm50_vm0, %v153_v31  ;;  %v119_v34 = vpop.f32.mrf.mxu0  ;;  %v131_v35 = vpop.f32.mrf.mxu1 }
  0x91   :  { %v120_v36 = vadd.f32 %v119_v34, %v35_v32  ;;  %v132_v37 = vadd.f32 %v131_v35, %v39_v33 }
  0x93   :  { %165 = vst.msk [vmem:[%s423_s3 + $0x8] sm:$0xff] %vm50_vm0, %v120_v36 }
  0x94   :  { %169 = vst.msk [vmem:[%s423_s3 + $0x28] sm:$0xff] %vm50_vm0, %v132_v37  ;;  %v143_v40 = vpop.f32.mrf.mxu2  ;;  %v155_v41 = vpop.f32.mrf.mxu3 }
  0x95   :  { %v144_v42 = vadd.f32 %v143_v40, %v43_v38  ;;  %v156_v43 = vadd.f32 %v155_v41, %v47_v39 }
  0x97   :  { %173 = vst.msk [vmem:[%s423_s3 + $0x48] sm:$0xff] %vm50_vm0, %v144_v42 }
  0x98   :  { %177 = vst.msk [vmem:[%s423_s3 + $0x68] sm:$0xff] %vm50_vm0, %v156_v43  ;;  %v122_v46 = vpop.f32.mrf.mxu0  ;;  %v134_v47 = vpop.f32.mrf.mxu1 }
  0x99   :  { %v123_v48 = vadd.f32 %v122_v46, %v36_v44  ;;  %v135_v49 = vadd.f32 %v134_v47, %v40_v45 }
  0x9b   :  { %166 = vst.msk [vmem:[%s423_s3 + $0x10] sm:$0xff] %vm50_vm0, %v123_v48 }
  0x9c   :  { %170 = vst.msk [vmem:[%s423_s3 + $0x30] sm:$0xff] %vm50_vm0, %v135_v49  ;;  %v146_v52 = vpop.f32.mrf.mxu2  ;;  %v158_v53 = vpop.f32.mrf.mxu3 }
  0x9d   :  { %v147_v54 = vadd.f32 %v146_v52, %v44_v50  ;;  %v159_v55 = vadd.f32 %v158_v53, %v48_v51 }
  0x9f   :  { %174 = vst.msk [vmem:[%s423_s3 + $0x50] sm:$0xff] %vm50_vm0, %v147_v54 }
  0xa0   :  { %178 = vst.msk [vmem:[%s423_s3 + $0x70] sm:$0xff] %vm50_vm0, %v159_v55  ;;  %v125_v58 = vpop.f32.mrf.mxu0  ;;  %v137_v59 = vpop.f32.mrf.mxu1 }
  0xa1   :  { %v126_v60 = vadd.f32 %v125_v58, %v37_v56  ;;  %v138_v61 = vadd.f32 %v137_v59, %v41_v57 }
  0xa3   :  { %167 = vst.msk [vmem:[%s423_s3 + $0x18] sm:$0xff] %vm50_vm0, %v126_v60 }
  0xa4   :  { %171 = vst.msk [vmem:[%s423_s3 + $0x38] sm:$0xff] %vm50_vm0, %v138_v61  ;;  %v149_v0 = vpop.f32.mrf.mxu2  ;;  %v161_v1 = vpop.f32.mrf.mxu3 }
  0xa5   :  { %v150_v2 = vadd.f32 %v149_v0, %v45_v62  ;;  %v162_v3 = vadd.f32 %v161_v1, %v49_v63 }
  0xa7   :  { %175 = vst.msk [vmem:[%s423_s3 + $0x58] sm:$0xff] %vm50_vm0, %v150_v2 }
  0xa8   :  { %179 = vst.msk [vmem:[%s423_s3 + $0x78] sm:$0xff] %vm50_vm0, %v162_v3 }

// kernel: single_mamba_block.3
= control target key start
LH: loop header
LB: loop body
LE: loop exit
PB: predicated region body
PF: predicated region fallthrough
CT: control target
= control target key end

     0   :  { %vm38_vm0 = vcmask 261120   ;;  %v741_v26 = vmov 32.0   ;;  %s1424_s0 = inlined_call_operand.vmem [shape: f32[128,32], index: 0, kind: input, shape index: {}]   ;;  %s1425_s1 = inlined_call_operand.vmem [shape: f32[1,32], index: 1, kind: input, shape index: {}]   ;;  %s1426_s2 = inlined_call_operand.vmem [shape: f32[1,32], index: 2, kind: input, shape index: {}]   ;;  %s1427_s3 = inlined_call_operand.vmem [shape: f32[32,32], index: 3, kind: input, shape index: {}]   ;;  %s1428_s4 = inlined_call_operand.vmem [shape: f32[32,32], index: 4, kind: input, shape index: {}]   ;;  %s1429_s5 = inlined_call_operand.vmem [shape: f32[128,32], index: 5, kind: output, shape index: {0}]   ;;  %s1430_s6 = inlined_call_operand.vmem [shape: f32[128,32], index: 6, kind: output, shape index: {1}]  }
   0x1   :  { %v31_v0 = vld [vmem:[%s1424_s0 + $0x48] sm:$0xff]  ;;  %v30_v1 = vld [vmem:[%s1424_s0 + $0x40] sm:$0xff]  ;;  %v788_v4 = vld [vmem:[%s1424_s0 + $0x50] sm:$0xff]  ;;  %707 = vrcp.f32 %v741_v26 }
   0x2   :  { %v66_v2 = vsel %vm38_vm0, %v31_v0, 0.0  ;;  %v63_v3 = vsel %vm38_vm0, %v30_v1, 0.0  ;;  %v69_v5 = vsel %vm38_vm0, %v788_v4, 0.0  ;;  %v23_v6 = vld [vmem:[%s1424_s0 + $0x8] sm:$0xff]  ;;  %v22_v7 = vld [vmem:[%s1424_s0] sm:$0xff]  ;;  %v801_v8 = vld [vmem:[%s1424_s0 + $0x10] sm:$0xff] }
   0x3   :  { %67 = vadd.xlane.f32.xlu1 %v66_v2  ;;  %64 = vadd.xlane.f32.xlu0 %v63_v3  ;;  %v42_v9 = vsel %vm38_vm0, %v23_v6, 0.0  ;;  %v39_v10 = vsel %vm38_vm0, %v22_v7, 0.0  ;;  %v45_v11 = vsel %vm38_vm0, %v801_v8, 0.0  ;;  %v810_v12 = vld [vmem:[%s1424_s0 + $0x18] sm:$0xff]  ;;  %v820_v14 = vld [vmem:[%s1424_s0 + $0x60] sm:$0xff]  ;;  %v831_v18 = vld [vmem:[%s1424_s0 + $0x68] sm:$0xff] }
   0x4   :  { %70 = vadd.xlane.f32.xlu2 %v69_v5  ;;  %v815_v13 = vld [vmem:[%s1424_s0 + $0x58] sm:$0xff]  ;;  %v48_v15 = vsel %vm38_vm0, %v810_v12, 0.0  ;;  %v75_v17 = vsel %vm38_vm0, %v820_v14, 0.0  ;;  %v836_v19 = vld [vmem:[%s1424_s0 + $0x20] sm:$0xff]  ;;  %v841_v20 = vld [vmem:[%s1424_s0 + $0x28] sm:$0xff]  ;;  %v78_v21 = vsel %vm38_vm0, %v831_v18, 0.0 }
   0x5   :  { %v72_v16 = vsel %vm38_vm0, %v815_v13, 0.0  ;;  %v51_v22 = vsel %vm38_vm0, %v836_v19, 0.0  ;;  %v54_v23 = vsel %vm38_vm0, %v841_v20, 0.0  ;;  %v852_v24 = vld [vmem:[%s1424_s0 + $0x70] sm:$0xff]  ;;  %v875_v48 = vld [vmem:[%s1424_s0 + $0x38] sm:$0xff] }
   0x6   :  { %v81_v25 = vsel %vm38_vm0, %v852_v24, 0.0  ;;  %v880_v49 = vld [vmem:[%s1424_s0 + $0x30] sm:$0xff]  ;;  %v60_v53 = vsel %vm38_vm0, %v875_v48, 0.0 }
   0x7   :  { %v708_v27 = vpop.eup %707  ;;  %v57_v54 = vsel %vm38_vm0, %v880_v49, 0.0 }
   0x8   :  { %v88_v28 = vmul.f32 32.0, %v708_v27  ;;  %vm92_vm1 = vweird.f32 %v708_v27 }
   0xa   :  { %v89_v29 = vsub.f32 1.0, %v88_v28 }
   0xb   :  { %43 = vadd.xlane.f32.xlu1 %v42_v9  ;;  %40 = vadd.xlane.f32.xlu0 %v39_v10 }
   0xc   :  { %46 = vadd.xlane.f32.xlu2 %v45_v11  ;;  %v90_v30 = vmul.f32 %v708_v27, %v89_v29 }
   0xe   :  { %v91_v31 = vadd.f32 %v708_v27, %v90_v30 }
  0x10   :  { %v856_v32 = vsel %vm92_vm1, %v708_v27, %v91_v31 }
  0x13   :  { %49 = vadd.xlane.f32.xlu1 %v48_v15  ;;  %73 = vadd.xlane.f32.xlu0 %v72_v16 }
  0x14   :  { %76 = vadd.xlane.f32.xlu2 %v75_v17 }
  0x1b   :  { %79 = vadd.xlane.f32.xlu1 %v78_v21  ;;  %52 = vadd.xlane.f32.xlu0 %v51_v22 }
  0x1c   :  { %55 = vadd.xlane.f32.xlu2 %v54_v23 }
  0x23   :  { %82 = vadd.xlane.f32.xlu1 %v81_v25 }
  0x76   :  { %v68_v33 = vpop.xlane.xlu1 %67  ;;  %v65_v34 = vpop.xlane.xlu0 %64 }
  0x77   :  { %v103_v35 = vmul.f32 %v856_v32, %v68_v33  ;;  %v102_v36 = vmul.f32 %v856_v32, %v65_v34  ;;  %v71_v37 = vpop.xlane.xlu2 %70 }
  0x78   :  { %v104_v62 = vmul.f32 %v856_v32, %v71_v37 }
  0x79   :  { %v860_v38 = vsub.f32 %v31_v0, %v103_v35  ;;  %v862_v39 = vsub.f32 %v30_v1, %v102_v36  ;;  %v904_v0 = vld [vmem:[%s1424_s0 + $0x78] sm:$0xff] }
  0x7b   :  { %v135_v40 = vmul.f32 %v860_v38, %v860_v38  ;;  %v134_v41 = vmul.f32 %v862_v39, %v862_v39 }
  0x7d   :  { %v169_v42 = vsel %vm38_vm0, %v135_v40, 0.0  ;;  %v166_v43 = vsel %vm38_vm0, %v134_v41, 0.0 }
  0x7e   :  { %170 = vadd.xlane.f32.xlu1 %v169_v42  ;;  %v44_v44 = vpop.xlane.xlu1 %43  ;;  %167 = vadd.xlane.f32.xlu0 %v166_v43  ;;  %v41_v45 = vpop.xlane.xlu0 %40 }
  0x7f   :  { %v95_v46 = vmul.f32 %v856_v32, %v44_v44  ;;  %v94_v47 = vmul.f32 %v856_v32, %v41_v45  ;;  %v47_v50 = vpop.xlane.xlu2 %46  ;;  %v574_v44 = vld [vmem:[%s1428_s4 + $0x18] sm:$0xff]  ;;  %v440_v45 = vld [vmem:[%s1427_s3 + $0x10] sm:$0xff] }
  0x80   :  { %v96_v60 = vmul.f32 %v856_v32, %v47_v50  ;;  %700 = vmatpush.msra.mxu3 %v574_v44  ;;  %587 = vmatpush.msra.mxu1 %v574_v44  ;;  %v572_v50 = vld [vmem:[%s1428_s4 + $0x8] sm:$0xff] }
  0x81   :  { %v882_v51 = vsub.f32 %v22_v7, %v94_v47  ;;  %v884_v52 = vsub.f32 %v23_v6, %v95_v46  ;;  %v913_v6 = vsub.f32 %v788_v4, %v104_v62  ;;  %v84_v7 = vsel %vm38_vm0, %v904_v0, 0.0  ;;  %v573_v46 = vld [vmem:[%s1428_s4 + $0x10] sm:$0xff]  ;;  %v439_v47 = vld [vmem:[%s1427_s3 + $0x8] sm:$0xff] }
  0x82   :  { %v907_v2 = vsub.f32 %v801_v8, %v96_v60  ;;  %701 = vmatpush.msra.mxu3 %v573_v46  ;;  %588 = vmatpush.msra.mxu1 %v573_v46 }
  0x83   :  { %v126_v55 = vmul.f32 %v882_v51, %v882_v51  ;;  %v127_v61 = vmul.f32 %v884_v52, %v884_v52  ;;  %v136_v16 = vmul.f32 %v913_v6, %v913_v6 }
  0x84   :  { %v128_v15 = vmul.f32 %v907_v2, %v907_v2  ;;  %702 = vmatpush.msra.mxu3 %v572_v50  ;;  %589 = vmatpush.msra.mxu1 %v572_v50 }
  0x85   :  { %v142_v56 = vsel %vm38_vm0, %v126_v55, 0.0  ;;  %v145_v3 = vsel %vm38_vm0, %v127_v61, 0.0  ;;  %v172_v26 = vsel %vm38_vm0, %v136_v16, 0.0 }
  0x86   :  { %61 = vadd.xlane.f32.xlu1 %v60_v53  ;;  %v50_v57 = vpop.xlane.xlu1 %49  ;;  %58 = vadd.xlane.f32.xlu0 %v57_v54  ;;  %v74_v58 = vpop.xlane.xlu0 %73  ;;  %v148_v22 = vsel %vm38_vm0, %v128_v15, 0.0  ;;  %v438_v53 = vld [vmem:[%s1427_s3] sm:$0xff] }
  0x87   :  { %143 = vadd.xlane.f32.xlu2 %v142_v56  ;;  %v105_v59 = vmul.f32 %v856_v32, %v74_v58  ;;  %v77_v1 = vpop.xlane.xlu2 %76  ;;  %v97_v4 = vmul.f32 %v856_v32, %v50_v57  ;;  %v571_v54 = vld [vmem:[%s1428_s4] sm:$0xff] }
  0x88   :  { %703 = vmatpush.msra.mxu3 %v571_v54  ;;  %590 = vmatpush.msra.mxu1 %v571_v54 }
  0x89   :  { %v899_v63 = vsub.f32 %v815_v13, %v105_v59  ;;  %v106_v13 = vmul.f32 %v856_v32, %v77_v1  ;;  %v935_v25 = vsub.f32 %v810_v12, %v97_v4 }
  0x8b   :  { %v137_v5 = vmul.f32 %v899_v63, %v899_v63  ;;  %v929_v21 = vsub.f32 %v820_v14, %v106_v13  ;;  %v129_v12 = vmul.f32 %v935_v25, %v935_v25 }
  0x8d   :  { %v175_v9 = vsel %vm38_vm0, %v137_v5, 0.0  ;;  %v138_v30 = vmul.f32 %v929_v21, %v929_v21  ;;  %v151_v40 = vsel %vm38_vm0, %v129_v12, 0.0 }
  0x8e   :  { %v80_v10 = vpop.xlane.xlu1 %79  ;;  %146 = vadd.xlane.f32.xlu0 %v145_v3  ;;  %176 = vadd.xlane.f32.xlu1 %v175_v9  ;;  %v53_v11 = vpop.xlane.xlu0 %52 }
  0x8f   :  { %85 = vadd.xlane.f32.xlu2 %v84_v7  ;;  %v98_v8 = vmul.f32 %v856_v32, %v53_v11  ;;  %v56_v27 = vpop.xlane.xlu2 %55  ;;  %v107_v31 = vmul.f32 %v856_v32, %v80_v10  ;;  %v178_v35 = vsel %vm38_vm0, %v138_v30, 0.0 }
  0x90   :  { %v99_v14 = vmul.f32 %v856_v32, %v56_v27 }
  0x91   :  { %v926_v17 = vsub.f32 %v836_v19, %v98_v8  ;;  %v956_v37 = vsub.f32 %v831_v18, %v107_v31  ;;  %v441_v18 = vld [vmem:[%s1427_s3 + $0x18] sm:$0xff] }
  0x92   :  { %v950_v34 = vsub.f32 %v841_v20, %v99_v14  ;;  %696 = vmatpush.msra.mxu2 %v441_v18  ;;  %502 = vmatpush.msra.mxu0 %v441_v18 }
  0x93   :  { %v130_v23 = vmul.f32 %v926_v17, %v926_v17  ;;  %v139_v20 = vmul.f32 %v956_v37, %v956_v37 }
  0x94   :  { %697 = vmatpush.msra.mxu2 %v440_v45  ;;  %503 = vmatpush.msra.mxu0 %v440_v45  ;;  %v1036_v45 = vld [vmem:[%s1425_s1] ss:$0 sm:$0xff] }
  0x95   :  { %v154_v28 = vsel %vm38_vm0, %v130_v23, 0.0  ;;  %v181_v43 = vsel %vm38_vm0, %v139_v20, 0.0 }
  0x96   :  { %v83_v29 = vpop.xlane.xlu1 %82  ;;  %149 = vadd.xlane.f32.xlu0 %v148_v22  ;;  %155 = vadd.xlane.f32.xlu1 %v154_v28 }
  0x97   :  { %v108_v19 = vmul.f32 %v856_v32, %v83_v29  ;;  %173 = vadd.xlane.f32.xlu2 %v172_v26  ;;  %698 = vmatpush.msra.mxu2 %v439_v47 }
  0x98   :  { %504 = vmatpush.msra.mxu0 %v439_v47 }
  0x99   :  { %v947_v33 = vsub.f32 %v852_v24, %v108_v19  ;;  %v131_v24 = vmul.f32 %v950_v34, %v950_v34  ;;  %699 = vmatpush.msra.mxu2 %v438_v53 }
  0x9a   :  { %505 = vmatpush.msra.mxu0 %v438_v53 }
  0x9b   :  { %v140_v36 = vmul.f32 %v947_v33, %v947_v33  ;;  %v157_v42 = vsel %vm38_vm0, %v131_v24, 0.0 }
  0x9d   :  { %v184_v41 = vsel %vm38_vm0, %v140_v36, 0.0 }
  0x9e   :  { %179 = vadd.xlane.f32.xlu0 %v178_v35  ;;  %185 = vadd.xlane.f32.xlu1 %v184_v41 }
  0x9f   :  { %152 = vadd.xlane.f32.xlu2 %v151_v40 }
  0xa6   :  { %158 = vadd.xlane.f32.xlu0 %v157_v42 }
  0xa7   :  { %182 = vadd.xlane.f32.xlu2 %v181_v43 }
  0xf1   :  { %v171_v55 = vpop.xlane.xlu1 %170  ;;  %v168_v56 = vpop.xlane.xlu0 %167 }
  0xf2   :  { %v199_v57 = vmul.f32 %v171_v55, %v856_v32  ;;  %v198_v58 = vmul.f32 %v168_v56, %v856_v32  ;;  %v1044_v55 = vld [vmem:[%s1426_s2] ss:$0 sm:$0xff] }
  0xf4   :  { %v215_v59 = vadd.f32 1e-05, %v199_v57  ;;  %v214_v60 = vadd.f32 1e-05, %v198_v58 }
  0xf6   :  { %709 = vrsqrt.f32 %v215_v59  ;;  %vm318_vm2 = vweird.f32 %v215_v59  ;;  %vm308_vm5 = vweird.f32 %v214_v60 }
  0xf7   :  { %711 = vrsqrt.f32 %v214_v60 }
  0xf9   :  { %v62_v61 = vpop.xlane.xlu1 %61  ;;  %v59_v62 = vpop.xlane.xlu0 %58 }
  0xfa   :  { %v101_v1 = vmul.f32 %v856_v32, %v62_v61  ;;  %v144_v3 = vpop.xlane.xlu2 %143  ;;  %v100_v5 = vmul.f32 %v856_v32, %v59_v62 }
  0xfb   :  { %v190_v7 = vmul.f32 %v144_v3, %v856_v32 }
  0xfc   :  { %v995_v9 = vpop.eup %709  ;;  %v998_v10 = vsub.f32 %v875_v48, %v101_v1  ;;  %v1001_v11 = vsub.f32 %v880_v49, %v100_v5 }
  0xfd   :  { %v712_v8 = vpop.eup %711  ;;  %v313_v13 = vmul.f32 %v995_v9, %v215_v59  ;;  %v1004_v15 = vadd.f32 1e-05, %v190_v7  ;;  %vm319_vm3 = vweird.f32 %v995_v9 }
  0xfe   :  { %v303_v4 = vmul.f32 %v712_v8, %v214_v60  ;;  %v133_v16 = vmul.f32 %v998_v10, %v998_v10  ;;  %v132_v22 = vmul.f32 %v1001_v11, %v1001_v11  ;;  %vm309_vm4 = vweird.f32 %v712_v8  ;;  %vm1026_vm6 = vmor %vm318_vm2, %vm319_vm3 }
  0xff   :  { %v314_v23 = vmul.f32 %v995_v9, %v313_v13  ;;  %713 = vrsqrt.f32 %v1004_v15  ;;  %vm310_vm7 = vmor %vm308_vm5, %vm309_vm4  ;;  %vm228_vm9 = vweird.f32 %v1004_v15 }
 0x100   :  { %v304_v48 = vmul.f32 %v712_v8, %v303_v4  ;;  %v163_v49 = vsel %vm38_vm0, %v133_v16, 0.0  ;;  %v160_v26 = vsel %vm38_vm0, %v132_v22, 0.0 }
 0x101   :  { %v315_v27 = vmul.f32 0.5, %v314_v23  ;;  %v177_v28 = vpop.xlane.xlu1 %176  ;;  %164 = vadd.xlane.f32.xlu1 %v163_v49  ;;  %161 = vadd.xlane.f32.xlu2 %v160_v26  ;;  %v147_v29 = vpop.xlane.xlu0 %146 }
 0x102   :  { %v305_v19 = vmul.f32 0.5, %v304_v48  ;;  %v86_v14 = vpop.xlane.xlu2 %85  ;;  %v201_v30 = vmul.f32 %v177_v28, %v856_v32  ;;  %v191_v31 = vmul.f32 %v147_v29, %v856_v32 }
 0x103   :  { %v316_v12 = vsub.f32 1.5, %v315_v27  ;;  %v109_v35 = vmul.f32 %v856_v32, %v86_v14 }
 0x104   :  { %v306_v36 = vsub.f32 1.5, %v305_v19  ;;  %v1018_v40 = vadd.f32 1e-05, %v201_v30  ;;  %v1020_v41 = vadd.f32 1e-05, %v191_v31 }
 0x105   :  { %v714_v24 = vpop.eup %713  ;;  %v1023_v20 = vsub.f32 %v904_v0, %v109_v35  ;;  %v317_v42 = vmul.f32 %v995_v9, %v316_v12 }
 0x106   :  { %v307_v18 = vmul.f32 %v712_v8, %v306_v36  ;;  %v223_v44 = vmul.f32 %v714_v24, %v1004_v15  ;;  %715 = vrsqrt.f32 %v1018_v40  ;;  %vm229_vm8 = vweird.f32 %v714_v24 }
 0x107   :  { %717 = vrsqrt.f32 %v1020_v41  ;;  %v141_v47 = vmul.f32 %v1023_v20, %v1023_v20  ;;  %v321_v56 = vsel %vm1026_vm6, %v995_v9, %v317_v42  ;;  %vm230_vm10 = vmor %vm228_vm9, %vm229_vm8  ;;  %vm238_vm11 = vweird.f32 %v1020_v41 }
 0x108   :  { %v311_v0 = vsel %vm310_vm7, %v712_v8, %v307_v18  ;;  %v224_v46 = vmul.f32 %v714_v24, %v223_v44  ;;  %v391_v13 = vmul.f32 %v321_v56, %v860_v38  ;;  %vm338_vm3 = vweird.f32 %v1018_v40 }
 0x109   :  { %v156_v50 = vpop.xlane.xlu1 %155  ;;  %v150_v53 = vpop.xlane.xlu0 %149  ;;  %v390_v54 = vmul.f32 %v311_v0, %v862_v39  ;;  %v187_v58 = vsel %vm38_vm0, %v141_v47, 0.0 }
 0x10a   :  { %v225_v57 = vmul.f32 0.5, %v224_v46  ;;  %v174_v59 = vpop.xlane.xlu2 %173  ;;  %v192_v60 = vmul.f32 %v150_v53, %v856_v32  ;;  %188 = vadd.xlane.f32.xlu0 %v187_v58  ;;  %v194_v39 = vmul.f32 %v156_v50, %v856_v32  ;;  %v411_v49 = vmul.f32 %v1036_v45, %v391_v13 }
 0x10b   :  { %v200_v61 = vmul.f32 %v174_v59, %v856_v32  ;;  %v410_v62 = vmul.f32 %v1036_v45, %v390_v54 }
 0x10c   :  { %v1054_v1 = vpop.eup %715  ;;  %v226_v3 = vsub.f32 1.5, %v225_v57  ;;  %v1056_v5 = vadd.f32 1e-05, %v192_v60  ;;  %v1068_v22 = vadd.f32 1e-05, %v194_v39 }
 0x10d   :  { %v1058_v7 = vpop.eup %717  ;;  %v1060_v9 = vadd.f32 1e-05, %v200_v61  ;;  %v430_v8 = vadd.f32 %v1044_v55, %v410_v62  ;;  %v333_v48 = vmul.f32 %v1054_v1, %v1018_v40  ;;  %vm339_vm4 = vweird.f32 %v1054_v1 }
 0x10e   :  { %v227_v4 = vmul.f32 %v714_v24, %v226_v3  ;;  %v233_v16 = vmul.f32 %v1058_v7, %v1020_v41  ;;  %vm239_vm12 = vweird.f32 %v1058_v7  ;;  %vm248_vm15 = vweird.f32 %v1056_v5  ;;  %vm1164_vm7 = vmor %vm338_vm3, %vm339_vm4 }
 0x10f   :  { %719 = vrsqrt.f32 %v1060_v9  ;;  %672 = vmatmul.msk.f32.vlgmr.msra.gmra.mxu2 %vm38_vm0, %v430_v8  ;;  %688 = vmatmul.msk.f32.vlgmr.msra.gmra.mxu3 %vm38_vm0, %v430_v8  ;;  %v334_v30 = vmul.f32 %v1054_v1, %v333_v48  ;;  %vm1103_vm13 = vmor %vm238_vm11, %vm239_vm12  ;;  %vm328_vm14 = vweird.f32 %v1060_v9 }
 0x110   :  { %v231_v23 = vsel %vm230_vm10, %v714_v24, %v227_v4  ;;  %v234_v38 = vmul.f32 %v1058_v7, %v233_v16  ;;  %721 = vrsqrt.f32 %v1056_v5 }
 0x111   :  { %v180_v15 = vpop.xlane.xlu0 %179  ;;  %v186_v28 = vpop.xlane.xlu1 %185  ;;  %v382_v19 = vmul.f32 %v231_v23, %v882_v51  ;;  %723 = vrsqrt.f32 %v1068_v22  ;;  %v431_v51 = vadd.f32 %v1044_v55, %v411_v49  ;;  %v335_v46 = vmul.f32 0.5, %v334_v30 }
 0x112   :  { %v235_v26 = vmul.f32 0.5, %v234_v38  ;;  %v153_v27 = vpop.xlane.xlu2 %152  ;;  %v202_v29 = vmul.f32 %v180_v15, %v856_v32  ;;  %v204_v36 = vmul.f32 %v186_v28, %v856_v32 }
 0x113   :  { %v193_v14 = vmul.f32 %v153_v27, %v856_v32  ;;  %v402_v18 = vmul.f32 %v1036_v45, %v382_v19  ;;  %v336_v3 = vsub.f32 1.5, %v335_v46 }
 0x114   :  { %v236_v31 = vsub.f32 1.5, %v235_v26  ;;  %v1089_v24 = vadd.f32 1e-05, %v202_v29  ;;  %v1111_v54 = vadd.f32 1e-05, %v204_v36 }
 0x115   :  { %v1084_v12 = vpop.eup %719  ;;  %v1086_v35 = vadd.f32 1e-05, %v193_v14  ;;  %v422_v58 = vadd.f32 %v1044_v55, %v402_v18  ;;  %v337_v28 = vmul.f32 %v1054_v1, %v336_v3 }
 0x116   :  { %v722_v42 = vpop.eup %721  ;;  %v323_v43 = vmul.f32 %v1084_v12, %v1060_v9  ;;  %v237_v44 = vmul.f32 %v1058_v7, %v236_v31  ;;  %vm329_vm1 = vweird.f32 %v1084_v12  ;;  %vm348_vm11 = vweird.f32 %v1089_v24 }
 0x117   :  { %v243_v0 = vmul.f32 %v722_v42, %v1056_v5  ;;  %673 = vmatmul.msk.f32.gmra.mxu2 %vm38_vm0, %v431_v51  ;;  %689 = vmatmul.msk.f32.gmra.mxu3 %vm38_vm0, %v431_v51  ;;  %725 = vrsqrt.f32 %v1086_v35  ;;  %v1114_v57 = vpop.eup %723  ;;  %vm249_vm2 = vweird.f32 %v722_v42  ;;  %vm1133_vm5 = vmor %vm328_vm14, %vm329_vm1  ;;  %vm258_vm8 = vweird.f32 %v1086_v35 }
 0x118   :  { %v324_v50 = vmul.f32 %v1084_v12, %v323_v43  ;;  %727 = vrsqrt.f32 %v1089_v24  ;;  %v241_v61 = vsel %vm1103_vm13, %v1058_v7, %v237_v44  ;;  %664 = vmatmul.msk.f32.vlgmr.msra.gmra.mxu0 %vm38_vm0, %v422_v58  ;;  %680 = vmatmul.msk.f32.vlgmr.msra.gmra.mxu1 %vm38_vm0, %v422_v58  ;;  %v263_v4 = vmul.f32 %v1114_v57, %v1068_v22  ;;  %vm1142_vm6 = vmor %vm248_vm15, %vm249_vm2 }
 0x119   :  { %v244_v53 = vmul.f32 %v722_v42, %v243_v0  ;;  %v159_v56 = vpop.xlane.xlu0 %158  ;;  %v383_v9 = vmul.f32 %v241_v61, %v884_v52  ;;  %vm268_vm14 = vweird.f32 %v1068_v22  ;;  %vm269_vm15 = vweird.f32 %v1114_v57 }
 0x11a   :  { %v325_v41 = vmul.f32 0.5, %v324_v50  ;;  %v183_v59 = vpop.xlane.xlu2 %182  ;;  %v195_v60 = vmul.f32 %v159_v56, %v856_v32  ;;  %v264_v19 = vmul.f32 %v1114_v57, %v263_v4  ;;  %vm1222_vm1 = vmor %vm268_vm14, %vm269_vm15 }
 0x11b   :  { %v245_v39 = vmul.f32 0.5, %v244_v53  ;;  %v203_v62 = vmul.f32 %v183_v59, %v856_v32 }
 0x11c   :  { %v326_v8 = vsub.f32 1.5, %v325_v41  ;;  %v1125_v13 = vadd.f32 1e-05, %v195_v60  ;;  %v265_v46 = vmul.f32 0.5, %v264_v19 }
 0x11d   :  { %v246_v16 = vsub.f32 1.5, %v245_v39  ;;  %v726_v23 = vpop.eup %725  ;;  %v1146_v15 = vadd.f32 1e-05, %v203_v62 }
 0x11e   :  { %v327_v48 = vmul.f32 %v1084_v12, %v326_v8  ;;  %729 = vrsqrt.f32 %v1125_v13  ;;  %v1150_v49 = vpop.eup %727  ;;  %v253_v27 = vmul.f32 %v726_v23, %v1086_v35  ;;  %vm259_vm9 = vweird.f32 %v726_v23 }
 0x11f   :  { %v247_v26 = vmul.f32 %v722_v42, %v246_v16  ;;  %731 = vrsqrt.f32 %v1111_v54  ;;  %v343_v29 = vmul.f32 %v1150_v49, %v1089_v24  ;;  %vm1188_vm10 = vmor %vm258_vm8, %vm259_vm9  ;;  %vm349_vm12 = vweird.f32 %v1150_v49 }
 0x120   :  { %v331_v5 = vsel %vm1133_vm5, %v1084_v12, %v327_v48  ;;  %v254_v30 = vmul.f32 %v726_v23, %v253_v27  ;;  %733 = vrsqrt.f32 %v1146_v15  ;;  %v403_v12 = vmul.f32 %v1036_v45, %v383_v9  ;;  %vm1205_vm13 = vmor %vm348_vm11, %vm349_vm12 }
 0x121   :  { %v251_v14 = vsel %vm1142_vm6, %v722_v42, %v247_v26  ;;  %v344_v31 = vmul.f32 %v1150_v49, %v343_v29  ;;  %v392_v40 = vmul.f32 %v331_v5, %v913_v6  ;;  %v341_v42 = vsel %vm1164_vm7, %v1054_v1, %v337_v28 }
 0x122   :  { %v384_v36 = vmul.f32 %v251_v14, %v907_v2  ;;  %v255_v51 = vmul.f32 0.5, %v254_v30  ;;  %v423_v44 = vadd.f32 %v1044_v55, %v403_v12  ;;  %v393_v58 = vmul.f32 %v341_v42, %v899_v63 }
 0x123   :  { %v345_v18 = vmul.f32 0.5, %v344_v31  ;;  %v412_v35 = vmul.f32 %v1036_v45, %v392_v40  ;;  %v266_v61 = vsub.f32 1.5, %v265_v46  ;;  %vm358_vm2 = vweird.f32 %v1146_v15 }
 0x124   :  { %v1177_v43 = vpop.eup %729  ;;  %v256_v47 = vsub.f32 1.5, %v255_v51  ;;  %665 = vmatmul.msk.f32.gmra.mxu0 %vm38_vm0, %v423_v44  ;;  %681 = vmatmul.msk.f32.gmra.mxu1 %vm38_vm0, %v423_v44  ;;  %v404_v1 = vmul.f32 %v1036_v45, %v384_v36  ;;  %v413_v4 = vmul.f32 %v1036_v45, %v393_v58  ;;  %vm278_vm5 = vweird.f32 %v1125_v13 }
 0x125   :  { %v1183_v0 = vpop.eup %731  ;;  %v273_v2 = vmul.f32 %v1177_v43, %v1125_v13  ;;  %v346_v50 = vsub.f32 1.5, %v345_v18  ;;  %v432_v41 = vadd.f32 %v1044_v55, %v412_v35  ;;  %v267_v38 = vmul.f32 %v1114_v57, %v266_v61 }
 0x126   :  { %v734_v53 = vpop.eup %733  ;;  %v257_v56 = vmul.f32 %v726_v23, %v256_v47  ;;  %v363_v59 = vmul.f32 %v1183_v0, %v1111_v54  ;;  %v424_v8 = vadd.f32 %v1044_v55, %v404_v1  ;;  %vm279_vm6 = vweird.f32 %v1177_v43 }
 0x127   :  { %v347_v60 = vmul.f32 %v1150_v49, %v346_v50  ;;  %v353_v24 = vmul.f32 %v734_v53, %v1146_v15  ;;  %v274_v3 = vmul.f32 %v1177_v43, %v273_v2  ;;  %674 = vmatmul.msk.f32.gmra.mxu2 %vm38_vm0, %v432_v41  ;;  %690 = vmatmul.msk.f32.gmra.mxu3 %vm38_vm0, %v432_v41  ;;  %vm359_vm3 = vweird.f32 %v734_v53  ;;  %vm280_vm9 = vmor %vm278_vm5, %vm279_vm6 }
 0x128   :  { %v261_v39 = vsel %vm1188_vm10, %v726_v23, %v257_v56  ;;  %v364_v16 = vmul.f32 %v1183_v0, %v363_v59  ;;  %v271_v29 = vsel %vm1222_vm1, %v1114_v57, %v267_v38  ;;  %vm1235_vm4 = vmor %vm358_vm2, %vm359_vm3  ;;  %vm368_vm7 = vweird.f32 %v1111_v54 }
 0x129   :  { %v354_v63 = vmul.f32 %v734_v53, %v353_v24  ;;  %v385_v7 = vmul.f32 %v261_v39, %v935_v25  ;;  %v351_v23 = vsel %vm1205_vm13, %v1150_v49, %v347_v60  ;;  %v275_v9 = vmul.f32 0.5, %v274_v3 }
 0x12a   :  { %v433_v49 = vadd.f32 %v1044_v55, %v413_v4  ;;  %v394_v27 = vmul.f32 %v351_v23, %v929_v21  ;;  %v365_v28 = vmul.f32 0.5, %v364_v16  ;;  %v386_v30 = vmul.f32 %v271_v29, %v926_v17 }
 0x12b   :  { %v355_v48 = vmul.f32 0.5, %v354_v63  ;;  %v405_v22 = vmul.f32 %v1036_v45, %v385_v7  ;;  %v276_v15 = vsub.f32 1.5, %v275_v9  ;;  %vm369_vm8 = vweird.f32 %v1183_v0 }
 0x12c   :  { %666 = vmatmul.msk.f32.gmra.mxu0 %vm38_vm0, %v424_v8  ;;  %682 = vmatmul.msk.f32.gmra.mxu1 %vm38_vm0, %v424_v8  ;;  %v414_v21 = vmul.f32 %v1036_v45, %v394_v27  ;;  %v366_v14 = vsub.f32 1.5, %v365_v28  ;;  %v406_v51 = vmul.f32 %v1036_v45, %v386_v30  ;;  %vm370_vm10 = vmor %vm368_vm7, %vm369_vm8 }
 0x12d   :  { %v356_v25 = vsub.f32 1.5, %v355_v48  ;;  %v425_v19 = vadd.f32 %v1044_v55, %v405_v22  ;;  %v277_v31 = vmul.f32 %v1177_v43, %v276_v15 }
 0x12e   :  { %v434_v13 = vadd.f32 %v1044_v55, %v414_v21  ;;  %v367_v36 = vmul.f32 %v1183_v0, %v366_v14  ;;  %v426_v42 = vadd.f32 %v1044_v55, %v406_v51 }
 0x12f   :  { %v357_v5 = vmul.f32 %v734_v53, %v356_v25  ;;  %675 = vmatmul.msk.f32.gmra.mxu2 %vm38_vm0, %v433_v49  ;;  %691 = vmatmul.msk.f32.gmra.mxu3 %vm38_vm0, %v433_v49  ;;  %v281_v17 = vsel %vm280_vm9, %v1177_v43, %v277_v31 }
 0x130   :  { %v371_v40 = vsel %vm370_vm10, %v1183_v0, %v367_v36  ;;  %v387_v18 = vmul.f32 %v281_v17, %v950_v34 }
 0x131   :  { %v361_v57 = vsel %vm1235_vm4, %v734_v53, %v357_v5  ;;  %v396_v43 = vmul.f32 %v371_v40, %v947_v33 }
 0x132   :  { %v395_v12 = vmul.f32 %v361_v57, %v956_v37  ;;  %v407_v44 = vmul.f32 %v1036_v45, %v387_v18 }
 0x133   :  { %v416_v0 = vmul.f32 %v1036_v45, %v396_v43 }
 0x134   :  { %667 = vmatmul.msk.f32.gmra.mxu0 %vm38_vm0, %v425_v19  ;;  %683 = vmatmul.msk.f32.gmra.mxu1 %vm38_vm0, %v425_v19  ;;  %v415_v54 = vmul.f32 %v1036_v45, %v395_v12  ;;  %v427_v46 = vadd.f32 %v1044_v55, %v407_v44 }
 0x135   :  { %v436_v34 = vadd.f32 %v1044_v55, %v416_v0 }
 0x136   :  { %v435_v37 = vadd.f32 %v1044_v55, %v415_v54 }
 0x137   :  { %676 = vmatmul.msk.f32.gmra.mxu2 %vm38_vm0, %v434_v13  ;;  %692 = vmatmul.msk.f32.gmra.mxu3 %vm38_vm0, %v434_v13 }
 0x13c   :  { %668 = vmatmul.msk.f32.gmra.mxu0 %vm38_vm0, %v426_v42  ;;  %684 = vmatmul.msk.f32.gmra.mxu1 %vm38_vm0, %v426_v42 }
 0x13f   :  { %677 = vmatmul.msk.f32.gmra.mxu2 %vm38_vm0, %v435_v37  ;;  %693 = vmatmul.msk.f32.gmra.mxu3 %vm38_vm0, %v435_v37 }
 0x144   :  { %669 = vmatmul.msk.f32.gmra.mxu0 %vm38_vm0, %v427_v46  ;;  %685 = vmatmul.msk.f32.gmra.mxu1 %vm38_vm0, %v427_v46 }
 0x147   :  { %678 = vmatmul.msk.f32.gmra.mxu2 %vm38_vm0, %v436_v34  ;;  %694 = vmatmul.msk.f32.gmra.mxu3 %vm38_vm0, %v436_v34 }
 0x174   :  { %v165_v33 = vpop.xlane.xlu1 %164  ;;  %v162_v47 = vpop.xlane.xlu2 %161 }
 0x175   :  { %v197_v2 = vmul.f32 %v165_v33, %v856_v32  ;;  %v196_v35 = vmul.f32 %v162_v47, %v856_v32 }
 0x177   :  { %v213_v6 = vadd.f32 1e-05, %v197_v2  ;;  %v212_v50 = vadd.f32 1e-05, %v196_v35 }
 0x179   :  { %735 = vrsqrt.f32 %v213_v6  ;;  %vm298_vm11 = vweird.f32 %v213_v6  ;;  %vm288_vm13 = vweird.f32 %v212_v50 }
 0x17a   :  { %737 = vrsqrt.f32 %v212_v50 }
 0x17d   :  { %v189_v1 = vpop.xlane.xlu0 %188 }
 0x17e   :  { %v205_v56 = vmul.f32 %v189_v1, %v856_v32 }
 0x17f   :  { %v736_v53 = vpop.eup %735 }
 0x180   :  { %v738_v41 = vpop.eup %737  ;;  %v293_v58 = vmul.f32 %v736_v53, %v213_v6  ;;  %v221_v60 = vadd.f32 1e-05, %v205_v56  ;;  %vm299_vm12 = vweird.f32 %v736_v53 }
 0x181   :  { %v283_v59 = vmul.f32 %v738_v41, %v212_v50  ;;  %vm289_vm14 = vweird.f32 %v738_v41  ;;  %vm300_vm15 = vmor %vm298_vm11, %vm299_vm12 }
 0x182   :  { %v294_v24 = vmul.f32 %v736_v53, %v293_v58  ;;  %739 = vrsqrt.f32 %v221_v60  ;;  %vm290_vm1 = vmor %vm288_vm13, %vm289_vm14  ;;  %vm378_vm3 = vweird.f32 %v221_v60 }
 0x183   :  { %v284_v61 = vmul.f32 %v738_v41, %v283_v59 }
 0x184   :  { %v295_v39 = vmul.f32 0.5, %v294_v24 }
 0x185   :  { %v285_v62 = vmul.f32 0.5, %v284_v61 }
 0x186   :  { %v296_v3 = vsub.f32 1.5, %v295_v39 }
 0x187   :  { %v286_v63 = vsub.f32 1.5, %v285_v62 }
 0x188   :  { %v740_v8 = vpop.eup %739  ;;  %v297_v7 = vmul.f32 %v736_v53, %v296_v3 }
 0x189   :  { %v287_v4 = vmul.f32 %v738_v41, %v286_v63  ;;  %v373_v32 = vmul.f32 %v740_v8, %v221_v60  ;;  %vm379_vm2 = vweird.f32 %v740_v8 }
 0x18a   :  { %v301_v38 = vsel %vm300_vm15, %v736_v53, %v297_v7  ;;  %vm380_vm4 = vmor %vm378_vm3, %vm379_vm2 }
 0x18b   :  { %v291_v16 = vsel %vm290_vm1, %v738_v41, %v287_v4  ;;  %v374_v23 = vmul.f32 %v740_v8, %v373_v32  ;;  %v389_v49 = vmul.f32 %v301_v38, %v998_v10 }
 0x18c   :  { %v388_v48 = vmul.f32 %v291_v16, %v1001_v11 }
 0x18d   :  { %v375_v9 = vmul.f32 0.5, %v374_v23  ;;  %v409_v10 = vmul.f32 %v1036_v45, %v389_v49 }
 0x18e   :  { %v408_v26 = vmul.f32 %v1036_v45, %v388_v48 }
 0x18f   :  { %v376_v25 = vsub.f32 1.5, %v375_v9  ;;  %v429_v15 = vadd.f32 %v1044_v55, %v409_v10 }
 0x190   :  { %v428_v22 = vadd.f32 %v1044_v55, %v408_v26 }
 0x191   :  { %v377_v27 = vmul.f32 %v740_v8, %v376_v25 }
 0x192   :  { %670 = vmatmul.msk.f32.gmra.mxu0 %vm38_vm0, %v428_v22  ;;  %v531_v28 = vpop.f32.mrf.mxu2  ;;  %686 = vmatmul.msk.f32.gmra.mxu1 %vm38_vm0, %v428_v22  ;;  %v616_v5 = vpop.f32.mrf.mxu3 }
 0x193   :  { %563 = vst.msk [vmem:[%s1429_s5 + $0x40] sm:$0xff] %vm38_vm0, %v531_v28  ;;  %v381_v11 = vsel %vm380_vm4, %v740_v8, %v377_v27 }
 0x194   :  { %648 = vst.msk [vmem:[%s1430_s6 + $0x40] sm:$0xff] %vm38_vm0, %v616_v5  ;;  %v397_v29 = vmul.f32 %v381_v11, %v1023_v20 }
 0x195   :  { %v507_v19 = vpop.f32.mrf.mxu0  ;;  %v592_v21 = vpop.f32.mrf.mxu1 }
 0x196   :  { %v417_v52 = vmul.f32 %v1036_v45, %v397_v29  ;;  %555 = vst.msk [vmem:[%s1429_s5] sm:$0xff] %vm38_vm0, %v507_v19 }
 0x197   :  { %640 = vst.msk [vmem:[%s1430_s6] sm:$0xff] %vm38_vm0, %v592_v21 }
 0x198   :  { %v437_v14 = vadd.f32 %v1044_v55, %v417_v52 }
 0x19a   :  { %671 = vmatmul.msk.f32.gmra.mxu0 %vm38_vm0, %v429_v15  ;;  %v534_v57 = vpop.f32.mrf.mxu2  ;;  %687 = vmatmul.msk.f32.gmra.mxu1 %vm38_vm0, %v429_v15  ;;  %v619_v30 = vpop.f32.mrf.mxu3 }
 0x19b   :  { %679 = vmatmul.msk.f32.gmra.mxu2 %vm38_vm0, %v437_v14  ;;  %695 = vmatmul.msk.f32.gmra.mxu3 %vm38_vm0, %v437_v14  ;;  %564 = vst.msk [vmem:[%s1429_s5 + $0x48] sm:$0xff] %vm38_vm0, %v534_v57 }
 0x19c   :  { %649 = vst.msk [vmem:[%s1430_s6 + $0x48] sm:$0xff] %vm38_vm0, %v619_v30 }
 0x1a1   :  { %v510_v20 = vpop.f32.mrf.mxu0  ;;  %v595_v45 = vpop.f32.mrf.mxu1 }
 0x1a2   :  { %556 = vst.msk [vmem:[%s1429_s5 + $0x8] sm:$0xff] %vm38_vm0, %v510_v20 }
 0x1a3   :  { %641 = vst.msk [vmem:[%s1430_s6 + $0x8] sm:$0xff] %vm38_vm0, %v595_v45 }
 0x1a9   :  { %v513_v55 = vpop.f32.mrf.mxu0  ;;  %v598_v31 = vpop.f32.mrf.mxu1 }
 0x1aa   :  { %557 = vst.msk [vmem:[%s1429_s5 + $0x10] sm:$0xff] %vm38_vm0, %v513_v55  ;;  %v537_v13 = vpop.f32.mrf.mxu2  ;;  %v622_v12 = vpop.f32.mrf.mxu3 }
 0x1ab   :  { %642 = vst.msk [vmem:[%s1430_s6 + $0x10] sm:$0xff] %vm38_vm0, %v598_v31 }
 0x1ac   :  { %565 = vst.msk [vmem:[%s1429_s5 + $0x50] sm:$0xff] %vm38_vm0, %v537_v13 }
 0x1ad   :  { %650 = vst.msk [vmem:[%s1430_s6 + $0x50] sm:$0xff] %vm38_vm0, %v622_v12 }
 0x1b1   :  { %v516_v36 = vpop.f32.mrf.mxu0  ;;  %v601_v51 = vpop.f32.mrf.mxu1 }
 0x1b2   :  { %558 = vst.msk [vmem:[%s1429_s5 + $0x18] sm:$0xff] %vm38_vm0, %v516_v36  ;;  %v540_v17 = vpop.f32.mrf.mxu2  ;;  %v625_v54 = vpop.f32.mrf.mxu3 }
 0x1b3   :  { %643 = vst.msk [vmem:[%s1430_s6 + $0x18] sm:$0xff] %vm38_vm0, %v601_v51 }
 0x1b4   :  { %566 = vst.msk [vmem:[%s1429_s5 + $0x58] sm:$0xff] %vm38_vm0, %v540_v17 }
 0x1b5   :  { %651 = vst.msk [vmem:[%s1430_s6 + $0x58] sm:$0xff] %vm38_vm0, %v625_v54 }
 0x1b9   :  { %v519_v40 = vpop.f32.mrf.mxu0  ;;  %v604_v42 = vpop.f32.mrf.mxu1 }
 0x1ba   :  { %559 = vst.msk [vmem:[%s1429_s5 + $0x20] sm:$0xff] %vm38_vm0, %v519_v40  ;;  %v543_v18 = vpop.f32.mrf.mxu2  ;;  %v628_v37 = vpop.f32.mrf.mxu3 }
 0x1bb   :  { %644 = vst.msk [vmem:[%s1430_s6 + $0x20] sm:$0xff] %vm38_vm0, %v604_v42 }
 0x1bc   :  { %567 = vst.msk [vmem:[%s1429_s5 + $0x60] sm:$0xff] %vm38_vm0, %v543_v18 }
 0x1bd   :  { %652 = vst.msk [vmem:[%s1430_s6 + $0x60] sm:$0xff] %vm38_vm0, %v628_v37 }
 0x1c1   :  { %v522_v43 = vpop.f32.mrf.mxu0  ;;  %v607_v44 = vpop.f32.mrf.mxu1 }
 0x1c2   :  { %560 = vst.msk [vmem:[%s1429_s5 + $0x28] sm:$0xff] %vm38_vm0, %v522_v43  ;;  %v546_v0 = vpop.f32.mrf.mxu2  ;;  %v631_v46 = vpop.f32.mrf.mxu3 }
 0x1c3   :  { %645 = vst.msk [vmem:[%s1430_s6 + $0x28] sm:$0xff] %vm38_vm0, %v607_v44 }
 0x1c4   :  { %568 = vst.msk [vmem:[%s1429_s5 + $0x68] sm:$0xff] %vm38_vm0, %v546_v0 }
 0x1c5   :  { %653 = vst.msk [vmem:[%s1430_s6 + $0x68] sm:$0xff] %vm38_vm0, %v631_v46 }
 0x1ca   :  { %v549_v34 = vpop.f32.mrf.mxu2  ;;  %v634_v33 = vpop.f32.mrf.mxu3 }
 0x1cb   :  { %569 = vst.msk [vmem:[%s1429_s5 + $0x70] sm:$0xff] %vm38_vm0, %v549_v34 }
 0x1cc   :  { %654 = vst.msk [vmem:[%s1430_s6 + $0x70] sm:$0xff] %vm38_vm0, %v634_v33 }
 0x20f   :  { %v525_v47 = vpop.f32.mrf.mxu0  ;;  %v610_v2 = vpop.f32.mrf.mxu1 }
 0x210   :  { %561 = vst.msk [vmem:[%s1429_s5 + $0x30] sm:$0xff] %vm38_vm0, %v525_v47 }
 0x211   :  { %646 = vst.msk [vmem:[%s1430_s6 + $0x30] sm:$0xff] %vm38_vm0, %v610_v2 }
 0x217   :  { %v528_v35 = vpop.f32.mrf.mxu0  ;;  %v613_v6 = vpop.f32.mrf.mxu1 }
 0x218   :  { %562 = vst.msk [vmem:[%s1429_s5 + $0x38] sm:$0xff] %vm38_vm0, %v528_v35 }
 0x219   :  { %647 = vst.msk [vmem:[%s1430_s6 + $0x38] sm:$0xff] %vm38_vm0, %v613_v6 }
 0x21e   :  { %v552_v50 = vpop.f32.mrf.mxu2  ;;  %v637_v1 = vpop.f32.mrf.mxu3 }
 0x21f   :  { %570 = vst.msk [vmem:[%s1429_s5 + $0x78] sm:$0xff] %vm38_vm0, %v552_v50 }
 0x220   :  { %655 = vst.msk [vmem:[%s1430_s6 + $0x78] sm:$0xff] %vm38_vm0, %v637_v1 }

// kernel: single_mamba_block.4
= control target key start
LH: loop header
LB: loop body
LE: loop exit
PB: predicated region body
PF: predicated region fallthrough
CT: control target
= control target key end

     0   :  { %s9109_s21 = smov 0   ;;  %s13438_s0 = inlined_call_operand.vmem [shape: f32[2,64,32], index: 0, kind: input, shape index: {}]   ;;  %s13439_s1 = inlined_call_operand.vmem [shape: f32[2,64,32], index: 1, kind: input, shape index: {}]   ;;  %s13440_s2 = inlined_call_operand.vmem [shape: f32[2,4,32], index: 2, kind: input, shape index: {}]   ;;  %s13441_s3 = inlined_call_operand.vmem [shape: f32[2,1,32], index: 3, kind: input, shape index: {}]   ;;  %s13442_s4 = inlined_call_operand.vmem [shape: f32[2,32,8], index: 4, kind: input, shape index: {}]   ;;  %s13443_s5 = inlined_call_operand.vmem [shape: f32[2,32,8], index: 5, kind: input, shape index: {}]   ;;  %s13444_s6 = inlined_call_operand.vmem [shape: f32[2,32,32], index: 6, kind: input, shape index: {}]   ;;  %s13445_s7 = inlined_call_operand.vmem [shape: f32[2,1,32], index: 7, kind: input, shape index: {}]   ;;  %s13446_s8 = inlined_call_operand.vmem [shape: f32[2,8,32], index: 8, kind: input, shape index: {}]   ;;  %s13447_s9 = inlined_call_operand.vmem [shape: f32[2,1,32], index: 9, kind: input, shape index: {}]   ;;  %s13448_s10 = inlined_call_operand.vmem [shape: f32[1,32], index: 10, kind: input, shape index: {}]   ;;  %s13449_s11 = inlined_call_operand.vmem [shape: f32[1,32], index: 11, kind: input, shape index: {}]   ;;  %s13450_s12 = inlined_call_operand.vmem [shape: f32[2,64,32], index: 12, kind: output, shape index: {}]  }
   0x1 LB: > { %s8423_s22 = sadd.s32 4294967295, %s9029_s21   ;;  %p8427_p0 = scmp.ge.s32.totalorder %s9029_s21, 1  ;;  %s9029_s21 = sphi %s9109_s21, %s22_s21  }
   0x2   : > { %p372_p1 = scmp.lt.s32.totalorder %s9029_s21, 3 }
   0x4   : > { %p373_p2 = pnand %p8427_p0, %p372_p1 }
   0x6   : > { %376 = sbr.rel (%p373_p2) target bundleno = 1652 (0x674), region = 68 }
   0xb   : > { %v907_v0 = vld [vmem:[%s13442_s4 + $0x18] sm:$0xff]  ;;  %v906_v1 = vld [vmem:[%s13442_s4 + $0x10] sm:$0xff]  ;;  %p419_p3 = scmp.lt.s32.totalorder %s8423_s22, 1  ;;  %v905_v2 = vld [vmem:[%s13442_s4 + $0x8] sm:$0xff]  ;;  %vm463_vm0 = vcmask 1042432   ;;  %vm505_vm1 = vcmask 1041408  }
   0xc   : > { %920 = vmatpush.msra.mxu1 %v907_v0  ;;  %8515 = vmatpush.msra.mxu3 %v907_v0  ;;  %v450_v3 = vld [vmem:[%s13440_s2] sm:$0xf]  ;;  %vm547_vm2 = vcmask 1040384   ;;  %vm774_vm6 = vcmask 261120   ;;  %s11046_s28 = smov 0  }
   0xd   : > { %s14005_s22 = smov (!%p419_p3, %s8423_s22), 1  ;;  %v904_v4 = vld [vmem:[%s13442_s4] sm:$0xff]  ;;  %v9157_v9 = vperm.slane %v450_v3, 0  ;;  %v9159_v10 = vperm.slane %v450_v3, 1  ;;  %v9176_v20 = vperm.slane %v450_v3, 2  ;;  %v9181_v24 = vperm.slane %v450_v3, 3 }
   0xe   : > { %921 = vmatpush.msra.mxu1 %v906_v1  ;;  %8516 = vmatpush.msra.mxu3 %v906_v1  ;;  %s8505_s15 = sshll.u32 %s14005_s22, 6  ;;  %v9155_v8 = vld [vmem:[%s13441_s3] ss:$0 sm:$0xff] }
   0xf   : > { %s9135_s18 = scalar_lea.vmem %s13438_s0, %s8505_s15  ;;  %s428_s23 = scalar_lea.vmem %s13439_s1, %s8505_s15 }
  0x10   : > { %922 = vmatpush.msra.mxu1 %v905_v2  ;;  %8517 = vmatpush.msra.mxu3 %v905_v2  ;;  %s9143_s26 = scalar_lea.vmem %s13450_s12, %s8505_s15  ;;  %v9146_v5 = vld [vmem:[%s9135_s18] sm:$0xff]  ;;  %v9150_v7 = vld [vmem:[%s428_s23 + $0x8] sm:$0xff]  ;;  %v9161_v11 = vld [vmem:[%s428_s23 + $0x10] sm:$0xff] }
  0x11   : > { %v9148_v6 = vld [vmem:[%s428_s23] sm:$0xff]  ;;  %13536 = vst [vmem:[#allocation9_spill] sm:$0xff] %v9150_v7  ;;  %v9163_v12 = vld [vmem:[%s428_s23 + $0x18] sm:$0xff]  ;;  %v464_v14 = vrot.slane %v9146_v5, 5  ;;  %v506_v15 = vrot.slane %v9146_v5, 6  ;;  %v548_v16 = vrot.slane %v9146_v5, 7  ;;  %v590_v37 = vmul.f32 %v9181_v24, %v9146_v5 }
  0x12   : > { %13535 = vst [vmem:[#allocation8_spill] sm:$0xff] %v9148_v6  ;;  %923 = vmatpush.msra.mxu1 %v904_v4  ;;  %v9165_v13 = vld [vmem:[%s428_s23 + $0x20] sm:$0xff]  ;;  %8518 = vmatpush.msra.mxu3 %v904_v4  ;;  %v9170_v17 = vld [vmem:[%s428_s23 + $0x28] sm:$0xff]  ;;  %v9172_v18 = vld [vmem:[%s428_s23 + $0x30] sm:$0xff] }
  0x13   : > { %13537 = vst [vmem:[#allocation10_spill] sm:$0xff] %v9161_v11  ;;  %v9174_v19 = vld [vmem:[%s428_s23 + $0x38] sm:$0xff]  ;;  %v487_v21 = vsel %vm463_vm0, 0.0, %v464_v14  ;;  %v529_v22 = vsel %vm505_vm1, 0.0, %v506_v15  ;;  %v571_v23 = vsel %vm547_vm2, 0.0, %v548_v16  ;;  %v9187_v26 = vld [vmem:[%s9135_s18 + $0x20] sm:$0xff] }
  0x14   : > { %13538 = vst [vmem:[#allocation11_spill] sm:$0xff] %v9163_v12  ;;  %v9184_v25 = vld [vmem:[%s9135_s18 + $0x18] sm:$0xff]  ;;  %v489_v27 = vmul.f32 %v9157_v9, %v487_v21  ;;  %v531_v28 = vmul.f32 %v9159_v10, %v529_v22  ;;  %v471_v30 = vrot.slane %v9187_v26, 5  ;;  %v513_v32 = vrot.slane %v9187_v26, 6  ;;  %v9213_v44 = vld [vmem:[%s9135_s18 + $0x8] sm:$0xff] }
  0x15   : > { %13539 = vst [vmem:[#allocation12_spill] sm:$0xff] %v9165_v13  ;;  %v469_v29 = vrot.slane %v9184_v25, 5  ;;  %v511_v31 = vrot.slane %v9184_v25, 6  ;;  %v553_v33 = vrot.slane %v9184_v25, 7  ;;  %v573_v35 = vmul.f32 %v9176_v20, %v571_v23 }
  0x16   : > { %13540 = vst [vmem:[#allocation13_spill] sm:$0xff] %v9170_v17  ;;  %v497_v34 = vadd.f32 %v9155_v8, %v489_v27  ;;  %v555_v36 = vrot.slane %v9187_v26, 7  ;;  %v465_v45 = vrot.slane %v9213_v44, 5  ;;  %v507_v50 = vrot.slane %v9213_v44, 6 }
  0x17   : > { %13541 = vst [vmem:[#allocation14_spill] sm:$0xff] %v9172_v18  ;;  %v472_v38 = vsel %vm463_vm0, %v469_v29, %v471_v30  ;;  %v514_v39 = vsel %vm505_vm1, %v511_v31, %v513_v32  ;;  %v594_v53 = vmul.f32 %v9181_v24, %v9187_v26  ;;  %v549_v56 = vrot.slane %v9213_v44, 7 }
  0x18   : > { %13542 = vst [vmem:[#allocation15_spill] sm:$0xff] %v9174_v19  ;;  %v539_v40 = vadd.f32 %v531_v28, %v497_v34  ;;  %v493_v41 = vmul.f32 %v9157_v9, %v472_v38  ;;  %v535_v42 = vmul.f32 %v9159_v10, %v514_v39  ;;  %v556_v43 = vsel %vm547_vm2, %v553_v33, %v555_v36 }
  0x19   : > { %v577_v48 = vmul.f32 %v9176_v20, %v556_v43  ;;  %v466_v49 = vsel %vm463_vm0, %v464_v14, %v465_v45  ;;  %v508_v55 = vsel %vm505_vm1, %v506_v15, %v507_v50  ;;  %v550_v61 = vsel %vm547_vm2, %v548_v16, %v549_v56  ;;  %v9244_v14 = vld [vmem:[%s9135_s18 + $0x28] sm:$0xff] }
  0x1a   : > { %v581_v46 = vadd.f32 %v573_v35, %v539_v40  ;;  %v501_v47 = vadd.f32 %v9155_v8, %v493_v41  ;;  %v490_v54 = vmul.f32 %v9157_v9, %v466_v49  ;;  %v532_v60 = vmul.f32 %v9159_v10, %v508_v55  ;;  %v768_v55 = vld [vmem:[%s13444_s6 + $0x10] sm:$0xff] }
  0x1b   : > { %v574_v1 = vmul.f32 %v9176_v20, %v550_v61  ;;  %v591_v4 = vmul.f32 %v9181_v24, %v9213_v44  ;;  %v473_v15 = vrot.slane %v9244_v14, 5  ;;  %v515_v23 = vrot.slane %v9244_v14, 6 }
  0x1c   : > { %v9222_v51 = vadd.f32 %v590_v37, %v581_v46  ;;  %v543_v52 = vadd.f32 %v535_v42, %v501_v47  ;;  %v498_v59 = vadd.f32 %v9155_v8, %v490_v54  ;;  %v557_v34 = vrot.slane %v9244_v14, 7  ;;  %v769_v54 = vld [vmem:[%s13444_s6 + $0x18] sm:$0xff] }
  0x1d   : > { %v474_v16 = vsel %vm463_vm0, %v471_v30, %v473_v15  ;;  %v516_v35 = vsel %vm505_vm1, %v513_v32, %v515_v23  ;;  %v595_v46 = vmul.f32 %v9181_v24, %v9244_v14  ;;  %811 = vmatpush.msra.mxu0 %v769_v54  ;;  %8511 = vmatpush.msra.mxu2 %v769_v54 }
  0x1e   : > { %v606_v57 = vsub.f32 0.0, %v9222_v51  ;;  %v585_v58 = vadd.f32 %v577_v48, %v543_v52  ;;  %v540_v0 = vadd.f32 %v532_v60, %v498_v59  ;;  %v494_v28 = vmul.f32 %v9157_v9, %v474_v16  ;;  %v9282_v60 = vld [vmem:[%s9135_s18 + $0x10] sm:$0xff] }
  0x1f   : > { %v536_v40 = vmul.f32 %v9159_v10, %v516_v35  ;;  %v558_v30 = vsel %vm547_vm2, %v555_v36, %v557_v34  ;;  %812 = vmatpush.msra.mxu0 %v768_v55  ;;  %8512 = vmatpush.msra.mxu2 %v768_v55 }
  0x20   : > { %v614_v62 = vmul.f32 1.442695, %v606_v57  ;;  %v9237_v63 = vadd.f32 %v594_v53, %v585_v58  ;;  %v582_v3 = vadd.f32 %v574_v1, %v540_v0  ;;  %v502_v39 = vadd.f32 %v9155_v8, %v494_v28  ;;  %v767_v0 = vld [vmem:[%s13444_s6 + $0x8] sm:$0xff] }
  0x21   : > { %v578_v42 = vmul.f32 %v9176_v20, %v558_v30  ;;  %v467_v1 = vrot.slane %v9282_v60, 5  ;;  %813 = vmatpush.msra.mxu0 %v767_v0  ;;  %8513 = vmatpush.msra.mxu2 %v767_v0 }
  0x22   : > { %8559 = vpow2.f32 %v614_v62  ;;  %v610_v2 = vsub.f32 0.0, %v9237_v63  ;;  %v9247_v22 = vadd.f32 %v591_v4, %v582_v3  ;;  %v544_v43 = vadd.f32 %v536_v40, %v502_v39 }
  0x23   : > { %v468_v16 = vsel %vm463_vm0, %v465_v45, %v467_v1  ;;  %v551_v39 = vrot.slane %v9282_v60, 7 }
  0x24   : > { %v622_v21 = vmul.f32 1.442695, %v610_v2  ;;  %v607_v27 = vsub.f32 0.0, %v9247_v22  ;;  %v586_v47 = vadd.f32 %v578_v42, %v544_v43 }
  0x26   : > { %8561 = vpow2.f32 %v622_v21  ;;  %v616_v38 = vmul.f32 1.442695, %v607_v27  ;;  %v9269_v49 = vadd.f32 %v595_v46, %v586_v47  ;;  %v766_v21 = vld [vmem:[%s13444_s6] sm:$0xff]  ;;  %v509_v27 = vrot.slane %v9282_v60, 6 }
  0x27   : > { %814 = vmatpush.msra.mxu0 %v766_v21  ;;  %8514 = vmatpush.msra.mxu2 %v766_v21 }
  0x28   : > { %v8560_v37 = vpop.eup %8559  ;;  %8563 = vpow2.f32 %v616_v38  ;;  %v611_v53 = vsub.f32 0.0, %v9269_v49  ;;  %v491_v38 = vmul.f32 %v9157_v9, %v468_v16  ;;  %v510_v45 = vsel %vm505_vm1, %v507_v50, %v509_v27 }
  0x29   : > { %v630_v41 = vadd.f32 1.0, %v8560_v37  ;;  %v552_v50 = vsel %vm547_vm2, %v549_v56, %v551_v39  ;;  %v592_v56 = vmul.f32 %v9181_v24, %v9282_v60 }
  0x2a   : > { %v624_v62 = vmul.f32 1.442695, %v611_v53  ;;  %v499_v46 = vadd.f32 %v9155_v8, %v491_v38 }
  0x2b   : > { %8565 = vrcp.f32 %v630_v41  ;;  %v647_v52 = vand.u32 2147483647, %v630_v41  ;;  %v649_v58 = vand.u32 2147483648, %v630_v41  ;;  %vm643_vm3 = vweird.f32 %v630_v41 }
  0x2c   : > { %v8562_v32 = vpop.eup %8561 }
  0x2d   : > { %v9267_v48 = vadd.f32 1.0, %v8562_v32  ;;  %vm9288_vm5 = vcmp.eq.f32.partialorder %v647_v52, 8.507059e+37  ;;  %v650_v35 = vor.u32 1.1754944e-38, %v649_v58  ;;  %v533_v32 = vmul.f32 %v9159_v10, %v510_v45 }
  0x2e   : > { %v8564_v36 = vpop.eup %8563  ;;  %v575_v52 = vmul.f32 %v9176_v20, %v552_v50 }
  0x2f   : > { %8567 = vrcp.f32 %v9267_v48  ;;  %v9279_v59 = vadd.f32 1.0, %v8564_v36  ;;  %v707_v3 = vand.u32 2147483647, %v9267_v48  ;;  %v709_v37 = vand.u32 2147483648, %v9267_v48 }
  0x30   : > { %vm703_vm7 = vweird.f32 %v9267_v48  ;;  %v541_v55 = vadd.f32 %v533_v32, %v499_v46  ;;  %v9365_v46 = vld [vmem:[%s9135_s18 + $0x30] sm:$0xff] }
  0x31   : > { %v8566_v57 = vpop.eup %8565  ;;  %8569 = vrcp.f32 %v9279_v59  ;;  %vm9319_vm9 = vcmp.eq.f32.partialorder %v707_v3, 8.507059e+37  ;;  %v710_v53 = vor.u32 1.1754944e-38, %v709_v37  ;;  %vm658_vm11 = vweird.f32 %v9279_v59 }
  0x32   : > { %v639_v61 = vmul.f32 %v8566_v57, %v630_v41  ;;  %vm644_vm4 = vweird.f32 %v8566_v57  ;;  %8571 = vpow2.f32 %v624_v62  ;;  %v662_v54 = vand.u32 2147483647, %v9279_v59 }
  0x33   : > { %vm9315_vm8 = vmor %vm643_vm3, %vm644_vm4  ;;  %v583_v16 = vadd.f32 %v575_v52, %v541_v55  ;;  %v475_v32 = vrot.slane %v9365_v46, 5  ;;  %v517_v43 = vrot.slane %v9365_v46, 6 }
  0x34   : > { %v640_v4 = vsub.f32 1.0, %v639_v61  ;;  %vm663_vm15 = vcmp.eq.f32.partialorder %v662_v54, 8.507059e+37 }
  0x35   : > { %v8568_v28 = vpop.eup %8567  ;;  %v476_v52 = vsel %vm463_vm0, %v473_v15, %v475_v32 }
  0x36   : > { %v641_v40 = vmul.f32 %v8566_v57, %v640_v4  ;;  %v699_v30 = vmul.f32 %v8568_v28, %v9267_v48  ;;  %vm704_vm10 = vweird.f32 %v8568_v28  ;;  %v664_v4 = vand.u32 2147483648, %v9279_v59 }
  0x37   : > { %v8570_v36 = vpop.eup %8569  ;;  %vm705_vm12 = vmor %vm703_vm7, %vm704_vm10  ;;  %v9350_v48 = vadd.f32 %v592_v56, %v583_v16  ;;  %v495_v15 = vmul.f32 %v9157_v9, %v476_v52  ;;  %v596_v16 = vmul.f32 %v9181_v24, %v9365_v46 }
  0x38   : > { %v642_v41 = vadd.f32 %v8566_v57, %v641_v40  ;;  %v700_v47 = vsub.f32 1.0, %v699_v30  ;;  %v8572_v58 = vpop.eup %8571  ;;  %v654_v0 = vmul.f32 %v8570_v36, %v9279_v59  ;;  %vm659_vm13 = vweird.f32 %v8570_v36 }
  0x39   : > { %v635_v21 = vadd.f32 1.0, %v8572_v58  ;;  %vm9356_vm14 = vmor %vm658_vm11, %vm659_vm13  ;;  %v665_v30 = vor.u32 1.1754944e-38, %v664_v4  ;;  %v608_v42 = vsub.f32 0.0, %v9350_v48  ;;  %v559_v59 = vrot.slane %v9365_v46, 7 }
  0x3a   : > { %v646_v61 = vsel %vm9315_vm8, %v8566_v57, %v642_v41  ;;  %v701_v62 = vmul.f32 %v8568_v28, %v700_v47  ;;  %v655_v38 = vsub.f32 1.0, %v654_v0 }
  0x3b   : > { %v651_v3 = vsel %vm9288_vm5, %v650_v35, %v646_v61  ;;  %8573 = vrcp.f32 %v635_v21  ;;  %v560_v55 = vsel %vm547_vm2, %v557_v34, %v559_v59  ;;  %v724_v58 = vand.u32 2147483648, %v635_v21 }
  0x3c   : > { %v9344_v37 = vmul.f32 %v651_v3, %v9222_v51  ;;  %v702_v57 = vadd.f32 %v8568_v28, %v701_v62  ;;  %v656_v35 = vmul.f32 %v8570_v36, %v655_v38  ;;  %vm718_vm3 = vweird.f32 %v635_v21 }
  0x3d   : > { %v503_v62 = vadd.f32 %v9155_v8, %v495_v15  ;;  %v579_v14 = vmul.f32 %v9176_v20, %v560_v55  ;;  %v725_v0 = vor.u32 1.1754944e-38, %v724_v58 }
  0x3e   : > { %8442 = vmatmul.msk.f32.vlgmr.msra.gmra.mxu1 %vm774_vm6, %v9344_v37  ;;  %v706_v2 = vsel %vm705_vm12, %v8568_v28, %v702_v57  ;;  %8434 = vmatmul.msk.f32.vlgmr.msra.gmra.mxu0 %vm774_vm6, %v9344_v37  ;;  %v657_v28 = vadd.f32 %v8570_v36, %v656_v35 }
  0x3f   : > { %v711_v40 = vsel %vm9319_vm9, %v710_v53, %v706_v2  ;;  %v518_v53 = vsel %vm505_vm1, %v515_v23, %v517_v43 }
  0x40   : > { %v9361_v45 = vmul.f32 %v711_v40, %v9237_v63  ;;  %v661_v50 = vsel %vm9356_vm14, %v8570_v36, %v657_v28  ;;  %v618_v63 = vmul.f32 1.442695, %v608_v42  ;;  %v537_v61 = vmul.f32 %v9159_v10, %v518_v53 }
  0x41   : > { %v8574_v41 = vpop.eup %8573  ;;  %v666_v47 = vsel %vm663_vm15, %v665_v30, %v661_v50  ;;  %v1444_v30 = vlaneseq }
  0x42   : > { %8446 = vmatmul.msk.f32.vlgmr.msra.gmra.mxu3 %vm774_vm6, %v9361_v45  ;;  %8438 = vmatmul.msk.f32.vlgmr.msra.gmra.mxu2 %vm774_vm6, %v9361_v45  ;;  %v9387_v36 = vmul.f32 %v666_v47, %v9247_v22  ;;  %v714_v54 = vmul.f32 %v8574_v41, %v635_v21  ;;  %8575 = vpow2.f32 %v618_v63  ;;  %vm719_vm4 = vweird.f32 %v8574_v41 }
  0x43   : > { %v722_v22 = vand.u32 2147483647, %v635_v21  ;;  %vm720_vm5 = vmor %vm718_vm3, %vm719_vm4  ;;  %v545_v56 = vadd.f32 %v537_v61, %v503_v62  ;;  %v9411_v42 = vshrl.u32 %v1444_v30, 7  ;;  %v554_v30 = vsel %vm547_vm2, %v551_v39, %v553_v33 }
  0x44   : > { %v715_v23 = vsub.f32 1.0, %v714_v54  ;;  %vm2226_vm4 = vcmask 1044480  }
  0x45   : > { %vm723_vm7 = vcmp.eq.f32.partialorder %v722_v22, 8.507059e+37  ;;  %v587_v38 = vadd.f32 %v579_v14, %v545_v56  ;;  %13552 = vst [vmem:[#allocation17_spill] sm:$0xff] %v9411_v42  ;;  %8554 = vset.pattern.permute.xlu2 %v9411_v42  ;;  %8553 = vset.pattern.permute.xlu1 %v9411_v42 }
  0x46   : > { %8443 = vmatmul.msk.f32.gmra.mxu1 %vm774_vm6, %v9387_v36  ;;  %8435 = vmatmul.msk.f32.gmra.mxu0 %vm774_vm6, %v9387_v36  ;;  %v716_v34 = vmul.f32 %v8574_v41, %v715_v23 }
  0x47   : > { %v604_v40 = vadd.f32 %v596_v16, %v587_v38  ;;  %8552 = vset.pattern.permute.xlu0 %v9411_v42  ;;  %v470_v38 = vsel %vm463_vm0, %v467_v1, %v469_v29  ;;  %v576_v29 = vmul.f32 %v9176_v20, %v554_v30 }
  0x48   : > { %v8576_v3 = vpop.eup %8575  ;;  %v717_v4 = vadd.f32 %v8574_v41, %v716_v34 }
  0x49   : > { %v632_v57 = vadd.f32 1.0, %v8576_v3  ;;  %v612_v51 = vsub.f32 0.0, %v604_v40 }
  0x4a   : > { %v721_v21 = vsel %vm720_vm5, %v8574_v41, %v717_v4  ;;  %vm2268_vm5 = vcmask 1045504  }
  0x4b   : > { %v726_v2 = vsel %vm723_vm7, %v725_v0, %v721_v21  ;;  %8577 = vrcp.f32 %v632_v57  ;;  %v626_v28 = vmul.f32 1.442695, %v612_v51  ;;  %vm673_vm8 = vweird.f32 %v632_v57 }
  0x4c   : > { %v9405_v35 = vmul.f32 %v726_v2, %v9269_v49  ;;  %v679_v49 = vand.u32 2147483648, %v632_v57  ;;  %v677_v47 = vand.u32 2147483647, %v632_v57  ;;  %v492_v21 = vmul.f32 %v9157_v9, %v470_v38 }
  0x4d   : > { %8579 = vpow2.f32 %v626_v28  ;;  %v512_v2 = vsel %vm505_vm1, %v509_v27, %v511_v31  ;;  %v2228_v38 = vrot.slane %v9213_v44, 3  ;;  %vm2310_vm7 = vcmask 1046528  }
  0x4e   : > { %13551 = vst [vmem:[#allocation16_spill] sm:$0xff] %v9405_v35  ;;  %8447 = vmatmul.msk.f32.gmra.mxu3 %vm774_vm6, %v9405_v35  ;;  %8439 = vmatmul.msk.f32.gmra.mxu2 %vm774_vm6, %v9405_v35  ;;  %v680_v53 = vor.u32 1.1754944e-38, %v679_v49  ;;  %vm678_vm11 = vcmp.eq.f32.partialorder %v677_v47, 8.507059e+37  ;;  %v534_v51 = vmul.f32 %v9159_v10, %v512_v2 }
  0x51   : > { %v8578_v50 = vpop.eup %8577 }
  0x52   : > { %v669_v63 = vmul.f32 %v8578_v50, %v632_v57  ;;  %vm674_vm9 = vweird.f32 %v8578_v50 }
  0x53   : > { %vm675_vm10 = vmor %vm673_vm8, %vm674_vm9  ;;  %v8580_v54 = vpop.eup %8579 }
  0x54   : > { %v670_v41 = vsub.f32 1.0, %v669_v63  ;;  %v636_v58 = vadd.f32 1.0, %v8580_v54  ;;  %v441_v63 = vld [vmem:[%s9135_s18 + $0x38] sm:$0xff] }
  0x55   : > { %v477_v49 = vrot.slane %v441_v63, 5  ;;  %v561_v39 = vrot.slane %v441_v63, 7 }
  0x56   : > { %v671_v52 = vmul.f32 %v8578_v50, %v670_v41  ;;  %8581 = vrcp.f32 %v636_v58  ;;  %v739_v14 = vand.u32 2147483648, %v636_v58  ;;  %vm733_vm12 = vweird.f32 %v636_v58 }
  0x57   : > { %v737_v0 = vand.u32 2147483647, %v636_v58  ;;  %v478_v27 = vsel %vm463_vm0, %v475_v32, %v477_v49  ;;  %v519_v41 = vrot.slane %v441_v63, 6 }
  0x58   : > { %v672_v55 = vadd.f32 %v8578_v50, %v671_v52  ;;  %v740_v3 = vor.u32 1.1754944e-38, %v739_v14  ;;  %v496_v52 = vmul.f32 %v9157_v9, %v478_v27  ;;  %v597_v9 = vmul.f32 %v9181_v24, %v441_v63  ;;  %v9483_v63 = vld [vmem:[%s13441_s3 + $0x1] ss:$0 sm:$0xff] }
  0x59   : > { %vm738_vm15 = vcmp.eq.f32.partialorder %v737_v0, 8.507059e+37  ;;  %v520_v33 = vsel %vm505_vm1, %v517_v43, %v519_v41 }
  0x5a   : > { %v676_v15 = vsel %vm675_vm10, %v8578_v50, %v672_v55  ;;  %v593_v50 = vmul.f32 %v9181_v24, %v9184_v25  ;;  %v504_v54 = vadd.f32 %v9155_v8, %v496_v52  ;;  %v538_v55 = vmul.f32 %v9159_v10, %v520_v33 }
  0x5b   : > { %v681_v61 = vsel %vm678_vm11, %v680_v53, %v676_v15  ;;  %v2312_v52 = vrot.slane %v9213_v44, 1 }
  0x5c   : > { %v9417_v23 = vmul.f32 %v681_v61, %v9350_v48  ;;  %v8582_v22 = vpop.eup %8581  ;;  %v546_v32 = vadd.f32 %v538_v55, %v504_v54 }
  0x5d   : > { %v729_v62 = vmul.f32 %v8582_v22, %v636_v58  ;;  %vm734_vm13 = vweird.f32 %v8582_v22  ;;  %v562_v58 = vsel %vm547_vm2, %v559_v59, %v561_v39 }
  0x5e   : > { %8444 = vmatmul.msk.f32.gmra.mxu1 %vm774_vm6, %v9417_v23  ;;  %8436 = vmatmul.msk.f32.gmra.mxu0 %vm774_vm6, %v9417_v23  ;;  %vm735_vm14 = vmor %vm733_vm12, %vm734_vm13  ;;  %v580_v15 = vmul.f32 %v9176_v20, %v562_v58 }
  0x5f   : > { %v730_v34 = vsub.f32 1.0, %v729_v62 }
  0x60   : > { %v588_v61 = vadd.f32 %v580_v15, %v546_v32 }
  0x61   : > { %v731_v56 = vmul.f32 %v8582_v22, %v730_v34 }
  0x63   : > { %v732_v4 = vadd.f32 %v8582_v22, %v731_v56 }
  0x65   : > { %v736_v48 = vsel %vm735_vm14, %v8582_v22, %v732_v4  ;;  %v9465_v22 = vadd.f32 %v597_v9, %v588_v61 }
  0x66   : > { %v741_v16 = vsel %vm738_vm15, %v740_v3, %v736_v48  ;;  %v8458_v48 = vld [vmem:[%s13440_s2 + $0x4] sm:$0xf] }
  0x67   : > { %v9423_v57 = vmul.f32 %v741_v16, %v604_v40  ;;  %v500_v40 = vadd.f32 %v9155_v8, %v492_v21  ;;  %v613_v62 = vsub.f32 0.0, %v9465_v22  ;;  %v2227_v16 = vrot.slane %v9146_v5, 3 }
  0x68   : > { %v9473_v2 = vperm.slane %v8458_v48, 0  ;;  %v9487_v41 = vperm.slane %v8458_v48, 1  ;;  %v9504_v15 = vperm.slane %v8458_v48, 3 }
  0x69   : > { %8448 = vmatmul.msk.f32.gmra.mxu3 %vm774_vm6, %v9423_v57  ;;  %8440 = vmatmul.msk.f32.gmra.mxu2 %vm774_vm6, %v9423_v57  ;;  %v542_v28 = vadd.f32 %v534_v51, %v500_v40  ;;  %v628_v8 = vmul.f32 1.442695, %v613_v62  ;;  %v2229_v30 = vsel %vm2226_vm4, %v2227_v16, %v2228_v38  ;;  %v2272_v16 = vrot.slane %v9282_v60, 2 }
  0x6a   : > { %v2252_v49 = vmul.f32 %v9473_v2, %v2229_v30  ;;  %v8473_v30 = vld [vmem:[%s13442_s4 + $0x20] sm:$0xff] }
  0x6b   : > { %v584_v1 = vadd.f32 %v576_v29, %v542_v28  ;;  %v2269_v28 = vrot.slane %v9146_v5, 2  ;;  %v2270_v29 = vrot.slane %v9213_v44, 2 }
  0x6c   : > { %v2260_v39 = vadd.f32 %v9483_v63, %v2252_v49 }
  0x6d   : > { %v601_v31 = vadd.f32 %v593_v50, %v584_v1  ;;  %v2271_v27 = vsel %vm2268_vm5, %v2269_v28, %v2270_v29 }
  0x6e   : > { %v2294_v54 = vmul.f32 %v9487_v41, %v2271_v27 }
  0x6f   : > { %v609_v47 = vsub.f32 0.0, %v601_v31 }
  0x70   : > { %v2302_v9 = vadd.f32 %v2294_v54, %v2260_v39 }
  0x71   : > { %v620_v53 = vmul.f32 1.442695, %v609_v47  ;;  %v2311_v47 = vrot.slane %v9146_v5, 1 }
  0x73   : > { %8583 = vpow2.f32 %v620_v53  ;;  %v9499_v53 = vperm.slane %v8458_v48, 2  ;;  %v2313_v55 = vsel %vm2310_vm7, %v2311_v47, %v2312_v52 }
  0x75   : > { %v2336_v32 = vmul.f32 %v9499_v53, %v2313_v55 }
  0x79   : > { %v8584_v43 = vpop.eup %8583 }
  0x7a   : > { %v633_v14 = vadd.f32 1.0, %v8584_v43 }
  0x7c   : > { %8585 = vrcp.f32 %v633_v14  ;;  %v694_v20 = vand.u32 2147483648, %v633_v14  ;;  %vm688_vm0 = vweird.f32 %v633_v14  ;;  %v692_v24 = vand.u32 2147483647, %v633_v14 }
  0x7d   : > { %8587 = vpow2.f32 %v628_v8  ;;  %v2344_v8 = vadd.f32 %v2336_v32, %v2302_v9 }
  0x7e   : > { %v695_v4 = vor.u32 1.1754944e-38, %v694_v20  ;;  %vm693_vm3 = vcmp.eq.f32.partialorder %v692_v24, 8.507059e+37  ;;  %v8475_v20 = vld [vmem:[%s13442_s4 + $0x30] sm:$0xff]  ;;  %v2230_v24 = vrot.slane %v9282_v60, 3 }
  0x80   : > { %v2231_v48 = vsel %vm2226_vm4, %v2228_v38, %v2230_v24 }
  0x82   : > { %v8586_v10 = vpop.eup %8585 }
  0x83   : > { %v8588_v46 = vpop.eup %8587  ;;  %v684_v34 = vmul.f32 %v8586_v10, %v633_v14  ;;  %vm689_vm1 = vweird.f32 %v8586_v10 }
  0x84   : > { %v637_v59 = vadd.f32 1.0, %v8588_v46  ;;  %vm690_vm2 = vmor %vm688_vm0, %vm689_vm1 }
  0x85   : > { %v685_v0 = vsub.f32 1.0, %v684_v34 }
  0x86   : > { %8589 = vrcp.f32 %v637_v59  ;;  %v754_v61 = vand.u32 2147483648, %v637_v59  ;;  %vm748_vm8 = vweird.f32 %v637_v59  ;;  %v752_v62 = vand.u32 2147483647, %v637_v59 }
  0x87   : > { %v686_v56 = vmul.f32 %v8586_v10, %v685_v0 }
  0x88   : > { %v755_v14 = vor.u32 1.1754944e-38, %v754_v61  ;;  %vm753_vm11 = vcmp.eq.f32.partialorder %v752_v62, 8.507059e+37 }
  0x89   : > { %v687_v3 = vadd.f32 %v8586_v10, %v686_v56 }
  0x8b   : > { %v691_v21 = vsel %vm690_vm2, %v8586_v10, %v687_v3  ;;  %v2353_v10 = vmul.f32 %v9504_v15, %v9146_v5 }
  0x8c   : > { %v8590_v40 = vpop.eup %8589  ;;  %v696_v51 = vsel %vm693_vm3, %v695_v4, %v691_v21  ;;  %v2253_v21 = vmul.f32 %v9473_v2, %v2231_v48 }
  0x8d   : > { %v9478_v1 = vmul.f32 %v696_v51, %v601_v31  ;;  %v744_v50 = vmul.f32 %v8590_v40, %v637_v59  ;;  %v8476_v31 = vld [vmem:[%s13442_s4 + $0x38] sm:$0xff]  ;;  %vm749_vm9 = vweird.f32 %v8590_v40  ;;  %v9508_v0 = vadd.f32 %v2353_v10, %v2344_v8 }
  0x8e   : > { %2685 = vmatpush.msrb.mxu0 %v8476_v31  ;;  %vm750_vm10 = vmor %vm748_vm8, %vm749_vm9  ;;  %v2314_v51 = vrot.slane %v9282_v60, 1  ;;  %v2261_v28 = vadd.f32 %v9483_v63, %v2253_v21 }
  0x8f   : > { %8445 = vmatmul.msk.f32.gmra.mxu1 %vm774_vm6, %v9478_v1  ;;  %8437 = vmatmul.msk.f32.gmra.mxu0 %vm774_vm6, %v9478_v1  ;;  %v745_v33 = vsub.f32 1.0, %v744_v50  ;;  %v2369_v59 = vsub.f32 0.0, %v9508_v0 }
  0x90   : > { %2686 = vmatpush.msrb.mxu0 %v8475_v20  ;;  %v2315_v38 = vsel %vm2310_vm7, %v2312_v52, %v2314_v51 }
  0x91   : > { %v746_v58 = vmul.f32 %v8590_v40, %v745_v33  ;;  %v2377_v5 = vmul.f32 1.442695, %v2369_v59  ;;  %v2337_v27 = vmul.f32 %v9499_v53, %v2315_v38  ;;  %v2274_v59 = vrot.slane %v9184_v25, 2 }
  0x93   : > { %v747_v43 = vadd.f32 %v8590_v40, %v746_v58  ;;  %8591 = vpow2.f32 %v2377_v5  ;;  %v2275_v21 = vsel %vm2268_vm5, %v2272_v16, %v2274_v59 }
  0x95   : > { %v751_v46 = vsel %vm750_vm10, %v8590_v40, %v747_v43  ;;  %v2273_v40 = vsel %vm2268_vm5, %v2270_v29, %v2272_v16  ;;  %v2354_v29 = vmul.f32 %v9504_v15, %v9213_v44  ;;  %v2232_v44 = vrot.slane %v9184_v25, 3 }
  0x96   : > { %v756_v34 = vsel %vm753_vm11, %v755_v14, %v751_v46  ;;  %v2295_v50 = vmul.f32 %v9487_v41, %v2273_v40 }
  0x97   : > { %v9511_v56 = vmul.f32 %v756_v34, %v9465_v22  ;;  %v8474_v22 = vld [vmem:[%s13442_s4 + $0x28] sm:$0xff]  ;;  %v2233_v5 = vsel %vm2226_vm4, %v2230_v24, %v2232_v44  ;;  %v2316_v24 = vrot.slane %v9184_v25, 1 }
  0x98   : > { %2687 = vmatpush.msrb.mxu0 %v8474_v22  ;;  %v2303_v49 = vadd.f32 %v2295_v50, %v2261_v28  ;;  %v2254_v48 = vmul.f32 %v9473_v2, %v2233_v5  ;;  %v2296_v50 = vmul.f32 %v9487_v41, %v2275_v21 }
  0x99   : > { %8449 = vmatmul.msk.f32.gmra.mxu3 %vm774_vm6, %v9511_v56  ;;  %8441 = vmatmul.msk.f32.gmra.mxu2 %vm774_vm6, %v9511_v56  ;;  %v8592_v3 = vpop.eup %8591  ;;  %v2317_v16 = vsel %vm2310_vm7, %v2314_v51, %v2316_v24 }
  0x9a   : > { %v2393_v4 = vadd.f32 1.0, %v8592_v3  ;;  %2688 = vmatpush.msrb.mxu0 %v8473_v30  ;;  %v2345_v33 = vadd.f32 %v2337_v27, %v2303_v49  ;;  %v2262_v49 = vadd.f32 %v9483_v63, %v2254_v48 }
  0x9c   : > { %8593 = vrcp.f32 %v2393_v4  ;;  %v9539_v32 = vadd.f32 %v2354_v29, %v2345_v33  ;;  %vm2406_vm12 = vweird.f32 %v2393_v4  ;;  %v2412_v9 = vand.u32 2147483648, %v2393_v4 }
  0x9d   : > { %v2410_v62 = vand.u32 2147483647, %v2393_v4  ;;  %v2304_v33 = vadd.f32 %v2296_v50, %v2262_v49  ;;  %v2355_v29 = vmul.f32 %v9504_v15, %v9282_v60  ;;  %v9577_v60 = vld [vmem:[%s13445_s7] ss:$0 sm:$0xff] }
  0x9e   : > { %v2370_v52 = vsub.f32 0.0, %v9539_v32  ;;  %v2413_v20 = vor.u32 1.1754944e-38, %v2412_v9 }
  0x9f   : > { %vm2411_vm15 = vcmp.eq.f32.partialorder %v2410_v62, 8.507059e+37 }
  0xa0   : > { %v2379_v14 = vmul.f32 1.442695, %v2370_v52 }
  0xa2   : > { %v8594_v47 = vpop.eup %8593  ;;  %8595 = vpow2.f32 %v2379_v14 }
  0xa3   : > { %v2402_v58 = vmul.f32 %v8594_v47, %v2393_v4  ;;  %vm2407_vm13 = vweird.f32 %v8594_v47 }
  0xa4   : > { %vm2408_vm14 = vmor %vm2406_vm12, %vm2407_vm13 }
  0xa5   : > { %v2403_v61 = vsub.f32 1.0, %v2402_v58 }
  0xa7   : > { %v2404_v43 = vmul.f32 %v8594_v47, %v2403_v61 }
  0xa8   : > { %v8596_v40 = vpop.eup %8595 }
  0xa9   : > { %v2405_v46 = vadd.f32 %v8594_v47, %v2404_v43  ;;  %v2394_v38 = vadd.f32 1.0, %v8596_v40 }
  0xab   : > { %v2409_v3 = vsel %vm2408_vm14, %v8594_v47, %v2405_v46  ;;  %8597 = vrcp.f32 %v2394_v38  ;;  %vm2421_vm0 = vweird.f32 %v2394_v38  ;;  %v2425_v46 = vand.u32 2147483647, %v2394_v38 }
  0xac   : > { %v2414_v4 = vsel %vm2411_vm15, %v2413_v20, %v2409_v3 }
  0xad   : > { %v9555_v28 = vmul.f32 %v2414_v4, %v9508_v0  ;;  %v2338_v0 = vmul.f32 %v9499_v53, %v2317_v16  ;;  %vm2426_vm3 = vcmp.eq.f32.partialorder %v2425_v46, 8.507059e+37 }
  0xaf   : > { %8477 = vmatmul.msk.f32.vlgmr.msrb.gmra.mxu0 %vm774_vm6, %v9555_v28 }
  0xb1   : > { %v8598_v58 = vpop.eup %8597 }
  0xb2   : > { %v2417_v52 = vmul.f32 %v8598_v58, %v2394_v38  ;;  %vm2422_vm1 = vweird.f32 %v8598_v58 }
  0xb3   : > { %vm2423_vm2 = vmor %vm2421_vm0, %vm2422_vm1 }
  0xb4   : > { %v2418_v9 = vsub.f32 1.0, %v2417_v52 }
  0xb6   : > { %v2419_v14 = vmul.f32 %v8598_v58, %v2418_v9 }
  0xbb   : > { %v925_v31 = vpop.f32.mrf.mxu1  ;;  %v816_v43 = vpop.f32.mrf.mxu0 }
  0xbc   : > { %v1471_v39 = vperm.slane %v925_v31, 4  ;;  %v1457_v54 = vperm.slane %v925_v31, 2  ;;  %v1443_v55 = vperm.slane %v925_v31, 0  ;;  %v1478_v8 = vperm.slane %v925_v31, 5 }
  0xbd   : > { %v1464_v10 = vperm.slane %v925_v31, 3  ;;  %v1450_v34 = vperm.slane %v925_v31, 1  ;;  %v1492_v27 = vperm.slane %v925_v31, 7  ;;  %v1485_v47 = vperm.slane %v925_v31, 6 }
  0xbe   : > { %1476 = vperm.xlu2 %8554, %v1471_v39   ;;  %1462 = vperm.xlu1 %8553, %v1457_v54   ;;  %v2346_v39 = vadd.f32 %v2338_v0, %v2304_v33  ;;  %v2276_v0 = vrot.slane %v9187_v26, 2 }
  0xbf   : > { %1448 = vperm.xlu0 %8552, %v1443_v55  }
  0xc0   : > { %v9568_v54 = vadd.f32 %v2355_v29, %v2346_v39 }
  0xc2   : > { %v2371_v61 = vsub.f32 0.0, %v9568_v54 }
  0xc4   : > { %v2381_v62 = vmul.f32 1.442695, %v2371_v61 }
  0xc5   : > { %v9547_v22 = vpop.f32.mrf.mxu3 }
  0xc6   : > { %1483 = vperm.xlu2 %8554, %v1478_v8   ;;  %1469 = vperm.xlu1 %8553, %v1464_v10   ;;  %v1667_v30 = vperm.slane %v9547_v22, 0  ;;  %v1688_v31 = vperm.slane %v9547_v22, 3  ;;  %v1681_v55 = vperm.slane %v9547_v22, 2  ;;  %v1674_v51 = vperm.slane %v9547_v22, 1 }
  0xc7   : > { %1455 = vperm.xlu0 %8552, %v1450_v34   ;;  %v2427_v8 = vand.u32 2147483648, %v2394_v38  ;;  %v9580_v10 = vadd.f32 %v9577_v60, %v816_v43  ;;  %v2420_v34 = vadd.f32 %v8598_v58, %v2419_v14  ;;  %8599 = vpow2.f32 %v2381_v62  ;;  %v9589_v38 = vpop.f32.mrf.mxu1 }
  0xc8   : > { %v1709_v3 = vperm.slane %v9547_v22, 6  ;;  %v1702_v4 = vperm.slane %v9547_v22, 5  ;;  %v1695_v21 = vperm.slane %v9547_v22, 4  ;;  %v1513_v16 = vperm.slane %v9589_v38, 2 }
  0xc9   : > { %v2428_v20 = vor.u32 1.1754944e-38, %v2427_v8  ;;  %v848_v5 = vmin.f32 %v9580_v10, 20.0  ;;  %v2424_v48 = vsel %vm2423_vm2, %v8598_v58, %v2420_v34  ;;  %v1499_v33 = vperm.slane %v9589_v38, 0 }
  0xca   : > { %v2318_v58 = vrot.slane %v9187_v26, 1  ;;  %v1534_v62 = vperm.slane %v9589_v38, 5  ;;  %v1520_v14 = vperm.slane %v9589_v38, 3  ;;  %v1506_v46 = vperm.slane %v9589_v38, 1 }
  0xcb   : > { %v856_v40 = vmul.f32 1.442695, %v848_v5  ;;  %vm840_vm8 = vcmp.gt.f32.partialorder %v9580_v10, 20.0 }
  0xcd   : > { %8601 = vpow2.f32 %v856_v40  ;;  %v8600_v49 = vpop.eup %8599 }
  0xce   : > { %1672 = vperm.xlu2 %8554, %v1667_v30   ;;  %1497 = vperm.xlu1 %8553, %v1492_v27   ;;  %v2429_v30 = vsel %vm2426_vm3, %v2428_v20, %v2424_v48  ;;  %v9593_v27 = vadd.f32 1.0, %v8600_v49  ;;  %v1541_v48 = vperm.slane %v9589_v38, 6 }
  0xcf   : > { %1490 = vperm.xlu0 %8552, %v1485_v47   ;;  %v9587_v50 = vmul.f32 %v2429_v30, %v9539_v32  ;;  %v2234_v47 = vrot.slane %v9187_v26, 3 }
  0xd0   : > { %8603 = vrcp.f32 %v9593_v27  ;;  %vm2436_vm9 = vweird.f32 %v9593_v27  ;;  %v2440_v30 = vand.u32 2147483647, %v9593_v27 }
  0xd1   : > { %8478 = vmatmul.msk.f32.gmra.mxu0 %vm774_vm6, %v9587_v50  ;;  %v2235_v32 = vsel %vm2226_vm4, %v2232_v44, %v2234_v47  ;;  %v9628_v34 = vpop.f32.mrf.mxu3 }
  0xd2   : > { %v2255_v29 = vmul.f32 %v9473_v2, %v2235_v32  ;;  %v1723_v40 = vperm.slane %v9628_v34, 0  ;;  %v9650_v32 = vld [vmem:[%s13446_s8] sm:$0xff]  ;;  %vm2441_vm12 = vcmp.eq.f32.partialorder %v2440_v30, 8.507059e+37 }
  0xd3   : > { %v8602_v39 = vpop.eup %8601 }
  0xd4   : > { %v2263_v44 = vadd.f32 %v9483_v63, %v2255_v29 }
  0xd6   : > { %1693 = vperm.xlu2 %8554, %v1688_v31   ;;  %1686 = vperm.xlu1 %8553, %v1681_v55   ;;  %v1716_v31 = vperm.slane %v9547_v22, 7  ;;  %v2277_v55 = vsel %vm2268_vm5, %v2274_v59, %v2276_v0  ;;  %v2319_v22 = vsel %vm2310_vm7, %v2316_v24, %v2318_v58  ;;  %v9620_v52 = vpop.eup %8603  ;;  %v2356_v24 = vmul.f32 %v9504_v15, %v9184_v25 }
  0xd7   : > { %1679 = vperm.xlu0 %8552, %v1674_v51   ;;  %v872_v51 = vadd.f32 1.0, %v8602_v39  ;;  %v2297_v61 = vmul.f32 %v9487_v41, %v2277_v55  ;;  %v2339_v9 = vmul.f32 %v9499_v53, %v2319_v22  ;;  %v2432_v43 = vmul.f32 %v9620_v52, %v9593_v27 }
  0xd8   : > { %v2442_v25 = vand.u32 2147483648, %v9593_v27  ;;  %vm2437_vm10 = vweird.f32 %v9620_v52 }
  0xd9   : > { %8605 = vlog2.f32 %v872_v51  ;;  %v2305_v59 = vadd.f32 %v2297_v61, %v2263_v44  ;;  %v2433_v8 = vsub.f32 1.0, %v2432_v43  ;;  %vm9668_vm11 = vmor %vm2436_vm9, %vm2437_vm10 }
  0xdb   : > { %v2347_v20 = vadd.f32 %v2339_v9, %v2305_v59 }
  0xde   : > { %1714 = vperm.xlu2 %8554, %v1709_v3   ;;  %1707 = vperm.xlu1 %8553, %v1702_v4   ;;  %v2434_v3 = vmul.f32 %v9620_v52, %v2433_v8  ;;  %v1527_v4 = vperm.slane %v9589_v38, 4 }
  0xdf   : > { %1700 = vperm.xlu0 %8552, %v1695_v21   ;;  %v8606_v5 = vpop.eup %8605 }
  0xe0   : > { %v881_v21 = vmul.f32 0.6931472, %v8606_v5 }
  0xe2   : > { %v9641_v49 = vsel %vm840_vm8, %v9580_v10, %v881_v21 }
  0xe3   : > { %v1003_v29 = vrot.slane %v9641_v49, 1  ;;  %v1004_v39 = vrot.slane %v9641_v49, 2  ;;  %v1006_v10 = vrot.slane %v9641_v49, 4  ;;  %v1007_v55 = vrot.slane %v9641_v49, 5 }
  0xe4   : > { %v1008_v51 = vrot.slane %v9641_v49, 6  ;;  %v1009_v44 = vrot.slane %v9641_v49, 7  ;;  %v1059_v61 = vperm.slane %v9641_v49, 0 }
  0xe5   : > { %v1060_v22 = vperm.slane %v1003_v29, 0  ;;  %v1061_v59 = vperm.slane %v1004_v39, 0  ;;  %v1063_v43 = vperm.slane %v1006_v10, 0  ;;  %v2443_v29 = vor.u32 1.1754944e-38, %v2442_v25 }
  0xe6   : > { %1518 = vperm.xlu1 %8553, %v1513_v16   ;;  %1504 = vperm.xlu2 %8554, %v1499_v33   ;;  %v2435_v16 = vadd.f32 %v9620_v52, %v2434_v3  ;;  %v9645_v33 = vadd.f32 %v2356_v24, %v2347_v20  ;;  %v1065_v8 = vperm.slane %v1008_v51, 0  ;;  %v1187_v20 = vmul.f32 %v1059_v61, %v9650_v32 }
  0xe7   : > { %1721 = vperm.xlu0 %8552, %v1716_v31   ;;  %v1005_v31 = vrot.slane %v9641_v49, 3  ;;  %v1188_v24 = vmul.f32 %v1060_v22, %v9650_v32  ;;  %v1189_v5 = vmul.f32 %v1061_v59, %v9650_v32  ;;  %v1191_v39 = vmul.f32 %v1063_v43, %v9650_v32 }
  0xe8   : > { %v1193_v27 = vmul.f32 %v1065_v8, %v9650_v32  ;;  %v1251_v10 = vmul.f32 1.442695, %v1187_v20  ;;  %v2439_v30 = vsel %vm9668_vm11, %v9620_v52, %v2435_v16  ;;  %v2372_v22 = vsub.f32 0.0, %v9645_v33  ;;  %v8462_v52 = vld [vmem:[%s13444_s6 + $0x30] sm:$0xff]  ;;  %v8461_v20 = vld [vmem:[%s13444_s6 + $0x28] sm:$0xff] }
  0xe9   : > { %v1062_v9 = vperm.slane %v1005_v31, 0  ;;  %v8463_v31 = vld [vmem:[%s13444_s6 + $0x38] sm:$0xff]  ;;  %v1255_v51 = vmul.f32 1.442695, %v1189_v5  ;;  %v2444_v61 = vsel %vm2441_vm12, %v2443_v29, %v2439_v30  ;;  %v1730_v8 = vperm.slane %v9628_v34, 1 }
  0xea   : > { %2575 = vmatpush.msrb.mxu3 %v8463_v31  ;;  %8607 = vpow2.f32 %v1251_v10 }
  0xeb   : > { %v1190_v3 = vmul.f32 %v1062_v9, %v9650_v32  ;;  %v9687_v9 = vmul.f32 %v2444_v61, %v9568_v54 }
  0xec   : > { %2576 = vmatpush.msrb.mxu3 %v8462_v52 }
  0xed   : > { %v1257_v25 = vmul.f32 1.442695, %v1190_v3  ;;  %8479 = vmatmul.msk.f32.gmra.mxu0 %vm774_vm6, %v9687_v9  ;;  %v9705_v3 = vld [vmem:[%s9135_s18 + $0x28] sm:$0xff] }
  0xee   : > { %1539 = vperm.xlu1 %8553, %v1534_v62   ;;  %1525 = vperm.xlu2 %8554, %v1520_v14   ;;  %v828_v62 = vpop.f32.mrf.mxu2  ;;  %v1064_v14 = vperm.slane %v1007_v55, 0  ;;  %v1253_v55 = vmul.f32 1.442695, %v1188_v24  ;;  %v2383_v24 = vmul.f32 1.442695, %v2372_v22  ;;  %v13453_v21 = vrot.slane %v9705_v3, 3 }
  0xef   : > { %1511 = vperm.xlu0 %8552, %v1506_v46   ;;  %v1066_v46 = vperm.slane %v1009_v44, 0  ;;  %v1259_v44 = vmul.f32 1.442695, %v1191_v39  ;;  %2577 = vmatpush.msrb.mxu3 %v8461_v20  ;;  %v13452_v31 = vrot.slane %v9705_v3, 2  ;;  %v8944_v20 = vld [vmem:[%s9135_s18 + $0x20] sm:$0xff] }
  0xf0   : > { %8609 = vpow2.f32 %v1253_v55  ;;  %v8608_v5 = vpop.eup %8607  ;;  %v2357_v26 = vmul.f32 %v8944_v20, %v9504_v15 }
  0xf1   : > { %8611 = vpow2.f32 %v1255_v51  ;;  %1379 = vst.msk [vmem:[#allocation2] sm:$0xff] %vm774_vm6, %v8608_v5  ;;  %v1765_v51 = vperm.slane %v9628_v34, 6  ;;  %v9753_v5 = vmul.f32 %v9641_v49, %v9344_v37 }
  0xf2   : > { %8613 = vpow2.f32 %v1257_v25  ;;  %v13451_v25 = vrot.slane %v9705_v3, 1 }
  0xf3   : > { %8615 = vpow2.f32 %v1259_v44  ;;  %v1737_v44 = vperm.slane %v9628_v34, 2  ;;  %v1910_v49 = vrot.slane %v9753_v5, 4 }
  0xf6   : > { %1728 = vperm.xlu1 %8553, %v1723_v40   ;;  %1546 = vperm.xlu2 %8554, %v1541_v48   ;;  %v1192_v48 = vmul.f32 %v1064_v14, %v9650_v32  ;;  %v9675_v40 = vadd.f32 %v9577_v60, %v828_v62  ;;  %v1263_v62 = vmul.f32 1.442695, %v1193_v27  ;;  %v1744_v14 = vperm.slane %v9628_v34, 3  ;;  %v8610_v29 = vpop.eup %8609 }
  0xf7   : > { %1532 = vperm.xlu0 %8552, %v1527_v4   ;;  %v1194_v4 = vmul.f32 %v1066_v46, %v9650_v32  ;;  %v1548_v46 = vperm.slane %v9589_v38, 7  ;;  %v8460_v38 = vld [vmem:[%s13444_s6 + $0x20] sm:$0xff]  ;;  %v8612_v39 = vpop.eup %8611  ;;  %1380 = vst.msk [vmem:[#allocation2 + $0x8] sm:$0xff] %vm774_vm6, %v8610_v29  ;;  %v1772_v29 = vperm.slane %v9628_v34, 7 }
  0xf8   : > { %v1261_v59 = vmul.f32 1.442695, %v1192_v48  ;;  %v852_v43 = vmin.f32 %v9675_v40, 20.0  ;;  %2578 = vmatpush.msrb.mxu3 %v8460_v38  ;;  %v2237_v48 = vsel %vm2226_vm4, %v2234_v47, %v13453_v21  ;;  %v8614_v27 = vpop.eup %8613  ;;  %1381 = vst.msk [vmem:[#allocation2 + $0x10] sm:$0xff] %vm774_vm6, %v8612_v39  ;;  %v2279_v47 = vsel %vm2268_vm5, %v2276_v0, %v13452_v31  ;;  %v819_v38 = vpop.f32.mrf.mxu0 }
  0xf9   : > { %v1265_v16 = vmul.f32 1.442695, %v1194_v4  ;;  %8465 = vmatmul.msk.f32.vlgmr.msrb.gmra.mxu3 %vm774_vm6, %v9555_v28  ;;  %v2256_v10 = vmul.f32 %v9473_v2, %v2237_v48  ;;  %v8616_v55 = vpop.eup %8615  ;;  %1382 = vst.msk [vmem:[#allocation2 + $0x18] sm:$0xff] %vm774_vm6, %v8614_v27  ;;  %v1751_v4 = vperm.slane %v9628_v34, 4  ;;  %v2298_v22 = vmul.f32 %v9487_v41, %v2279_v47 }
  0xfa   : > { %v864_v54 = vmul.f32 1.442695, %v852_v43  ;;  %8617 = vpow2.f32 %v1261_v59  ;;  %1383 = vst.msk [vmem:[#allocation2 + $0x20] sm:$0xff] %vm774_vm6, %v8616_v55  ;;  %v2321_v0 = vsel %vm2310_vm7, %v2318_v58, %v13451_v25  ;;  %v9757_v39 = vadd.f32 %v9577_v60, %v819_v38 }
  0xfb   : > { %8619 = vpow2.f32 %v1263_v62  ;;  %v2264_v61 = vadd.f32 %v9483_v63, %v2256_v10  ;;  %v9740_v62 = vpop.f32.mrf.mxu1  ;;  %v1758_v27 = vperm.slane %v9628_v34, 5  ;;  %vm844_vm13 = vcmp.gt.f32.partialorder %v9675_v40, 20.0 }
  0xfc   : > { %8621 = vpow2.f32 %v1265_v16  ;;  %v1555_v58 = vperm.slane %v9740_v62, 0  ;;  %v849_v10 = vmin.f32 %v9757_v39, 20.0  ;;  %v1569_v47 = vperm.slane %v9740_v62, 2 }
  0xfd   : > { %8623 = vpow2.f32 %v864_v54  ;;  %vm841_vm2 = vcmp.gt.f32.partialorder %v9757_v39, 20.0 }
  0xfe   : > { %1749 = vperm.xlu1 %8553, %v1744_v14   ;;  %1735 = vperm.xlu2 %8554, %v1730_v8   ;;  %8625 = vpow2.f32 %v2383_v24  ;;  %v2306_v14 = vadd.f32 %v2298_v22, %v2264_v61  ;;  %v2340_v8 = vmul.f32 %v9499_v53, %v2321_v0  ;;  %v858_v55 = vmul.f32 1.442695, %v849_v10 }
  0xff   : > { %1553 = vperm.xlu0 %8552, %v1548_v46   ;;  %v1576_v61 = vperm.slane %v9740_v62, 3  ;;  %v1590_v22 = vperm.slane %v9740_v62, 5  ;;  %v1967_v0 = vperm.slane %v1910_v49, 0 }
 0x100   : > { %v8618_v30 = vpop.eup %8617  ;;  %v2348_v54 = vadd.f32 %v2340_v8, %v2306_v14  ;;  %v1911_v14 = vrot.slane %v9753_v5, 5 }
 0x101   : > { %v8620_v59 = vpop.eup %8619  ;;  %1384 = vst.msk [vmem:[#allocation2 + $0x28] sm:$0xff] %vm774_vm6, %v8618_v30  ;;  %8466 = vmatmul.msk.f32.gmra.mxu3 %vm774_vm6, %v9587_v50  ;;  %v1562_v30 = vperm.slane %v9740_v62, 1 }
 0x102   : > { %v8622_v43 = vpop.eup %8621  ;;  %1385 = vst.msk [vmem:[#allocation2 + $0x30] sm:$0xff] %vm774_vm6, %v8620_v59  ;;  %v9760_v48 = vadd.f32 %v2357_v26, %v2348_v54  ;;  %v1583_v59 = vperm.slane %v9740_v62, 4 }
 0x103   : > { %v8624_v52 = vpop.eup %8623  ;;  %1386 = vst.msk [vmem:[#allocation2 + $0x38] sm:$0xff] %vm774_vm6, %v8622_v43  ;;  %v1597_v43 = vperm.slane %v9740_v62, 6 }
 0x104   : > { %v8626_v16 = vpop.eup %8625  ;;  %v876_v46 = vadd.f32 1.0, %v8624_v52 }
 0x105   : > { %v9747_v24 = vadd.f32 1.0, %v8626_v16 }
 0x106   : > { %1770 = vperm.xlu1 %8553, %v1765_v51   ;;  %1756 = vperm.xlu2 %8554, %v1751_v4   ;;  %8627 = vlog2.f32 %v876_v46  ;;  %v2373_v51 = vsub.f32 0.0, %v9760_v48 }
 0x107   : > { %1742 = vperm.xlu0 %8552, %v1737_v44   ;;  %8629 = vrcp.f32 %v9747_v24  ;;  %vm2451_vm14 = vweird.f32 %v9747_v24 }
 0x108   : > { %8631 = vpow2.f32 %v858_v55  ;;  %v2385_v46 = vmul.f32 1.442695, %v2373_v51 }
 0x109   : > { %8467 = vmatmul.msk.f32.gmra.mxu3 %vm774_vm6, %v9687_v9 }
 0x10a   : > { %8633 = vpow2.f32 %v2385_v46 }
 0x10c   : > { %v8628_v4 = vpop.eup %8627  ;;  %v9935_v11 = vpop.f32.mrf.mxu1 }
 0x10d   : > { %v9769_v44 = vpop.eup %8629  ;;  %v889_v34 = vmul.f32 0.6931472, %v8628_v4 }
 0x10e   : > { %1777 = vperm.xlu2 %8554, %v1772_v29   ;;  %1560 = vperm.xlu1 %8553, %v1555_v58   ;;  %v9784_v16 = vmul.f32 %v9769_v44, %v9747_v24  ;;  %vm2452_vm15 = vweird.f32 %v9769_v44 }
 0x10f   : > { %1763 = vperm.xlu0 %8552, %v1758_v27   ;;  %v9780_v52 = vsel %vm844_vm13, %v9675_v40, %v889_v34  ;;  %vm9825_vm0 = vmor %vm2451_vm14, %vm2452_vm15 }
 0x110   : > { %v1031_v54 = vrot.slane %v9780_v52, 1  ;;  %v1032_v20 = vrot.slane %v9780_v52, 2  ;;  %v1033_v26 = vrot.slane %v9780_v52, 3  ;;  %v1034_v58 = vrot.slane %v9780_v52, 4 }
 0x111   : > { %v1035_v38 = vrot.slane %v9780_v52, 5  ;;  %v1036_v29 = vrot.slane %v9780_v52, 6  ;;  %v1037_v40 = vrot.slane %v9780_v52, 7  ;;  %v1091_v27 = vperm.slane %v9780_v52, 0 }
 0x112   : > { %v1092_v10 = vperm.slane %v1031_v54, 0  ;;  %v1093_v49 = vperm.slane %v1032_v20, 0  ;;  %v1094_v55 = vperm.slane %v1033_v26, 0  ;;  %v1095_v51 = vperm.slane %v1034_v58, 0 }
 0x113   : > { %v1096_v4 = vperm.slane %v1035_v38, 0  ;;  %v1097_v34 = vperm.slane %v1036_v29, 0  ;;  %v1098_v25 = vperm.slane %v1037_v40, 0  ;;  %v1219_v8 = vmul.f32 %v1091_v27, %v9650_v32 }
 0x114   : > { %v1220_v21 = vmul.f32 %v1092_v10, %v9650_v32  ;;  %v1221_v19 = vmul.f32 %v1093_v49, %v9650_v32  ;;  %v1222_v17 = vmul.f32 %v1094_v55, %v9650_v32  ;;  %v2455_v27 = vand.u32 2147483647, %v9747_v24  ;;  %v9804_v55 = vpop.f32.mrf.mxu3 }
 0x115   : > { %v1224_v54 = vmul.f32 %v1096_v4, %v9650_v32  ;;  %v1225_v20 = vmul.f32 %v1097_v34, %v9650_v32  ;;  %v1226_v26 = vmul.f32 %v1098_v25, %v9650_v32  ;;  %v9811_v25 = vld [vmem:[%s9135_s18 + $0x30] sm:$0xff] }
 0x116   : > { %1567 = vperm.xlu2 %8554, %v1562_v30   ;;  %1581 = vperm.xlu1 %8553, %v1576_v61   ;;  %v1223_v30 = vmul.f32 %v1095_v51, %v9650_v32  ;;  %v8632_v61 = vpop.eup %8631  ;;  %v1317_v58 = vmul.f32 1.442695, %v1220_v21  ;;  %v1319_v38 = vmul.f32 1.442695, %v1221_v19  ;;  %v1321_v29 = vmul.f32 1.442695, %v1222_v17 }
 0x117   : > { %1574 = vperm.xlu0 %8552, %v1569_v47   ;;  %v1315_v47 = vmul.f32 1.442695, %v1219_v8  ;;  %v1325_v10 = vmul.f32 1.442695, %v1224_v54  ;;  %v2457_v8 = vand.u32 2147483648, %v9747_v24  ;;  %v2448_v17 = vsub.f32 1.0, %v9784_v16  ;;  %v831_v24 = vpop.f32.mrf.mxu2 }
 0x118   : > { %v1477_v31 = vpop.permute.xlu2 %1476  ;;  %v1323_v40 = vmul.f32 1.442695, %v1223_v30  ;;  %v1327_v46 = vmul.f32 1.442695, %v1225_v20  ;;  %v1329_v19 = vmul.f32 1.442695, %v1226_v26  ;;  %v9818_v16 = vmul.f32 %v9780_v52, %v9361_v45 }
 0x119   : > { %8635 = vpow2.f32 %v1315_v47  ;;  %v2095_v49 = vmul.f32 %v1967_v0, %v1477_v31  ;;  %v1968_v21 = vperm.slane %v1911_v14, 0  ;;  %v13457_v31 = vrot.slane %v9811_v25, 3  ;;  %v8634_v0 = vpop.eup %8633 }
 0x11a   : > { %8637 = vpow2.f32 %v1317_v58  ;;  %v873_v4 = vadd.f32 1.0, %v8632_v61  ;;  %v2458_v34 = vor.u32 1.1754944e-38, %v2457_v8  ;;  %vm9830_vm1 = vcmp.eq.f32.partialorder %v2455_v27, 8.507059e+37 }
 0x11b   : > { %8639 = vpow2.f32 %v1319_v38  ;;  %2159 = vst.msk [vmem:[#allocation3 + $0x20] sm:$0xff] %vm774_vm6, %v2095_v49  ;;  %v1800_v52 = vperm.slane %v9804_v55, 3  ;;  %v13559_v47 = vrot.slane %v9705_v3, 3  ;;  %v13456_v58 = vrot.slane %v9811_v25, 2 }
 0x11c   : > { %8641 = vpow2.f32 %v1321_v29  ;;  %v9849_v27 = vadd.f32 %v9577_v60, %v831_v24  ;;  %v1937_v8 = vrot.slane %v9818_v16, 3  ;;  %v1908_v14 = vrot.slane %v9753_v5, 2 }
 0x11d   : > { %8643 = vpow2.f32 %v1323_v40  ;;  %v2239_v26 = vsel %vm2226_vm4, %v13559_v47, %v13457_v31  ;;  %v1995_v40 = vperm.slane %v9818_v16, 0  ;;  %v1807_v47 = vperm.slane %v9804_v55, 4 }
 0x11e   : > { %1588 = vperm.xlu2 %8554, %v1583_v59   ;;  %1602 = vperm.xlu1 %8553, %v1597_v43   ;;  %v1779_v59 = vperm.slane %v9804_v55, 0  ;;  %v2449_v43 = vmul.f32 %v9769_v44, %v2448_v17  ;;  %8645 = vpow2.f32 %v1325_v10  ;;  %v13560_v17 = vrot.slane %v9705_v3, 2 }
 0x11f   : > { %1595 = vperm.xlu0 %8552, %v1590_v22   ;;  %v1786_v22 = vperm.slane %v9804_v55, 1  ;;  %v8636_v30 = vpop.eup %8635  ;;  %8647 = vpow2.f32 %v1327_v46  ;;  %v2257_v46 = vmul.f32 %v9473_v2, %v2239_v26  ;;  %vm845_vm11 = vcmp.gt.f32.partialorder %v9849_v27, 20.0  ;;  %v834_v7 = vpop.f32.mrf.mxu2 }
 0x120   : > { %v1484_v51 = vpop.permute.xlu2 %1483  ;;  %v2450_v61 = vadd.f32 %v9769_v44, %v2449_v43  ;;  %v8638_v20 = vpop.eup %8637  ;;  %8649 = vpow2.f32 %v1329_v19  ;;  %1411 = vst.msk [vmem:[#allocation2 + $0x100] sm:$0xff] %vm774_vm6, %v8636_v30  ;;  %v9869_v30 = vadd.f32 1.0, %v8634_v0  ;;  %v1793_v0 = vperm.slane %v9804_v55, 2 }
 0x121   : > { %v8640_v38 = vpop.eup %8639  ;;  %1412 = vst.msk [vmem:[#allocation2 + $0x108] sm:$0xff] %vm774_vm6, %v8638_v20  ;;  %8651 = vlog2.f32 %v873_v4  ;;  %v13561_v4 = vperm.slane %v9740_v62, 7  ;;  %v2096_v54 = vmul.f32 %v1968_v21, %v1484_v51  ;;  %v1940_v20 = vrot.slane %v9818_v16, 6 }
 0x122   : > { %v2454_v29 = vsel %vm9825_vm0, %v9769_v44, %v2450_v61  ;;  %v8642_v10 = vpop.eup %8641  ;;  %1413 = vst.msk [vmem:[#allocation2 + $0x110] sm:$0xff] %vm774_vm6, %v8640_v38  ;;  %v2281_v44 = vsel %vm2268_vm5, %v13560_v17, %v13456_v58  ;;  %v2265_v62 = vadd.f32 %v9483_v63, %v2257_v46  ;;  %v1909_v51 = vrot.slane %v9753_v5, 3  ;;  %v822_v38 = vpop.f32.mrf.mxu0 }
 0x123   : > { %v2459_v49 = vsel %vm9830_vm1, %v2458_v34, %v2454_v29  ;;  %v8644_v19 = vpop.eup %8643  ;;  %1414 = vst.msk [vmem:[#allocation2 + $0x118] sm:$0xff] %vm774_vm6, %v8642_v10  ;;  %v853_v34 = vmin.f32 %v9849_v27, 20.0  ;;  %v2472_v29 = vand.u32 2147483648, %v9869_v30  ;;  %8653 = vrcp.f32 %v9869_v30 }
 0x124   : > { %v9865_v43 = vmul.f32 %v2459_v49, %v9645_v33  ;;  %v8646_v61 = vpop.eup %8645  ;;  %1415 = vst.msk [vmem:[#allocation2 + $0x120] sm:$0xff] %vm774_vm6, %v8644_v19  ;;  %v1998_v19 = vperm.slane %v1937_v8, 0  ;;  %vm2466_vm3 = vweird.f32 %v9869_v30 }
 0x125   : > { %v8648_v24 = vpop.eup %8647  ;;  %1416 = vst.msk [vmem:[#allocation2 + $0x128] sm:$0xff] %vm774_vm6, %v8646_v61  ;;  %v866_v26 = vmul.f32 1.442695, %v853_v34  ;;  %v9894_v34 = vperm.slane %v1940_v20, 0  ;;  %v9897_v61 = vperm.slane %v1909_v51, 0  ;;  %v9909_v8 = vor.u32 1.1754944e-38, %v2472_v29 }
 0x126   : > { %1609 = vperm.xlu2 %8554, %v13561_v4   ;;  %1791 = vperm.xlu1 %8553, %v1786_v22   ;;  %v2299_v22 = vmul.f32 %v9487_v41, %v2281_v44  ;;  %v8650_v63 = vpop.eup %8649  ;;  %1417 = vst.msk [vmem:[#allocation2 + $0x130] sm:$0xff] %vm774_vm6, %v8648_v24  ;;  %v1828_v44 = vperm.slane %v9804_v55, 7  ;;  %v1965_v4 = vperm.slane %v1908_v14, 0  ;;  %v2470_v24 = vand.u32 2147483647, %v9869_v30 }
 0x127   : > { %1784 = vperm.xlu0 %8552, %v1779_v59   ;;  %8480 = vmatmul.msk.f32.gmra.mxu0 %vm774_vm6, %v9865_v43  ;;  %v8652_v49 = vpop.eup %8651  ;;  %1418 = vst.msk [vmem:[#allocation2 + $0x138] sm:$0xff] %vm774_vm6, %v8650_v63  ;;  %8655 = vpow2.f32 %v866_v26 }
 0x128   : > { %v1673_v33 = vpop.permute.xlu2 %1672  ;;  %8468 = vmatmul.msk.f32.gmra.mxu3 %vm774_vm6, %v9865_v43  ;;  %v9886_v10 = vadd.f32 %v2299_v22, %v2265_v62  ;;  %2160 = vst.msk [vmem:[#allocation3 + $0x28] sm:$0xff] %vm774_vm6, %v2096_v54  ;;  %v9901_v22 = vadd.f32 %v9577_v60, %v822_v38  ;;  %vm9938_vm9 = vcmp.eq.f32.partialorder %v2470_v24, 8.507059e+37 }
 0x129   : > { %v2123_v59 = vmul.f32 %v1995_v40, %v1673_v33  ;;  %v883_v40 = vmul.f32 0.6931472, %v8652_v49  ;;  %v9923_v29 = vpop.eup %8653 }
 0x12a   : > { %vm2467_vm8 = vweird.f32 %v9923_v29  ;;  %vm842_vm12 = vcmp.gt.f32.partialorder %v9901_v22, 20.0 }
 0x12b   : > { %2187 = vst.msk [vmem:[#allocation3 + $0x100] sm:$0xff] %vm774_vm6, %v2123_v59  ;;  %v9907_v54 = vsel %vm841_vm2, %v9757_v39, %v883_v40  ;;  %vm9964_vm10 = vmor %vm2466_vm3, %vm2467_vm8 }
 0x12c   : > { %v1010_v20 = vrot.slane %v9907_v54, 1  ;;  %v1011_v33 = vrot.slane %v9907_v54, 2  ;;  %v1012_v51 = vrot.slane %v9907_v54, 3  ;;  %v1013_v63 = vrot.slane %v9907_v54, 4 }
 0x12d   : > { %v1014_v59 = vrot.slane %v9907_v54, 5  ;;  %v1015_v39 = vrot.slane %v9907_v54, 6  ;;  %v1016_v26 = vrot.slane %v9907_v54, 7  ;;  %v1067_v38 = vperm.slane %v9907_v54, 0 }
 0x12e   : > { %1798 = vperm.xlu2 %8554, %v1793_v0   ;;  %1812 = vperm.xlu1 %8553, %v1807_v47   ;;  %v1068_v49 = vperm.slane %v1010_v20, 0  ;;  %v1069_v40 = vperm.slane %v1011_v33, 0  ;;  %v1070_v58 = vperm.slane %v1012_v51, 0  ;;  %v1071_v0 = vperm.slane %v1013_v63, 0  ;;  %v8656_v20 = vpop.eup %8655 }
 0x12f   : > { %1805 = vperm.xlu0 %8552, %v1800_v52   ;;  %v1072_v62 = vperm.slane %v1014_v59, 0  ;;  %v1073_v14 = vperm.slane %v1015_v39, 0  ;;  %v1074_v21 = vperm.slane %v1016_v26, 0  ;;  %v1195_v46 = vmul.f32 %v1067_v38, %v9650_v32 }
 0x130   : > { %v1694_v47 = vpop.permute.xlu2 %1693  ;;  %v1463_v31 = vpop.permute.xlu1 %1462  ;;  %v1196_v18 = vmul.f32 %v1068_v49, %v9650_v32  ;;  %v1197_v52 = vmul.f32 %v1069_v40, %v9650_v32  ;;  %v1198_v13 = vmul.f32 %v1070_v58, %v9650_v32  ;;  %v1199_v12 = vmul.f32 %v1071_v0, %v9650_v32 }
 0x131   : > { %v1449_v17 = vpop.permute.xlu0 %1448  ;;  %v1200_v33 = vmul.f32 %v1072_v62, %v9650_v32  ;;  %v1201_v51 = vmul.f32 %v1073_v14, %v9650_v32  ;;  %v1267_v63 = vmul.f32 1.442695, %v1195_v46  ;;  %v2462_v59 = vmul.f32 %v9923_v29, %v9869_v30 }
 0x132   : > { %v1202_v39 = vmul.f32 %v1074_v21, %v9650_v32  ;;  %v1269_v26 = vmul.f32 1.442695, %v1196_v18  ;;  %v1271_v38 = vmul.f32 1.442695, %v1197_v52  ;;  %v1273_v49 = vmul.f32 1.442695, %v1198_v13  ;;  %v825_v52 = vpop.f32.mrf.mxu0 }
 0x133   : > { %8657 = vpow2.f32 %v1267_v63  ;;  %v1275_v40 = vmul.f32 1.442695, %v1199_v12  ;;  %v1277_v46 = vmul.f32 1.442695, %v1200_v33  ;;  %v2126_v62 = vmul.f32 %v1998_v19, %v1694_v47 }
 0x134   : > { %8659 = vpow2.f32 %v1269_v26  ;;  %v2093_v14 = vmul.f32 %v1965_v4, %v1463_v31  ;;  %v13564_v0 = vperm.slane %v9804_v55, 5  ;;  %v1279_v13 = vmul.f32 1.442695, %v1201_v51 }
 0x135   : > { %8661 = vpow2.f32 %v1271_v38  ;;  %v13565_v12 = vperm.slane %v9753_v5, 0  ;;  %v13566_v21 = vperm.slane %v9804_v55, 6  ;;  %v2463_v24 = vsub.f32 1.0, %v2462_v59  ;;  %2190 = vst.msk [vmem:[#allocation3 + $0x118] sm:$0xff] %vm774_vm6, %v2126_v62 }
 0x136   : > { %1819 = vperm.xlu2 %8554, %v13564_v0   ;;  %1833 = vperm.xlu1 %8553, %v1828_v44   ;;  %8663 = vpow2.f32 %v1273_v49  ;;  %v1281_v63 = vmul.f32 1.442695, %v1202_v39  ;;  %v1625_v4 = vperm.slane %v9935_v11, 2  ;;  %v13567_v44 = vrot.slane %v9811_v25, 1  ;;  %2157 = vst.msk [vmem:[#allocation3 + $0x10] sm:$0xff] %vm774_vm6, %v2093_v14 }
 0x137   : > { %v2091_v18 = vmul.f32 %v13565_v12, %v1449_v17  ;;  %1826 = vperm.xlu0 %8552, %v13566_v21   ;;  %v13568_v47 = vrot.slane %v9705_v3, 1  ;;  %8665 = vpow2.f32 %v1275_v40  ;;  %v877_v51 = vadd.f32 1.0, %v8656_v20 }
 0x138   : > { %v1715_v19 = vpop.permute.xlu2 %1714  ;;  %v1470_v31 = vpop.permute.xlu1 %1469  ;;  %v2464_v59 = vmul.f32 %v9923_v29, %v2463_v24  ;;  %8667 = vpow2.f32 %v1277_v46  ;;  %v1618_v39 = vperm.slane %v9935_v11, 1  ;;  %v1913_v38 = vrot.slane %v9753_v5, 7 }
 0x139   : > { %v2323_v33 = vsel %vm2310_vm7, %v13568_v47, %v13567_v44  ;;  %v2129_v55 = vmul.f32 %v9894_v34, %v1715_v19  ;;  %v1456_v17 = vpop.permute.xlu0 %1455  ;;  %2155 = vst.msk [vmem:[#allocation3] sm:$0xff] %vm774_vm6, %v2091_v18  ;;  %v9970_v34 = vadd.f32 %v9577_v60, %v825_v52  ;;  %v8658_v20 = vpop.eup %8657  ;;  %8669 = vpow2.f32 %v1279_v13 }
 0x13a   : > { %v1611_v49 = vperm.slane %v9935_v11, 0  ;;  %v2465_v40 = vadd.f32 %v9923_v29, %v2464_v59  ;;  %v1912_v46 = vrot.slane %v9753_v5, 6  ;;  %v8660_v30 = vpop.eup %8659  ;;  %8671 = vpow2.f32 %v1281_v63  ;;  %1387 = vst.msk [vmem:[#allocation2 + $0x40] sm:$0xff] %vm774_vm6, %v8658_v20 }
 0x13b   : > { %2193 = vst.msk [vmem:[#allocation3 + $0x130] sm:$0xff] %vm774_vm6, %v2129_v55  ;;  %v9979_v62 = vmul.f32 %v9907_v54, %v9387_v36  ;;  %v850_v60 = vmin.f32 %v9901_v22, 20.0  ;;  %v2341_v14 = vmul.f32 %v9499_v53, %v2323_v33  ;;  %v8662_v0 = vpop.eup %8661  ;;  %v13571_v13 = vrot.slane %v9753_v5, 1 }
 0x13c   : > { %1388 = vst.msk [vmem:[#allocation2 + $0x48] sm:$0xff] %vm774_vm6, %v8660_v30  ;;  %8673 = vlog2.f32 %v877_v51  ;;  %v2469_v18 = vsel %vm9964_vm10, %v9923_v29, %v2465_v40  ;;  %v8664_v21 = vpop.eup %8663  ;;  %v1970_v24 = vperm.slane %v1913_v38, 0  ;;  %v851_v52 = vmin.f32 %v9970_v34, 20.0 }
 0x13d   : > { %v1964_v12 = vperm.slane %v13571_v13, 0  ;;  %1389 = vst.msk [vmem:[#allocation2 + $0x50] sm:$0xff] %vm774_vm6, %v8662_v0  ;;  %v2474_v54 = vsel %vm9938_vm9, %v9909_v8, %v2469_v18  ;;  %v8666_v63 = vpop.eup %8665  ;;  %v1969_v29 = vperm.slane %v1912_v46, 0  ;;  %v860_v44 = vmul.f32 1.442695, %v850_v60 }
 0x13e   : > { %1630 = vperm.xlu2 %8554, %v1625_v4   ;;  %1623 = vperm.xlu1 %8553, %v1618_v39   ;;  %1390 = vst.msk [vmem:[#allocation2 + $0x58] sm:$0xff] %vm774_vm6, %v8664_v21  ;;  %v9996_v5 = vmul.f32 %v2474_v54, %v9760_v48  ;;  %v8668_v19 = vpop.eup %8667  ;;  %v2094_v4 = vmul.f32 %v9897_v61, %v1470_v31  ;;  %v1971_v8 = vperm.slane %v9979_v62, 0  ;;  %v1936_v59 = vrot.slane %v9818_v16, 2 }
 0x13f   : > { %1616 = vperm.xlu0 %8552, %v1611_v49   ;;  %1391 = vst.msk [vmem:[#allocation2 + $0x60] sm:$0xff] %vm774_vm6, %v8666_v63  ;;  %v10002_v58 = vadd.f32 %v2341_v14, %v9886_v10  ;;  %v8670_v33 = vpop.eup %8669  ;;  %v2092_v55 = vmul.f32 %v1964_v12, %v1456_v17  ;;  %v1935_v61 = vrot.slane %v9818_v16, 1  ;;  %v1916_v31 = vrot.slane %v9979_v62, 3  ;;  %v10016_v49 = vpop.f32.mrf.mxu3 }
 0x140   : > { %13572 = vst [vmem:[#allocation18_spill] sm:$0xff] %v9996_v5  ;;  %v1498_v47 = vpop.permute.xlu1 %1497  ;;  %8481 = vmatmul.msk.f32.gmra.mxu0 %vm774_vm6, %v9996_v5  ;;  %v1505_v51 = vpop.permute.xlu2 %1504  ;;  %8469 = vmatmul.msk.f32.gmra.mxu3 %vm774_vm6, %v9996_v5  ;;  %v862_v26 = vmul.f32 1.442695, %v851_v52  ;;  %v1646_v20 = vperm.slane %v9935_v11, 5  ;;  %v1639_v30 = vperm.slane %v9935_v11, 4  ;;  %v1632_v60 = vperm.slane %v9935_v11, 3 }
 0x141   : > { %1392 = vst.msk [vmem:[#allocation2 + $0x68] sm:$0xff] %vm774_vm6, %v8668_v19  ;;  %v1491_v48 = vpop.permute.xlu0 %1490  ;;  %v8672_v10 = vpop.eup %8671  ;;  %v2098_v39 = vmul.f32 %v1970_v24, %v1498_v47  ;;  %v2099_v46 = vmul.f32 %v1971_v8, %v1505_v51  ;;  %8675 = vpow2.f32 %v860_v44  ;;  %v1997_v14 = vperm.slane %v1936_v59, 0 }
 0x142   : > { %1393 = vst.msk [vmem:[#allocation2 + $0x70] sm:$0xff] %vm774_vm6, %v8670_v33  ;;  %v8674_v17 = vpop.eup %8673  ;;  %v2097_v38 = vmul.f32 %v1969_v29, %v1491_v48  ;;  %v1996_v0 = vperm.slane %v1935_v61, 0  ;;  %v1974_v13 = vperm.slane %v1916_v31, 0  ;;  %8677 = vpow2.f32 %v862_v26 }
 0x143   : > { %1394 = vst.msk [vmem:[#allocation2 + $0x78] sm:$0xff] %vm774_vm6, %v8672_v10  ;;  %v891_v40 = vmul.f32 0.6931472, %v8674_v17  ;;  %v1835_v18 = vperm.slane %v10016_v49, 0  ;;  %v1660_v21 = vperm.slane %v9935_v11, 7  ;;  %vm843_vm13 = vcmp.gt.f32.partialorder %v9970_v34, 20.0 }
 0x144   : > { %2158 = vst.msk [vmem:[#allocation3 + $0x18] sm:$0xff] %vm774_vm6, %v2094_v4 }
 0x145   : > { %2156 = vst.msk [vmem:[#allocation3 + $0x8] sm:$0xff] %vm774_vm6, %v2092_v55  ;;  %v10023_v12 = vsel %vm845_vm11, %v9849_v27, %v891_v40 }
 0x146   : > { %2162 = vst.msk [vmem:[#allocation3 + $0x38] sm:$0xff] %vm774_vm6, %v2098_v39  ;;  %1651 = vperm.xlu2 %8554, %v1646_v20   ;;  %1644 = vperm.xlu1 %8553, %v1639_v30   ;;  %v1038_v54 = vrot.slane %v10023_v12, 1  ;;  %v1039_v24 = vrot.slane %v10023_v12, 2  ;;  %v1040_v52 = vrot.slane %v10023_v12, 3  ;;  %v1041_v63 = vrot.slane %v10023_v12, 4 }
 0x147   : > { %2161 = vst.msk [vmem:[#allocation3 + $0x30] sm:$0xff] %vm774_vm6, %v2097_v38  ;;  %1637 = vperm.xlu0 %8552, %v1632_v60   ;;  %v1042_v27 = vrot.slane %v10023_v12, 5  ;;  %v1043_v29 = vrot.slane %v10023_v12, 6  ;;  %v1044_v19 = vrot.slane %v10023_v12, 7  ;;  %v1099_v4 = vperm.slane %v10023_v12, 0  ;;  %v8676_v61 = vpop.eup %8675 }
 0x148   : > { %2163 = vst.msk [vmem:[#allocation3 + $0x40] sm:$0xff] %vm774_vm6, %v2099_v46  ;;  %v1100_v44 = vperm.slane %v1038_v54, 0  ;;  %v1101_v47 = vperm.slane %v1039_v24, 0  ;;  %v1102_v8 = vperm.slane %v1040_v52, 0  ;;  %v1103_v33 = vperm.slane %v1041_v63, 0  ;;  %v8678_v17 = vpop.eup %8677  ;;  %v1687_v46 = vpop.permute.xlu1 %1686 }
 0x149   : > { %v1104_v55 = vperm.slane %v1042_v27, 0  ;;  %v1105_v48 = vperm.slane %v1043_v29, 0  ;;  %v1106_v51 = vperm.slane %v1044_v19, 0  ;;  %v1227_v59 = vmul.f32 %v1099_v4, %v9650_v32  ;;  %v1680_v63 = vpop.permute.xlu0 %1679  ;;  %v1526_v27 = vpop.permute.xlu2 %1525 }
 0x14a   : > { %v1228_v31 = vmul.f32 %v1100_v44, %v9650_v32  ;;  %v1229_v10 = vmul.f32 %v1101_v47, %v9650_v32  ;;  %v1230_v39 = vmul.f32 %v1102_v8, %v9650_v32  ;;  %v1231_v26 = vmul.f32 %v1103_v33, %v9650_v32  ;;  %v10050_v33 = vld [vmem:[%s9135_s18 + $0x38] sm:$0xff] }
 0x14b   : > { %v1232_v38 = vmul.f32 %v1104_v55, %v9650_v32  ;;  %v1233_v20 = vmul.f32 %v1105_v48, %v9650_v32  ;;  %v1331_v40 = vmul.f32 1.442695, %v1227_v59  ;;  %v1653_v30 = vperm.slane %v9935_v11, 6 }
 0x14c   : > { %v1234_v60 = vmul.f32 %v1106_v51, %v9650_v32  ;;  %v1333_v54 = vmul.f32 1.442695, %v1228_v31  ;;  %v1335_v24 = vmul.f32 1.442695, %v1229_v10  ;;  %v1337_v52 = vmul.f32 1.442695, %v1230_v39 }
 0x14d   : > { %8679 = vpow2.f32 %v1331_v40  ;;  %v1339_v29 = vmul.f32 1.442695, %v1231_v26  ;;  %v2358_v19 = vmul.f32 %v9705_v3, %v9504_v15  ;;  %v1341_v4 = vmul.f32 1.442695, %v1232_v38 }
 0x14e   : > { %1840 = vperm.xlu2 %8554, %v1835_v18   ;;  %1665 = vperm.xlu1 %8553, %v1660_v21   ;;  %8681 = vpow2.f32 %v1333_v54  ;;  %v1343_v44 = vmul.f32 1.442695, %v1233_v20  ;;  %v2125_v11 = vmul.f32 %v1997_v14, %v1687_v46  ;;  %v2124_v32 = vmul.f32 %v1996_v0, %v1680_v63 }
 0x14f   : > { %1658 = vperm.xlu0 %8552, %v1653_v30   ;;  %8683 = vpow2.f32 %v1335_v24  ;;  %v2102_v47 = vmul.f32 %v1974_v13, %v1526_v27  ;;  %v1345_v8 = vmul.f32 1.442695, %v1234_v60  ;;  %v13464_v55 = vrot.slane %v10050_v33, 3  ;;  %v10083_v30 = vld [vmem:[%s13441_s3 + $0x1] ss:$0 sm:$0xff] }
 0x150   : > { %8685 = vpow2.f32 %v1337_v52  ;;  %v874_v18 = vadd.f32 1.0, %v8676_v61  ;;  %2189 = vst.msk [vmem:[#allocation3 + $0x110] sm:$0xff] %vm774_vm6, %v2125_v11  ;;  %v10055_v3 = vadd.f32 %v2358_v19, %v10002_v58  ;;  %v875_v21 = vadd.f32 1.0, %v8678_v17 }
 0x151   : > { %8687 = vpow2.f32 %v1339_v29  ;;  %2188 = vst.msk [vmem:[#allocation3 + $0x108] sm:$0xff] %vm774_vm6, %v2124_v32  ;;  %v13573_v0 = vrot.slane %v9811_v25, 3  ;;  %v13463_v48 = vrot.slane %v10050_v33, 2  ;;  %v13462_v10 = vrot.slane %v10050_v33, 1 }
 0x152   : > { %8689 = vpow2.f32 %v1341_v4  ;;  %2166 = vst.msk [vmem:[#allocation3 + $0x58] sm:$0xff] %vm774_vm6, %v2102_v47  ;;  %v2374_v59 = vsub.f32 0.0, %v10055_v3  ;;  %v13574_v26 = vrot.slane %v9811_v25, 2  ;;  %v13575_v24 = vrot.slane %v9811_v25, 1 }
 0x153   : > { %v8680_v14 = vpop.eup %8679  ;;  %8691 = vpow2.f32 %v1343_v44  ;;  %v2241_v13 = vsel %vm2226_vm4, %v13573_v0, %v13464_v55  ;;  %v10101_v32 = vmul.f32 %v9811_v25, %v9504_v15  ;;  %v1863_v55 = vperm.slane %v10016_v49, 4 }
 0x154   : > { %v8682_v51 = vpop.eup %8681  ;;  %8693 = vpow2.f32 %v1345_v8  ;;  %1419 = vst.msk [vmem:[#allocation2 + $0x140] sm:$0xff] %vm774_vm6, %v8680_v14  ;;  %v2258_v31 = vmul.f32 %v9473_v2, %v2241_v13  ;;  %v2283_v17 = vsel %vm2268_vm5, %v13574_v26, %v13463_v48  ;;  %v2387_v40 = vmul.f32 1.442695, %v2374_v59  ;;  %v10114_v26 = vld [vmem:[%s13446_s8] sm:$0xff] }
 0x155   : > { %v8684_v58 = vpop.eup %8683  ;;  %1420 = vst.msk [vmem:[#allocation2 + $0x148] sm:$0xff] %vm774_vm6, %v8682_v51  ;;  %8695 = vlog2.f32 %v874_v18  ;;  %v2300_v54 = vmul.f32 %v9487_v41, %v2283_v17  ;;  %v2325_v52 = vsel %vm2310_vm7, %v13575_v24, %v13462_v10  ;;  %v10123_v24 = vpop.permute.xlu0 %1700 }
 0x156   : > { %v8686_v61 = vpop.eup %8685  ;;  %1421 = vst.msk [vmem:[#allocation2 + $0x150] sm:$0xff] %vm774_vm6, %v8684_v58  ;;  %8697 = vlog2.f32 %v875_v21  ;;  %v2266_v60 = vadd.f32 %v10083_v30, %v2258_v31  ;;  %v2342_v19 = vmul.f32 %v9499_v53, %v2325_v52 }
 0x157   : > { %v8688_v39 = vpop.eup %8687  ;;  %1422 = vst.msk [vmem:[#allocation2 + $0x158] sm:$0xff] %vm774_vm6, %v8686_v61  ;;  %8699 = vpow2.f32 %v2387_v40 }
 0x158   : > { %v8690_v38 = vpop.eup %8689  ;;  %1423 = vst.msk [vmem:[#allocation2 + $0x160] sm:$0xff] %vm774_vm6, %v8688_v39  ;;  %v2308_v11 = vadd.f32 %v2300_v54, %v2266_v60  ;;  %v10121_v54 = vpop.permute.xlu1 %1707 }
 0x159   : > { %v8692_v20 = vpop.eup %8691  ;;  %1424 = vst.msk [vmem:[#allocation2 + $0x168] sm:$0xff] %vm774_vm6, %v8690_v38 }
 0x15a   : > { %v8694_v46 = vpop.eup %8693  ;;  %1425 = vst.msk [vmem:[#allocation2 + $0x170] sm:$0xff] %vm774_vm6, %v8692_v20 }
 0x15b   : > { %v8696_v63 = vpop.eup %8695  ;;  %1426 = vst.msk [vmem:[#allocation2 + $0x178] sm:$0xff] %vm774_vm6, %v8694_v46 }
 0x15c   : > { %v8698_v27 = vpop.eup %8697  ;;  %v885_v29 = vmul.f32 0.6931472, %v8696_v63 }
 0x15d   : > { %v887_v44 = vmul.f32 0.6931472, %v8698_v27  ;;  %v8700_v38 = vpop.eup %8699 }
 0x15e   : > { %v10097_v4 = vsel %vm842_vm12, %v9901_v22, %v885_v29 }
 0x15f   : > { %v1017_v47 = vrot.slane %v10097_v4, 1  ;;  %v1018_v8 = vrot.slane %v10097_v4, 2  ;;  %v1019_v18 = vrot.slane %v10097_v4, 3  ;;  %v1020_v21 = vrot.slane %v10097_v4, 4 }
 0x160   : > { %v1021_v14 = vrot.slane %v10097_v4, 5  ;;  %v1022_v0 = vrot.slane %v10097_v4, 6  ;;  %v1023_v22 = vrot.slane %v10097_v4, 7  ;;  %v1075_v13 = vperm.slane %v10097_v4, 0 }
 0x161   : > { %v1076_v51 = vperm.slane %v1017_v47, 0  ;;  %v1077_v58 = vperm.slane %v1018_v8, 0  ;;  %v1078_v25 = vperm.slane %v1019_v18, 0  ;;  %v1079_v59 = vperm.slane %v1020_v21, 0  ;;  %v10128_v47 = vpop.permute.xlu2 %1546 }
 0x162   : > { %v1080_v61 = vperm.slane %v1021_v14, 0  ;;  %v1081_v31 = vperm.slane %v1022_v0, 0  ;;  %v1082_v39 = vperm.slane %v1023_v22, 0  ;;  %v1203_v17 = vmul.f32 %v10114_v26, %v1075_v13 }
 0x163   : > { %v1204_v20 = vmul.f32 %v10114_v26, %v1076_v51  ;;  %v1205_v40 = vmul.f32 %v10114_v26, %v1077_v58  ;;  %v1206_v46 = vmul.f32 %v10114_v26, %v1078_v25  ;;  %v1207_v60 = vmul.f32 %v10114_v26, %v1079_v59 }
 0x164   : > { %v1208_v52 = vmul.f32 %v10114_v26, %v1080_v61  ;;  %v1209_v63 = vmul.f32 %v10114_v26, %v1081_v31  ;;  %v1210_v27 = vmul.f32 %v10114_v26, %v1082_v39  ;;  %v1283_v29 = vmul.f32 1.442695, %v1203_v17 }
 0x165   : > { %v1285_v8 = vmul.f32 1.442695, %v1204_v20  ;;  %v1287_v18 = vmul.f32 1.442695, %v1205_v40  ;;  %v1289_v21 = vmul.f32 1.442695, %v1206_v46  ;;  %v10130_v14 = vadd.f32 %v2342_v19, %v2308_v11  ;;  %v10147_v46 = vpop.permute.xlu0 %1721 }
 0x166   : > { %8701 = vpow2.f32 %v1283_v29  ;;  %v1291_v0 = vmul.f32 1.442695, %v1207_v60  ;;  %v1293_v22 = vmul.f32 1.442695, %v1208_v52  ;;  %v10132_v13 = vadd.f32 1.0, %v8700_v38  ;;  %v10149_v60 = vpop.permute.xlu1 %1518 }
 0x167   : > { %8703 = vpow2.f32 %v1285_v8  ;;  %v1295_v51 = vmul.f32 1.442695, %v1209_v63  ;;  %v1297_v58 = vmul.f32 1.442695, %v1210_v27  ;;  %v10137_v25 = vsel %vm843_vm13, %v9970_v34, %v887_v44 }
 0x168   : > { %8705 = vpow2.f32 %v1287_v18  ;;  %v1024_v59 = vrot.slane %v10137_v25, 1  ;;  %v1025_v61 = vrot.slane %v10137_v25, 2  ;;  %v1026_v19 = vrot.slane %v10137_v25, 3 }
 0x169   : > { %8707 = vpow2.f32 %v1289_v21  ;;  %v1027_v11 = vrot.slane %v10137_v25, 4  ;;  %v1028_v31 = vrot.slane %v10137_v25, 5  ;;  %v1029_v39 = vrot.slane %v10137_v25, 6  ;;  %v10151_v8 = vpop.permute.xlu2 %1735 }
 0x16a   : > { %8709 = vpow2.f32 %v1291_v0  ;;  %v1030_v17 = vrot.slane %v10137_v25, 7  ;;  %v1083_v34 = vperm.slane %v10137_v25, 0  ;;  %v1084_v44 = vperm.slane %v1024_v59, 0 }
 0x16b   : > { %8711 = vpow2.f32 %v1293_v22  ;;  %v1085_v38 = vperm.slane %v1025_v61, 0  ;;  %v1086_v20 = vperm.slane %v1026_v19, 0  ;;  %v1087_v40 = vperm.slane %v1027_v11, 0 }
 0x16c   : > { %v8702_v52 = vpop.eup %8701  ;;  %8713 = vpow2.f32 %v1295_v51  ;;  %v1088_v63 = vperm.slane %v1028_v31, 0  ;;  %v1089_v27 = vperm.slane %v1029_v39, 0  ;;  %v1090_v29 = vperm.slane %v1030_v17, 0 }
 0x16d   : > { %v8704_v18 = vpop.eup %8703  ;;  %8715 = vpow2.f32 %v1297_v58  ;;  %1395 = vst.msk [vmem:[#allocation2 + $0x80] sm:$0xff] %vm774_vm6, %v8702_v52  ;;  %v1211_v21 = vmul.f32 %v10114_v26, %v1083_v34  ;;  %v1212_v0 = vmul.f32 %v10114_v26, %v1084_v44  ;;  %v1213_v22 = vmul.f32 %v10114_v26, %v1085_v38 }
 0x16e   : > { %v8706_v59 = vpop.eup %8705  ;;  %1396 = vst.msk [vmem:[#allocation2 + $0x88] sm:$0xff] %vm774_vm6, %v8704_v18  ;;  %v1214_v51 = vmul.f32 %v10114_v26, %v1086_v20  ;;  %v1215_v61 = vmul.f32 %v10114_v26, %v1087_v40  ;;  %v1216_v19 = vmul.f32 %v10114_v26, %v1088_v63  ;;  %v1217_v11 = vmul.f32 %v10114_v26, %v1089_v27 }
 0x16f   : > { %v8708_v58 = vpop.eup %8707  ;;  %1397 = vst.msk [vmem:[#allocation2 + $0x90] sm:$0xff] %vm774_vm6, %v8706_v59  ;;  %v1218_v31 = vmul.f32 %v10114_v26, %v1090_v29  ;;  %v1299_v39 = vmul.f32 1.442695, %v1211_v21  ;;  %v1301_v17 = vmul.f32 1.442695, %v1212_v0  ;;  %8717 = vrcp.f32 %v10132_v13 }
 0x170   : > { %v8710_v34 = vpop.eup %8709  ;;  %1398 = vst.msk [vmem:[#allocation2 + $0x98] sm:$0xff] %vm774_vm6, %v8708_v58  ;;  %v1303_v44 = vmul.f32 1.442695, %v1213_v22  ;;  %v1305_v38 = vmul.f32 1.442695, %v1214_v51  ;;  %v10168_v40 = vmul.f32 %v10023_v12, %v9405_v35  ;;  %v1939_v63 = vrot.slane %v9818_v16, 5  ;;  %v10179_v51 = vpop.permute.xlu1 %1539 }
 0x171   : > { %v8712_v20 = vpop.eup %8711  ;;  %1399 = vst.msk [vmem:[#allocation2 + $0xa0] sm:$0xff] %vm774_vm6, %v8710_v34  ;;  %8719 = vpow2.f32 %v1299_v39  ;;  %v1307_v52 = vmul.f32 1.442695, %v1215_v61  ;;  %v1309_v29 = vmul.f32 1.442695, %v1216_v19  ;;  %v10175_v21 = vadd.f32 %v10101_v32, %v10130_v14  ;;  %v10181_v61 = vpop.permute.xlu0 %1511 }
 0x172   : > { %v8714_v27 = vpop.eup %8713  ;;  %1400 = vst.msk [vmem:[#allocation2 + $0xa8] sm:$0xff] %vm774_vm6, %v8712_v20  ;;  %8721 = vpow2.f32 %v1301_v17  ;;  %v1311_v18 = vmul.f32 1.442695, %v1217_v11  ;;  %v1313_v12 = vmul.f32 1.442695, %v1218_v31  ;;  %v2000_v22 = vperm.slane %v1939_v63, 0  ;;  %v10187_v11 = vpop.permute.xlu2 %1756 }
 0x173   : > { %v8716_v0 = vpop.eup %8715  ;;  %1401 = vst.msk [vmem:[#allocation2 + $0xb0] sm:$0xff] %vm774_vm6, %v8714_v27  ;;  %8723 = vpow2.f32 %v1303_v44  ;;  %v1938_v59 = vrot.slane %v9818_v16, 4  ;;  %v1919_v19 = vrot.slane %v9979_v62, 6  ;;  %v1856_v32 = vperm.slane %v10016_v49, 3  ;;  %v10239_v35 = vpop.f32.mrf.mxu0 }
 0x174   : > { %1402 = vst.msk [vmem:[#allocation2 + $0xb8] sm:$0xff] %vm774_vm6, %v8716_v0  ;;  %8725 = vpow2.f32 %v1305_v38  ;;  %v1849_v14 = vperm.slane %v10016_v49, 2  ;;  %v2485_v58 = vand.u32 2147483647, %v10132_v13  ;;  %v2487_v31 = vand.u32 2147483648, %v10132_v13 }
 0x175   : > { %8727 = vpow2.f32 %v1307_v52  ;;  %v2128_v39 = vmul.f32 %v2000_v22, %v10121_v54  ;;  %v10192_v17 = vpop.eup %8717  ;;  %v1999_v34 = vperm.slane %v1938_v59, 0  ;;  %1861 = vperm.xlu2 %8554, %v1856_v32   ;;  %v1842_v44 = vperm.slane %v10016_v49, 1 }
 0x176   : > { %8729 = vpow2.f32 %v1309_v29  ;;  %1854 = vperm.xlu1 %8553, %v1849_v14   ;;  %v1941_v38 = vrot.slane %v9818_v16, 7  ;;  %v10198_v52 = vmul.f32 %v10097_v4, %v9417_v23  ;;  %v2477_v63 = vmul.f32 %v10192_v17, %v10132_v13 }
 0x177   : > { %v8720_v20 = vpop.eup %8719  ;;  %8731 = vpow2.f32 %v1311_v18  ;;  %2192 = vst.msk [vmem:[#allocation3 + $0x128] sm:$0xff] %vm774_vm6, %v2128_v39  ;;  %v2375_v54 = vsub.f32 0.0, %v10175_v21  ;;  %vm2481_vm14 = vweird.f32 %v10132_v13  ;;  %v1977_v16 = vperm.slane %v1919_v19, 0  ;;  %1847 = vperm.xlu0 %8552, %v1842_v44  }
 0x178   : > { %v8722_v27 = vpop.eup %8721  ;;  %8733 = vpow2.f32 %v1313_v12  ;;  %1403 = vst.msk [vmem:[#allocation2 + $0xc0] sm:$0xff] %vm774_vm6, %v8720_v20  ;;  %v1915_v29 = vrot.slane %v9979_v62, 2  ;;  %v2478_v18 = vsub.f32 1.0, %v2477_v63  ;;  %vm2482_vm15 = vweird.f32 %v10192_v17 }
 0x179   : > { %v8724_v4 = vpop.eup %8723  ;;  %1404 = vst.msk [vmem:[#allocation2 + $0xc8] sm:$0xff] %vm774_vm6, %v8722_v27  ;;  %v2002_v0 = vperm.slane %v1941_v38, 0  ;;  %v1942_v22 = vrot.slane %v10168_v40, 1  ;;  %vm10211_vm0 = vcmp.eq.f32.partialorder %v2485_v58, 8.507059e+37  ;;  %v2488_v19 = vor.u32 1.1754944e-38, %v2487_v31  ;;  %v1729_v27 = vpop.permute.xlu1 %1728  ;;  %vm10226_vm1 = vmor %vm2481_vm14, %vm2482_vm15 }
 0x17a   : > { %v8726_v59 = vpop.eup %8725  ;;  %1405 = vst.msk [vmem:[#allocation2 + $0xd0] sm:$0xff] %vm774_vm6, %v8724_v4  ;;  %v2127_v32 = vmul.f32 %v1999_v34, %v10123_v24  ;;  %v1918_v14 = vrot.slane %v9979_v62, 5  ;;  %v2479_v44 = vmul.f32 %v10192_v17, %v2478_v18  ;;  %v1914_v20 = vrot.slane %v9979_v62, 1  ;;  %v1533_v58 = vpop.permute.xlu0 %1532 }
 0x17b   : > { %v8728_v39 = vpop.eup %8727  ;;  %1406 = vst.msk [vmem:[#allocation2 + $0xd8] sm:$0xff] %vm774_vm6, %v8726_v59  ;;  %v2004_v38 = vperm.slane %v1942_v22, 0  ;;  %v1945_v63 = vrot.slane %v10168_v40, 4  ;;  %v1973_v31 = vperm.slane %v1915_v29, 0  ;;  %v1877_v34 = vperm.slane %v10016_v49, 6  ;;  %v1778_v59 = vpop.permute.xlu2 %1777 }
 0x17c   : > { %v8730_v4 = vpop.eup %8729  ;;  %1407 = vst.msk [vmem:[#allocation2 + $0xe0] sm:$0xff] %vm774_vm6, %v8728_v39  ;;  %v1870_v18 = vperm.slane %v10016_v49, 5  ;;  %v2389_v22 = vmul.f32 1.442695, %v2375_v54  ;;  %v2480_v39 = vadd.f32 %v10192_v17, %v2479_v44  ;;  %v2105_v48 = vmul.f32 %v1977_v16, %v10128_v47 }
 0x17d   : > { %v8732_v10 = vpop.eup %8731  ;;  %1408 = vst.msk [vmem:[#allocation2 + $0xe8] sm:$0xff] %vm774_vm6, %v8730_v4  ;;  %v2130_v13 = vmul.f32 %v2002_v0, %v10147_v46  ;;  %v2101_v29 = vmul.f32 %v1973_v31, %v10149_v60  ;;  %1882 = vperm.xlu2 %8554, %v1877_v34   ;;  %v1976_v54 = vperm.slane %v1918_v14, 0  ;;  %v2007_v42 = vperm.slane %v1945_v63, 0 }
 0x17e   : > { %v8734_v6 = vpop.eup %8733  ;;  %1409 = vst.msk [vmem:[#allocation2 + $0xf0] sm:$0xff] %vm774_vm6, %v8732_v10  ;;  %1875 = vperm.xlu1 %8553, %v1870_v18   ;;  %8735 = vpow2.f32 %v2389_v22  ;;  %v2484_v47 = vsel %vm10226_vm1, %v10192_v17, %v2480_v39  ;;  %v2132_v46 = vmul.f32 %v2004_v38, %v10151_v8  ;;  %v1972_v16 = vperm.slane %v1914_v20, 0 }
 0x17f   : > { %1410 = vst.msk [vmem:[#allocation2 + $0xf8] sm:$0xff] %vm774_vm6, %v8734_v6  ;;  %v2003_v10 = vperm.slane %v10168_v40, 0  ;;  %v2489_v60 = vsel %vm10211_vm0, %v2488_v19, %v2484_v47  ;;  %1868 = vperm.xlu0 %8552, %v1863_v55   ;;  %v1917_v0 = vrot.slane %v9979_v62, 4  ;;  %v1948_v14 = vrot.slane %v10168_v40, 7  ;;  %v10255_v6 = vld [vmem:[%s13445_s7] ss:$0 sm:$0xff] }
 0x180   : > { %2191 = vst.msk [vmem:[#allocation3 + $0x120] sm:$0xff] %vm774_vm6, %v2127_v32  ;;  %v10258_v8 = vadd.f32 %v10255_v6, %v834_v7  ;;  %v10261_v17 = vmul.f32 %v2489_v60, %v10055_v3  ;;  %v2104_v12 = vmul.f32 %v1976_v54, %v10179_v51  ;;  %v3217_v55 = vperm.slane %v10239_v35, 1 }
 0x181   : > { %2169 = vst.msk [vmem:[#allocation3 + $0x70] sm:$0xff] %vm774_vm6, %v2105_v48  ;;  %v3210_v19 = vperm.slane %v10239_v35, 0  ;;  %v2100_v32 = vmul.f32 %v1972_v16, %v10181_v61  ;;  %v2135_v44 = vmul.f32 %v2007_v42, %v10187_v11  ;;  %v2010_v38 = vperm.slane %v1948_v14, 0  ;;  %v1750_v31 = vpop.permute.xlu1 %1749 }
 0x182   : > { %13580 = vst [vmem:[#allocation19_spill] sm:$0xff] %v10261_v17  ;;  %v854_v7 = vmin.f32 %v10258_v8, 20.0  ;;  %8482 = vmatmul.msk.f32.gmra.mxu0 %vm774_vm6, %v10261_v17  ;;  %v1975_v3 = vperm.slane %v1917_v0, 0  ;;  %v1944_v48 = vrot.slane %v10168_v40, 3  ;;  %v1920_v51 = vrot.slane %v9979_v62, 7  ;;  %8470 = vmatmul.msk.f32.gmra.mxu3 %vm774_vm6, %v10261_v17  ;;  %v1554_v34 = vpop.permute.xlu0 %1553 }
 0x183   : > { %2194 = vst.msk [vmem:[#allocation3 + $0x138] sm:$0xff] %vm774_vm6, %v2130_v13  ;;  %v1921_v20 = vrot.slane %v10198_v52, 1  ;;  %v2131_v42 = vmul.f32 %v2003_v10, %v1729_v27  ;;  %v1884_v62 = vperm.slane %v10016_v49, 7  ;;  %v2138_v18 = vmul.f32 %v2010_v38, %v1778_v59  ;;  %v1568_v39 = vpop.permute.xlu2 %1567 }
 0x184   : > { %2165 = vst.msk [vmem:[#allocation3 + $0x50] sm:$0xff] %vm774_vm6, %v2101_v29  ;;  %v8736_v61 = vpop.eup %8735  ;;  %v868_v11 = vmul.f32 1.442695, %v854_v7  ;;  %v2103_v4 = vmul.f32 %v1975_v3, %v1533_v58  ;;  %v2006_v24 = vperm.slane %v1944_v48, 0  ;;  %v1978_v22 = vperm.slane %v1920_v51, 0 }
 0x185   : > { %2196 = vst.msk [vmem:[#allocation3 + $0x148] sm:$0xff] %vm774_vm6, %v2132_v46  ;;  %v10281_v63 = vadd.f32 1.0, %v8736_v61  ;;  %3222 = vperm.xlu2 %8554, %v3217_v55   ;;  %v1980_v27 = vperm.slane %v1921_v20, 0  ;;  %v1924_v49 = vrot.slane %v10198_v52, 4  ;;  %v13581_v59 = vrot.slane %v10050_v33, 3 }
 0x186   : > { %2168 = vst.msk [vmem:[#allocation3 + $0x68] sm:$0xff] %vm774_vm6, %v2104_v12  ;;  %3215 = vperm.xlu1 %8553, %v3210_v19   ;;  %8737 = vpow2.f32 %v868_v11  ;;  %v2134_v58 = vmul.f32 %v2006_v24, %v1750_v31  ;;  %v2106_v13 = vmul.f32 %v1978_v22, %v1554_v34  ;;  %v13582_v47 = vrot.slane %v10050_v33, 2 }
 0x187   : > { %2164 = vst.msk [vmem:[#allocation3 + $0x48] sm:$0xff] %vm774_vm6, %v2100_v32  ;;  %8739 = vrcp.f32 %v10281_v63  ;;  %1889 = vperm.xlu0 %8552, %v1884_v62   ;;  %v2108_v29 = vmul.f32 %v1980_v27, %v1568_v39  ;;  %v2250_v54 = vsel %vm2226_vm4, %v13581_v59, 0.0  ;;  %v1947_v16 = vrot.slane %v10168_v40, 6 }
 0x188   : > { %2199 = vst.msk [vmem:[#allocation3 + $0x160] sm:$0xff] %vm774_vm6, %v2135_v44  ;;  %v2292_v46 = vsel %vm2268_vm5, %v13582_v47, 0.0  ;;  %v1943_v10 = vrot.slane %v10168_v40, 2  ;;  %v2259_v60 = vmul.f32 %v9473_v2, %v2250_v54  ;;  %v3238_v0 = vperm.slane %v10239_v35, 4 }
 0x189   : > { %2195 = vst.msk [vmem:[#allocation3 + $0x140] sm:$0xff] %vm774_vm6, %v2131_v42  ;;  %v3231_v14 = vperm.slane %v10239_v35, 3  ;;  %v2009_v55 = vperm.slane %v1947_v16, 0  ;;  %v2301_v44 = vmul.f32 %v9487_v41, %v2292_v46  ;;  %v3224_v3 = vperm.slane %v10239_v35, 2  ;;  %v1771_v2 = vpop.permute.xlu1 %1770 }
 0x18a   : > { %2167 = vst.msk [vmem:[#allocation3 + $0x60] sm:$0xff] %vm774_vm6, %v2103_v4  ;;  %v2005_v19 = vperm.slane %v1943_v10, 0  ;;  %v2267_v32 = vadd.f32 %v10083_v30, %v2259_v60  ;;  %v1743_v48 = vpop.permute.xlu0 %1742  ;;  %v1983_v51 = vperm.slane %v1924_v49, 0  ;;  %v13583_v20 = vrot.slane %v10050_v33, 1 }
 0x18b   : > { %2202 = vst.msk [vmem:[#allocation3 + $0x178] sm:$0xff] %vm774_vm6, %v2138_v18  ;;  %vm2496_vm4 = vweird.f32 %v10281_v63  ;;  %v2137_v41 = vmul.f32 %v2009_v55, %v1771_v2  ;;  %v1589_v11 = vpop.permute.xlu2 %1588  ;;  %v2500_v4 = vand.u32 2147483647, %v10281_v63  ;;  %v2502_v24 = vand.u32 2147483648, %v10281_v63 }
 0x18c   : > { %2198 = vst.msk [vmem:[#allocation3 + $0x158] sm:$0xff] %vm774_vm6, %v2134_v58  ;;  %v8738_v12 = vpop.eup %8737  ;;  %v2334_v61 = vsel %vm2310_vm7, %v13583_v20, 0.0  ;;  %v2133_v30 = vmul.f32 %v2005_v19, %v1743_v48  ;;  %v2111_v31 = vmul.f32 %v1983_v51, %v1589_v11  ;;  %v2309_v62 = vadd.f32 %v2301_v44, %v2267_v32 }
 0x18d   : > { %2170 = vst.msk [vmem:[#allocation3 + $0x78] sm:$0xff] %vm774_vm6, %v2106_v13  ;;  %v8740_v38 = vpop.eup %8739  ;;  %v878_v7 = vadd.f32 1.0, %v8738_v12  ;;  %3243 = vperm.xlu2 %8554, %v3238_v0   ;;  %v2343_v18 = vmul.f32 %v9499_v53, %v2334_v61  ;;  %v2503_v27 = vor.u32 1.1754944e-38, %v2502_v24  ;;  %v3259_v58 = vperm.slane %v10239_v35, 7 }
 0x18e   : > { %2172 = vst.msk [vmem:[#allocation3 + $0x88] sm:$0xff] %vm774_vm6, %v2108_v29  ;;  %v2492_v42 = vmul.f32 %v8740_v38, %v10281_v63  ;;  %3236 = vperm.xlu1 %8553, %v3231_v14   ;;  %vm2497_vm5 = vweird.f32 %v8740_v38  ;;  %v3252_v13 = vperm.slane %v10239_v35, 6  ;;  %vm2501_vm2 = vcmp.eq.f32.partialorder %v2500_v4, 8.507059e+37 }
 0x18f   : > { %8741 = vlog2.f32 %v878_v7  ;;  %3229 = vperm.xlu0 %8552, %v3224_v3   ;;  %2201 = vst.msk [vmem:[#allocation3 + $0x170] sm:$0xff] %vm774_vm6, %v2137_v41  ;;  %vm10321_vm7 = vmor %vm2496_vm4, %vm2497_vm5  ;;  %v2351_v49 = vadd.f32 %v2343_v18, %v2309_v62  ;;  %v2360_v53 = vmul.f32 %v10050_v33, %v9504_v15  ;;  %vm846_vm3 = vcmp.gt.f32.partialorder %v10258_v8, 20.0 }
 0x190   : > { %v2493_v34 = vsub.f32 1.0, %v2492_v42  ;;  %2197 = vst.msk [vmem:[#allocation3 + $0x150] sm:$0xff] %vm774_vm6, %v2133_v30  ;;  %v3245_v47 = vperm.slane %v10239_v35, 5 }
 0x191   : > { %2175 = vst.msk [vmem:[#allocation3 + $0xa0] sm:$0xff] %vm774_vm6, %v2111_v31  ;;  %v10337_v60 = vadd.f32 %v2360_v53, %v2351_v49  ;;  %v1946_v53 = vrot.slane %v10168_v40, 5 }
 0x192   : > { %v2494_v22 = vmul.f32 %v8740_v38, %v2493_v34  ;;  %v10351_v34 = vpop.f32.mrf.mxu0 }
 0x193   : > { %v2376_v18 = vsub.f32 0.0, %v10337_v60  ;;  %v2008_v40 = vperm.slane %v1946_v53, 0 }
 0x194   : > { %v2495_v29 = vadd.f32 %v8740_v38, %v2494_v22 }
 0x195   : > { %v8742_v59 = vpop.eup %8741  ;;  %3264 = vperm.xlu2 %8554, %v3259_v58   ;;  %v3273_v58 = vperm.slane %v10351_v34, 1 }
 0x196   : > { %v2499_v63 = vsel %vm10321_vm7, %v8740_v38, %v2495_v29  ;;  %v893_v54 = vmul.f32 0.6931472, %v8742_v59  ;;  %3257 = vperm.xlu1 %8553, %v3252_v13   ;;  %v3266_v13 = vperm.slane %v10351_v34, 0  ;;  %v2391_v59 = vmul.f32 1.442695, %v2376_v18 }
 0x197   : > { %v2504_v46 = vsel %vm2501_vm2, %v2503_v27, %v2499_v63  ;;  %3250 = vperm.xlu0 %8552, %v3245_v47   ;;  %v3280_v27 = vperm.slane %v10351_v34, 2  ;;  %v1764_v63 = vpop.permute.xlu0 %1763  ;;  %v1927_v47 = vrot.slane %v10198_v52, 7 }
 0x198   : > { %v10334_v16 = vmul.f32 %v2504_v46, %v10175_v21  ;;  %v902_v10 = vsel %vm846_vm3, %v10258_v8, %v893_v54  ;;  %v1610_v54 = vpop.permute.xlu2 %1609  ;;  %v1561_v46 = vpop.permute.xlu1 %1560 }
 0x199   : > { %v1045_v15 = vrot.slane %v902_v10, 1  ;;  %v1046_v33 = vrot.slane %v902_v10, 2  ;;  %v1047_v0 = vrot.slane %v902_v10, 3  ;;  %v1048_v14 = vrot.slane %v902_v10, 4 }
 0x19a   : > { %13586 = vst [vmem:[#allocation20_spill] sm:$0xff] %v10334_v16  ;;  %8483 = vmatmul.msk.f32.gmra.mxu0 %vm774_vm6, %v10334_v16  ;;  %v1049_v12 = vrot.slane %v902_v10, 5  ;;  %v1050_v35 = vrot.slane %v902_v10, 6  ;;  %v1051_v55 = vrot.slane %v902_v10, 7  ;;  %v1107_v19 = vperm.slane %v902_v10, 0  ;;  %8471 = vmatmul.msk.f32.gmra.mxu3 %vm774_vm6, %v10334_v16 }
 0x19b   : > { %v1108_v21 = vperm.slane %v1045_v15, 0  ;;  %v1109_v32 = vperm.slane %v1046_v33, 0  ;;  %v1110_v8 = vperm.slane %v1047_v0, 0  ;;  %v1111_v44 = vperm.slane %v1048_v14, 0  ;;  %v837_v15 = vpop.f32.mrf.mxu2 }
 0x19c   : > { %v1112_v38 = vperm.slane %v1049_v12, 0  ;;  %v1113_v7 = vperm.slane %v1050_v35, 0  ;;  %v1114_v3 = vperm.slane %v1051_v55, 0  ;;  %v1235_v2 = vmul.f32 %v10114_v26, %v1107_v19 }
 0x19d   : > { %v1236_v48 = vmul.f32 %v10114_v26, %v1108_v21  ;;  %v1237_v51 = vmul.f32 %v10114_v26, %v1109_v32  ;;  %v1238_v20 = vmul.f32 %v10114_v26, %v1110_v8  ;;  %v1239_v61 = vmul.f32 %v10114_v26, %v1111_v44  ;;  %3285 = vperm.xlu2 %8554, %v3280_v27  }
 0x19e   : > { %v1240_v42 = vmul.f32 %v10114_v26, %v1112_v38  ;;  %v1241_v41 = vmul.f32 %v10114_v26, %v1113_v7  ;;  %v1347_v30 = vmul.f32 1.442695, %v1235_v2  ;;  %v1242_v11 = vmul.f32 %v10114_v26, %v1114_v3  ;;  %3278 = vperm.xlu1 %8553, %v3273_v58  }
 0x19f   : > { %v1349_v4 = vmul.f32 1.442695, %v1236_v48  ;;  %v1351_v24 = vmul.f32 1.442695, %v1237_v51  ;;  %v1353_v31 = vmul.f32 1.442695, %v1238_v20  ;;  %v10358_v49 = vmul.f32 %v902_v10, %v9423_v57  ;;  %3271 = vperm.xlu0 %8552, %v3266_v13  }
 0x1a0   : > { %8743 = vpow2.f32 %v1347_v30  ;;  %v1355_v62 = vmul.f32 1.442695, %v1239_v61  ;;  %v1357_v22 = vmul.f32 1.442695, %v1240_v42  ;;  %v1359_v39 = vmul.f32 1.442695, %v1241_v41  ;;  %v1575_v42 = vpop.permute.xlu0 %1574  ;;  %v1799_v30 = vpop.permute.xlu2 %1798 }
 0x1a1   : > { %8745 = vpow2.f32 %v1349_v4  ;;  %v1361_v29 = vmul.f32 1.442695, %v1242_v11  ;;  %v10363_v0 = vadd.f32 %v10255_v6, %v837_v15  ;;  %v1950_v14 = vrot.slane %v10358_v49, 2 }
 0x1a2   : > { %8747 = vpow2.f32 %v1351_v24  ;;  %v1922_v35 = vrot.slane %v10198_v52, 2  ;;  %v1986_v6 = vperm.slane %v1927_v47, 0  ;;  %v3301_v32 = vperm.slane %v10351_v34, 5  ;;  %v1582_v24 = vpop.permute.xlu1 %1581 }
 0x1a3   : > { %8749 = vpow2.f32 %v1353_v31  ;;  %v855_v55 = vmin.f32 %v10363_v0, 20.0  ;;  %v3294_v8 = vperm.slane %v10351_v34, 4  ;;  %v1923_v44 = vrot.slane %v10198_v52, 3 }
 0x1a4   : > { %8751 = vpow2.f32 %v1355_v62  ;;  %v2136_v3 = vmul.f32 %v2008_v40, %v1764_v63  ;;  %v1979_v2 = vperm.slane %v10198_v52, 0  ;;  %v3287_v48 = vperm.slane %v10351_v34, 3 }
 0x1a5   : > { %8753 = vpow2.f32 %v1357_v22  ;;  %v870_v38 = vmul.f32 1.442695, %v855_v55  ;;  %v2013_v51 = vperm.slane %v1950_v14, 0  ;;  %v2114_v61 = vmul.f32 %v1986_v6, %v1610_v54  ;;  %3306 = vperm.xlu2 %8554, %v3301_v32  }
 0x1a6   : > { %v8744_v33 = vpop.eup %8743  ;;  %8755 = vpow2.f32 %v1359_v39  ;;  %3299 = vperm.xlu1 %8553, %v3294_v8   ;;  %v1981_v41 = vperm.slane %v1922_v35, 0  ;;  %v2107_v4 = vmul.f32 %v1979_v2, %v1561_v46  ;;  %v10382_v62 = vmul.f32 %v10137_v25, %v9478_v1  ;;  %2200 = vst.msk [vmem:[#allocation3 + $0x168] sm:$0xff] %vm774_vm6, %v2136_v3  ;;  %v10392_v25 = vpop.f32.mrf.mxu0 }
 0x1a7   : > { %v8746_v10 = vpop.eup %8745  ;;  %8757 = vpow2.f32 %v1361_v29  ;;  %1427 = vst.msk [vmem:[#allocation2 + $0x180] sm:$0xff] %vm774_vm6, %v8744_v33  ;;  %3292 = vperm.xlu0 %8552, %v3287_v48   ;;  %v1982_v22 = vperm.slane %v1923_v44, 0  ;;  %v2141_v27 = vmul.f32 %v2013_v51, %v1799_v30  ;;  %v1925_v13 = vrot.slane %v10198_v52, 5 }
 0x1a8   : > { %v8748_v12 = vpop.eup %8747  ;;  %1428 = vst.msk [vmem:[#allocation2 + $0x188] sm:$0xff] %vm774_vm6, %v8746_v10  ;;  %8759 = vpow2.f32 %v2391_v59  ;;  %v2109_v18 = vmul.f32 %v1981_v41, %v1575_v42  ;;  %v1926_v29 = vrot.slane %v10198_v52, 6  ;;  %v3315_v59 = vperm.slane %v10351_v34, 7  ;;  %v1596_v33 = vpop.permute.xlu0 %1595 }
 0x1a9   : > { %v8750_v19 = vpop.eup %8749  ;;  %1429 = vst.msk [vmem:[#allocation2 + $0x190] sm:$0xff] %vm774_vm6, %v8748_v12  ;;  %8761 = vpow2.f32 %v870_v38  ;;  %v2110_v58 = vmul.f32 %v1982_v22, %v1582_v24  ;;  %v3322_v63 = vperm.slane %v10392_v25, 0  ;;  %v1929_v54 = vrot.slane %v10382_v62, 2  ;;  %v1820_v40 = vpop.permute.xlu2 %1819 }
 0x1aa   : > { %v8752_v21 = vpop.eup %8751  ;;  %1430 = vst.msk [vmem:[#allocation2 + $0x198] sm:$0xff] %vm774_vm6, %v8750_v19  ;;  %v3308_v46 = vperm.slane %v10351_v34, 6  ;;  %v1953_v15 = vrot.slane %v10358_v49, 5  ;;  %v1984_v52 = vperm.slane %v1925_v13, 0  ;;  %v1985_v14 = vperm.slane %v1926_v29, 0  ;;  %v1603_v35 = vpop.permute.xlu1 %1602 }
 0x1ab   : > { %v8754_v7 = vpop.eup %8753  ;;  %1431 = vst.msk [vmem:[#allocation2 + $0x1a0] sm:$0xff] %vm774_vm6, %v8752_v21  ;;  %v1989_v55 = vperm.slane %v1929_v54, 0  ;;  %v1932_v19 = vrot.slane %v10382_v62, 5  ;;  %v3336_v38 = vperm.slane %v10392_v25, 2  ;;  %v1949_v3 = vrot.slane %v10358_v49, 1  ;;  %v2580_v41 = vpop.f32.mrf.mxu3 }
 0x1ac   : > { %v8756_v20 = vpop.eup %8755  ;;  %1432 = vst.msk [vmem:[#allocation2 + $0x1a8] sm:$0xff] %vm774_vm6, %v8754_v7  ;;  %v2016_v10 = vperm.slane %v1953_v15, 0  ;;  %v2112_v12 = vmul.f32 %v1984_v52, %v1596_v33  ;;  %v2113_v8 = vmul.f32 %v1985_v14, %v1603_v35  ;;  %v3343_v7 = vperm.slane %v10392_v25, 3 }
 0x1ad   : > { %v8758_v11 = vpop.eup %8757  ;;  %1433 = vst.msk [vmem:[#allocation2 + $0x1b0] sm:$0xff] %vm774_vm6, %v8756_v20  ;;  %3327 = vperm.xlu2 %8554, %v3322_v63   ;;  %v3329_v2 = vperm.slane %v10392_v25, 1  ;;  %v1951_v48 = vrot.slane %v10358_v49, 3  ;;  %v1952_v51 = vrot.slane %v10358_v49, 4  ;;  %v10418_v20 = vld [vmem:[%s13445_s7 + $0x1] ss:$0 sm:$0xff] }
 0x1ae   : > { %v8760_v31 = vpop.eup %8759  ;;  %1434 = vst.msk [vmem:[#allocation2 + $0x1b8] sm:$0xff] %vm774_vm6, %v8758_v11  ;;  %3320 = vperm.xlu1 %8553, %v3315_v59   ;;  %v2144_v32 = vmul.f32 %v2016_v10, %v1820_v40  ;;  %v2011_v42 = vperm.slane %v10358_v49, 0  ;;  %vm847_vm11 = vcmp.gt.f32.partialorder %v10363_v0, 20.0  ;;  %v3357_v24 = vperm.slane %v10392_v25, 5 }
 0x1af   : > { %v10385_v39 = vadd.f32 1.0, %v8760_v31  ;;  %2178 = vst.msk [vmem:[#allocation3 + $0xb8] sm:$0xff] %vm774_vm6, %v2114_v61  ;;  %v8762_v53 = vpop.eup %8761  ;;  %3313 = vperm.xlu0 %8552, %v3308_v46   ;;  %v2012_v22 = vperm.slane %v1949_v3, 0  ;;  %v2014_v59 = vperm.slane %v1951_v48, 0  ;;  %v2015_v63 = vperm.slane %v1952_v51, 0 }
 0x1b0   : > { %2171 = vst.msk [vmem:[#allocation3 + $0x80] sm:$0xff] %vm774_vm6, %v2107_v4  ;;  %v879_v47 = vadd.f32 1.0, %v8762_v53  ;;  %v1785_v13 = vpop.permute.xlu0 %1784  ;;  %v3364_v53 = vperm.slane %v10392_v25, 6  ;;  %v10439_v54 = vadd.f32 %v10418_v20, %v2580_v41 }
 0x1b1   : > { %8763 = vrcp.f32 %v10385_v39  ;;  %2173 = vst.msk [vmem:[#allocation3 + $0x90] sm:$0xff] %vm774_vm6, %v2109_v18  ;;  %v2515_v34 = vand.u32 2147483647, %v10385_v39  ;;  %v2517_v21 = vand.u32 2147483648, %v10385_v39  ;;  %vm2511_vm8 = vweird.f32 %v10385_v39  ;;  %v1631_v29 = vpop.permute.xlu2 %1630 }
 0x1b2   : > { %2205 = vst.msk [vmem:[#allocation3 + $0x190] sm:$0xff] %vm774_vm6, %v2141_v27  ;;  %8765 = vlog2.f32 %v879_v47  ;;  %v3350_v27 = vperm.slane %v10392_v25, 4  ;;  %v1792_v15 = vpop.permute.xlu1 %1791  ;;  %v2117_v52 = vmul.f32 %v1989_v55, %v1631_v29  ;;  %vm2604_vm13 = vcmp.gt.f32.partialorder %v10439_v54, 20.0 }
 0x1b3   : > { %2174 = vst.msk [vmem:[#allocation3 + $0x98] sm:$0xff] %vm774_vm6, %v2110_v58  ;;  %vm10423_vm10 = vcmp.eq.f32.partialorder %v2515_v34, 8.507059e+37  ;;  %v2518_v4 = vor.u32 1.1754944e-38, %v2517_v21 }
 0x1b4   : > { %2176 = vst.msk [vmem:[#allocation3 + $0xa8] sm:$0xff] %vm774_vm6, %v2112_v12 }
 0x1b5   : > { %2208 = vst.msk [vmem:[#allocation3 + $0x1a8] sm:$0xff] %vm774_vm6, %v2144_v32  ;;  %3348 = vperm.xlu2 %8554, %v3343_v7  }
 0x1b6   : > { %2177 = vst.msk [vmem:[#allocation3 + $0xb0] sm:$0xff] %vm774_vm6, %v2113_v8  ;;  %3341 = vperm.xlu1 %8553, %v3336_v38  }
 0x1b7   : > { %v8764_v6 = vpop.eup %8763  ;;  %3334 = vperm.xlu0 %8552, %v3329_v2   ;;  %2181 = vst.msk [vmem:[#allocation3 + $0xd0] sm:$0xff] %vm774_vm6, %v2117_v52 }
 0x1b8   : > { %v2507_v44 = vmul.f32 %v8764_v6, %v10385_v39  ;;  %vm2512_vm9 = vweird.f32 %v8764_v6  ;;  %v8766_v30 = vpop.eup %8765  ;;  %v2139_v39 = vmul.f32 %v2011_v42, %v1785_v13 }
 0x1b9   : > { %v895_v18 = vmul.f32 0.6931472, %v8766_v30  ;;  %vm10433_vm12 = vmor %vm2511_vm8, %vm2512_vm9 }
 0x1ba   : > { %v2508_v61 = vsub.f32 1.0, %v2507_v44  ;;  %2203 = vst.msk [vmem:[#allocation3 + $0x180] sm:$0xff] %vm774_vm6, %v2139_v39  ;;  %v1992_v39 = vperm.slane %v1932_v19, 0 }
 0x1bb   : > { %v10444_v46 = vsel %vm847_vm11, %v10363_v0, %v895_v18  ;;  %v1652_v18 = vpop.permute.xlu2 %1651 }
 0x1bc   : > { %v2509_v31 = vmul.f32 %v8764_v6, %v2508_v61  ;;  %v1052_v33 = vrot.slane %v10444_v46, 1  ;;  %v1053_v10 = vrot.slane %v10444_v46, 2  ;;  %v1054_v40 = vrot.slane %v10444_v46, 3 }
 0x1bd   : > { %v1055_v14 = vrot.slane %v10444_v46, 4  ;;  %v1056_v35 = vrot.slane %v10444_v46, 5  ;;  %v1057_v34 = vrot.slane %v10444_v46, 6  ;;  %v1058_v0 = vrot.slane %v10444_v46, 7  ;;  %3369 = vperm.xlu2 %8554, %v3364_v53   ;;  %v10478_v53 = vpop.f32.mrf.mxu0 }
 0x1be   : > { %v2510_v47 = vadd.f32 %v8764_v6, %v2509_v31  ;;  %v1115_v21 = vperm.slane %v10444_v46, 0  ;;  %v1116_v32 = vperm.slane %v1052_v33, 0  ;;  %v1117_v8 = vperm.slane %v1053_v10, 0  ;;  %3362 = vperm.xlu1 %8553, %v3357_v24   ;;  %v1806_v31 = vpop.permute.xlu0 %1805 }
 0x1bf   : > { %v1119_v38 = vperm.slane %v1055_v14, 0  ;;  %v1120_v7 = vperm.slane %v1056_v35, 0  ;;  %v1121_v3 = vperm.slane %v1057_v34, 0  ;;  %v1122_v2 = vperm.slane %v1058_v0, 0  ;;  %3355 = vperm.xlu0 %8552, %v3350_v27  }
 0x1c0   : > { %v2514_v12 = vsel %vm10433_vm12, %v8764_v6, %v2510_v47  ;;  %v1118_v6 = vperm.slane %v1054_v40, 0  ;;  %v1243_v48 = vmul.f32 %v10114_v26, %v1115_v21  ;;  %v1244_v51 = vmul.f32 %v10114_v26, %v1116_v32  ;;  %v1813_v47 = vpop.permute.xlu1 %1812 }
 0x1c1   : > { %v2519_v55 = vsel %vm10423_vm10, %v2518_v4, %v2514_v12  ;;  %v1245_v61 = vmul.f32 %v10114_v26, %v1117_v8  ;;  %v1247_v41 = vmul.f32 %v10114_v26, %v1119_v38  ;;  %v1249_v30 = vmul.f32 %v10114_v26, %v1121_v3 }
 0x1c2   : > { %v10461_v44 = vmul.f32 %v2519_v55, %v10337_v60  ;;  %v1246_v42 = vmul.f32 %v10114_v26, %v1118_v6  ;;  %v1248_v60 = vmul.f32 %v10114_v26, %v1120_v7  ;;  %v1363_v11 = vmul.f32 1.442695, %v1243_v48 }
 0x1c3   : > { %v1365_v4 = vmul.f32 1.442695, %v1244_v51  ;;  %v1250_v58 = vmul.f32 %v10114_v26, %v1122_v2  ;;  %v1367_v13 = vmul.f32 1.442695, %v1245_v61  ;;  %v1371_v52 = vmul.f32 1.442695, %v1247_v41  ;;  %v1841_v8 = vpop.permute.xlu2 %1840 }
 0x1c4   : > { %13591 = vst [vmem:[#allocation21_spill] sm:$0xff] %v10461_v44  ;;  %8484 = vmatmul.msk.f32.gmra.mxu0 %vm774_vm6, %v10461_v44  ;;  %v1369_v29 = vmul.f32 1.442695, %v1246_v42  ;;  %8472 = vmatmul.msk.f32.gmra.mxu3 %vm774_vm6, %v10461_v44  ;;  %8767 = vpow2.f32 %v1363_v11  ;;  %v1373_v33 = vmul.f32 1.442695, %v1248_v60  ;;  %v2612_v24 = vmin.f32 %v10439_v54, 20.0 }
 0x1c5   : > { %8769 = vpow2.f32 %v1365_v4  ;;  %v2140_v27 = vmul.f32 %v2012_v22, %v1792_v15  ;;  %v2142_v10 = vmul.f32 %v2014_v59, %v1806_v31  ;;  %v2143_v40 = vmul.f32 %v2015_v63, %v1813_v47 }
 0x1c6   : > { %8771 = vpow2.f32 %v1367_v13  ;;  %v1375_v26 = vmul.f32 1.442695, %v1249_v30  ;;  %v2120_v14 = vmul.f32 %v1992_v39, %v1652_v18  ;;  %v3371_v12 = vperm.slane %v10392_v25, 7 }
 0x1c7   : > { %8773 = vpow2.f32 %v1369_v29  ;;  %v1377_v19 = vmul.f32 1.442695, %v1250_v58  ;;  %2204 = vst.msk [vmem:[#allocation3 + $0x188] sm:$0xff] %vm774_vm6, %v2140_v27  ;;  %v3385_v35 = vperm.slane %v10478_v53, 1  ;;  %v3378_v34 = vperm.slane %v10478_v53, 0 }
 0x1c8   : > { %8775 = vpow2.f32 %v1371_v52  ;;  %2206 = vst.msk [vmem:[#allocation3 + $0x198] sm:$0xff] %vm774_vm6, %v2142_v10  ;;  %v2620_v22 = vmul.f32 1.442695, %v2612_v24  ;;  %v1954_v59 = vrot.slane %v10358_v49, 6  ;;  %v1955_v63 = vrot.slane %v10358_v49, 7  ;;  %3376 = vperm.xlu0 %8552, %v3371_v12   ;;  %v1827_v49 = vpop.permute.xlu0 %1826  ;;  %v1834_v21 = vpop.permute.xlu1 %1833  ;;  %v952_v52 = vld [vmem:[%s13443_s5 + $0x18] sm:$0xff] }
 0x1c9   : > { %8777 = vpow2.f32 %v1373_v33  ;;  %v10489_v25 = vmul.f32 %v10444_v46, %v9511_v56  ;;  %2207 = vst.msk [vmem:[#allocation3 + $0x1a0] sm:$0xff] %vm774_vm6, %v2143_v40  ;;  %3383 = vperm.xlu1 %8553, %v3378_v34   ;;  %3390 = vperm.xlu2 %8554, %v3385_v35   ;;  %v1928_v3 = vrot.slane %v10382_v62, 1  ;;  %v3392_v42 = vperm.slane %v10478_v53, 2  ;;  %v8488_v33 = vld [vmem:[%s13443_s5 + $0x38] sm:$0xff]  ;;  %v951_v24 = vld [vmem:[%s13443_s5 + $0x10] sm:$0xff]  ;;  %v950_v34 = vld [vmem:[%s13443_s5 + $0x8] sm:$0xff] }
 0x1ca   : > { %v8768_v15 = vpop.eup %8767  ;;  %8779 = vpow2.f32 %v1375_v26  ;;  %2184 = vst.msk [vmem:[#allocation3 + $0xe8] sm:$0xff] %vm774_vm6, %v2120_v14  ;;  %v2017_v55 = vperm.slane %v1954_v59, 0  ;;  %v2018_v46 = vperm.slane %v1955_v63, 0  ;;  %v3399_v41 = vperm.slane %v10478_v53, 3  ;;  %v2583_v26 = vpop.f32.mrf.mxu3  ;;  %965 = vmatpush.msrb.mxu2 %v952_v52  ;;  %2731 = vmatpush.msrb.mxu1 %v8488_v33  ;;  %v8487_v12 = vld [vmem:[%s13443_s5 + $0x30] sm:$0xff] }
 0x1cb   : > { %v8770_v0 = vpop.eup %8769  ;;  %8781 = vpow2.f32 %v1377_v19  ;;  %1435 = vst.msk [vmem:[#allocation2 + $0x1c0] sm:$0xff] %vm774_vm6, %v8768_v15  ;;  %v2019_v38 = vperm.slane %v10489_v25, 0  ;;  %v1958_v60 = vrot.slane %v10489_v25, 3  ;;  %v3406_v4 = vperm.slane %v10478_v53, 4 }
 0x1cc   : > { %v8772_v32 = vpop.eup %8771  ;;  %1436 = vst.msk [vmem:[#allocation2 + $0x1c8] sm:$0xff] %vm774_vm6, %v8770_v0  ;;  %8783 = vpow2.f32 %v2620_v22  ;;  %v2145_v48 = vmul.f32 %v2017_v55, %v1827_v49  ;;  %v2146_v61 = vmul.f32 %v2018_v46, %v1834_v21  ;;  %v1988_v58 = vperm.slane %v1928_v3, 0  ;;  %966 = vmatpush.msrb.mxu2 %v951_v24  ;;  %2732 = vmatpush.msrb.mxu1 %v8487_v12 }
 0x1cd   : > { %v8774_v6 = vpop.eup %8773  ;;  %1437 = vst.msk [vmem:[#allocation2 + $0x1d0] sm:$0xff] %vm774_vm6, %v8772_v32  ;;  %v2147_v11 = vmul.f32 %v2019_v38, %v1841_v8  ;;  %v2022_v18 = vperm.slane %v1958_v60, 0  ;;  %v1987_v13 = vperm.slane %v10382_v62, 0  ;;  %v1961_v19 = vrot.slane %v10489_v25, 6 }
 0x1ce   : > { %v8776_v7 = vpop.eup %8775  ;;  %1438 = vst.msk [vmem:[#allocation2 + $0x1d8] sm:$0xff] %vm774_vm6, %v8774_v6  ;;  %v10525_v35 = vadd.f32 %v10418_v20, %v2583_v26  ;;  %v1931_v22 = vrot.slane %v10382_v62, 4  ;;  %v1930_v59 = vrot.slane %v10382_v62, 3  ;;  %v3413_v15 = vperm.slane %v10478_v53, 5  ;;  %967 = vmatpush.msrb.mxu2 %v950_v34 }
 0x1cf   : > { %v8778_v2 = vpop.eup %8777  ;;  %1439 = vst.msk [vmem:[#allocation2 + $0x1e0] sm:$0xff] %vm774_vm6, %v8776_v7  ;;  %v1862_v27 = vpop.permute.xlu2 %1861  ;;  %v3420_v0 = vperm.slane %v10478_v53, 6  ;;  %v3427_v55 = vperm.slane %v10478_v53, 7  ;;  %v2025_v49 = vperm.slane %v1961_v19, 0 }
 0x1d0   : > { %v8780_v51 = vpop.eup %8779  ;;  %1440 = vst.msk [vmem:[#allocation2 + $0x1e8] sm:$0xff] %vm774_vm6, %v8778_v2  ;;  %3397 = vperm.xlu0 %8552, %v3392_v42   ;;  %v1624_v47 = vpop.permute.xlu1 %1623  ;;  %v2150_v14 = vmul.f32 %v2022_v18, %v1862_v27  ;;  %v2613_v63 = vmin.f32 %v10525_v35, 20.0  ;;  %v1991_v21 = vperm.slane %v1931_v22, 0  ;;  %v1990_v32 = vperm.slane %v1930_v59, 0 }
 0x1d1   : > { %v8782_v30 = vpop.eup %8781  ;;  %1441 = vst.msk [vmem:[#allocation2 + $0x1f0] sm:$0xff] %vm774_vm6, %v8780_v51  ;;  %3404 = vperm.xlu1 %8553, %v3399_v41   ;;  %3411 = vperm.xlu2 %8554, %v3406_v4   ;;  %v1617_v39 = vpop.permute.xlu0 %1616  ;;  %v2116_v10 = vmul.f32 %v1988_v58, %v1624_v47  ;;  %v1933_v42 = vrot.slane %v10382_v62, 6  ;;  %v10547_v41 = vld [vmem:[%s13446_s8 + $0x8] sm:$0xff]  ;;  %vm2605_vm14 = vcmp.gt.f32.partialorder %v10525_v35, 20.0 }
 0x1d2   : > { %v8784_v31 = vpop.eup %8783  ;;  %1442 = vst.msk [vmem:[#allocation2 + $0x1f8] sm:$0xff] %vm774_vm6, %v8782_v30  ;;  %v2115_v40 = vmul.f32 %v1987_v13, %v1617_v39  ;;  %v2622_v46 = vmul.f32 1.442695, %v2613_v63 }
 0x1d3   : > { %v2636_v29 = vadd.f32 1.0, %v8784_v31  ;;  %2209 = vst.msk [vmem:[#allocation3 + $0x1b0] sm:$0xff] %vm774_vm6, %v2145_v48 }
 0x1d4   : > { %2210 = vst.msk [vmem:[#allocation3 + $0x1b8] sm:$0xff] %vm774_vm6, %v2146_v61  ;;  %v1934_v61 = vrot.slane %v10382_v62, 7 }
 0x1d5   : > { %8785 = vlog2.f32 %v2636_v29  ;;  %2211 = vst.msk [vmem:[#allocation3 + $0x1c0] sm:$0xff] %vm774_vm6, %v2147_v11 }
 0x1d6   : > { %2180 = vst.msk [vmem:[#allocation3 + $0xc8] sm:$0xff] %vm774_vm6, %v2116_v10  ;;  %8787 = vpow2.f32 %v2622_v46 }
 0x1d7   : > { %2214 = vst.msk [vmem:[#allocation3 + $0x1d8] sm:$0xff] %vm774_vm6, %v2150_v14  ;;  %v1883_v3 = vpop.permute.xlu2 %1882 }
 0x1d8   : > { %2179 = vst.msk [vmem:[#allocation3 + $0xc0] sm:$0xff] %vm774_vm6, %v2115_v40  ;;  %3418 = vperm.xlu0 %8552, %v3413_v15   ;;  %v1645_v6 = vpop.permute.xlu1 %1644  ;;  %v2153_v51 = vmul.f32 %v2025_v49, %v1883_v3  ;;  %v10559_v15 = vpop.f32.mrf.mxu0 }
 0x1d9   : > { %3425 = vperm.xlu1 %8553, %v3420_v0   ;;  %3432 = vperm.xlu2 %8554, %v3427_v55   ;;  %v1638_v38 = vpop.permute.xlu0 %1637  ;;  %v2119_v2 = vmul.f32 %v1991_v21, %v1645_v6  ;;  %v1993_v6 = vperm.slane %v1933_v42, 0  ;;  %v3448_v3 = vperm.slane %v10559_v15, 2 }
 0x1da   : > { %v2118_v48 = vmul.f32 %v1990_v32, %v1638_v38  ;;  %2217 = vst.msk [vmem:[#allocation3 + $0x1f0] sm:$0xff] %vm774_vm6, %v2153_v51 }
 0x1db   : > { %v8786_v8 = vpop.eup %8785  ;;  %2183 = vst.msk [vmem:[#allocation3 + $0xe0] sm:$0xff] %vm774_vm6, %v2119_v2  ;;  %v3441_v2 = vperm.slane %v10559_v15, 1 }
 0x1dc   : > { %v2645_v7 = vmul.f32 0.6931472, %v8786_v8  ;;  %2182 = vst.msk [vmem:[#allocation3 + $0xd8] sm:$0xff] %vm774_vm6, %v2118_v48  ;;  %v8788_v19 = vpop.eup %8787  ;;  %v1994_v8 = vperm.slane %v1934_v61, 0  ;;  %v3434_v48 = vperm.slane %v10559_v15, 0 }
 0x1de   : > { %v2660_v53 = vsel %vm2604_vm13, %v10439_v54, %v2645_v7 }
 0x1df   : > { %v2770_v60 = vrot.slane %v2660_v53, 1  ;;  %v2771_v30 = vrot.slane %v2660_v53, 2  ;;  %v2772_v11 = vrot.slane %v2660_v53, 3  ;;  %v2773_v4 = vrot.slane %v2660_v53, 4  ;;  %v10561_v0 = vpop.permute.xlu2 %3222 }
 0x1e0   : > { %v2774_v31 = vrot.slane %v2660_v53, 5  ;;  %v2775_v54 = vrot.slane %v2660_v53, 6  ;;  %v2776_v18 = vrot.slane %v2660_v53, 7  ;;  %v2826_v58 = vperm.slane %v2660_v53, 0  ;;  %v1666_v14 = vpop.permute.xlu1 %1665  ;;  %3439 = vperm.xlu0 %8552, %v3434_v48  }
 0x1e1   : > { %v2827_v13 = vperm.slane %v2770_v60, 0  ;;  %v2828_v29 = vperm.slane %v2771_v30, 0  ;;  %v2829_v62 = vperm.slane %v2772_v11, 0  ;;  %v2830_v47 = vperm.slane %v2773_v4, 0  ;;  %v1659_v12 = vpop.permute.xlu0 %1658  ;;  %3453 = vperm.xlu2 %8554, %v3448_v3   ;;  %3446 = vperm.xlu1 %8553, %v3441_v2  }
 0x1e2   : > { %v2831_v39 = vperm.slane %v2774_v31, 0  ;;  %v2832_v52 = vperm.slane %v2775_v54, 0  ;;  %v2833_v33 = vperm.slane %v2776_v18, 0  ;;  %v2954_v24 = vmul.f32 %v10547_v41, %v2826_v58 }
 0x1e3   : > { %v2955_v27 = vmul.f32 %v10547_v41, %v2827_v13  ;;  %v2956_v10 = vmul.f32 %v10547_v41, %v2828_v29  ;;  %v2957_v40 = vmul.f32 %v10547_v41, %v2829_v62  ;;  %v2958_v26 = vmul.f32 %v10547_v41, %v2830_v47  ;;  %v8486_v62 = vld [vmem:[%s13443_s5 + $0x28] sm:$0xff] }
 0x1e4   : > { %v2959_v34 = vmul.f32 %v10547_v41, %v2831_v39  ;;  %v2960_v22 = vmul.f32 %v10547_v41, %v2832_v52  ;;  %v2961_v59 = vmul.f32 %v10547_v41, %v2833_v33  ;;  %v3018_v63 = vmul.f32 1.442695, %v2954_v24  ;;  %v8485_v39 = vld [vmem:[%s13443_s5 + $0x20] sm:$0xff]  ;;  %v2586_v52 = vpop.f32.mrf.mxu3  ;;  %2733 = vmatpush.msrb.mxu1 %v8486_v62 }
 0x1e5   : > { %v3020_v55 = vmul.f32 1.442695, %v2955_v27  ;;  %v3022_v49 = vmul.f32 1.442695, %v2956_v10  ;;  %v3024_v21 = vmul.f32 1.442695, %v2957_v40  ;;  %v10564_v32 = vmul.f32 %v2660_v53, %v9555_v28 }
 0x1e6   : > { %8789 = vpow2.f32 %v3018_v63  ;;  %v3026_v46 = vmul.f32 1.442695, %v2958_v26  ;;  %v3028_v38 = vmul.f32 1.442695, %v2959_v34  ;;  %v3030_v7 = vmul.f32 1.442695, %v2960_v22  ;;  %2734 = vmatpush.msrb.mxu1 %v8485_v39 }
 0x1e7   : > { %8791 = vpow2.f32 %v3020_v55  ;;  %v2122_v51 = vmul.f32 %v1994_v8, %v1666_v14  ;;  %v3032_v60 = vmul.f32 1.442695, %v2961_v59  ;;  %v949_v53 = vld [vmem:[%s13443_s5] sm:$0xff]  ;;  %v2121_v61 = vmul.f32 %v1993_v6, %v1659_v12  ;;  %v3244_v13 = vpop.permute.xlu2 %3243  ;;  %8489 = vmatmul.msk.f32.vlgmr.msrb.gmra.mxu1 %vm774_vm6, %v9555_v28 }
 0x1e8   : > { %8793 = vpow2.f32 %v3022_v49  ;;  %v3674_v42 = vrot.slane %v10564_v32, 1  ;;  %v2637_v30 = vadd.f32 1.0, %v8788_v19  ;;  %v1957_v11 = vrot.slane %v10489_v25, 2  ;;  %968 = vmatpush.msrb.mxu2 %v949_v53  ;;  %v1855_v4 = vpop.permute.xlu1 %1854 }
 0x1e9   : > { %8795 = vpow2.f32 %v3024_v21  ;;  %2186 = vst.msk [vmem:[#allocation3 + $0xf8] sm:$0xff] %vm774_vm6, %v2122_v51  ;;  %v1956_v31 = vrot.slane %v10489_v25, 1  ;;  %v1848_v54 = vpop.permute.xlu0 %1847  ;;  %8450 = vmatmul.msk.f32.vlgmr.msrb.gmra.mxu2 %vm774_vm6, %v9344_v37  ;;  %v3677_v58 = vrot.slane %v10564_v32, 4  ;;  %v10589_v27 = vadd.f32 %v10418_v20, %v2586_v52 }
 0x1ea   : > { %8797 = vpow2.f32 %v3026_v46  ;;  %2185 = vst.msk [vmem:[#allocation3 + $0xf0] sm:$0xff] %vm774_vm6, %v2121_v61  ;;  %v3731_v47 = vperm.slane %v3674_v42, 0  ;;  %v2021_v24 = vperm.slane %v1957_v11, 0  ;;  %v3469_v40 = vperm.slane %v10559_v15, 5 }
 0x1eb   : > { %8799 = vpow2.f32 %v3028_v38  ;;  %v3462_v26 = vperm.slane %v10559_v15, 4  ;;  %v3455_v14 = vperm.slane %v10559_v15, 3  ;;  %v2020_v12 = vperm.slane %v1956_v31, 0 }
 0x1ec   : > { %v8790_v18 = vpop.eup %8789  ;;  %8801 = vpow2.f32 %v3030_v7  ;;  %v3734_v34 = vperm.slane %v3677_v58, 0  ;;  %v2614_v22 = vmin.f32 %v10589_v27, 20.0  ;;  %v1960_v59 = vrot.slane %v10489_v25, 5  ;;  %3474 = vperm.xlu2 %8554, %v3469_v40  }
 0x1ed   : > { %v8792_v29 = vpop.eup %8791  ;;  %8803 = vpow2.f32 %v3032_v60  ;;  %3146 = vst.msk [vmem:[#allocation4] sm:$0xff] %vm774_vm6, %v8790_v18  ;;  %v1959_v63 = vrot.slane %v10489_v25, 4  ;;  %v3859_v49 = vmul.f32 %v3731_v47, %v10561_v0  ;;  %v3680_v21 = vrot.slane %v10564_v32, 7  ;;  %3467 = vperm.xlu1 %8553, %v3462_v26   ;;  %3460 = vperm.xlu0 %8552, %v3455_v14  }
 0x1ee   : > { %v8794_v33 = vpop.eup %8793  ;;  %3147 = vst.msk [vmem:[#allocation4 + $0x8] sm:$0xff] %vm774_vm6, %v8792_v29  ;;  %8805 = vlog2.f32 %v2637_v30  ;;  %v2149_v8 = vmul.f32 %v2021_v24, %v1855_v4  ;;  %v2024_v6 = vperm.slane %v1960_v59, 0  ;;  %v2148_v3 = vmul.f32 %v2020_v12, %v1848_v54 }
 0x1ef   : > { %v8796_v10 = vpop.eup %8795  ;;  %3148 = vst.msk [vmem:[#allocation4 + $0x10] sm:$0xff] %vm774_vm6, %v8794_v33  ;;  %v2023_v38 = vperm.slane %v1959_v63, 0  ;;  %v2624_v2 = vmul.f32 1.442695, %v2614_v22  ;;  %v3737_v51 = vperm.slane %v3680_v21, 0  ;;  %v3862_v53 = vmul.f32 %v3734_v34, %v3244_v13  ;;  %v3265_v61 = vpop.permute.xlu2 %3264  ;;  %8490 = vmatmul.msk.f32.gmra.mxu1 %vm774_vm6, %v9587_v50 }
 0x1f0   : > { %v8798_v19 = vpop.eup %8797  ;;  %3149 = vst.msk [vmem:[#allocation4 + $0x18] sm:$0xff] %vm774_vm6, %v8796_v10  ;;  %v1876_v0 = vpop.permute.xlu1 %1875  ;;  %v3483_v11 = vperm.slane %v10559_v15, 7  ;;  %v3476_v54 = vperm.slane %v10559_v15, 6  ;;  %vm2606_vm15 = vcmp.gt.f32.partialorder %v10589_v27, 20.0 }
 0x1f1   : > { %v8800_v55 = vpop.eup %8799  ;;  %3150 = vst.msk [vmem:[#allocation4 + $0x20] sm:$0xff] %vm774_vm6, %v8798_v19  ;;  %v1869_v48 = vpop.permute.xlu0 %1868  ;;  %8451 = vmatmul.msk.f32.gmra.mxu2 %vm774_vm6, %v9387_v36  ;;  %v2152_v30 = vmul.f32 %v2024_v6, %v1876_v0  ;;  %8807 = vpow2.f32 %v2624_v2  ;;  %v3865_v18 = vmul.f32 %v3737_v51, %v3265_v61 }
 0x1f2   : > { %v8802_v46 = vpop.eup %8801  ;;  %3151 = vst.msk [vmem:[#allocation4 + $0x28] sm:$0xff] %vm774_vm6, %v8800_v55  ;;  %v2151_v4 = vmul.f32 %v2023_v38, %v1869_v48 }
 0x1f3   : > { %v8804_v7 = vpop.eup %8803  ;;  %3152 = vst.msk [vmem:[#allocation4 + $0x30] sm:$0xff] %vm774_vm6, %v8802_v46 }
 0x1f4   : > { %v8806_v60 = vpop.eup %8805  ;;  %3153 = vst.msk [vmem:[#allocation4 + $0x38] sm:$0xff] %vm774_vm6, %v8804_v7 }
 0x1f5   : > { %v2647_v42 = vmul.f32 0.6931472, %v8806_v60  ;;  %3923 = vst.msk [vmem:[#allocation5 + $0x8] sm:$0xff] %vm774_vm6, %v3859_v49  ;;  %3488 = vperm.xlu1 %8553, %v3483_v11   ;;  %3481 = vperm.xlu0 %8552, %v3476_v54  }
 0x1f6   : > { %2213 = vst.msk [vmem:[#allocation3 + $0x1d0] sm:$0xff] %vm774_vm6, %v2149_v8 }
 0x1f7   : > { %v2661_v31 = vsel %vm2605_vm14, %v10525_v35, %v2647_v42  ;;  %2212 = vst.msk [vmem:[#allocation3 + $0x1c8] sm:$0xff] %vm774_vm6, %v2148_v3  ;;  %v10633_v49 = vpop.permute.xlu2 %3285  ;;  %v8808_v21 = vpop.eup %8807  ;;  %8491 = vmatmul.msk.f32.gmra.mxu1 %vm774_vm6, %v9687_v9 }
 0x1f8   : > { %v2777_v58 = vrot.slane %v2661_v31, 1  ;;  %v2778_v13 = vrot.slane %v2661_v31, 2  ;;  %v2779_v29 = vrot.slane %v2661_v31, 3  ;;  %v2780_v62 = vrot.slane %v2661_v31, 4  ;;  %3926 = vst.msk [vmem:[#allocation5 + $0x20] sm:$0xff] %vm774_vm6, %v3862_v53  ;;  %v10625_v34 = vpop.permute.xlu1 %3215 }
 0x1f9   : > { %v2781_v47 = vrot.slane %v2661_v31, 5  ;;  %v2782_v39 = vrot.slane %v2661_v31, 6  ;;  %v2783_v52 = vrot.slane %v2661_v31, 7  ;;  %v2834_v33 = vperm.slane %v2661_v31, 0  ;;  %2216 = vst.msk [vmem:[#allocation3 + $0x1e8] sm:$0xff] %vm774_vm6, %v2152_v30  ;;  %v10623_v19 = vpop.permute.xlu0 %1889  ;;  %8452 = vmatmul.msk.f32.gmra.mxu2 %vm774_vm6, %v9417_v23 }
 0x1fa   : > { %v2835_v35 = vperm.slane %v2777_v58, 0  ;;  %v2836_v24 = vperm.slane %v2778_v13, 0  ;;  %v2837_v10 = vperm.slane %v2779_v29, 0  ;;  %v2838_v15 = vperm.slane %v2780_v62, 0  ;;  %2215 = vst.msk [vmem:[#allocation3 + $0x1e0] sm:$0xff] %vm774_vm6, %v2151_v4  ;;  %v2589_v29 = vpop.f32.mrf.mxu3 }
 0x1fb   : > { %v2839_v40 = vperm.slane %v2781_v47, 0  ;;  %v2840_v26 = vperm.slane %v2782_v39, 0  ;;  %v2841_v14 = vperm.slane %v2783_v52, 0  ;;  %v2962_v12 = vmul.f32 %v10547_v41, %v2834_v33  ;;  %3929 = vst.msk [vmem:[#allocation5 + $0x38] sm:$0xff] %vm774_vm6, %v3865_v18 }
 0x1fc   : > { %v2963_v22 = vmul.f32 %v10547_v41, %v2835_v35  ;;  %v2964_v59 = vmul.f32 %v10547_v41, %v2836_v24  ;;  %v2965_v63 = vmul.f32 %v10547_v41, %v2837_v10  ;;  %v2966_v55 = vmul.f32 %v10547_v41, %v2838_v15 }
 0x1fd   : > { %v2967_v46 = vmul.f32 %v10547_v41, %v2839_v40  ;;  %v2968_v8 = vmul.f32 %v10547_v41, %v2840_v26  ;;  %v3034_v6 = vmul.f32 1.442695, %v2962_v12  ;;  %v2969_v7 = vmul.f32 %v10547_v41, %v2841_v14 }
 0x1fe   : > { %v3036_v3 = vmul.f32 1.442695, %v2963_v22  ;;  %v3038_v2 = vmul.f32 1.442695, %v2964_v59  ;;  %v3040_v0 = vmul.f32 1.442695, %v2965_v63  ;;  %v10641_v60 = vmul.f32 %v2661_v31, %v9587_v50 }
 0x1ff   : > { %v10637_v38 = vpop.f32.mrf.mxu0  ;;  %8809 = vpow2.f32 %v3034_v6  ;;  %v3042_v48 = vmul.f32 1.442695, %v2966_v55  ;;  %v3044_v51 = vmul.f32 1.442695, %v2967_v46  ;;  %v3046_v61 = vmul.f32 1.442695, %v2968_v8  ;;  %v3307_v13 = vpop.permute.xlu2 %3306  ;;  %8492 = vmatmul.msk.f32.gmra.mxu1 %vm774_vm6, %v9865_v43 }
 0x200   : > { %8811 = vpow2.f32 %v3036_v3  ;;  %v3490_v53 = vperm.slane %v10637_v38, 0  ;;  %v3504_v42 = vperm.slane %v10637_v38, 2  ;;  %v3497_v30 = vperm.slane %v10637_v38, 1  ;;  %v3237_v18 = vpop.permute.xlu1 %3236 }
 0x201   : > { %8813 = vpow2.f32 %v3038_v2  ;;  %v3048_v11 = vmul.f32 1.442695, %v2969_v7  ;;  %v1962_v4 = vrot.slane %v10489_v25, 7  ;;  %v2638_v54 = vadd.f32 1.0, %v8808_v21  ;;  %v3230_v31 = vpop.permute.xlu0 %3229  ;;  %8453 = vmatmul.msk.f32.gmra.mxu2 %vm774_vm6, %v9478_v1 }
 0x202   : > { %8815 = vpow2.f32 %v3040_v0  ;;  %3495 = vperm.xlu2 %8554, %v3490_v53   ;;  %3509 = vperm.xlu1 %8553, %v3504_v42   ;;  %v3682_v58 = vrot.slane %v10641_v60, 2  ;;  %v3511_v47 = vperm.slane %v10637_v38, 3  ;;  %v3675_v25 = vrot.slane %v10564_v32, 2 }
 0x203   : > { %8817 = vpow2.f32 %v3042_v48  ;;  %3502 = vperm.xlu0 %8552, %v3497_v30   ;;  %v2026_v52 = vperm.slane %v1962_v4, 0  ;;  %v3676_v33 = vrot.slane %v10564_v32, 3  ;;  %v10657_v35 = vadd.f32 %v10418_v20, %v2589_v29 }
 0x204   : > { %8819 = vpow2.f32 %v3044_v51  ;;  %v3730_v10 = vperm.slane %v10564_v32, 0  ;;  %v3685_v15 = vrot.slane %v10641_v60, 5  ;;  %v3740_v26 = vperm.slane %v3682_v58, 0 }
 0x205   : > { %v8810_v62 = vpop.eup %8809  ;;  %8821 = vpow2.f32 %v3046_v61  ;;  %v2615_v14 = vmin.f32 %v10657_v35, 20.0  ;;  %v3678_v12 = vrot.slane %v10564_v32, 5  ;;  %v3525_v20 = vperm.slane %v10637_v38, 5 }
 0x206   : > { %v8812_v39 = vpop.eup %8811  ;;  %8823 = vpow2.f32 %v3048_v11  ;;  %3154 = vst.msk [vmem:[#allocation4 + $0x40] sm:$0xff] %vm774_vm6, %v8810_v62  ;;  %v3518_v59 = vperm.slane %v10637_v38, 4  ;;  %v3732_v63 = vperm.slane %v3675_v25, 0  ;;  %v3679_v55 = vrot.slane %v10564_v32, 6 }
 0x207   : > { %v8814_v24 = vpop.eup %8813  ;;  %3155 = vst.msk [vmem:[#allocation4 + $0x48] sm:$0xff] %vm774_vm6, %v8812_v39  ;;  %8825 = vlog2.f32 %v2638_v54  ;;  %v2154_v46 = vmul.f32 %v2026_v52, %v10623_v19  ;;  %v3733_v8 = vperm.slane %v3676_v33, 0  ;;  %v3858_v7 = vmul.f32 %v3730_v10, %v10625_v34  ;;  %v10679_v61 = vpop.permute.xlu2 %3327  ;;  %8493 = vmatmul.msk.f32.gmra.mxu1 %vm774_vm6, %v9996_v5 }
 0x208   : > { %v8816_v40 = vpop.eup %8815  ;;  %3156 = vst.msk [vmem:[#allocation4 + $0x50] sm:$0xff] %vm774_vm6, %v8814_v24  ;;  %v3743_v3 = vperm.slane %v3685_v15, 0  ;;  %v3258_v0 = vpop.permute.xlu1 %3257  ;;  %v3868_v32 = vmul.f32 %v3740_v26, %v10633_v49  ;;  %v2626_v51 = vmul.f32 1.442695, %v2615_v14  ;;  %v3735_v19 = vperm.slane %v3678_v12, 0 }
 0x209   : > { %v8818_v22 = vpop.eup %8817  ;;  %3157 = vst.msk [vmem:[#allocation4 + $0x58] sm:$0xff] %vm774_vm6, %v8816_v40  ;;  %v3251_v2 = vpop.permute.xlu0 %3250  ;;  %8454 = vmatmul.msk.f32.gmra.mxu2 %vm774_vm6, %v9361_v45  ;;  %v3736_v53 = vperm.slane %v3679_v55, 0  ;;  %v3860_v34 = vmul.f32 %v3732_v63, %v3230_v31  ;;  %v3861_v11 = vmul.f32 %v3733_v8, %v3237_v18  ;;  %v3532_v49 = vperm.slane %v10637_v38, 6 }
 0x20a   : > { %v8820_v21 = vpop.eup %8819  ;;  %3158 = vst.msk [vmem:[#allocation4 + $0x60] sm:$0xff] %vm774_vm6, %v8818_v22  ;;  %3516 = vperm.xlu2 %8554, %v3511_v47   ;;  %3530 = vperm.xlu1 %8553, %v3525_v20   ;;  %v3871_v4 = vmul.f32 %v3743_v3, %v3307_v13  ;;  %v3539_v54 = vperm.slane %v10637_v38, 7  ;;  %8827 = vpow2.f32 %v2626_v51  ;;  %v3863_v29 = vmul.f32 %v3735_v19, %v3251_v2  ;;  %v13592_v22 = vld [vmem:[#allocation16_spill] sm:$0xff] }
 0x20b   : > { %v8822_v6 = vpop.eup %8821  ;;  %3159 = vst.msk [vmem:[#allocation4 + $0x68] sm:$0xff] %vm774_vm6, %v8820_v21  ;;  %3523 = vperm.xlu0 %8552, %v3518_v59   ;;  %v3864_v62 = vmul.f32 %v3736_v53, %v3258_v0  ;;  %vm2607_vm0 = vcmp.gt.f32.partialorder %v10657_v35, 20.0 }
 0x20c   : > { %v8824_v48 = vpop.eup %8823  ;;  %3160 = vst.msk [vmem:[#allocation4 + $0x70] sm:$0xff] %vm774_vm6, %v8822_v6 }
 0x20d   : > { %v8826_v42 = vpop.eup %8825  ;;  %3161 = vst.msk [vmem:[#allocation4 + $0x78] sm:$0xff] %vm774_vm6, %v8824_v48 }
 0x20e   : > { %v2649_v30 = vmul.f32 0.6931472, %v8826_v42  ;;  %2218 = vst.msk [vmem:[#allocation3 + $0x1f8] sm:$0xff] %vm774_vm6, %v2154_v46 }
 0x20f   : > { %3922 = vst.msk [vmem:[#allocation5] sm:$0xff] %vm774_vm6, %v3858_v7  ;;  %v10707_v46 = vpop.permute.xlu2 %3348  ;;  %8494 = vmatmul.msk.f32.gmra.mxu1 %vm774_vm6, %v10261_v17 }
 0x210   : > { %v2662_v58 = vsel %vm2606_vm15, %v10589_v27, %v2649_v30  ;;  %3932 = vst.msk [vmem:[#allocation5 + $0x50] sm:$0xff] %vm774_vm6, %v3868_v32  ;;  %v10694_v15 = vpop.permute.xlu1 %3278  ;;  %v8828_v8 = vpop.eup %8827 }
 0x211   : > { %v2784_v47 = vrot.slane %v2662_v58, 1  ;;  %v2785_v31 = vrot.slane %v2662_v58, 2  ;;  %v2786_v25 = vrot.slane %v2662_v58, 3  ;;  %v2787_v39 = vrot.slane %v2662_v58, 4  ;;  %3924 = vst.msk [vmem:[#allocation5 + $0x10] sm:$0xff] %vm774_vm6, %v3860_v34  ;;  %8455 = vmatmul.msk.f32.gmra.mxu2 %vm774_vm6, %v13592_v22  ;;  %v10700_v20 = vpop.permute.xlu0 %3271 }
 0x212   : > { %v2788_v18 = vrot.slane %v2662_v58, 5  ;;  %v2789_v13 = vrot.slane %v2662_v58, 6  ;;  %v2790_v52 = vrot.slane %v2662_v58, 7  ;;  %v2842_v38 = vperm.slane %v2662_v58, 0  ;;  %3537 = vperm.xlu2 %8554, %v3532_v49   ;;  %3925 = vst.msk [vmem:[#allocation5 + $0x18] sm:$0xff] %vm774_vm6, %v3861_v11 }
 0x213   : > { %v2843_v27 = vperm.slane %v2784_v47, 0  ;;  %v2844_v33 = vperm.slane %v2785_v31, 0  ;;  %v2845_v24 = vperm.slane %v2786_v25, 0  ;;  %v2846_v10 = vperm.slane %v2787_v39, 0  ;;  %3935 = vst.msk [vmem:[#allocation5 + $0x68] sm:$0xff] %vm774_vm6, %v3871_v4  ;;  %3544 = vperm.xlu0 %8552, %v3539_v54   ;;  %v2592_v39 = vpop.f32.mrf.mxu3 }
 0x214   : > { %v2847_v40 = vperm.slane %v2788_v18, 0  ;;  %v2848_v26 = vperm.slane %v2789_v13, 0  ;;  %v2849_v14 = vperm.slane %v2790_v52, 0  ;;  %v2970_v12 = vmul.f32 %v10547_v41, %v2842_v38  ;;  %3927 = vst.msk [vmem:[#allocation5 + $0x28] sm:$0xff] %vm774_vm6, %v3863_v29 }
 0x215   : > { %v2971_v59 = vmul.f32 %v10547_v41, %v2843_v27  ;;  %v2972_v63 = vmul.f32 %v10547_v41, %v2844_v33  ;;  %v2973_v55 = vmul.f32 %v10547_v41, %v2845_v24  ;;  %v2974_v21 = vmul.f32 %v10547_v41, %v2846_v10  ;;  %3928 = vst.msk [vmem:[#allocation5 + $0x30] sm:$0xff] %vm774_vm6, %v3864_v62 }
 0x216   : > { %v2975_v6 = vmul.f32 %v10547_v41, %v2847_v40  ;;  %v2976_v7 = vmul.f32 %v10547_v41, %v2848_v26  ;;  %v2977_v3 = vmul.f32 %v10547_v41, %v2849_v14  ;;  %v3050_v2 = vmul.f32 1.442695, %v2970_v12  ;;  %v10740_v40 = vld [vmem:[%s13445_s7 + $0x1] ss:$0 sm:$0xff] }
 0x217   : > { %v10712_v0 = vpop.f32.mrf.mxu0  ;;  %v3052_v48 = vmul.f32 1.442695, %v2971_v59  ;;  %v3054_v32 = vmul.f32 1.442695, %v2972_v63  ;;  %v3056_v51 = vmul.f32 1.442695, %v2973_v55  ;;  %v10715_v19 = vmul.f32 %v2662_v58, %v9687_v9  ;;  %v3370_v27 = vpop.permute.xlu2 %3369  ;;  %8495 = vmatmul.msk.f32.gmra.mxu1 %vm774_vm6, %v10334_v16 }
 0x218   : > { %8829 = vpow2.f32 %v3050_v2  ;;  %v3058_v53 = vmul.f32 1.442695, %v2974_v21  ;;  %v3060_v42 = vmul.f32 1.442695, %v2975_v6  ;;  %v3062_v34 = vmul.f32 1.442695, %v2976_v7  ;;  %v10724_v29 = vpop.permute.xlu1 %3299 }
 0x219   : > { %8831 = vpow2.f32 %v3052_v48  ;;  %v3553_v30 = vperm.slane %v10712_v0, 1  ;;  %v3546_v11 = vperm.slane %v10712_v0, 0  ;;  %v3746_v49 = vperm.slane %v10715_v19, 0  ;;  %v3293_v31 = vpop.permute.xlu0 %3292  ;;  %8456 = vmatmul.msk.f32.gmra.mxu2 %vm774_vm6, %v9423_v57 }
 0x21a   : > { %8833 = vpow2.f32 %v3054_v32  ;;  %v3560_v4 = vperm.slane %v10712_v0, 2  ;;  %v3064_v54 = vmul.f32 1.442695, %v2977_v3  ;;  %v3681_v58 = vrot.slane %v10641_v60, 1 }
 0x21b   : > { %8835 = vpow2.f32 %v3056_v51  ;;  %3558 = vperm.xlu2 %8554, %v3553_v30   ;;  %v2639_v62 = vadd.f32 1.0, %v8828_v8  ;;  %3551 = vperm.xlu1 %8553, %v3546_v11   ;;  %v3874_v47 = vmul.f32 %v3746_v49, %v10679_v61  ;;  %v3690_v25 = vrot.slane %v10715_v19, 3 }
 0x21c   : > { %8837 = vpow2.f32 %v3058_v53  ;;  %3565 = vperm.xlu0 %8552, %v3560_v4   ;;  %v3739_v52 = vperm.slane %v3681_v58, 0  ;;  %v3684_v61 = vrot.slane %v10641_v60, 4  ;;  %v3683_v38 = vrot.slane %v10641_v60, 3 }
 0x21d   : > { %8839 = vpow2.f32 %v3060_v42  ;;  %3938 = vst.msk [vmem:[#allocation5 + $0x80] sm:$0xff] %vm774_vm6, %v3874_v47  ;;  %v3738_v24 = vperm.slane %v10641_v60, 0  ;;  %v3693_v10 = vrot.slane %v10715_v19, 6  ;;  %v10743_v26 = vadd.f32 %v10740_v40, %v2592_v39 }
 0x21e   : > { %v8830_v18 = vpop.eup %8829  ;;  %8841 = vpow2.f32 %v3062_v34  ;;  %v3574_v12 = vperm.slane %v10712_v0, 4  ;;  %v3567_v22 = vperm.slane %v10712_v0, 3  ;;  %v3749_v59 = vperm.slane %v3690_v25, 0 }
 0x21f   : > { %v8832_v13 = vpop.eup %8831  ;;  %8843 = vpow2.f32 %v3064_v54  ;;  %3162 = vst.msk [vmem:[#allocation4 + $0x80] sm:$0xff] %vm774_vm6, %v8830_v18  ;;  %v3687_v63 = vrot.slane %v10641_v60, 7  ;;  %v3581_v21 = vperm.slane %v10712_v0, 5  ;;  %v3742_v8 = vperm.slane %v3684_v61, 0  ;;  %8496 = vmatmul.msk.f32.gmra.mxu1 %vm774_vm6, %v10461_v44 }
 0x220   : > { %v8834_v33 = vpop.eup %8833  ;;  %3163 = vst.msk [vmem:[#allocation4 + $0x88] sm:$0xff] %vm774_vm6, %v8832_v13  ;;  %8845 = vlog2.f32 %v2639_v62  ;;  %v2616_v6 = vmin.f32 %v10743_v26, 20.0  ;;  %v3686_v7 = vrot.slane %v10641_v60, 6  ;;  %v3867_v2 = vmul.f32 %v3739_v52, %v10694_v15  ;;  %v3321_v34 = vpop.permute.xlu1 %3320 }
 0x221   : > { %v8836_v14 = vpop.eup %8835  ;;  %3164 = vst.msk [vmem:[#allocation4 + $0x90] sm:$0xff] %vm774_vm6, %v8834_v33  ;;  %v3741_v48 = vperm.slane %v3683_v38, 0  ;;  %v3866_v51 = vmul.f32 %v3738_v24, %v10700_v20  ;;  %v3752_v53 = vperm.slane %v3693_v10, 0  ;;  %v3745_v42 = vperm.slane %v3687_v63, 0  ;;  %v3314_v30 = vpop.permute.xlu0 %3313  ;;  %8457 = vmatmul.msk.f32.gmra.mxu2 %vm774_vm6, %v9511_v56 }
 0x222   : > { %v8838_v55 = vpop.eup %8837  ;;  %3165 = vst.msk [vmem:[#allocation4 + $0x98] sm:$0xff] %vm774_vm6, %v8836_v14  ;;  %v3877_v60 = vmul.f32 %v3749_v59, %v10707_v46  ;;  %v2628_v49 = vmul.f32 1.442695, %v2616_v6  ;;  %v3744_v15 = vperm.slane %v3686_v7, 0  ;;  %v3870_v20 = vmul.f32 %v3742_v8, %v10724_v29 }
 0x223   : > { %v8840_v3 = vpop.eup %8839  ;;  %3166 = vst.msk [vmem:[#allocation4 + $0xa0] sm:$0xff] %vm774_vm6, %v8838_v55  ;;  %3579 = vperm.xlu2 %8554, %v3574_v12   ;;  %3572 = vperm.xlu1 %8553, %v3567_v22   ;;  %v3869_v58 = vmul.f32 %v3741_v48, %v3293_v31  ;;  %v3595_v46 = vperm.slane %v10712_v0, 7  ;;  %v3588_v62 = vperm.slane %v10712_v0, 6  ;;  %v3880_v47 = vmul.f32 %v3752_v53, %v3370_v27  ;;  %v10772_v13 = vpop.permute.xlu2 %3390 }
 0x224   : > { %v8842_v32 = vpop.eup %8841  ;;  %3167 = vst.msk [vmem:[#allocation4 + $0xa8] sm:$0xff] %vm774_vm6, %v8840_v3  ;;  %3586 = vperm.xlu0 %8552, %v3581_v21   ;;  %v3873_v25 = vmul.f32 %v3745_v42, %v3321_v34  ;;  %8847 = vpow2.f32 %v2628_v49  ;;  %v3872_v18 = vmul.f32 %v3744_v15, %v3314_v30  ;;  %v3689_v29 = vrot.slane %v10715_v19, 2  ;;  %v2595_v15 = vpop.f32.mrf.mxu3 }
 0x225   : > { %v8844_v11 = vpop.eup %8843  ;;  %3168 = vst.msk [vmem:[#allocation4 + $0xb0] sm:$0xff] %vm774_vm6, %v8842_v32  ;;  %vm2608_vm1 = vcmp.gt.f32.partialorder %v10743_v26, 20.0 }
 0x226   : > { %v8846_v4 = vpop.eup %8845  ;;  %3169 = vst.msk [vmem:[#allocation4 + $0xb8] sm:$0xff] %vm774_vm6, %v8844_v11 }
 0x227   : > { %v2651_v54 = vmul.f32 0.6931472, %v8846_v4  ;;  %3931 = vst.msk [vmem:[#allocation5 + $0x48] sm:$0xff] %vm774_vm6, %v3867_v2 }
 0x228   : > { %3930 = vst.msk [vmem:[#allocation5 + $0x40] sm:$0xff] %vm774_vm6, %v3866_v51  ;;  %v3342_v22 = vpop.permute.xlu1 %3341 }
 0x229   : > { %v2663_v39 = vsel %vm2607_vm0, %v10657_v35, %v2651_v54  ;;  %3941 = vst.msk [vmem:[#allocation5 + $0x98] sm:$0xff] %vm774_vm6, %v3877_v60  ;;  %v10780_v59 = vpop.permute.xlu0 %3334 }
 0x22a   : > { %v2791_v31 = vrot.slane %v2663_v39, 1  ;;  %v2792_v52 = vrot.slane %v2663_v39, 2  ;;  %v2793_v61 = vrot.slane %v2663_v39, 3  ;;  %v2794_v38 = vrot.slane %v2663_v39, 4  ;;  %3934 = vst.msk [vmem:[#allocation5 + $0x60] sm:$0xff] %vm774_vm6, %v3870_v20  ;;  %v8848_v48 = vpop.eup %8847 }
 0x22b   : > { %v2795_v0 = vrot.slane %v2663_v39, 5  ;;  %v2796_v27 = vrot.slane %v2663_v39, 6  ;;  %v2797_v35 = vrot.slane %v2663_v39, 7  ;;  %v2850_v33 = vperm.slane %v2663_v39, 0  ;;  %3600 = vperm.xlu2 %8554, %v3595_v46   ;;  %3933 = vst.msk [vmem:[#allocation5 + $0x58] sm:$0xff] %vm774_vm6, %v3869_v58  ;;  %3593 = vperm.xlu1 %8553, %v3588_v62   ;;  %v3412_v46 = vpop.permute.xlu2 %3411 }
 0x22c   : > { %v2851_v24 = vperm.slane %v2791_v31, 0  ;;  %v2852_v10 = vperm.slane %v2792_v52, 0  ;;  %v2853_v14 = vperm.slane %v2793_v61, 0  ;;  %v2854_v12 = vperm.slane %v2794_v38, 0  ;;  %3944 = vst.msk [vmem:[#allocation5 + $0xb0] sm:$0xff] %vm774_vm6, %v3880_v47 }
 0x22d   : > { %v2855_v63 = vperm.slane %v2795_v0, 0  ;;  %v2856_v55 = vperm.slane %v2796_v27, 0  ;;  %v2857_v21 = vperm.slane %v2797_v35, 0  ;;  %v2978_v8 = vmul.f32 %v10547_v41, %v2850_v33  ;;  %3937 = vst.msk [vmem:[#allocation5 + $0x78] sm:$0xff] %vm774_vm6, %v3873_v25 }
 0x22e   : > { %v2979_v6 = vmul.f32 %v10547_v41, %v2851_v24  ;;  %v2980_v7 = vmul.f32 %v10547_v41, %v2852_v10  ;;  %v2981_v3 = vmul.f32 %v10547_v41, %v2853_v14  ;;  %v2982_v2 = vmul.f32 %v10547_v41, %v2854_v12  ;;  %3936 = vst.msk [vmem:[#allocation5 + $0x70] sm:$0xff] %vm774_vm6, %v3872_v18 }
 0x22f   : > { %v2983_v32 = vmul.f32 %v10547_v41, %v2855_v63  ;;  %v2984_v51 = vmul.f32 %v10547_v41, %v2856_v55  ;;  %v2985_v53 = vmul.f32 %v10547_v41, %v2857_v21  ;;  %v3066_v42 = vmul.f32 1.442695, %v2978_v8 }
 0x230   : > { %v3068_v34 = vmul.f32 1.442695, %v2979_v6  ;;  %v3070_v30 = vmul.f32 1.442695, %v2980_v7  ;;  %v3072_v11 = vmul.f32 1.442695, %v2981_v3  ;;  %v10793_v60 = vmul.f32 %v2663_v39, %v9865_v43  ;;  %v3363_v18 = vpop.permute.xlu1 %3362 }
 0x231   : > { %8849 = vpow2.f32 %v3066_v42  ;;  %v3074_v49 = vmul.f32 1.442695, %v2982_v2  ;;  %v3076_v4 = vmul.f32 1.442695, %v2983_v32  ;;  %v3078_v20 = vmul.f32 1.442695, %v2984_v51  ;;  %v3356_v31 = vpop.permute.xlu0 %3355 }
 0x232   : > { %8851 = vpow2.f32 %v3068_v34  ;;  %v3695_v54 = vrot.slane %v10793_v60, 1  ;;  %v3748_v58 = vperm.slane %v3689_v29, 0  ;;  %v3080_v41 = vmul.f32 1.442695, %v2985_v53 }
 0x233   : > { %8853 = vpow2.f32 %v3070_v30  ;;  %v10797_v62 = vadd.f32 %v10740_v40, %v2595_v15  ;;  %v2640_v47 = vadd.f32 1.0, %v8848_v48  ;;  %v3688_v39 = vrot.slane %v10715_v19, 1  ;;  %v3433_v32 = vpop.permute.xlu2 %3432 }
 0x234   : > { %8855 = vpow2.f32 %v3072_v11  ;;  %v3876_v25 = vmul.f32 %v3748_v58, %v3342_v22  ;;  %v3698_v52 = vrot.slane %v10793_v60, 4  ;;  %v3755_v38 = vperm.slane %v3695_v54, 0 }
 0x235   : > { %8857 = vpow2.f32 %v3074_v49  ;;  %v3692_v29 = vrot.slane %v10715_v19, 5  ;;  %v2617_v27 = vmin.f32 %v10797_v62, 20.0  ;;  %v3691_v35 = vrot.slane %v10715_v19, 4 }
 0x236   : > { %8859 = vpow2.f32 %v3076_v4  ;;  %3940 = vst.msk [vmem:[#allocation5 + $0x90] sm:$0xff] %vm774_vm6, %v3876_v25  ;;  %v3701_v33 = vrot.slane %v10793_v60, 7  ;;  %v3747_v10 = vperm.slane %v3688_v39, 0  ;;  %v3758_v12 = vperm.slane %v3698_v52, 0 }
 0x237   : > { %v8850_v61 = vpop.eup %8849  ;;  %8861 = vpow2.f32 %v3078_v20  ;;  %v3694_v22 = vrot.slane %v10715_v19, 7  ;;  %v3751_v55 = vperm.slane %v3692_v29, 0  ;;  %v3883_v8 = vmul.f32 %v3755_v38, %v10772_v13 }
 0x238   : > { %v8852_v0 = vpop.eup %8851  ;;  %8863 = vpow2.f32 %v3080_v41  ;;  %3170 = vst.msk [vmem:[#allocation4 + $0xc0] sm:$0xff] %vm774_vm6, %v8850_v61  ;;  %v2630_v6 = vmul.f32 1.442695, %v2617_v27  ;;  %v3750_v7 = vperm.slane %v3691_v35, 0  ;;  %v3761_v3 = vperm.slane %v3701_v33, 0 }
 0x239   : > { %v8854_v24 = vpop.eup %8853  ;;  %3171 = vst.msk [vmem:[#allocation4 + $0xc8] sm:$0xff] %vm774_vm6, %v8852_v0  ;;  %8865 = vlog2.f32 %v2640_v47  ;;  %v3875_v48 = vmul.f32 %v3747_v10, %v10780_v59  ;;  %v3753_v51 = vperm.slane %v3694_v22, 0  ;;  %v3754_v53 = vperm.slane %v10793_v60, 0 }
 0x23a   : > { %v8856_v14 = vpop.eup %8855  ;;  %3172 = vst.msk [vmem:[#allocation4 + $0xd0] sm:$0xff] %vm774_vm6, %v8854_v24  ;;  %v3377_v19 = vpop.permute.xlu0 %3376  ;;  %v3886_v13 = vmul.f32 %v3758_v12, %v3412_v46  ;;  %v3879_v4 = vmul.f32 %v3751_v55, %v3363_v18  ;;  %8867 = vpow2.f32 %v2630_v6  ;;  %v3878_v54 = vmul.f32 %v3750_v7, %v3356_v31 }
 0x23b   : > { %v8858_v63 = vpop.eup %8857  ;;  %3173 = vst.msk [vmem:[#allocation4 + $0xd8] sm:$0xff] %vm774_vm6, %v8856_v14  ;;  %v3384_v30 = vpop.permute.xlu1 %3383  ;;  %v3889_v58 = vmul.f32 %v3761_v3, %v3433_v32  ;;  %v3881_v47 = vmul.f32 %v3753_v51, %v3377_v19  ;;  %v3696_v31 = vrot.slane %v10793_v60, 2  ;;  %v3697_v52 = vrot.slane %v10793_v60, 3 }
 0x23c   : > { %v8860_v21 = vpop.eup %8859  ;;  %3174 = vst.msk [vmem:[#allocation4 + $0xe0] sm:$0xff] %vm774_vm6, %v8858_v63  ;;  %v3882_v25 = vmul.f32 %v3754_v53, %v3384_v30  ;;  %vm2609_vm4 = vcmp.gt.f32.partialorder %v10797_v62, 20.0 }
 0x23d   : > { %v8862_v2 = vpop.eup %8861  ;;  %3175 = vst.msk [vmem:[#allocation4 + $0xe8] sm:$0xff] %vm774_vm6, %v8860_v21 }
 0x23e   : > { %v8864_v42 = vpop.eup %8863  ;;  %3176 = vst.msk [vmem:[#allocation4 + $0xf0] sm:$0xff] %vm774_vm6, %v8862_v2 }
 0x23f   : > { %v8866_v11 = vpop.eup %8865  ;;  %3177 = vst.msk [vmem:[#allocation4 + $0xf8] sm:$0xff] %vm774_vm6, %v8864_v42  ;;  %v3454_v42 = vpop.permute.xlu2 %3453 }
 0x240   : > { %v2653_v20 = vmul.f32 0.6931472, %v8866_v11  ;;  %3947 = vst.msk [vmem:[#allocation5 + $0xc8] sm:$0xff] %vm774_vm6, %v3883_v8  ;;  %v8868_v22 = vpop.eup %8867  ;;  %v10841_v8 = vld [vmem:[%s13446_s8 + $0x8] sm:$0xff] }
 0x241   : > { %v10818_v34 = vpop.f32.mrf.mxu0  ;;  %3939 = vst.msk [vmem:[#allocation5 + $0x88] sm:$0xff] %vm774_vm6, %v3875_v48 }
 0x242   : > { %v3616_v49 = vperm.slane %v10818_v34, 2  ;;  %v3609_v59 = vperm.slane %v10818_v34, 1  ;;  %v3602_v15 = vperm.slane %v10818_v34, 0  ;;  %v3637_v46 = vperm.slane %v10818_v34, 5  ;;  %3950 = vst.msk [vmem:[#allocation5 + $0xe0] sm:$0xff] %vm774_vm6, %v3886_v13 }
 0x243   : > { %v3630_v41 = vperm.slane %v10818_v34, 4  ;;  %v2664_v39 = vsel %vm2608_vm1, %v10743_v26, %v2653_v20  ;;  %v3623_v18 = vperm.slane %v10818_v34, 3  ;;  %3943 = vst.msk [vmem:[#allocation5 + $0xa8] sm:$0xff] %vm774_vm6, %v3879_v4  ;;  %v3405_v13 = vpop.permute.xlu1 %3404 }
 0x244   : > { %3621 = vperm.xlu2 %8554, %v3616_v49   ;;  %3614 = vperm.xlu1 %8553, %v3609_v59   ;;  %v2798_v61 = vrot.slane %v2664_v39, 1  ;;  %v2799_v38 = vrot.slane %v2664_v39, 2  ;;  %v2800_v29 = vrot.slane %v2664_v39, 3  ;;  %v2801_v0 = vrot.slane %v2664_v39, 4  ;;  %3942 = vst.msk [vmem:[#allocation5 + $0xa0] sm:$0xff] %vm774_vm6, %v3878_v54 }
 0x245   : > { %3607 = vperm.xlu0 %8552, %v3602_v15   ;;  %v2802_v27 = vrot.slane %v2664_v39, 5  ;;  %v2803_v35 = vrot.slane %v2664_v39, 6  ;;  %v2804_v33 = vrot.slane %v2664_v39, 7  ;;  %v2858_v24 = vperm.slane %v2664_v39, 0  ;;  %3953 = vst.msk [vmem:[#allocation5 + $0xf8] sm:$0xff] %vm774_vm6, %v3889_v58  ;;  %v3398_v15 = vpop.permute.xlu0 %3397  ;;  %v2598_v58 = vpop.f32.mrf.mxu3 }
 0x246   : > { %v2859_v26 = vperm.slane %v2798_v61, 0  ;;  %v2860_v10 = vperm.slane %v2799_v38, 0  ;;  %v2861_v14 = vperm.slane %v2800_v29, 0  ;;  %v2862_v12 = vperm.slane %v2801_v0, 0  ;;  %3945 = vst.msk [vmem:[#allocation5 + $0xb8] sm:$0xff] %vm774_vm6, %v3881_v47 }
 0x247   : > { %v2863_v63 = vperm.slane %v2802_v27, 0  ;;  %v2864_v55 = vperm.slane %v2803_v35, 0  ;;  %v2865_v21 = vperm.slane %v2804_v33, 0  ;;  %v2986_v6 = vmul.f32 %v10841_v8, %v2858_v24  ;;  %3946 = vst.msk [vmem:[#allocation5 + $0xc0] sm:$0xff] %vm774_vm6, %v3882_v25 }
 0x248   : > { %v2987_v7 = vmul.f32 %v10841_v8, %v2859_v26  ;;  %v2988_v3 = vmul.f32 %v10841_v8, %v2860_v10  ;;  %v2989_v2 = vmul.f32 %v10841_v8, %v2861_v14  ;;  %v2990_v48 = vmul.f32 %v10841_v8, %v2862_v12  ;;  %v3475_v14 = vpop.permute.xlu2 %3474 }
 0x249   : > { %v2991_v32 = vmul.f32 %v10841_v8, %v2863_v63  ;;  %v2992_v51 = vmul.f32 %v10841_v8, %v2864_v55  ;;  %v2993_v19 = vmul.f32 %v10841_v8, %v2865_v21  ;;  %v3082_v53 = vmul.f32 1.442695, %v2986_v6 }
 0x24a   : > { %v3084_v30 = vmul.f32 1.442695, %v2987_v7  ;;  %v3086_v11 = vmul.f32 1.442695, %v2988_v3  ;;  %v3088_v49 = vmul.f32 1.442695, %v2989_v2  ;;  %v10854_v59 = vmul.f32 %v2664_v39, %v9996_v5 }
 0x24b   : > { %8869 = vpow2.f32 %v3082_v53  ;;  %v3090_v4 = vmul.f32 1.442695, %v2990_v48  ;;  %v3092_v20 = vmul.f32 1.442695, %v2991_v32  ;;  %v3756_v54 = vperm.slane %v3696_v31, 0 }
 0x24c   : > { %3642 = vperm.xlu2 %8554, %v3637_v46   ;;  %3635 = vperm.xlu1 %8553, %v3630_v41   ;;  %8871 = vpow2.f32 %v3084_v30  ;;  %v3094_v47 = vmul.f32 1.442695, %v2992_v51  ;;  %v2641_v25 = vadd.f32 1.0, %v8868_v22  ;;  %v3757_v61 = vperm.slane %v3697_v52, 0 }
 0x24d   : > { %3628 = vperm.xlu0 %8552, %v3623_v18   ;;  %8873 = vpow2.f32 %v3086_v11  ;;  %v3096_v38 = vmul.f32 1.442695, %v2993_v19  ;;  %v3703_v29 = vrot.slane %v10854_v59, 2  ;;  %v3884_v39 = vmul.f32 %v3756_v54, %v3398_v15  ;;  %v3419_v63 = vpop.permute.xlu0 %3418 }
 0x24e   : > { %8875 = vpow2.f32 %v3088_v49  ;;  %v3885_v46 = vmul.f32 %v3757_v61, %v3405_v13  ;;  %v3706_v41 = vrot.slane %v10854_v59, 5  ;;  %v10859_v0 = vadd.f32 %v10740_v40, %v2598_v58 }
 0x24f   : > { %8877 = vpow2.f32 %v3090_v4  ;;  %v3651_v18 = vperm.slane %v10818_v34, 7  ;;  %3948 = vst.msk [vmem:[#allocation5 + $0xd0] sm:$0xff] %vm774_vm6, %v3884_v39  ;;  %v3699_v31 = vrot.slane %v10793_v60, 5  ;;  %v3644_v27 = vperm.slane %v10818_v34, 6  ;;  %v3426_v34 = vpop.permute.xlu1 %3425 }
 0x250   : > { %8879 = vpow2.f32 %v3092_v20  ;;  %3949 = vst.msk [vmem:[#allocation5 + $0xd8] sm:$0xff] %vm774_vm6, %v3885_v46  ;;  %v3700_v35 = vrot.slane %v10793_v60, 6  ;;  %v3764_v24 = vperm.slane %v3703_v29, 0  ;;  %v3767_v10 = vperm.slane %v3706_v41, 0 }
 0x251   : > { %v8870_v52 = vpop.eup %8869  ;;  %8881 = vpow2.f32 %v3094_v47  ;;  %v2618_v12 = vmin.f32 %v10859_v0, 20.0  ;;  %v3759_v60 = vperm.slane %v3699_v31, 0  ;;  %v3702_v19 = vrot.slane %v10854_v59, 1 }
 0x252   : > { %v8872_v33 = vpop.eup %8871  ;;  %8883 = vpow2.f32 %v3096_v38  ;;  %3178 = vst.msk [vmem:[#allocation4 + $0x100] sm:$0xff] %vm774_vm6, %v8870_v52  ;;  %v3760_v21 = vperm.slane %v3700_v35, 0  ;;  %v3892_v7 = vmul.f32 %v3764_v24, %v3454_v42  ;;  %v3895_v2 = vmul.f32 %v3767_v10, %v3475_v14 }
 0x253   : > { %v8874_v26 = vpop.eup %8873  ;;  %3179 = vst.msk [vmem:[#allocation4 + $0x108] sm:$0xff] %vm774_vm6, %v8872_v33  ;;  %8885 = vlog2.f32 %v2641_v25  ;;  %v2632_v48 = vmul.f32 1.442695, %v2618_v12  ;;  %v3887_v51 = vmul.f32 %v3759_v60, %v3419_v63  ;;  %v3763_v11 = vperm.slane %v3702_v19, 0 }
 0x254   : > { %3656 = vperm.xlu1 %8553, %v3651_v18   ;;  %v8876_v22 = vpop.eup %8875  ;;  %3180 = vst.msk [vmem:[#allocation4 + $0x110] sm:$0xff] %vm774_vm6, %v8874_v26  ;;  %v3888_v13 = vmul.f32 %v3760_v21, %v3426_v34  ;;  %v3762_v49 = vperm.slane %v10854_v59, 0  ;;  %v3705_v15 = vrot.slane %v10854_v59, 4  ;;  %vm2610_vm5 = vcmp.gt.f32.partialorder %v10859_v0, 20.0 }
 0x255   : > { %3649 = vperm.xlu0 %8552, %v3644_v27   ;;  %v8878_v55 = vpop.eup %8877  ;;  %3181 = vst.msk [vmem:[#allocation4 + $0x118] sm:$0xff] %vm774_vm6, %v8876_v22  ;;  %8887 = vpow2.f32 %v2632_v48 }
 0x256   : > { %v8880_v6 = vpop.eup %8879  ;;  %3182 = vst.msk [vmem:[#allocation4 + $0x120] sm:$0xff] %vm774_vm6, %v8878_v55 }
 0x257   : > { %v8882_v3 = vpop.eup %8881  ;;  %3183 = vst.msk [vmem:[#allocation4 + $0x128] sm:$0xff] %vm774_vm6, %v8880_v6  ;;  %v3447_v25 = vpop.permute.xlu1 %3446 }
 0x258   : > { %v8884_v32 = vpop.eup %8883  ;;  %3184 = vst.msk [vmem:[#allocation4 + $0x130] sm:$0xff] %vm774_vm6, %v8882_v3 }
 0x259   : > { %v8886_v53 = vpop.eup %8885  ;;  %3185 = vst.msk [vmem:[#allocation4 + $0x138] sm:$0xff] %vm774_vm6, %v8884_v32  ;;  %v3891_v32 = vmul.f32 %v3763_v11, %v3447_v25  ;;  %v3704_v25 = vrot.slane %v10854_v59, 3 }
 0x25a   : > { %v2655_v30 = vmul.f32 0.6931472, %v8886_v53  ;;  %3956 = vst.msk [vmem:[#allocation5 + $0x110] sm:$0xff] %vm774_vm6, %v3892_v7 }
 0x25b   : > { %3959 = vst.msk [vmem:[#allocation5 + $0x128] sm:$0xff] %vm774_vm6, %v3895_v2  ;;  %v8888_v24 = vpop.eup %8887 }
 0x25c   : > { %v2665_v42 = vsel %vm2609_vm4, %v10797_v62, %v2655_v30  ;;  %3951 = vst.msk [vmem:[#allocation5 + $0xe8] sm:$0xff] %vm774_vm6, %v3887_v51  ;;  %v3496_v47 = vpop.permute.xlu2 %3495  ;;  %v3440_v62 = vpop.permute.xlu0 %3439  ;;  %v3766_v30 = vperm.slane %v3705_v15, 0 }
 0x25d   : > { %v2805_v4 = vrot.slane %v2665_v42, 1  ;;  %v2806_v20 = vrot.slane %v2665_v42, 2  ;;  %v2807_v54 = vrot.slane %v2665_v42, 3  ;;  %v2808_v58 = vrot.slane %v2665_v42, 4  ;;  %3952 = vst.msk [vmem:[#allocation5 + $0xf0] sm:$0xff] %vm774_vm6, %v3888_v13 }
 0x25e   : > { %v2809_v61 = vrot.slane %v2665_v42, 5  ;;  %v2810_v38 = vrot.slane %v2665_v42, 6  ;;  %v2811_v29 = vrot.slane %v2665_v42, 7  ;;  %v2866_v39 = vperm.slane %v2665_v42, 0  ;;  %3955 = vst.msk [vmem:[#allocation5 + $0x108] sm:$0xff] %vm774_vm6, %v3891_v32 }
 0x25f   : > { %v2867_v46 = vperm.slane %v2805_v4, 0  ;;  %v2868_v41 = vperm.slane %v2806_v20, 0  ;;  %v2869_v18 = vperm.slane %v2807_v54, 0  ;;  %v2870_v31 = vperm.slane %v2808_v58, 0  ;;  %v3468_v19 = vpop.permute.xlu1 %3467  ;;  %v2601_v20 = vpop.f32.mrf.mxu3 }
 0x260   : > { %v2871_v52 = vperm.slane %v2809_v61, 0  ;;  %v2872_v27 = vperm.slane %v2810_v38, 0  ;;  %v2873_v35 = vperm.slane %v2811_v29, 0  ;;  %v2994_v33 = vmul.f32 %v10841_v8, %v2866_v39 }
 0x261   : > { %v2995_v26 = vmul.f32 %v10841_v8, %v2867_v46  ;;  %v2996_v10 = vmul.f32 %v10841_v8, %v2868_v41  ;;  %v2997_v14 = vmul.f32 %v10841_v8, %v2869_v18  ;;  %v2998_v12 = vmul.f32 %v10841_v8, %v2870_v31 }
 0x262   : > { %v2999_v34 = vmul.f32 %v10841_v8, %v2871_v52  ;;  %v3000_v22 = vmul.f32 %v10841_v8, %v2872_v27  ;;  %v3001_v60 = vmul.f32 %v10841_v8, %v2873_v35  ;;  %v3098_v63 = vmul.f32 1.442695, %v2994_v33 }
 0x263   : > { %v3100_v55 = vmul.f32 1.442695, %v2995_v26  ;;  %v3102_v21 = vmul.f32 1.442695, %v2996_v10  ;;  %v3104_v6 = vmul.f32 1.442695, %v2997_v14  ;;  %v10894_v7 = vmul.f32 %v2665_v42, %v10261_v17 }
 0x264   : > { %8889 = vpow2.f32 %v3098_v63  ;;  %v3106_v3 = vmul.f32 1.442695, %v2998_v12  ;;  %v3108_v2 = vmul.f32 1.442695, %v2999_v34  ;;  %v3517_v51 = vpop.permute.xlu2 %3516  ;;  %v3110_v53 = vmul.f32 1.442695, %v3000_v22  ;;  %v3461_v4 = vpop.permute.xlu0 %3460 }
 0x265   : > { %8891 = vpow2.f32 %v3100_v55  ;;  %v3770_v48 = vperm.slane %v10894_v7, 0  ;;  %v3890_v13 = vmul.f32 %v3762_v49, %v3440_v62  ;;  %v3112_v54 = vmul.f32 1.442695, %v3001_v60  ;;  %v10925_v32 = vpop.f32.mrf.mxu1 }
 0x266   : > { %8893 = vpow2.f32 %v3102_v21  ;;  %v3711_v42 = vrot.slane %v10894_v7, 3  ;;  %v2642_v61 = vadd.f32 1.0, %v8888_v24  ;;  %v3894_v11 = vmul.f32 %v3766_v30, %v3468_v19 }
 0x267   : > { %8895 = vpow2.f32 %v3104_v6  ;;  %v3898_v58 = vmul.f32 %v3770_v48, %v3496_v47  ;;  %3954 = vst.msk [vmem:[#allocation5 + $0x100] sm:$0xff] %vm774_vm6, %v3890_v13  ;;  %v3714_v49 = vrot.slane %v10894_v7, 6  ;;  %v10904_v15 = vadd.f32 %v10740_v40, %v2601_v20  ;;  %v3489_v26 = vpop.permute.xlu1 %3488 }
 0x268   : > { %8897 = vpow2.f32 %v3106_v3  ;;  %3958 = vst.msk [vmem:[#allocation5 + $0x120] sm:$0xff] %vm774_vm6, %v3894_v11  ;;  %v3708_v38 = vrot.slane %v10854_v59, 7  ;;  %v3773_v39 = vperm.slane %v3711_v42, 0  ;;  %v3707_v62 = vrot.slane %v10854_v59, 6 }
 0x269   : > { %8899 = vpow2.f32 %v3108_v2  ;;  %3962 = vst.msk [vmem:[#allocation5 + $0x140] sm:$0xff] %vm774_vm6, %v3898_v58  ;;  %v3765_v41 = vperm.slane %v3704_v25, 0  ;;  %v3776_v18 = vperm.slane %v3714_v49, 0  ;;  %v2619_v52 = vmin.f32 %v10904_v15, 20.0 }
 0x26a   : > { %v8890_v47 = vpop.eup %8889  ;;  %8901 = vpow2.f32 %v3110_v53  ;;  %v3769_v35 = vperm.slane %v3708_v38, 0  ;;  %v3901_v59 = vmul.f32 %v3773_v39, %v3517_v51  ;;  %v3768_v10 = vperm.slane %v3707_v62, 0 }
 0x26b   : > { %v8892_v29 = vpop.eup %8891  ;;  %8903 = vpow2.f32 %v3112_v54  ;;  %3186 = vst.msk [vmem:[#allocation4 + $0x140] sm:$0xff] %vm774_vm6, %v8890_v47  ;;  %v3893_v12 = vmul.f32 %v3765_v41, %v3461_v4  ;;  %v2634_v60 = vmul.f32 1.442695, %v2619_v52  ;;  %v3710_v63 = vrot.slane %v10894_v7, 2 }
 0x26c   : > { %v8894_v46 = vpop.eup %8893  ;;  %3187 = vst.msk [vmem:[#allocation4 + $0x148] sm:$0xff] %vm774_vm6, %v8892_v29  ;;  %8905 = vlog2.f32 %v2642_v61  ;;  %v3538_v31 = vpop.permute.xlu2 %3537  ;;  %v3709_v55 = vrot.slane %v10894_v7, 1  ;;  %v3897_v6 = vmul.f32 %v3769_v35, %v3489_v26  ;;  %vm2611_vm7 = vcmp.gt.f32.partialorder %v10904_v15, 20.0 }
 0x26d   : > { %v8896_v40 = vpop.eup %8895  ;;  %3188 = vst.msk [vmem:[#allocation4 + $0x150] sm:$0xff] %vm774_vm6, %v8894_v46  ;;  %v3482_v33 = vpop.permute.xlu0 %3481  ;;  %v3904_v22 = vmul.f32 %v3776_v18, %v3538_v31  ;;  %8907 = vpow2.f32 %v2634_v60  ;;  %v3772_v19 = vperm.slane %v3710_v63, 0 }
 0x26e   : > { %v8898_v27 = vpop.eup %8897  ;;  %3189 = vst.msk [vmem:[#allocation4 + $0x158] sm:$0xff] %vm774_vm6, %v8896_v40  ;;  %v3896_v2 = vmul.f32 %v3768_v10, %v3482_v33  ;;  %v10923_v48 = vpop.f32.mrf.mxu2  ;;  %v3771_v53 = vperm.slane %v3709_v55, 0 }
 0x26f   : > { %v8900_v24 = vpop.eup %8899  ;;  %3190 = vst.msk [vmem:[#allocation4 + $0x160] sm:$0xff] %vm774_vm6, %v8898_v27 }
 0x270   : > { %v8902_v14 = vpop.eup %8901  ;;  %3191 = vst.msk [vmem:[#allocation4 + $0x168] sm:$0xff] %vm774_vm6, %v8900_v24 }
 0x271   : > { %v8904_v34 = vpop.eup %8903  ;;  %3192 = vst.msk [vmem:[#allocation4 + $0x170] sm:$0xff] %vm774_vm6, %v8902_v14 }
 0x272   : > { %v8906_v21 = vpop.eup %8905  ;;  %3193 = vst.msk [vmem:[#allocation4 + $0x178] sm:$0xff] %vm774_vm6, %v8904_v34 }
 0x273   : > { %v2657_v3 = vmul.f32 0.6931472, %v8906_v21  ;;  %3965 = vst.msk [vmem:[#allocation5 + $0x158] sm:$0xff] %vm774_vm6, %v3901_v59  ;;  %v8908_v27 = vpop.eup %8907 }
 0x274   : > { %3957 = vst.msk [vmem:[#allocation5 + $0x118] sm:$0xff] %vm774_vm6, %v3893_v12  ;;  %v3510_v52 = vpop.permute.xlu1 %3509 }
 0x275   : > { %v2666_v51 = vsel %vm2610_vm5, %v10859_v0, %v2657_v3  ;;  %3968 = vst.msk [vmem:[#allocation5 + $0x170] sm:$0xff] %vm774_vm6, %v3904_v22  ;;  %v10930_v54 = vpop.permute.xlu2 %3558  ;;  %v3503_v0 = vpop.permute.xlu0 %3502  ;;  %v3900_v55 = vmul.f32 %v3772_v19, %v3510_v52  ;;  %v3713_v19 = vrot.slane %v10894_v7, 5 }
 0x276   : > { %v2812_v13 = vrot.slane %v2666_v51, 1  ;;  %v2813_v30 = vrot.slane %v2666_v51, 2  ;;  %v2814_v4 = vrot.slane %v2666_v51, 3  ;;  %v2815_v20 = vrot.slane %v2666_v51, 4  ;;  %3961 = vst.msk [vmem:[#allocation5 + $0x138] sm:$0xff] %vm774_vm6, %v3897_v6  ;;  %v10944_v34 = vpop.f32.mrf.mxu2  ;;  %v10946_v22 = vpop.f32.mrf.mxu1 }
 0x277   : > { %v2816_v58 = vrot.slane %v2666_v51, 5  ;;  %v2817_v42 = vrot.slane %v2666_v51, 6  ;;  %v2818_v61 = vrot.slane %v2666_v51, 7  ;;  %v2874_v11 = vperm.slane %v2666_v51, 0  ;;  %3960 = vst.msk [vmem:[#allocation5 + $0x130] sm:$0xff] %vm774_vm6, %v3896_v2 }
 0x278   : > { %v2875_v25 = vperm.slane %v2812_v13, 0  ;;  %v2876_v49 = vperm.slane %v2813_v30, 0  ;;  %v2877_v47 = vperm.slane %v2814_v4, 0  ;;  %v2878_v38 = vperm.slane %v2815_v20, 0  ;;  %3964 = vst.msk [vmem:[#allocation5 + $0x150] sm:$0xff] %vm774_vm6, %v3900_v55 }
 0x279   : > { %v2879_v29 = vperm.slane %v2816_v58, 0  ;;  %v2880_v39 = vperm.slane %v2817_v42, 0  ;;  %v2881_v62 = vperm.slane %v2818_v61, 0  ;;  %v3002_v46 = vmul.f32 %v10841_v8, %v2874_v11 }
 0x27a   : > { %v3003_v41 = vmul.f32 %v10841_v8, %v2875_v25  ;;  %v3004_v40 = vmul.f32 %v10841_v8, %v2876_v49  ;;  %v3005_v18 = vmul.f32 %v10841_v8, %v2877_v47  ;;  %v3006_v31 = vmul.f32 %v10841_v8, %v2878_v38 }
 0x27b   : > { %v3007_v35 = vmul.f32 %v10841_v8, %v2879_v29  ;;  %v3008_v33 = vmul.f32 %v10841_v8, %v2880_v39  ;;  %v3009_v24 = vmul.f32 %v10841_v8, %v2881_v62  ;;  %v3114_v59 = vmul.f32 1.442695, %v3002_v46 }
 0x27c   : > { %v3116_v26 = vmul.f32 1.442695, %v3003_v41  ;;  %v3118_v10 = vmul.f32 1.442695, %v3004_v40  ;;  %v3120_v14 = vmul.f32 1.442695, %v3005_v18  ;;  %v10942_v12 = vmul.f32 %v2666_v51, %v10334_v16  ;;  %v3531_v61 = vpop.permute.xlu1 %3530 }
 0x27d   : > { %8909 = vpow2.f32 %v3114_v59  ;;  %v3122_v60 = vmul.f32 1.442695, %v3006_v31  ;;  %v3124_v63 = vmul.f32 1.442695, %v3007_v35  ;;  %v3126_v21 = vmul.f32 1.442695, %v3008_v33  ;;  %v3580_v3 = vpop.permute.xlu2 %3579  ;;  %v3524_v2 = vpop.permute.xlu0 %3523 }
 0x27e   : > { %8911 = vpow2.f32 %v3116_v26  ;;  %v3899_v6 = vmul.f32 %v3771_v53, %v3503_v0  ;;  %v3128_v13 = vmul.f32 1.442695, %v3009_v24  ;;  %v3716_v30 = vrot.slane %v10942_v12, 1  ;;  %v10957_v49 = vpop.f32.mrf.mxu2  ;;  %v10959_v47 = vpop.f32.mrf.mxu1 }
 0x27f   : > { %8913 = vpow2.f32 %v3118_v10  ;;  %v2643_v51 = vadd.f32 1.0, %v8908_v27  ;;  %v3719_v4 = vrot.slane %v10942_v12, 4  ;;  %v3712_v53 = vrot.slane %v10894_v7, 4 }
 0x280   : > { %8915 = vpow2.f32 %v3120_v14  ;;  %3963 = vst.msk [vmem:[#allocation5 + $0x148] sm:$0xff] %vm774_vm6, %v3899_v6  ;;  %v3779_v42 = vperm.slane %v3716_v30, 0  ;;  %v3722_v11 = vrot.slane %v10942_v12, 7  ;;  %v3775_v29 = vperm.slane %v3713_v19, 0 }
 0x281   : > { %8917 = vpow2.f32 %v3122_v60  ;;  %v3782_v25 = vperm.slane %v3719_v4, 0  ;;  %v3774_v62 = vperm.slane %v3712_v53, 0  ;;  %v3715_v46 = vrot.slane %v10894_v7, 7 }
 0x282   : > { %8919 = vpow2.f32 %v3124_v63  ;;  %v3907_v18 = vmul.f32 %v3779_v42, %v10930_v54  ;;  %v3785_v31 = vperm.slane %v3722_v11, 0  ;;  %v3903_v24 = vmul.f32 %v3775_v29, %v3531_v61 }
 0x283   : > { %v8910_v20 = vpop.eup %8909  ;;  %8921 = vpow2.f32 %v3126_v21  ;;  %v3910_v27 = vmul.f32 %v3782_v25, %v3580_v3  ;;  %v3902_v7 = vmul.f32 %v3774_v62, %v3524_v2  ;;  %v3777_v26 = vperm.slane %v3715_v46, 0 }
 0x284   : > { %v8912_v58 = vpop.eup %8911  ;;  %8923 = vpow2.f32 %v3128_v13  ;;  %3194 = vst.msk [vmem:[#allocation4 + $0x180] sm:$0xff] %vm774_vm6, %v8910_v20  ;;  %v3778_v60 = vperm.slane %v10942_v12, 0  ;;  %v3717_v6 = vrot.slane %v10942_v12, 2  ;;  %v3718_v3 = vrot.slane %v10942_v12, 3 }
 0x285   : > { %v8914_v0 = vpop.eup %8913  ;;  %3195 = vst.msk [vmem:[#allocation4 + $0x188] sm:$0xff] %vm774_vm6, %v8912_v58  ;;  %8925 = vlog2.f32 %v2643_v51  ;;  %v3545_v41 = vpop.permute.xlu0 %3544  ;;  %v3720_v2 = vrot.slane %v10942_v12, 5 }
 0x286   : > { %v8916_v38 = vpop.eup %8915  ;;  %3196 = vst.msk [vmem:[#allocation4 + $0x190] sm:$0xff] %vm774_vm6, %v8914_v0  ;;  %v3601_v35 = vpop.permute.xlu2 %3600  ;;  %v3905_v14 = vmul.f32 %v3777_v26, %v3545_v41 }
 0x287   : > { %v8918_v39 = vpop.eup %8917  ;;  %3197 = vst.msk [vmem:[#allocation4 + $0x198] sm:$0xff] %vm774_vm6, %v8916_v38  ;;  %v3913_v54 = vmul.f32 %v3785_v31, %v3601_v35  ;;  %v10973_v63 = vpop.f32.mrf.mxu2 }
 0x288   : > { %v8920_v40 = vpop.eup %8919  ;;  %3198 = vst.msk [vmem:[#allocation4 + $0x1a0] sm:$0xff] %vm774_vm6, %v8918_v39  ;;  %v10975_v55 = vpop.f32.mrf.mxu1 }
 0x289   : > { %v8922_v52 = vpop.eup %8921  ;;  %3199 = vst.msk [vmem:[#allocation4 + $0x1a8] sm:$0xff] %vm774_vm6, %v8920_v40 }
 0x28a   : > { %v8924_v33 = vpop.eup %8923  ;;  %3200 = vst.msk [vmem:[#allocation4 + $0x1b0] sm:$0xff] %vm774_vm6, %v8922_v52 }
 0x28b   : > { %v8926_v59 = vpop.eup %8925  ;;  %3201 = vst.msk [vmem:[#allocation4 + $0x1b8] sm:$0xff] %vm774_vm6, %v8924_v33 }
 0x28c   : > { %v2659_v10 = vmul.f32 0.6931472, %v8926_v59  ;;  %3971 = vst.msk [vmem:[#allocation5 + $0x188] sm:$0xff] %vm774_vm6, %v3907_v18 }
 0x28d   : > { %3974 = vst.msk [vmem:[#allocation5 + $0x1a0] sm:$0xff] %vm774_vm6, %v3910_v27  ;;  %v3552_v19 = vpop.permute.xlu1 %3551 }
 0x28e   : > { %v2667_v21 = vsel %vm2611_vm7, %v10904_v15, %v2659_v10  ;;  %3967 = vst.msk [vmem:[#allocation5 + $0x168] sm:$0xff] %vm774_vm6, %v3903_v24  ;;  %v3566_v20 = vpop.permute.xlu0 %3565 }
 0x28f   : > { %v2819_v13 = vrot.slane %v2667_v21, 1  ;;  %v2820_v30 = vrot.slane %v2667_v21, 2  ;;  %v2821_v51 = vrot.slane %v2667_v21, 3  ;;  %v2822_v4 = vrot.slane %v2667_v21, 4  ;;  %3966 = vst.msk [vmem:[#allocation5 + $0x160] sm:$0xff] %vm774_vm6, %v3902_v7  ;;  %v10996_v26 = vpop.f32.mrf.mxu2 }
 0x290   : > { %v2823_v53 = vrot.slane %v2667_v21, 5  ;;  %v2824_v58 = vrot.slane %v2667_v21, 6  ;;  %v2825_v42 = vrot.slane %v2667_v21, 7  ;;  %v2882_v15 = vperm.slane %v2667_v21, 0  ;;  %3977 = vst.msk [vmem:[#allocation5 + $0x1b8] sm:$0xff] %vm774_vm6, %v3913_v54  ;;  %v10998_v10 = vpop.f32.mrf.mxu1 }
 0x291   : > { %v2883_v61 = vperm.slane %v2819_v13, 0  ;;  %v2884_v11 = vperm.slane %v2820_v30, 0  ;;  %v2885_v0 = vperm.slane %v2821_v51, 0  ;;  %v2886_v25 = vperm.slane %v2822_v4, 0  ;;  %3969 = vst.msk [vmem:[#allocation5 + $0x178] sm:$0xff] %vm774_vm6, %v3905_v14 }
 0x292   : > { %v2887_v38 = vperm.slane %v2823_v53, 0  ;;  %v2888_v29 = vperm.slane %v2824_v58, 0  ;;  %v2889_v39 = vperm.slane %v2825_v42, 0  ;;  %v3010_v62 = vmul.f32 %v10841_v8, %v2882_v15 }
 0x293   : > { %v3011_v46 = vmul.f32 %v10841_v8, %v2883_v61  ;;  %v3012_v41 = vmul.f32 %v10841_v8, %v2884_v11  ;;  %v3013_v40 = vmul.f32 %v10841_v8, %v2885_v0  ;;  %v3014_v18 = vmul.f32 %v10841_v8, %v2886_v25 }
 0x294   : > { %v3015_v31 = vmul.f32 %v10841_v8, %v2887_v38  ;;  %v3016_v52 = vmul.f32 %v10841_v8, %v2888_v29  ;;  %v3017_v27 = vmul.f32 %v10841_v8, %v2889_v39  ;;  %v3130_v35 = vmul.f32 1.442695, %v3010_v62 }
 0x295   : > { %v3132_v33 = vmul.f32 1.442695, %v3011_v46  ;;  %v3134_v24 = vmul.f32 1.442695, %v3012_v41  ;;  %v3136_v59 = vmul.f32 1.442695, %v3013_v40  ;;  %v10994_v7 = vmul.f32 %v2667_v21, %v10461_v44  ;;  %v3573_v4 = vpop.permute.xlu1 %3572 }
 0x296   : > { %8927 = vpow2.f32 %v3130_v35  ;;  %v3138_v54 = vmul.f32 1.442695, %v3014_v18  ;;  %v3780_v14 = vperm.slane %v3717_v6, 0  ;;  %v3781_v13 = vperm.slane %v3718_v3, 0  ;;  %v3587_v53 = vpop.permute.xlu0 %3586 }
 0x297   : > { %8929 = vpow2.f32 %v3132_v33  ;;  %v3140_v30 = vmul.f32 1.442695, %v3015_v31  ;;  %v3906_v51 = vmul.f32 %v3778_v60, %v3552_v19  ;;  %v3783_v8 = vperm.slane %v3720_v2, 0  ;;  %v11008_v0 = vpop.f32.mrf.mxu2 }
 0x298   : > { %8931 = vpow2.f32 %v3134_v24  ;;  %v3142_v58 = vmul.f32 1.442695, %v3016_v52  ;;  %v3908_v42 = vmul.f32 %v3780_v14, %v3566_v20  ;;  %v3909_v15 = vmul.f32 %v3781_v13, %v3573_v4  ;;  %v11010_v25 = vpop.f32.mrf.mxu1 }
 0x299   : > { %8933 = vpow2.f32 %v3136_v59  ;;  %v3144_v21 = vmul.f32 1.442695, %v3017_v27  ;;  %3970 = vst.msk [vmem:[#allocation5 + $0x180] sm:$0xff] %vm774_vm6, %v3906_v51  ;;  %v3724_v61 = vrot.slane %v10994_v7, 2  ;;  %v3911_v11 = vmul.f32 %v3783_v8, %v3587_v53 }
 0x29a   : > { %8935 = vpow2.f32 %v3138_v54  ;;  %3972 = vst.msk [vmem:[#allocation5 + $0x190] sm:$0xff] %vm774_vm6, %v3908_v42  ;;  %v3721_v3 = vrot.slane %v10942_v12, 6  ;;  %v3727_v20 = vrot.slane %v10994_v7, 5  ;;  %v3723_v14 = vrot.slane %v10994_v7, 1 }
 0x29b   : > { %8937 = vpow2.f32 %v3140_v30  ;;  %3973 = vst.msk [vmem:[#allocation5 + $0x198] sm:$0xff] %vm774_vm6, %v3909_v15  ;;  %v3788_v19 = vperm.slane %v3724_v61, 0  ;;  %v3786_v51 = vperm.slane %v10994_v7, 0  ;;  %v3725_v42 = vrot.slane %v10994_v7, 3 }
 0x29c   : > { %v8928_v60 = vpop.eup %8927  ;;  %8939 = vpow2.f32 %v3142_v58  ;;  %3975 = vst.msk [vmem:[#allocation5 + $0x1a8] sm:$0xff] %vm774_vm6, %v3911_v11  ;;  %v3784_v12 = vperm.slane %v3721_v3, 0  ;;  %v3791_v40 = vperm.slane %v3727_v20, 0  ;;  %v3787_v13 = vperm.slane %v3723_v14, 0 }
 0x29d   : > { %v8930_v2 = vpop.eup %8929  ;;  %8941 = vpow2.f32 %v3144_v21  ;;  %3202 = vst.msk [vmem:[#allocation4 + $0x1c0] sm:$0xff] %vm774_vm6, %v8928_v60  ;;  %v3594_v39 = vpop.permute.xlu1 %3593  ;;  %v3726_v58 = vrot.slane %v10994_v7, 4  ;;  %v3789_v61 = vperm.slane %v3725_v42, 0  ;;  %v3729_v3 = vrot.slane %v10994_v7, 7 }
 0x29e   : > { %v3622_v6 = vpop.permute.xlu2 %3621  ;;  %v8932_v38 = vpop.eup %8931  ;;  %3203 = vst.msk [vmem:[#allocation4 + $0x1c8] sm:$0xff] %vm774_vm6, %v8930_v2  ;;  %v3912_v31 = vmul.f32 %v3784_v12, %v3594_v39  ;;  %v3728_v2 = vrot.slane %v10994_v7, 6  ;;  %v11042_v12 = vmov 0.0  }
 0x29f   : > { %v8934_v29 = vpop.eup %8933  ;;  %3204 = vst.msk [vmem:[#allocation4 + $0x1d0] sm:$0xff] %vm774_vm6, %v8932_v38  ;;  %v3916_v41 = vmul.f32 %v3788_v19, %v3622_v6  ;;  %v11020_v33 = vpop.f32.mrf.mxu2  ;;  %v3790_v15 = vperm.slane %v3726_v58, 0  ;;  %v3793_v19 = vperm.slane %v3729_v3, 0 }
 0x2a0   : > { %v8936_v62 = vpop.eup %8935  ;;  %3205 = vst.msk [vmem:[#allocation4 + $0x1d8] sm:$0xff] %vm774_vm6, %v8934_v29  ;;  %v11022_v24 = vpop.f32.mrf.mxu1  ;;  %v3792_v38 = vperm.slane %v3728_v2, 0 }
 0x2a1   : > { %v8938_v46 = vpop.eup %8937  ;;  %3206 = vst.msk [vmem:[#allocation4 + $0x1e0] sm:$0xff] %vm774_vm6, %v8936_v62 }
 0x2a2   : > { %v8940_v18 = vpop.eup %8939  ;;  %3207 = vst.msk [vmem:[#allocation4 + $0x1e8] sm:$0xff] %vm774_vm6, %v8938_v46  ;;  %v11044_v46 = vmov 0.0  }
 0x2a3   : > { %v8942_v52 = vpop.eup %8941  ;;  %3208 = vst.msk [vmem:[#allocation4 + $0x1f0] sm:$0xff] %vm774_vm6, %v8940_v18 }
 0x2a4   : > { %3209 = vst.msk [vmem:[#allocation4 + $0x1f8] sm:$0xff] %vm774_vm6, %v8942_v52 }
 0x2a5   : > { %3980 = vst.msk [vmem:[#allocation5 + $0x1d0] sm:$0xff] %vm774_vm6, %v3916_v41 }
 0x2a6   : > { %v3643_v27 = vpop.permute.xlu2 %3642  ;;  %3976 = vst.msk [vmem:[#allocation5 + $0x1b0] sm:$0xff] %vm774_vm6, %v3912_v31 }
 0x2a7   : > { %v3919_v35 = vmul.f32 %v3791_v40, %v3643_v27  ;;  %v11026_v59 = vpop.f32.mrf.mxu2 }
 0x2a8   : > { %v11028_v54 = vpop.f32.mrf.mxu1 }
 0x2a9   : > { %3983 = vst.msk [vmem:[#allocation5 + $0x1e8] sm:$0xff] %vm774_vm6, %v3919_v35 }
 0x2b6   : > { %v3615_v30 = vpop.permute.xlu1 %3614 }
 0x2b7   : > { %v3915_v4 = vmul.f32 %v3787_v13, %v3615_v30  ;;  %v3608_v8 = vpop.permute.xlu0 %3607 }
 0x2b8   : > { %v3914_v53 = vmul.f32 %v3786_v51, %v3608_v8 }
 0x2b9   : > { %3979 = vst.msk [vmem:[#allocation5 + $0x1c8] sm:$0xff] %vm774_vm6, %v3915_v4 }
 0x2ba   : > { %3978 = vst.msk [vmem:[#allocation5 + $0x1c0] sm:$0xff] %vm774_vm6, %v3914_v53 }
 0x2be   : > { %v3636_v21 = vpop.permute.xlu1 %3635 }
 0x2bf   : > { %v3918_v11 = vmul.f32 %v3790_v15, %v3636_v21  ;;  %v3629_v60 = vpop.permute.xlu0 %3628 }
 0x2c0   : > { %v3917_v6 = vmul.f32 %v3789_v61, %v3629_v60 }
 0x2c1   : > { %3982 = vst.msk [vmem:[#allocation5 + $0x1e0] sm:$0xff] %vm774_vm6, %v3918_v11 }
 0x2c2   : > { %3981 = vst.msk [vmem:[#allocation5 + $0x1d8] sm:$0xff] %vm774_vm6, %v3917_v6 }
 0x2c6   : > { %v3657_v20 = vpop.permute.xlu1 %3656 }
 0x2c7   : > { %v3921_v29 = vmul.f32 %v3793_v19, %v3657_v20  ;;  %v3650_v39 = vpop.permute.xlu0 %3649 }
 0x2c8   : > { %v3920_v62 = vmul.f32 %v3792_v38, %v3650_v39 }
 0x2c9   : > { %3985 = vst.msk [vmem:[#allocation5 + $0x1f8] sm:$0xff] %vm774_vm6, %v3921_v29 }
 0x2ca   : > { %3984 = vst.msk [vmem:[#allocation5 + $0x1f0] sm:$0xff] %vm774_vm6, %v3920_v62 }
 0x2cb LB: >> { %s8510_s29 = sshll.u32 %s9041_s28, 6  ;;  %s8508_s18 = sshll.u32 %s9041_s28, 3  ;;  %s9041_s28 = sphi %s11046_s28, %s3991_s28   ;;  %v9037_v46 = vphi %v11044_v46, %v4065_v46   ;;  %v9033_v12 = vphi %v11042_v12, %v4067_v12  }
 0x2cc   : >> { %s11055_s30 = scalar_lea.vmem [#allocation2], %s8510_s29  ;;  %s11058_s13 = scalar_lea.vmem [#allocation3], %s8510_s29 }
 0x2cd   : >> { %v4000_v7 = vld [vmem:[%s11055_s30] sm:$0xff]  ;;  %s8509_s14 = sadd.s32 8, %s8508_s18  ;;  %v4001_v18 = vld [vmem:[%s11055_s30 + $0x8] sm:$0xff]  ;;  %s11063_s17 = scalar_lea.vmem [#allocation6], %s8510_s29  ;;  %v4002_v35 = vld [vmem:[%s11055_s30 + $0x10] sm:$0xff] }
 0x2ce   : >> { %v4009_v41 = vld [vmem:[%s11058_s13] sm:$0xff]  ;;  %v4036_v40 = vmul.f32 %v9037_v46, %v4000_v7  ;;  %s3997_s15 = ssub.s32 64, %s8509_s14  ;;  %v4010_v52 = vld [vmem:[%s11058_s13 + $0x8] sm:$0xff]  ;;  %v4011_v30 = vld [vmem:[%s11058_s13 + $0x10] sm:$0xff]  ;;  %s3991_s28 = sadd.s32 1, %s9041_s28  }
 0x2cf   : >> { %s8501_s16 = sshll.u32 %s3997_s15, 3  ;;  %v4003_v8 = vld [vmem:[%s11055_s30 + $0x18] sm:$0xff]  ;;  %v4004_v6 = vld [vmem:[%s11055_s30 + $0x20] sm:$0xff]  ;;  %v4005_v62 = vld [vmem:[%s11055_s30 + $0x28] sm:$0xff]  ;;  %p3988_p4 = scmp.ge.s32.totalorder %s3991_s28, 8  }
 0x2d0   : >> { %v4037_v31 = vadd.f32 %v4036_v40, %v4009_v41  ;;  %s11068_s19 = scalar_lea.vmem [#allocation4], %s8501_s16  ;;  %s11076_s20 = scalar_lea.vmem [#allocation5], %s8501_s16  ;;  %v4012_v21 = vld [vmem:[%s11058_s13 + $0x18] sm:$0xff]  ;;  %v4013_v20 = vld [vmem:[%s11058_s13 + $0x20] sm:$0xff]  ;;  %v4014_v41 = vld [vmem:[%s11058_s13 + $0x28] sm:$0xff] }
 0x2d1   : >> { %v4026_v13 = vld [vmem:[%s11068_s19 + $0x38] sm:$0xff]  ;;  %v4025_v53 = vld [vmem:[%s11068_s19 + $0x30] sm:$0xff]  ;;  %v4024_v3 = vld [vmem:[%s11068_s19 + $0x28] sm:$0xff]  ;;  %s11085_s23 = scalar_lea.vmem [#allocation7], %s8501_s16 }
 0x2d2   : >> { %4069 = vst.msk [vmem:[%s11063_s17] sm:$0xff] %vm774_vm6, %v4037_v31  ;;  %v4040_v27 = vmul.f32 %v4037_v31, %v4001_v18  ;;  %v4038_v51 = vmul.f32 %v9033_v12, %v4026_v13  ;;  %v4035_v58 = vld [vmem:[%s11076_s20 + $0x38] sm:$0xff]  ;;  %v4034_v61 = vld [vmem:[%s11076_s20 + $0x30] sm:$0xff]  ;;  %v4033_v38 = vld [vmem:[%s11076_s20 + $0x28] sm:$0xff] }
 0x2d3   : >> { %v4023_v12 = vld [vmem:[%s11068_s19 + $0x20] sm:$0xff]  ;;  %v4015_v13 = vld [vmem:[%s11058_s13 + $0x30] sm:$0xff] }
 0x2d4   : >> { %v4041_v14 = vadd.f32 %v4040_v27, %v4010_v52  ;;  %v4039_v15 = vadd.f32 %v4038_v51, %v4035_v58  ;;  %v4032_v40 = vld [vmem:[%s11076_s20 + $0x20] sm:$0xff]  ;;  %v4006_v52 = vld [vmem:[%s11055_s30 + $0x30] sm:$0xff]  ;;  %v4022_v27 = vld [vmem:[%s11068_s19 + $0x18] sm:$0xff] }
 0x2d6   : >> { %4070 = vst.msk [vmem:[%s11063_s17 + $0x8] sm:$0xff] %vm774_vm6, %v4041_v14  ;;  %v4044_v4 = vmul.f32 %v4041_v14, %v4002_v35  ;;  %v4042_v60 = vmul.f32 %v4039_v15, %v4025_v53  ;;  %v4021_v53 = vld [vmem:[%s11068_s19 + $0x10] sm:$0xff] }
 0x2d7   : >> { %4085 = vst.msk [vmem:[%s11085_s23 + $0x38] sm:$0xff] %vm774_vm6, %v4039_v15  ;;  %v4016_v15 = vld [vmem:[%s11058_s13 + $0x38] sm:$0xff] }
 0x2d8   : >> { %v4045_v42 = vadd.f32 %v4044_v4, %v4011_v30  ;;  %v4043_v19 = vadd.f32 %v4042_v60, %v4034_v61  ;;  %v4031_v30 = vld [vmem:[%s11076_s20 + $0x18] sm:$0xff]  ;;  %v4020_v60 = vld [vmem:[%s11068_s19 + $0x8] sm:$0xff] }
 0x2da   : >> { %4071 = vst.msk [vmem:[%s11063_s17 + $0x10] sm:$0xff] %vm774_vm6, %v4045_v42  ;;  %v4048_v11 = vmul.f32 %v4045_v42, %v4003_v8  ;;  %v4046_v39 = vmul.f32 %v4043_v19, %v4024_v3  ;;  %v4007_v8 = vld [vmem:[%s11055_s30 + $0x38] sm:$0xff]  ;;  %v4029_v3 = vld [vmem:[%s11076_s20 + $0x8] sm:$0xff] }
 0x2db   : >> { %4084 = vst.msk [vmem:[%s11085_s23 + $0x30] sm:$0xff] %vm774_vm6, %v4043_v19  ;;  %v4019_v19 = vld [vmem:[%s11068_s19] sm:$0xff] }
 0x2dc   : >> { %v4049_v2 = vadd.f32 %v4048_v11, %v4012_v21  ;;  %v4047_v7 = vadd.f32 %v4046_v39, %v4033_v38  ;;  %v4030_v21 = vld [vmem:[%s11076_s20 + $0x10] sm:$0xff]  ;;  %v4028_v38 = vld [vmem:[%s11076_s20] sm:$0xff]  ;;  %v13593_v39 = vld [vmem:[#allocation17_spill] sm:$0xff] (%p3988_p4) }
 0x2dd   : > { %8954 = vset.pattern.permute.xlu2 (%p3988_p4), %v13593_v39  ;;  %8953 = vset.pattern.permute.xlu1 (%p3988_p4), %v13593_v39 }
 0x2de   : >> { %4072 = vst.msk [vmem:[%s11063_s17 + $0x18] sm:$0xff] %vm774_vm6, %v4049_v2  ;;  %v4052_v29 = vmul.f32 %v4049_v2, %v4004_v6  ;;  %v4050_v31 = vmul.f32 %v4047_v7, %v4023_v12  ;;  %8952 = vset.pattern.permute.xlu0 (%p3988_p4), %v13593_v39  ;;  %v4381_v39 = vperm.slane (%p3988_p4), %v10996_v26, 1 }
 0x2df   : >> { %4083 = vst.msk [vmem:[%s11085_s23 + $0x28] sm:$0xff] %vm774_vm6, %v4047_v7  ;;  %v4164_v7 = vperm.slane (%p3988_p4), %v10923_v48, 2 }
 0x2e0   : >> { %v4053_v46 = vadd.f32 %v4052_v29, %v4013_v20  ;;  %v4051_v14 = vadd.f32 %v4050_v31, %v4032_v40  ;;  %v4171_v40 = vperm.slane (%p3988_p4), %v10923_v48, 3  ;;  %v4199_v31 = vperm.slane (%p3988_p4), %v10923_v48, 7 }
 0x2e2   : >> { %4073 = vst.msk [vmem:[%s11063_s17 + $0x20] sm:$0xff] %vm774_vm6, %v4053_v46  ;;  %v4056_v18 = vmul.f32 %v4053_v46, %v4005_v62  ;;  %v4054_v4 = vmul.f32 %v4051_v14, %v4022_v27  ;;  %v4178_v62 = vperm.slane (%p3988_p4), %v10923_v48, 4  ;;  %v4227_v27 = vperm.slane (%p3988_p4), %v10944_v34, 3 }
 0x2e3   : >> { %4082 = vst.msk [vmem:[%s11085_s23 + $0x20] sm:$0xff] %vm774_vm6, %v4051_v14  ;;  %v4213_v14 = vperm.slane (%p3988_p4), %v10944_v34, 1 }
 0x2e4   : >> { %v4057_v35 = vadd.f32 %v4056_v18, %v4014_v41  ;;  %v4055_v42 = vadd.f32 %v4054_v4, %v4031_v30  ;;  %v4150_v41 = vperm.slane (%p3988_p4), %v10923_v48, 0  ;;  %v4206_v18 = vperm.slane (%p3988_p4), %v10944_v34, 0 }
 0x2e5   : > { %4183 = vperm.xlu2 (%p3988_p4), %8954, %v4178_v62   ;;  %4169 = vperm.xlu1 (%p3988_p4), %8953, %v4164_v7   ;;  %v4241_v30 = vperm.slane (%p3988_p4), %v10944_v34, 5  ;;  %v4262_v4 = vperm.slane (%p3988_p4), %v10957_v49, 0 }
 0x2e6   : >> { %4074 = vst.msk [vmem:[%s11063_s17 + $0x28] sm:$0xff] %vm774_vm6, %v4057_v35  ;;  %v4060_v51 = vmul.f32 %v4057_v35, %v4006_v52  ;;  %v4058_v11 = vmul.f32 %v4055_v42, %v4021_v53  ;;  %4155 = vperm.xlu0 (%p3988_p4), %8952, %v4150_v41   ;;  %v4192_v52 = vperm.slane (%p3988_p4), %v10923_v48, 6  ;;  %v4220_v35 = vperm.slane (%p3988_p4), %v10944_v34, 2 }
 0x2e7   : >> { %4081 = vst.msk [vmem:[%s11085_s23 + $0x18] sm:$0xff] %vm774_vm6, %v4055_v42  ;;  %v4290_v53 = vperm.slane (%p3988_p4), %v10957_v49, 4  ;;  %v4276_v42 = vperm.slane (%p3988_p4), %v10957_v49, 2 }
 0x2e8   : >> { %v4061_v58 = vadd.f32 %v4060_v51, %v4015_v13  ;;  %v4059_v6 = vadd.f32 %v4058_v11, %v4030_v21  ;;  %v4248_v13 = vperm.slane (%p3988_p4), %v10944_v34, 6  ;;  %v4234_v51 = vperm.slane (%p3988_p4), %v10944_v34, 4 }
 0x2e9   : > { %v4304_v21 = vperm.slane (%p3988_p4), %v10957_v49, 6  ;;  %v4325_v11 = vperm.slane (%p3988_p4), %v10973_v63, 1 }
 0x2ea   : >> { %4075 = vst.msk [vmem:[%s11063_s17 + $0x30] sm:$0xff] %vm774_vm6, %v4061_v58  ;;  %v4064_v61 = vmul.f32 %v4061_v58, %v4007_v8  ;;  %v4062_v2 = vmul.f32 %v4059_v6, %v4020_v60  ;;  %v4255_v8 = vperm.slane (%p3988_p4), %v10944_v34, 7  ;;  %v4283_v58 = vperm.slane (%p3988_p4), %v10957_v49, 3 }
 0x2eb   : >> { %4080 = vst.msk [vmem:[%s11085_s23 + $0x10] sm:$0xff] %vm774_vm6, %v4059_v6  ;;  %v4332_v34 = vperm.slane (%p3988_p4), %v10973_v63, 2  ;;  %v4318_v60 = vperm.slane (%p3988_p4), %v10973_v63, 0  ;;  %v4353_v6 = vperm.slane (%p3988_p4), %v10973_v63, 5 }
 0x2ec   : >> { %v4065_v46 = vadd.f32 %v4064_v61, %v4016_v15   ;;  %v4063_v20 = vadd.f32 %v4062_v2, %v4029_v3  ;;  %v4311_v15 = vperm.slane (%p3988_p4), %v10957_v49, 7  ;;  %v4297_v61 = vperm.slane (%p3988_p4), %v10957_v49, 5 }
 0x2ed   : > { %4176 = vperm.xlu1 (%p3988_p4), %8953, %v4171_v40   ;;  %v4346_v3 = vperm.slane (%p3988_p4), %v10973_v63, 4  ;;  %v4339_v2 = vperm.slane (%p3988_p4), %v10973_v63, 3  ;;  %v4409_v40 = vperm.slane (%p3988_p4), %v10996_v26, 5 }
 0x2ee   : >> { %4076 = vst.msk [vmem:[%s11063_s17 + $0x38] sm:$0xff] %vm774_vm6, %v4065_v46  ;;  %v4066_v29 = vmul.f32 %v4063_v20, %v4019_v19  ;;  %3990 = sbr.rel (!%p3988_p4) target bundleno = 715 (0x2cb), region = 122  ;;  %v4185_v46 = vperm.slane (%p3988_p4), %v10923_v48, 5  ;;  %v4367_v19 = vperm.slane (%p3988_p4), %v10973_v63, 7 }
 0x2ef   : >> { %4079 = vst.msk [vmem:[%s11085_s23 + $0x8] sm:$0xff] %vm774_vm6, %v4063_v20  ;;  %v4360_v20 = vperm.slane (%p3988_p4), %v10973_v63, 6 }
 0x2f0   : >> { %v4067_v12 = vadd.f32 %v4066_v29, %v4028_v38   ;;  %4190 = vperm.xlu2 (%p3988_p4), %8954, %v4185_v46   ;;  %v4395_v38 = vperm.slane (%p3988_p4), %v10996_v26, 3  ;;  %v4388_v29 = vperm.slane (%p3988_p4), %v10996_v26, 2  ;;  %v4416_v46 = vperm.slane (%p3988_p4), %v10996_v26, 6 }
 0x2f2   : >> { %4078 = vst.msk [vmem:[%s11085_s23] sm:$0xff] %vm774_vm6, %v4067_v12  ;;  %v4157_v12 = vperm.slane (%p3988_p4), %v10923_v48, 1  ;;  %v4269_v48 = vperm.slane (%p3988_p4), %v10957_v49, 1  ;;  %v4374_v49 = vperm.slane (%p3988_p4), %v10996_v26, 0 }
 0x2f4   : > { %4162 = vperm.xlu0 %8952, %v4157_v12   ;;  %v4402_v12 = vperm.slane %v10996_v26, 4 }
 0x2f5   : > { %4204 = vperm.xlu1 %8953, %v4199_v31   ;;  %v4090_v62 = vld [vmem:[#allocation6 + $0x20] sm:$0xff]  ;;  %v4091_v31 = vld [vmem:[#allocation6 + $0x28] sm:$0xff] }
 0x2f8   : > { %4211 = vperm.xlu2 %8954, %v4206_v18  }
 0x2fc   : > { %4197 = vperm.xlu0 %8952, %v4192_v52  }
 0x2fd   : > { %4225 = vperm.xlu1 %8953, %v4220_v35  }
 0x300   : > { %4232 = vperm.xlu2 %8954, %v4227_v27  }
 0x304   : > { %4218 = vperm.xlu0 %8952, %v4213_v14   ;;  %v4437_v14 = vperm.slane %v11008_v0, 1 }
 0x305   : > { %4246 = vperm.xlu1 %8953, %v4241_v30  }
 0x308   : > { %4253 = vperm.xlu2 %8954, %v4248_v13   ;;  %v4430_v13 = vperm.slane %v11008_v0, 0 }
 0x30c   : > { %4239 = vperm.xlu0 %8952, %v4234_v51   ;;  %v4423_v51 = vperm.slane %v10996_v26, 7  ;;  %v4451_v26 = vperm.slane %v11008_v0, 3 }
 0x30d   : > { %4267 = vperm.xlu1 %8953, %v4262_v4  }
 0x310   : > { %4274 = vperm.xlu2 %8954, %v4269_v48  }
 0x314   : > { %4260 = vperm.xlu0 %8952, %v4255_v8  }
 0x315   : > { %4288 = vperm.xlu1 %8953, %v4283_v58   ;;  %v11188_v58 = vld [vmem:[%s13447_s9] ss:$0 sm:$0xff] }
 0x318   : > { %4295 = vperm.xlu2 %8954, %v4290_v53   ;;  %v4094_v53 = vld [vmem:[#allocation6 + $0x40] sm:$0xff] }
 0x31c   : > { %4281 = vperm.xlu0 %8952, %v4276_v42  }
 0x31d   : > { %4309 = vperm.xlu1 %8953, %v4304_v21  }
 0x320   : > { %4316 = vperm.xlu2 %8954, %v4311_v15  }
 0x324   : > { %4302 = vperm.xlu0 %8952, %v4297_v61  }
 0x325   : > { %4330 = vperm.xlu1 %8953, %v4325_v11   ;;  %v11194_v11 = vmul.f32 %v11188_v58, %v9344_v37  ;;  %v4097_v37 = vld [vmem:[#allocation6 + $0x58] sm:$0xff] }
 0x328   : > { %4337 = vperm.xlu2 %8954, %v4332_v34   ;;  %v4458_v34 = vperm.slane %v11008_v0, 4 }
 0x32c   : > { %4323 = vperm.xlu0 %8952, %v4318_v60   ;;  %v11198_v60 = vmul.f32 %v11188_v58, %v9387_v36  ;;  %v4472_v36 = vperm.slane %v11008_v0, 6 }
 0x32d   : > { %4351 = vperm.xlu1 %8953, %v4346_v3   ;;  %v4444_v3 = vperm.slane %v11008_v0, 2 }
 0x330   : > { %4358 = vperm.xlu2 %8954, %v4353_v6  }
 0x334   : > { %4344 = vperm.xlu0 %8952, %v4339_v2  }
 0x335   : > { %4372 = vperm.xlu1 %8953, %v4367_v19   ;;  %v5133_v19 = vrot.slane %v11194_v11, 4 }
 0x338   : > { %4379 = vperm.xlu2 %8954, %v4374_v49  }
 0x33c   : > { %4365 = vperm.xlu0 %8952, %v4360_v20  }
 0x33d   : > { %4393 = vperm.xlu1 %8953, %v4388_v29  }
 0x33f   : > { %v4184_v7 = vpop.permute.xlu2 %4183 }
 0x340   : > { %4400 = vperm.xlu2 %8954, %v4395_v38   ;;  %v4602_v41 = vmul.f32 %v4184_v7, %v4090_v62  ;;  %v5134_v38 = vrot.slane %v11194_v11, 5  ;;  %v4479_v62 = vperm.slane %v11008_v0, 7  ;;  %v5139_v7 = vrot.slane %v11198_v60, 3 }
 0x342   : > { %v4690_v63 = vsel %vm774_vm6, %v4602_v41, 0.0  ;;  %v5131_v41 = vrot.slane %v11194_v11, 2 }
 0x343   : > { %v4691_v18 = vrot.slane %v4690_v63, 4 }
 0x344   : > { %4386 = vperm.xlu0 %8952, %v4381_v39   ;;  %v4088_v39 = vld [vmem:[#allocation6 + $0x10] sm:$0xff] }
 0x345   : > { %4414 = vperm.xlu1 %8953, %v4409_v40   ;;  %v4692_v27 = vadd.f32 %v4691_v18, %v4690_v63  ;;  %v4465_v40 = vperm.slane %v11008_v0, 5  ;;  %v4500_v63 = vperm.slane %v11020_v33, 2 }
 0x347   : > { %v4693_v4 = vrot.slane %v4692_v27, 2 }
 0x348   : > { %4421 = vperm.xlu2 %8954, %v4416_v46   ;;  %v4086_v46 = vld [vmem:[#allocation6] sm:$0xff] }
 0x349   : > { %v4694_v21 = vadd.f32 %v4693_v4, %v4692_v27  ;;  %v4493_v27 = vperm.slane %v11020_v33, 1 }
 0x34a   : > { %v4191_v52 = vpop.permute.xlu2 %4190 }
 0x34b   : > { %v4603_v35 = vmul.f32 %v4191_v52, %v4091_v31  ;;  %v4695_v20 = vrot.slane %v4694_v21, 1 }
 0x34c   : > { %4407 = vperm.xlu0 %8952, %v4402_v12  }
 0x34d   : > { %v4697_v30 = vsel %vm774_vm6, %v4603_v35, 0.0  ;;  %4435 = vperm.xlu1 %8953, %v4430_v13   ;;  %v4486_v35 = vperm.slane %v11020_v33, 0 }
 0x34e   : > { %v4698_v48 = vrot.slane %v4697_v30, 4 }
 0x350   : > { %v4699_v8 = vadd.f32 %v4698_v48, %v4697_v30  ;;  %4442 = vperm.xlu2 %8954, %v4437_v14   ;;  %v4696_v14 = vadd.f32 %v4695_v20, %v4694_v21  ;;  %v4521_v21 = vperm.slane %v11020_v33, 5 }
 0x352   : > { %v4700_v42 = vrot.slane %v4699_v8, 2  ;;  %v4212_v15 = vpop.permute.xlu2 %4211 }
 0x353   : > { %v4606_v61 = vmul.f32 %v4212_v15, %v4094_v53  ;;  %v11216_v53 = vmul.f32 %v11188_v58, %v9417_v23 }
 0x354   : > { %4428 = vperm.xlu0 %8952, %v4423_v51   ;;  %v4701_v2 = vadd.f32 %v4700_v42, %v4699_v8 }
 0x355   : > { %v4718_v6 = vsel %vm774_vm6, %v4606_v61, 0.0  ;;  %4456 = vperm.xlu1 %8953, %v4451_v26  }
 0x356   : > { %v4719_v49 = vrot.slane %v4718_v6, 4  ;;  %v4702_v12 = vrot.slane %v4701_v2, 1 }
 0x357   : > { %v4170_v52 = vpop.permute.xlu1 %4169 }
 0x358   : > { %v4720_v29 = vadd.f32 %v4719_v49, %v4718_v6  ;;  %4463 = vperm.xlu2 %8954, %v4458_v34   ;;  %v4600_v30 = vmul.f32 %v4170_v52, %v4088_v39  ;;  %v4156_v51 = vpop.permute.xlu0 %4155  ;;  %v4703_v34 = vadd.f32 %v4702_v12, %v4701_v2  ;;  %v11223_v49 = vadd.f32 %v5133_v19, %v4696_v14  ;;  %v4087_v52 = vld [vmem:[#allocation6 + $0x8] sm:$0xff] }
 0x359   : > { %v4598_v8 = vmul.f32 %v4156_v51, %v4086_v46 }
 0x35a   : > { %v4721_v18 = vrot.slane %v4720_v29, 2  ;;  %v4233_v31 = vpop.permute.xlu2 %4232  ;;  %v4676_v15 = vsel %vm774_vm6, %v4600_v30, 0.0  ;;  %v11231_v30 = vadd.f32 %v5134_v38, %v4703_v34 }
 0x35b   : > { %v4609_v13 = vmul.f32 %v4233_v31, %v4097_v37  ;;  %v4677_v6 = vrot.slane %v4676_v15, 4  ;;  %v4089_v31 = vld [vmem:[#allocation6 + $0x18] sm:$0xff] }
 0x35c   : > { %4449 = vperm.xlu0 %8952, %v4444_v3   ;;  %v4722_v4 = vadd.f32 %v4721_v18, %v4720_v29  ;;  %v4662_v3 = vsel %vm774_vm6, %v4598_v8, 0.0  ;;  %v4514_v29 = vperm.slane %v11020_v33, 4  ;;  %v4100_v18 = vld [vmem:[#allocation6 + $0x70] sm:$0xff] }
 0x35d   : > { %v4739_v42 = vsel %vm774_vm6, %v4609_v13, 0.0  ;;  %v4663_v20 = vrot.slane %v4662_v3, 4  ;;  %v4678_v46 = vadd.f32 %v4677_v6, %v4676_v15  ;;  %4477 = vperm.xlu1 %8953, %v4472_v36  }
 0x35e   : > { %v4740_v26 = vrot.slane %v4739_v42, 4  ;;  %v4723_v37 = vrot.slane %v4722_v4, 1 }
 0x35f   : > { %v4664_v12 = vadd.f32 %v4663_v20, %v4662_v3  ;;  %v4679_v8 = vrot.slane %v4678_v46, 2 }
 0x360   : > { %v4741_v39 = vadd.f32 %v4740_v26, %v4739_v42  ;;  %4484 = vperm.xlu2 %8954, %v4479_v62   ;;  %v4177_v62 = vpop.permute.xlu1 %4176  ;;  %v4724_v20 = vadd.f32 %v4723_v37, %v4722_v4 }
 0x361   : > { %v4665_v15 = vrot.slane %v4664_v12, 2  ;;  %v4601_v6 = vmul.f32 %v4177_v62, %v4089_v31  ;;  %v4680_v61 = vadd.f32 %v4679_v8, %v4678_v46 }
 0x362   : > { %v4742_v51 = vrot.slane %v4741_v39, 2  ;;  %v4254_v42 = vpop.permute.xlu2 %4253  ;;  %v11242_v37 = vadd.f32 %v11198_v60, %v4724_v20 }
 0x363   : > { %v4612_v26 = vmul.f32 %v4254_v42, %v4100_v18  ;;  %v4666_v19 = vadd.f32 %v4665_v15, %v4664_v12  ;;  %v4683_v34 = vsel %vm774_vm6, %v4601_v6, 0.0  ;;  %v4681_v48 = vrot.slane %v4680_v61, 1  ;;  %v4103_v12 = vld [vmem:[#allocation6 + $0x88] sm:$0xff] }
 0x364   : > { %4470 = vperm.xlu0 %8952, %v4465_v40   ;;  %v4743_v2 = vadd.f32 %v4742_v51, %v4741_v39  ;;  %v4684_v23 = vrot.slane %v4683_v34, 4 }
 0x365   : > { %v4760_v38 = vsel %vm774_vm6, %v4612_v26, 0.0  ;;  %v4667_v18 = vrot.slane %v4666_v19, 1  ;;  %4498 = vperm.xlu1 %8953, %v4493_v27  }
 0x366   : > { %v4163_v3 = vpop.permute.xlu0 %4162  ;;  %v4744_v0 = vrot.slane %v4743_v2, 1  ;;  %v4761_v36 = vrot.slane %v4760_v38, 4  ;;  %v4685_v46 = vadd.f32 %v4684_v23, %v4683_v34 }
 0x367   : > { %v4599_v14 = vmul.f32 %v4163_v3, %v4087_v52  ;;  %v4093_v52 = vld [vmem:[#allocation6 + $0x38] sm:$0xff] }
 0x368   : > { %v4762_v39 = vadd.f32 %v4761_v36, %v4760_v38  ;;  %4505 = vperm.xlu2 %8954, %v4500_v63   ;;  %v4745_v15 = vadd.f32 %v4744_v0, %v4743_v2  ;;  %v4682_v63 = vadd.f32 %v4681_v48, %v4680_v61  ;;  %v4686_v6 = vrot.slane %v4685_v46, 2  ;;  %v4205_v20 = vpop.permute.xlu1 %4204 }
 0x369   : > { %v4669_v31 = vsel %vm774_vm6, %v4599_v14, 0.0  ;;  %v4092_v14 = vld [vmem:[#allocation6 + $0x30] sm:$0xff]  ;;  %v4668_v38 = vadd.f32 %v4667_v18, %v4666_v19  ;;  %v4605_v27 = vmul.f32 %v4205_v20, %v4093_v52 }
 0x36a   : > { %v4670_v8 = vrot.slane %v4669_v31, 4  ;;  %v4763_v26 = vrot.slane %v4762_v39, 2  ;;  %v4275_v3 = vpop.permute.xlu2 %4274  ;;  %v11260_v61 = vadd.f32 %v5139_v7, %v4745_v15  ;;  %v4106_v7 = vld [vmem:[#allocation6 + $0xa0] sm:$0xff] }
 0x36b   : > { %v4615_v13 = vmul.f32 %v4275_v3, %v4103_v12  ;;  %v4711_v0 = vsel %vm774_vm6, %v4605_v27, 0.0 }
 0x36c   : > { %4491 = vperm.xlu0 %8952, %v4486_v35   ;;  %v4671_v34 = vadd.f32 %v4670_v8, %v4669_v31  ;;  %v4764_v4 = vadd.f32 %v4763_v26, %v4762_v39  ;;  %v4687_v35 = vadd.f32 %v4686_v6, %v4685_v46  ;;  %13594 = vst [vmem:[#allocation17_spill] sm:$0xff] %v11260_v61  ;;  %v4712_v18 = vrot.slane %v4711_v0, 4  ;;  %v4096_v8 = vld [vmem:[#allocation6 + $0x50] sm:$0xff] }
 0x36d   : > { %v4781_v36 = vsel %vm774_vm6, %v4615_v13, 0.0  ;;  %v11264_v31 = vadd.f32 %v5131_v41, %v4682_v63  ;;  %v11268_v13 = vadd.f32 %v11194_v11, %v4668_v38  ;;  %4519 = vperm.xlu1 %8953, %v4514_v29  }
 0x36e   : > { %v4198_v51 = vpop.permute.xlu0 %4197  ;;  %v4672_v42 = vrot.slane %v4671_v34, 2  ;;  %v4765_v2 = vrot.slane %v4764_v4, 1  ;;  %v4782_v19 = vrot.slane %v4781_v36, 4  ;;  %v4688_v39 = vrot.slane %v4687_v35, 1 }
 0x36f   : > { %v4604_v40 = vmul.f32 %v4198_v51, %v4092_v14  ;;  %v4713_v51 = vadd.f32 %v4712_v18, %v4711_v0  ;;  %v11274_v14 = vmul.f32 %v11188_v58, %v9478_v1 }
 0x370   : > { %v4673_v46 = vadd.f32 %v4672_v42, %v4671_v34  ;;  %v4783_v52 = vadd.f32 %v4782_v19, %v4781_v36  ;;  %4526 = vperm.xlu2 %8954, %v4521_v21   ;;  %v4095_v42 = vld [vmem:[#allocation6 + $0x48] sm:$0xff]  ;;  %v4766_v21 = vadd.f32 %v4765_v2, %v4764_v4  ;;  %v4226_v20 = vpop.permute.xlu1 %4225  ;;  %v4689_v38 = vadd.f32 %v4688_v39, %v4687_v35 }
 0x371   : > { %v4704_v12 = vsel %vm774_vm6, %v4604_v40, 0.0  ;;  %v13595_v40 = vperm.slane %v11020_v33, 3  ;;  %v4714_v6 = vrot.slane %v4713_v51, 2  ;;  %v4608_v0 = vmul.f32 %v4226_v20, %v4096_v8 }
 0x372   : > { %v4674_v41 = vrot.slane %v4673_v46, 1  ;;  %v4705_v15 = vrot.slane %v4704_v12, 4  ;;  %v4784_v26 = vrot.slane %v4783_v52, 2  ;;  %v4296_v3 = vpop.permute.xlu2 %4295  ;;  %v13596_v39 = vrot.slane %v11198_v60, 6 }
 0x373   : > { %v4618_v27 = vmul.f32 %v4296_v3, %v4106_v7  ;;  %v4715_v18 = vadd.f32 %v4714_v6, %v4713_v51  ;;  %v4732_v2 = vsel %vm774_vm6, %v4608_v0, 0.0  ;;  %v4099_v6 = vld [vmem:[#allocation6 + $0x68] sm:$0xff] }
 0x374   : > { %4512 = vperm.xlu0 %8952, %v13595_v40   ;;  %v4706_v34 = vadd.f32 %v4705_v15, %v4704_v12  ;;  %v4785_v19 = vadd.f32 %v4784_v26, %v4783_v52  ;;  %v4675_v36 = vadd.f32 %v4674_v41, %v4673_v46  ;;  %v4733_v44 = vrot.slane %v4732_v2, 4  ;;  %v4109_v26 = vld [vmem:[#allocation6 + $0xb8] sm:$0xff] }
 0x375   : > { %v4802_v4 = vsel %vm774_vm6, %v4618_v27, 0.0  ;;  %v11289_v12 = vadd.f32 %v13596_v39, %v4766_v21  ;;  %v4716_v52 = vrot.slane %v4715_v18, 1  ;;  %v13598_v46 = vrot.slane %v11194_v11, 3 }
 0x376   : > { %v4219_v29 = vpop.permute.xlu0 %4218  ;;  %v4707_v48 = vrot.slane %v4706_v34, 2  ;;  %v4786_v63 = vrot.slane %v4785_v19, 1  ;;  %v4803_v62 = vrot.slane %v4802_v4, 4  ;;  %v4734_v15 = vadd.f32 %v4733_v44, %v4732_v2  ;;  %v4098_v44 = vld [vmem:[#allocation6 + $0x60] sm:$0xff] }
 0x377   : > { %v4607_v40 = vmul.f32 %v4219_v29, %v4095_v42  ;;  %13597 = vst [vmem:[#allocation22_spill] sm:$0xff] %v11289_v12  ;;  %v11294_v8 = vadd.f32 %v13598_v46, %v4689_v38  ;;  %v13599_v42 = vperm.slane %v11026_v59, 0  ;;  %v13600_v21 = vrot.slane %v11194_v11, 1 }
 0x378   : > { %v4708_v51 = vadd.f32 %v4707_v48, %v4706_v34  ;;  %v4804_v41 = vadd.f32 %v4803_v62, %v4802_v4  ;;  %v13601_v27 = vperm.slane %v11020_v33, 7  ;;  %v13602_v38 = vperm.slane %v11020_v33, 6  ;;  %v4247_v2 = vpop.permute.xlu1 %4246 }
 0x379   : > { %v4725_v7 = vsel %vm774_vm6, %v4607_v40, 0.0  ;;  %4547 = vperm.xlu2 %8954, %v13599_v42   ;;  %v11301_v20 = vadd.f32 %v13600_v21, %v4675_v36  ;;  %v4787_v0 = vadd.f32 %v4786_v63, %v4785_v19  ;;  %v4735_v40 = vrot.slane %v4734_v15, 2 }
 0x37a   : > { %v4709_v48 = vrot.slane %v4708_v51, 1  ;;  %v4726_v34 = vrot.slane %v4725_v7, 4  ;;  %4540 = vperm.xlu1 %8953, %v13601_v27   ;;  %v4805_v29 = vrot.slane %v4804_v41, 2  ;;  %v4317_v4 = vpop.permute.xlu2 %4316  ;;  %v4717_v36 = vadd.f32 %v4716_v52, %v4715_v18 }
 0x37b   : > { %v4621_v42 = vmul.f32 %v4317_v4, %v4109_v26  ;;  %v4611_v21 = vmul.f32 %v4247_v2, %v4099_v6  ;;  %v4736_v27 = vadd.f32 %v4735_v40, %v4734_v15  ;;  %v13603_v52 = vrot.slane %v11216_v53, 1 }
 0x37c   : > { %4533 = vperm.xlu0 %8952, %v13602_v38   ;;  %v4727_v46 = vadd.f32 %v4726_v34, %v4725_v7  ;;  %v4806_v23 = vadd.f32 %v4805_v29, %v4804_v41  ;;  %v4710_v38 = vadd.f32 %v4709_v48, %v4708_v51  ;;  %v13605_v51 = vrot.slane %v11194_v11, 7  ;;  %v4102_v29 = vld [vmem:[#allocation6 + $0x80] sm:$0xff] }
 0x37d   : > { %v4823_v63 = vsel %vm774_vm6, %v4621_v42, 0.0  ;;  %v4753_v19 = vsel %vm774_vm6, %v4611_v21, 0.0  ;;  %v11315_v7 = vadd.f32 %v13603_v52, %v4787_v0  ;;  %v4737_v41 = vrot.slane %v4736_v27, 1 }
 0x37e   : > { %v4240_v3 = vpop.permute.xlu0 %4239  ;;  %v4728_v1 = vrot.slane %v4727_v46, 2  ;;  %v4807_v62 = vrot.slane %v4806_v23, 1  ;;  %v4824_v17 = vrot.slane %v4823_v63, 4  ;;  %v4754_v16 = vrot.slane %v4753_v19, 4 }
 0x37f   : > { %v4610_v35 = vmul.f32 %v4240_v3, %v4098_v44  ;;  %13604 = vst [vmem:[#allocation23_spill] sm:$0xff] %v11315_v7  ;;  %v11320_v6 = vadd.f32 %v13605_v51, %v4717_v36  ;;  %v13607_v34 = vperm.slane %v11026_v59, 3  ;;  %v4112_v44 = vld [vmem:[#allocation6 + $0xd0] sm:$0xff]  ;;  %v13608_v0 = vrot.slane %v11194_v11, 6 }
 0x380   : > { %v4729_v15 = vadd.f32 %v4728_v1, %v4727_v46  ;;  %v4825_v3 = vadd.f32 %v4824_v17, %v4823_v63  ;;  %v4755_v48 = vadd.f32 %v4754_v16, %v4753_v19  ;;  %v13610_v36 = vperm.slane %v11026_v59, 1  ;;  %v4101_v17 = vld [vmem:[#allocation6 + $0x78] sm:$0xff]  ;;  %v4268_v19 = vpop.permute.xlu1 %4267 }
 0x381   : > { %v4746_v26 = vsel %vm774_vm6, %v4610_v35, 0.0  ;;  %13606 = vst [vmem:[#allocation24_spill] sm:$0xff] %v11320_v6  ;;  %4568 = vperm.xlu2 %8954, %v13607_v34   ;;  %v11327_v4 = vadd.f32 %v13608_v0, %v4710_v38  ;;  %v13609_v35 = vperm.slane %v11026_v59, 2  ;;  %v4808_v46 = vadd.f32 %v4807_v62, %v4806_v23 }
 0x382   : > { %v4730_v1 = vrot.slane %v4729_v15, 1  ;;  %v4747_v2 = vrot.slane %v4746_v26, 4  ;;  %v4826_v42 = vrot.slane %v4825_v3, 2  ;;  %v4756_v21 = vrot.slane %v4755_v48, 2  ;;  %v4338_v63 = vpop.permute.xlu2 %4337 }
 0x383   : > { %4561 = vperm.xlu1 %8953, %v13609_v35   ;;  %v11336_v11 = vmul.f32 %v11188_v58, %v9361_v45  ;;  %v4738_v38 = vadd.f32 %v4737_v41, %v4736_v27  ;;  %v4624_v51 = vmul.f32 %v4338_v63, %v4112_v44  ;;  %v4614_v34 = vmul.f32 %v4268_v19, %v4102_v29 }
 0x384   : > { %4554 = vperm.xlu0 %8952, %v13610_v36   ;;  %v4748_v52 = vadd.f32 %v4747_v2, %v4746_v26  ;;  %v4827_v35 = vadd.f32 %v4826_v42, %v4825_v3  ;;  %v4757_v40 = vadd.f32 %v4756_v21, %v4755_v48  ;;  %v4731_v16 = vadd.f32 %v4730_v1, %v4729_v15  ;;  %v4115_v42 = vld [vmem:[#allocation6 + $0xe8] sm:$0xff]  ;;  %v4105_v21 = vld [vmem:[#allocation6 + $0x98] sm:$0xff] }
 0x385   : > { %v4844_v62 = vsel %vm774_vm6, %v4624_v51, 0.0  ;;  %v4774_v33 = vsel %vm774_vm6, %v4614_v34, 0.0  ;;  %v13611_v41 = vrot.slane %v11216_v53, 4  ;;  %v13613_v15 = vrot.slane %v11198_v60, 2 }
 0x386   : > { %v4261_v0 = vpop.permute.xlu0 %4260  ;;  %v4749_v23 = vrot.slane %v4748_v52, 2  ;;  %v4828_v39 = vrot.slane %v4827_v35, 1  ;;  %v4845_v6 = vrot.slane %v4844_v62, 4  ;;  %v4775_v45 = vrot.slane %v4774_v33, 4 }
 0x387   : > { %v4613_v36 = vmul.f32 %v4261_v0, %v4101_v17  ;;  %v11344_v26 = vadd.f32 %v13611_v41, %v4808_v46  ;;  %v4758_v3 = vrot.slane %v4757_v40, 1  ;;  %v11349_v29 = vadd.f32 %v13613_v15, %v4738_v38 }
 0x388   : > { %v4750_v48 = vadd.f32 %v4749_v23, %v4748_v52  ;;  %v4846_v1 = vadd.f32 %v4845_v6, %v4844_v62  ;;  %v4776_v2 = vadd.f32 %v4775_v45, %v4774_v33  ;;  %v13614_v17 = vperm.slane %v11026_v59, 6  ;;  %v4104_v33 = vld [vmem:[#allocation6 + $0x90] sm:$0xff]  ;;  %v4289_v45 = vpop.permute.xlu1 %4288 }
 0x389   : > { %13612 = vst [vmem:[#allocation25_spill] sm:$0xff] %v11344_v26  ;;  %v4767_v44 = vsel %vm774_vm6, %v4613_v36, 0.0  ;;  %v13615_v46 = vrot.slane %v11198_v60, 1  ;;  %v13616_v34 = vperm.slane %v11026_v59, 5  ;;  %v13617_v38 = vperm.slane %v11026_v59, 4 }
 0x38a   : > { %4589 = vperm.xlu2 %8954, %v13614_v17   ;;  %v4751_v52 = vrot.slane %v4750_v48, 1  ;;  %v4768_v51 = vrot.slane %v4767_v44, 4  ;;  %v4829_v0 = vadd.f32 %v4828_v39, %v4827_v35  ;;  %v4847_v36 = vrot.slane %v4846_v1, 2  ;;  %v4359_v62 = vpop.permute.xlu2 %4358 }
 0x38b   : > { %v11356_v19 = vadd.f32 %v13615_v46, %v4731_v16  ;;  %4582 = vperm.xlu1 %8953, %v13616_v34   ;;  %v4777_v23 = vrot.slane %v4776_v2, 2  ;;  %v4759_v16 = vadd.f32 %v4758_v3, %v4757_v40  ;;  %v4627_v17 = vmul.f32 %v4359_v62, %v4115_v42 }
 0x38c   : > { %4575 = vperm.xlu0 %8952, %v13617_v38   ;;  %v4769_v15 = vadd.f32 %v4768_v51, %v4767_v44  ;;  %v4617_v46 = vmul.f32 %v4289_v45, %v4105_v21  ;;  %v4848_v27 = vadd.f32 %v4847_v36, %v4846_v1  ;;  %v4752_v26 = vadd.f32 %v4751_v52, %v4750_v48  ;;  %v4108_v36 = vld [vmem:[#allocation6 + $0xb0] sm:$0xff] }
 0x38d   : > { %v4778_v34 = vadd.f32 %v4777_v23, %v4776_v2  ;;  %v4865_v39 = vsel %vm774_vm6, %v4627_v17, 0.0  ;;  %v13618_v3 = vrot.slane %v11216_v53, 7  ;;  %v13620_v48 = vrot.slane %v11198_v60, 5 }
 0x38e   : > { %v4282_v63 = vpop.permute.xlu0 %4281  ;;  %v4770_v7 = vrot.slane %v4769_v15, 2  ;;  %v4795_v35 = vsel %vm774_vm6, %v4617_v46, 0.0  ;;  %v4849_v6 = vrot.slane %v4848_v27, 1  ;;  %v4866_v5 = vrot.slane %v4865_v39, 4 }
 0x38f   : > { %v4616_v18 = vmul.f32 %v4282_v63, %v4104_v33  ;;  %v4796_v12 = vrot.slane %v4795_v35, 4  ;;  %v11370_v44 = vadd.f32 %v13618_v3, %v4829_v0  ;;  %v4779_v1 = vrot.slane %v4778_v34, 1  ;;  %v4118_v33 = vld [vmem:[#allocation6 + $0x100] sm:$0xff] }
 0x390   : > { %v4771_v2 = vadd.f32 %v4770_v7, %v4769_v15  ;;  %v11375_v21 = vadd.f32 %v13620_v48, %v4759_v16  ;;  %v4867_v63 = vadd.f32 %v4866_v5, %v4865_v39  ;;  %v13621_v51 = vperm.slane %v10925_v32, 1  ;;  %v4107_v5 = vld [vmem:[#allocation6 + $0xa8] sm:$0xff] }
 0x391   : > { %13619 = vst [vmem:[#allocation26_spill] sm:$0xff] %v11370_v44  ;;  %v4788_v42 = vsel %vm774_vm6, %v4616_v18, 0.0  ;;  %v4797_v52 = vadd.f32 %v4796_v12, %v4795_v35  ;;  %v13622_v0 = vrot.slane %v11198_v60, 4  ;;  %v13624_v18 = vperm.slane %v10925_v32, 0  ;;  %v4310_v35 = vpop.permute.xlu1 %4309 }
 0x392   : > { %5390 = vperm.xlu2 %8954, %v13621_v51   ;;  %v4772_v7 = vrot.slane %v4771_v2, 1  ;;  %v4789_v45 = vrot.slane %v4788_v42, 4  ;;  %v13625_v16 = vperm.slane %v11026_v59, 7  ;;  %v4850_v15 = vadd.f32 %v4849_v6, %v4848_v27  ;;  %v4380_v39 = vpop.permute.xlu2 %4379 }
 0x393   : > { %v11382_v62 = vadd.f32 %v13622_v0, %v4752_v26  ;;  %5383 = vperm.xlu1 %8953, %v13624_v18   ;;  %v4868_v17 = vrot.slane %v4867_v63, 2  ;;  %v4798_v46 = vrot.slane %v4797_v52, 2  ;;  %v4780_v26 = vadd.f32 %v4779_v1, %v4778_v34  ;;  %v13633_v34 = vld [vmem:[#allocation16_spill] sm:$0xff] }
 0x394   : > { %4596 = vperm.xlu0 %8952, %v13625_v16   ;;  %v4790_v48 = vadd.f32 %v4789_v45, %v4788_v42  ;;  %v4630_v51 = vmul.f32 %v4380_v39, %v4118_v33  ;;  %v4620_v0 = vmul.f32 %v4310_v35, %v4108_v36  ;;  %v4773_v16 = vadd.f32 %v4772_v7, %v4771_v2  ;;  %v4121_v45 = vld [vmem:[#allocation6 + $0x118] sm:$0xff] }
 0x395   : > { %13623 = vst [vmem:[#allocation27_spill] sm:$0xff] %v11382_v62  ;;  %v4869_v41 = vadd.f32 %v4868_v17, %v4867_v63  ;;  %v4799_v18 = vadd.f32 %v4798_v46, %v4797_v52  ;;  %v13626_v1 = vrot.slane %v11274_v14, 2  ;;  %v11400_v2 = vadd.f32 %v11216_v53, %v4780_v26 }
 0x396   : > { %v4303_v23 = vpop.permute.xlu0 %4302  ;;  %v4791_v38 = vrot.slane %v4790_v48, 2  ;;  %v4886_v27 = vsel %vm774_vm6, %v4630_v51, 0.0  ;;  %v4816_v6 = vsel %vm774_vm6, %v4620_v0, 0.0  ;;  %v13628_v7 = vperm.slane %v10925_v32, 4 }
 0x397   : > { %v4619_v40 = vmul.f32 %v4303_v23, %v4107_v5  ;;  %v4870_v12 = vrot.slane %v4869_v41, 1  ;;  %v4887_v44 = vrot.slane %v4886_v27, 4  ;;  %v4817_v61 = vrot.slane %v4816_v6, 4  ;;  %v4111_v5 = vld [vmem:[#allocation6 + $0xc8] sm:$0xff] }
 0x398   : > { %v11396_v42 = vadd.f32 %v13626_v1, %v4850_v15  ;;  %v4800_v63 = vrot.slane %v4799_v18, 1  ;;  %v4792_v52 = vadd.f32 %v4791_v38, %v4790_v48  ;;  %v13629_v46 = vrot.slane %v11198_v60, 7 }
 0x399   : > { %v4809_v33 = vsel %vm774_vm6, %v4619_v40, 0.0  ;;  %v4888_v36 = vadd.f32 %v4887_v44, %v4886_v27  ;;  %v4818_v23 = vadd.f32 %v4817_v61, %v4816_v6  ;;  %v13631_v40 = vperm.slane %v10925_v32, 3  ;;  %v4110_v61 = vld [vmem:[#allocation6 + $0xc0] sm:$0xff]  ;;  %v4331_v27 = vpop.permute.xlu1 %4330 }
 0x39a   : > { %13627 = vst [vmem:[#allocation28_spill] sm:$0xff] %v11396_v42  ;;  %5411 = vperm.xlu2 %8954, %v13628_v7   ;;  %v11407_v15 = vadd.f32 %v13629_v46, %v4773_v16  ;;  %v4793_v39 = vrot.slane %v4792_v52, 1  ;;  %v4810_v38 = vrot.slane %v4809_v33, 4  ;;  %v13632_v35 = vperm.slane %v10925_v32, 2  ;;  %v4401_v0 = vpop.permute.xlu2 %4400 }
 0x39b   : > { %5404 = vperm.xlu1 %8953, %v13631_v40   ;;  %v4871_v26 = vadd.f32 %v4870_v12, %v4869_v41  ;;  %v4889_v48 = vrot.slane %v4888_v36, 2  ;;  %v4819_v51 = vrot.slane %v4818_v23, 2  ;;  %v4801_v16 = vadd.f32 %v4800_v63, %v4799_v18 }
 0x39c   : > { %13630 = vst [vmem:[#allocation29_spill] sm:$0xff] %v11407_v15  ;;  %5397 = vperm.xlu0 %8952, %v13632_v35   ;;  %v4811_v6 = vadd.f32 %v4810_v38, %v4809_v33  ;;  %v4633_v1 = vmul.f32 %v4401_v0, %v4121_v45  ;;  %v4623_v7 = vmul.f32 %v4331_v27, %v4111_v5  ;;  %v13634_v33 = vrot.slane %v11274_v14, 5 }
 0x39d   : > { %v4890_v17 = vadd.f32 %v4889_v48, %v4888_v36  ;;  %v4820_v40 = vadd.f32 %v4819_v51, %v4818_v23  ;;  %v11417_v35 = vmul.f32 %v11188_v58, %v13633_v34  ;;  %v4794_v44 = vadd.f32 %v4793_v39, %v4792_v52  ;;  %v4114_v48 = vld [vmem:[#allocation6 + $0xe0] sm:$0xff] }
 0x39e   : > { %v4324_v46 = vpop.permute.xlu0 %4323  ;;  %v4812_v41 = vrot.slane %v4811_v6, 2  ;;  %v4907_v12 = vsel %vm774_vm6, %v4633_v1, 0.0  ;;  %v4837_v59 = vsel %vm774_vm6, %v4623_v7, 0.0  ;;  %v11424_v36 = vadd.f32 %v13634_v33, %v4871_v26 }
 0x39f   : > { %v4622_v3 = vmul.f32 %v4324_v46, %v4110_v61  ;;  %v4891_v15 = vrot.slane %v4890_v17, 1  ;;  %v4908_v60 = vrot.slane %v4907_v12, 4  ;;  %v4838_v18 = vrot.slane %v4837_v59, 4  ;;  %v4124_v61 = vld [vmem:[#allocation6 + $0x130] sm:$0xff] }
 0x3a0   : > { %13635 = vst [vmem:[#allocation16_spill] sm:$0xff] %v11424_v36  ;;  %v4821_v23 = vrot.slane %v4820_v40, 1  ;;  %v4813_v45 = vadd.f32 %v4812_v41, %v4811_v6  ;;  %v13636_v34 = vrot.slane %v11216_v53, 3  ;;  %v13637_v38 = vperm.slane %v10925_v32, 7 }
 0x3a1   : > { %v4830_v58 = vsel %vm774_vm6, %v4622_v3, 0.0  ;;  %v4909_v5 = vadd.f32 %v4908_v60, %v4907_v12  ;;  %v4839_v39 = vadd.f32 %v4838_v18, %v4837_v59  ;;  %v13638_v26 = vrot.slane %v11216_v53, 2  ;;  %v4113_v59 = vld [vmem:[#allocation6 + $0xd8] sm:$0xff]  ;;  %v4352_v12 = vpop.permute.xlu1 %4351 }
 0x3a2   : > { %v11429_v52 = vadd.f32 %v13636_v34, %v4801_v16  ;;  %5432 = vperm.xlu2 %8954, %v13637_v38   ;;  %v4814_v27 = vrot.slane %v4813_v45, 1  ;;  %v4831_v6 = vrot.slane %v4830_v58, 4  ;;  %v13640_v3 = vperm.slane %v10925_v32, 6  ;;  %v4422_v41 = vpop.permute.xlu2 %4421 }
 0x3a3   : > { %v11436_v0 = vadd.f32 %v13638_v26, %v4794_v44  ;;  %v13641_v16 = vperm.slane %v10925_v32, 5  ;;  %v4892_v1 = vadd.f32 %v4891_v15, %v4890_v17  ;;  %v4910_v7 = vrot.slane %v4909_v5, 2 }
 0x3a4   : > { %5425 = vperm.xlu1 %8953, %v13640_v3   ;;  %v4840_v46 = vrot.slane %v4839_v39, 2  ;;  %v4822_v44 = vadd.f32 %v4821_v23, %v4820_v40  ;;  %v4832_v33 = vadd.f32 %v4831_v6, %v4830_v58  ;;  %v4636_v34 = vmul.f32 %v4422_v41, %v4124_v61 }
 0x3a5   : > { %13639 = vst [vmem:[#allocation30_spill] sm:$0xff] %v11436_v0  ;;  %5418 = vperm.xlu0 %8952, %v13641_v16   ;;  %v4626_v38 = vmul.f32 %v4352_v12, %v4114_v48  ;;  %v4911_v51 = vadd.f32 %v4910_v7, %v4909_v5  ;;  %v4815_v16 = vadd.f32 %v4814_v27, %v4813_v45  ;;  %v5455_v40 = vperm.slane %v10946_v22, 3  ;;  %v4117_v7 = vld [vmem:[#allocation6 + $0xf8] sm:$0xff] }
 0x3a6   : > { %v4345_v26 = vpop.permute.xlu0 %4344  ;;  %v4841_v3 = vadd.f32 %v4840_v46, %v4839_v39  ;;  %v4833_v36 = vrot.slane %v4832_v33, 2  ;;  %v4928_v17 = vsel %vm774_vm6, %v4636_v34, 0.0  ;;  %v11449_v23 = vadd.f32 %v11336_v11, %v4892_v1 }
 0x3a7   : > { %v4625_v63 = vmul.f32 %v4345_v26, %v4113_v59  ;;  %v4858_v15 = vsel %vm774_vm6, %v4626_v38, 0.0  ;;  %v4912_v60 = vrot.slane %v4911_v51, 1  ;;  %v4929_v42 = vrot.slane %v4928_v17, 4  ;;  %v4127_v59 = vld [vmem:[#allocation6 + $0x148] sm:$0xff] }
 0x3a8   : > { %v4859_v0 = vrot.slane %v4858_v15, 4  ;;  %13642 = vst [vmem:[#allocation31_spill] sm:$0xff] %v11449_v23  ;;  %v4842_v58 = vrot.slane %v4841_v3, 1  ;;  %v4834_v5 = vadd.f32 %v4833_v36, %v4832_v33  ;;  %v13643_v61 = vrot.slane %v11216_v53, 6 }
 0x3a9   : > { %v4851_v39 = vsel %vm774_vm6, %v4625_v63, 0.0  ;;  %v4930_v48 = vadd.f32 %v4929_v42, %v4928_v17  ;;  %v13645_v6 = vperm.slane %v10946_v22, 2  ;;  %v13646_v1 = vrot.slane %v11216_v53, 5  ;;  %v4116_v42 = vld [vmem:[#allocation6 + $0xf0] sm:$0xff]  ;;  %v4373_v17 = vpop.permute.xlu1 %4372 }
 0x3aa   : > { %v11454_v45 = vadd.f32 %v13643_v61, %v4822_v44  ;;  %v4860_v27 = vadd.f32 %v4859_v0, %v4858_v15  ;;  %v4835_v36 = vrot.slane %v4834_v5, 1  ;;  %v4852_v12 = vrot.slane %v4851_v39, 4  ;;  %v4443_v26 = vpop.permute.xlu2 %4442 }
 0x3ab   : > { %5453 = vperm.xlu2 %8954, %v13645_v6   ;;  %v11461_v41 = vadd.f32 %v13646_v1, %v4815_v16  ;;  %v13648_v63 = vperm.slane %v10946_v22, 1  ;;  %v13649_v44 = vperm.slane %v10946_v22, 0  ;;  %v4913_v33 = vadd.f32 %v4912_v60, %v4911_v51 }
 0x3ac   : > { %13644 = vst [vmem:[#allocation32_spill] sm:$0xff] %v11454_v45  ;;  %v4931_v34 = vrot.slane %v4930_v48, 2  ;;  %v4861_v38 = vrot.slane %v4860_v27, 2  ;;  %v4843_v16 = vadd.f32 %v4842_v58, %v4841_v3  ;;  %v4853_v15 = vadd.f32 %v4852_v12, %v4851_v39 }
 0x3ad   : > { %13647 = vst [vmem:[#allocation33_spill] sm:$0xff] %v11461_v41  ;;  %5446 = vperm.xlu1 %8953, %v13648_v63   ;;  %5439 = vperm.xlu0 %8952, %v13649_v44   ;;  %v4639_v61 = vmul.f32 %v4443_v26, %v4127_v59  ;;  %v4629_v6 = vmul.f32 %v4373_v17, %v4117_v7  ;;  %v5490_v44 = vperm.slane %v10959_v47, 0  ;;  %v5483_v3 = vperm.slane %v10946_v22, 7 }
 0x3ae   : > { %v4366_v1 = vpop.permute.xlu0 %4365  ;;  %v4932_v46 = vadd.f32 %v4931_v34, %v4930_v48  ;;  %v4862_v63 = vadd.f32 %v4861_v38, %v4860_v27  ;;  %v4836_v32 = vadd.f32 %v4835_v36, %v4834_v5  ;;  %v4854_v23 = vrot.slane %v4853_v15, 2  ;;  %v4130_v34 = vld [vmem:[#allocation6 + $0x160] sm:$0xff]  ;;  %v4120_v38 = vld [vmem:[#allocation6 + $0x110] sm:$0xff] }
 0x3af   : > { %v4628_v18 = vmul.f32 %v4366_v1, %v4116_v42  ;;  %v4949_v51 = vsel %vm774_vm6, %v4639_v61, 0.0  ;;  %v4879_v60 = vsel %vm774_vm6, %v4629_v6, 0.0  ;;  %v13650_v58 = vrot.slane %v11336_v11, 3 }
 0x3b0   : > { %v4933_v0 = vrot.slane %v4932_v46, 1  ;;  %v4950_v41 = vrot.slane %v4949_v51, 4  ;;  %v4880_v62 = vrot.slane %v4879_v60, 4  ;;  %v4863_v48 = vrot.slane %v4862_v63, 1 }
 0x3b1   : > { %v11475_v39 = vadd.f32 %v13650_v58, %v4913_v33  ;;  %v4855_v27 = vadd.f32 %v4854_v23, %v4853_v15  ;;  %v4872_v59 = vsel %vm774_vm6, %v4628_v18, 0.0  ;;  %v13652_v5 = vrot.slane %v11274_v14, 1  ;;  %v4394_v1 = vpop.permute.xlu1 %4393 }
 0x3b2   : > { %v4951_v36 = vadd.f32 %v4950_v41, %v4949_v51  ;;  %v4881_v12 = vadd.f32 %v4880_v62, %v4879_v60  ;;  %v13654_v42 = vperm.slane %v10946_v22, 5  ;;  %v5476_v26 = vperm.slane %v10946_v22, 6  ;;  %v4464_v6 = vpop.permute.xlu2 %4463 }
 0x3b3   : > { %13651 = vst [vmem:[#allocation34_spill] sm:$0xff] %v11475_v39  ;;  %v11480_v7 = vadd.f32 %v13652_v5, %v4843_v16  ;;  %v11486_v33 = vadd.f32 %v11274_v14, %v4836_v32  ;;  %v4856_v17 = vrot.slane %v4855_v27, 1  ;;  %v4873_v23 = vrot.slane %v4872_v59, 4  ;;  %v4119_v16 = vld [vmem:[#allocation6 + $0x108] sm:$0xff] }
 0x3b4   : > { %5474 = vperm.xlu2 %8954, %v13654_v42   ;;  %v13656_v18 = vperm.slane %v10946_v22, 4  ;;  %v4934_v62 = vadd.f32 %v4933_v0, %v4932_v46  ;;  %v4952_v15 = vrot.slane %v4951_v36, 2  ;;  %v4882_v61 = vrot.slane %v4881_v12, 2 }
 0x3b5   : > { %13653 = vst [vmem:[#allocation35_spill] sm:$0xff] %v11480_v7  ;;  %5460 = vperm.xlu0 %8952, %v5455_v40   ;;  %v4864_v60 = vadd.f32 %v4863_v48, %v4862_v63  ;;  %v4874_v58 = vadd.f32 %v4873_v23, %v4872_v59  ;;  %v4642_v32 = vmul.f32 %v4464_v6, %v4130_v34  ;;  %v5511_v63 = vperm.slane %v10959_v47, 3 }
 0x3b6   : > { %13655 = vst [vmem:[#allocation36_spill] sm:$0xff] %v11486_v33  ;;  %5467 = vperm.xlu1 %8953, %v13656_v18   ;;  %v4632_v5 = vmul.f32 %v4394_v1, %v4120_v38  ;;  %v4387_v42 = vpop.permute.xlu0 %4386  ;;  %v4953_v53 = vadd.f32 %v4952_v15, %v4951_v36  ;;  %v4883_v39 = vadd.f32 %v4882_v61, %v4881_v12  ;;  %v13657_v48 = vrot.slane %v11336_v11, 6  ;;  %v4123_v15 = vld [vmem:[#allocation6 + $0x128] sm:$0xff]  ;;  %v11508_v61 = vld [vmem:[%s13447_s9] ss:$0 sm:$0xff] }
 0x3b7   : > { %v4631_v22 = vmul.f32 %v4387_v42, %v4119_v16  ;;  %v4857_v18 = vadd.f32 %v4856_v17, %v4855_v27  ;;  %v4875_v33 = vrot.slane %v4874_v58, 2  ;;  %v4970_v46 = vsel %vm774_vm6, %v4642_v32, 0.0  ;;  %v4133_v16 = vld [vmem:[#allocation6 + $0x178] sm:$0xff] }
 0x3b8   : > { %v4900_v0 = vsel %vm774_vm6, %v4632_v5, 0.0  ;;  %v4954_v41 = vrot.slane %v4953_v53, 1  ;;  %v4971_v7 = vrot.slane %v4970_v46, 4  ;;  %v11498_v59 = vadd.f32 %v13657_v48, %v4934_v62 }
 0x3b9   : > { %v4901_v45 = vrot.slane %v4900_v0, 4  ;;  %v4884_v36 = vrot.slane %v4883_v39, 1  ;;  %v4876_v12 = vadd.f32 %v4875_v33, %v4874_v58  ;;  %v4893_v34 = vsel %vm774_vm6, %v4631_v22, 0.0  ;;  %v4415_v42 = vpop.permute.xlu1 %4414 }
 0x3ba   : > { %13658 = vst [vmem:[#allocation37_spill] sm:$0xff] %v11498_v59  ;;  %v13659_v27 = vrot.slane %v11274_v14, 4  ;;  %v4972_v17 = vadd.f32 %v4971_v7, %v4970_v46  ;;  %v11512_v62 = vmul.f32 %v11508_v61, %v9423_v57  ;;  %v13661_v33 = vrot.slane %v11274_v14, 3  ;;  %v4485_v5 = vpop.permute.xlu2 %4484 }
 0x3bb   : > { %v4902_v23 = vadd.f32 %v4901_v45, %v4900_v0  ;;  %v4877_v1 = vrot.slane %v4876_v12, 1  ;;  %v4122_v45 = vld [vmem:[#allocation6 + $0x120] sm:$0xff]  ;;  %v4955_v7 = vadd.f32 %v4954_v41, %v4953_v53  ;;  %v5497_v22 = vperm.slane %v10959_v47, 1 }
 0x3bc   : > { %v11503_v38 = vadd.f32 %v13659_v27, %v4864_v60  ;;  %5495 = vperm.xlu2 %8954, %v5490_v44   ;;  %v11516_v6 = vadd.f32 %v13661_v33, %v4857_v18  ;;  %v4894_v60 = vrot.slane %v4893_v34, 4  ;;  %v5504_v44 = vperm.slane %v10959_v47, 2 }
 0x3bd   : > { %5481 = vperm.xlu0 %8952, %v5476_v26   ;;  %v4973_v58 = vrot.slane %v4972_v17, 2  ;;  %v4903_v32 = vrot.slane %v4902_v23, 2  ;;  %v4885_v57 = vadd.f32 %v4884_v36, %v4883_v39  ;;  %v4645_v0 = vmul.f32 %v4485_v5, %v4133_v16 }
 0x3be   : > { %13660 = vst [vmem:[#allocation38_spill] sm:$0xff] %v11503_v38  ;;  %5488 = vperm.xlu1 %8953, %v5483_v3   ;;  %v4895_v46 = vadd.f32 %v4894_v60, %v4893_v34  ;;  %v4635_v48 = vmul.f32 %v4415_v42, %v4123_v15  ;;  %v4408_v18 = vpop.permute.xlu0 %4407  ;;  %v4878_v26 = vadd.f32 %v4877_v1, %v4876_v12  ;;  %v13663_v36 = vrot.slane %v11417_v35, 1 }
 0x3bf   : > { %13662 = vst [vmem:[#allocation39_spill] sm:$0xff] %v11516_v6  ;;  %v4974_v27 = vadd.f32 %v4973_v58, %v4972_v17  ;;  %v4904_v33 = vadd.f32 %v4903_v32, %v4902_v23  ;;  %v4634_v40 = vmul.f32 %v4408_v18, %v4122_v45  ;;  %v4991_v53 = vsel %vm774_vm6, %v4645_v0, 0.0  ;;  %v4136_v45 = vld [vmem:[#allocation6 + $0x190] sm:$0xff]  ;;  %v4126_v58 = vld [vmem:[#allocation6 + $0x140] sm:$0xff] }
 0x3c0   : > { %v4896_v51 = vrot.slane %v4895_v46, 2  ;;  %v4921_v41 = vsel %vm774_vm6, %v4635_v48, 0.0  ;;  %v4992_v6 = vrot.slane %v4991_v53, 4  ;;  %v11526_v34 = vadd.f32 %v13663_v36, %v4955_v7 }
 0x3c1   : > { %v4975_v59 = vrot.slane %v4974_v27, 1  ;;  %v4922_v38 = vrot.slane %v4921_v41, 4  ;;  %v4905_v17 = vrot.slane %v4904_v33, 1  ;;  %v4914_v16 = vsel %vm774_vm6, %v4634_v40, 0.0 }
 0x3c2   : > { %13664 = vst [vmem:[#allocation40_spill] sm:$0xff] %v11526_v34  ;;  %v4897_v23 = vadd.f32 %v4896_v51, %v4895_v46  ;;  %v13665_v12 = vrot.slane %v11274_v14, 7  ;;  %v4993_v1 = vadd.f32 %v4992_v6, %v4991_v53  ;;  %v5532_v32 = vperm.slane %v10959_v47, 6  ;;  %v4125_v51 = vld [vmem:[#allocation6 + $0x138] sm:$0xff] }
 0x3c3   : > { %v4923_v60 = vadd.f32 %v4922_v38, %v4921_v41  ;;  %v13667_v5 = vrot.slane %v11274_v14, 6  ;;  %v4915_v0 = vrot.slane %v4914_v16, 4  ;;  %v5525_v40 = vperm.slane %v10959_v47, 5  ;;  %v4506_v38 = vpop.permute.xlu2 %4505 }
 0x3c4   : > { %v11531_v15 = vadd.f32 %v13665_v12, %v4885_v57  ;;  %5516 = vperm.xlu2 %8954, %v5511_v63   ;;  %v4898_v7 = vrot.slane %v4897_v23, 1  ;;  %v4976_v57 = vadd.f32 %v4975_v59, %v4974_v27  ;;  %v4994_v46 = vrot.slane %v4993_v1, 2  ;;  %v4436_v63 = vpop.permute.xlu1 %4435 }
 0x3c5   : > { %v11536_v42 = vadd.f32 %v13667_v5, %v4878_v26  ;;  %5502 = vperm.xlu0 %8952, %v5497_v22   ;;  %v4924_v6 = vrot.slane %v4923_v60, 2  ;;  %v5518_v48 = vperm.slane %v10959_v47, 4  ;;  %v4906_v18 = vadd.f32 %v4905_v17, %v4904_v33 }
 0x3c6   : > { %13666 = vst [vmem:[#allocation41_spill] sm:$0xff] %v11531_v15  ;;  %5509 = vperm.xlu1 %8953, %v5504_v44   ;;  %v4916_v53 = vadd.f32 %v4915_v0, %v4914_v16  ;;  %v4648_v41 = vmul.f32 %v4506_v38, %v4136_v45  ;;  %v4638_v14 = vmul.f32 %v4436_v63, %v4126_v58  ;;  %v4429_v26 = vpop.permute.xlu0 %4428  ;;  %v13669_v17 = vrot.slane %v11417_v35, 4 }
 0x3c7   : > { %13668 = vst [vmem:[#allocation42_spill] sm:$0xff] %v11536_v42  ;;  %v4995_v36 = vadd.f32 %v4994_v46, %v4993_v1  ;;  %v4925_v12 = vadd.f32 %v4924_v6, %v4923_v60  ;;  %v4637_v5 = vmul.f32 %v4429_v26, %v4125_v51  ;;  %v4899_v22 = vadd.f32 %v4898_v7, %v4897_v23  ;;  %v4139_v51 = vld [vmem:[#allocation6 + $0x1a8] sm:$0xff]  ;;  %v4129_v46 = vld [vmem:[#allocation6 + $0x158] sm:$0xff] }
 0x3c8   : > { %v4917_v39 = vrot.slane %v4916_v53, 2  ;;  %v5012_v59 = vsel %vm774_vm6, %v4648_v41, 0.0  ;;  %v4942_v27 = vsel %vm774_vm6, %v4638_v14, 0.0  ;;  %v11546_v16 = vadd.f32 %v13669_v17, %v4976_v57 }
 0x3c9   : > { %v4996_v3 = vrot.slane %v4995_v36, 1  ;;  %v5013_v34 = vrot.slane %v5012_v59, 4  ;;  %v4943_v15 = vrot.slane %v4942_v27, 4  ;;  %v4926_v1 = vrot.slane %v4925_v12, 1 }
 0x3ca   : > { %13670 = vst [vmem:[#allocation43_spill] sm:$0xff] %v11546_v16  ;;  %v4918_v60 = vadd.f32 %v4917_v39, %v4916_v53  ;;  %v4935_v45 = vsel %vm774_vm6, %v4637_v5, 0.0  ;;  %v13671_v23 = vrot.slane %v11336_v11, 2  ;;  %v13672_v38 = vrot.slane %v11336_v11, 1  ;;  %v4128_v39 = vld [vmem:[#allocation6 + $0x150] sm:$0xff] }
 0x3cb   : > { %v5014_v7 = vadd.f32 %v5013_v34, %v5012_v59  ;;  %v4944_v0 = vadd.f32 %v4943_v15, %v4942_v27  ;;  %v4936_v41 = vrot.slane %v4935_v45, 4  ;;  %v5553_v53 = vperm.slane %v10975_v55, 1  ;;  %v4527_v15 = vpop.permute.xlu2 %4526 }
 0x3cc   : > { %v11551_v58 = vadd.f32 %v13671_v23, %v4906_v18  ;;  %5537 = vperm.xlu2 %8954, %v5532_v32   ;;  %v11556_v63 = vadd.f32 %v13672_v38, %v4899_v22  ;;  %v4919_v57 = vrot.slane %v4918_v60, 1  ;;  %v4997_v18 = vadd.f32 %v4996_v3, %v4995_v36  ;;  %v4457_v32 = vpop.permute.xlu1 %4456 }
 0x3cd   : > { %5523 = vperm.xlu0 %8952, %v5518_v48   ;;  %v5015_v14 = vrot.slane %v5014_v7, 2  ;;  %v4945_v34 = vrot.slane %v4944_v0, 2  ;;  %v5546_v26 = vperm.slane %v10975_v55, 0  ;;  %v4927_v5 = vadd.f32 %v4926_v1, %v4925_v12 }
 0x3ce   : > { %13673 = vst [vmem:[#allocation44_spill] sm:$0xff] %v11556_v63  ;;  %5530 = vperm.xlu1 %8953, %v5525_v40   ;;  %v4937_v59 = vadd.f32 %v4936_v41, %v4935_v45  ;;  %v4651_v27 = vmul.f32 %v4527_v15, %v4139_v51  ;;  %v4641_v17 = vmul.f32 %v4457_v32, %v4129_v46  ;;  %v4450_v22 = vpop.permute.xlu0 %4449  ;;  %v5539_v40 = vperm.slane %v10959_v47, 7 }
 0x3cf   : > { %v5016_v23 = vadd.f32 %v5015_v14, %v5014_v7  ;;  %v4946_v38 = vadd.f32 %v4945_v34, %v4944_v0  ;;  %v4640_v6 = vmul.f32 %v4450_v22, %v4128_v39  ;;  %v4920_v48 = vadd.f32 %v4919_v57, %v4918_v60  ;;  %v4142_v57 = vld [vmem:[#allocation6 + $0x1c0] sm:$0xff]  ;;  %v4132_v39 = vld [vmem:[#allocation6 + $0x170] sm:$0xff] }
 0x3d0   : > { %v4938_v33 = vrot.slane %v4937_v59, 2  ;;  %v5033_v3 = vsel %vm774_vm6, %v4651_v27, 0.0  ;;  %v4963_v36 = vsel %vm774_vm6, %v4641_v17, 0.0  ;;  %v13674_v12 = vrot.slane %v11417_v35, 7 }
 0x3d1   : > { %v5017_v44 = vrot.slane %v5016_v23, 1  ;;  %v4947_v16 = vrot.slane %v4946_v38, 1  ;;  %v5034_v63 = vrot.slane %v5033_v3, 4  ;;  %v4964_v42 = vrot.slane %v4963_v36, 4 }
 0x3d2   : > { %v11565_v1 = vadd.f32 %v13674_v12, %v4997_v18  ;;  %v4939_v45 = vadd.f32 %v4938_v33, %v4937_v59  ;;  %v4956_v7 = vsel %vm774_vm6, %v4640_v6, 0.0  ;;  %v11570_v47 = vmul.f32 %v11508_v61, %v9511_v56  ;;  %v4131_v56 = vld [vmem:[#allocation6 + $0x168] sm:$0xff] }
 0x3d3   : > { %v13676_v60 = vrot.slane %v11336_v11, 5  ;;  %v5035_v51 = vadd.f32 %v5034_v63, %v5033_v3  ;;  %v4965_v46 = vadd.f32 %v4964_v42, %v4963_v36  ;;  %v13677_v18 = vrot.slane %v11336_v11, 4 }
 0x3d4   : > { %13675 = vst [vmem:[#allocation45_spill] sm:$0xff] %v11565_v1  ;;  %5558 = vperm.xlu2 %8954, %v5553_v53   ;;  %v4940_v6 = vrot.slane %v4939_v45, 1  ;;  %v4957_v14 = vrot.slane %v4956_v7, 4  ;;  %v5574_v61 = vperm.slane %v10975_v55, 4  ;;  %v5018_v34 = vadd.f32 %v5017_v44, %v5016_v23  ;;  %v4548_v53 = vpop.permute.xlu2 %4547  ;;  %v4478_v32 = vpop.permute.xlu1 %4477 }
 0x3d5   : > { %v11574_v0 = vadd.f32 %v13676_v60, %v4927_v5  ;;  %v11579_v33 = vadd.f32 %v13677_v18, %v4920_v48  ;;  %5544 = vperm.xlu0 %8952, %v5539_v40   ;;  %v4948_v15 = vadd.f32 %v4947_v16, %v4946_v38  ;;  %v5036_v63 = vrot.slane %v5035_v51, 2 }
 0x3d6   : > { %5551 = vperm.xlu1 %8953, %v5546_v26   ;;  %v4966_v42 = vrot.slane %v4965_v46, 2  ;;  %v4958_v5 = vadd.f32 %v4957_v14, %v4956_v7  ;;  %v4654_v59 = vmul.f32 %v4548_v53, %v4142_v57  ;;  %v4644_v27 = vmul.f32 %v4478_v32, %v4132_v39  ;;  %v4471_v17 = vpop.permute.xlu0 %4470 }
 0x3d7   : > { %13678 = vst [vmem:[#allocation46_spill] sm:$0xff] %v11579_v33  ;;  %v5567_v22 = vperm.slane %v10975_v55, 3  ;;  %v5037_v48 = vadd.f32 %v5036_v63, %v5035_v51  ;;  %v4643_v36 = vmul.f32 %v4471_v17, %v4131_v56  ;;  %v5560_v26 = vperm.slane %v10975_v55, 2  ;;  %v4145_v63 = vld [vmem:[#allocation6 + $0x1d8] sm:$0xff] }
 0x3d8   : > { %v4967_v3 = vadd.f32 %v4966_v42, %v4965_v46  ;;  %v4941_v40 = vadd.f32 %v4940_v6, %v4939_v45  ;;  %v4959_v12 = vrot.slane %v4958_v5, 2  ;;  %v5054_v44 = vsel %vm774_vm6, %v4654_v59, 0.0  ;;  %v4135_v59 = vld [vmem:[#allocation6 + $0x188] sm:$0xff] }
 0x3d9   : > { %v4984_v16 = vsel %vm774_vm6, %v4644_v27, 0.0  ;;  %v5038_v23 = vrot.slane %v5037_v48, 1  ;;  %v5055_v38 = vrot.slane %v5054_v44, 4  ;;  %v13679_v57 = vrot.slane %v11512_v62, 2  ;;  %v4134_v27 = vld [vmem:[#allocation6 + $0x180] sm:$0xff] }
 0x3da   : > { %v4985_v60 = vrot.slane %v4984_v16, 4  ;;  %v4968_v51 = vrot.slane %v4967_v3, 1  ;;  %v4960_v46 = vadd.f32 %v4959_v12, %v4958_v5  ;;  %v4977_v18 = vsel %vm774_vm6, %v4643_v36, 0.0 }
 0x3db   : > { %v11589_v39 = vadd.f32 %v13679_v57, %v5018_v34  ;;  %v11593_v45 = vadd.f32 %v11417_v35, %v4948_v15  ;;  %v5056_v6 = vadd.f32 %v5055_v38, %v5054_v44  ;;  %v13681_v42 = vrot.slane %v11336_v11, 7 }
 0x3dc   : > { %v4986_v14 = vadd.f32 %v4985_v60, %v4984_v16  ;;  %5579 = vperm.xlu2 %8954, %v5574_v61   ;;  %v4961_v32 = vrot.slane %v4960_v46, 1  ;;  %v4978_v34 = vrot.slane %v4977_v18, 4  ;;  %v5039_v15 = vadd.f32 %v5038_v23, %v5037_v48  ;;  %v4569_v12 = vpop.permute.xlu2 %4568  ;;  %v4499_v11 = vpop.permute.xlu1 %4498 }
 0x3dd   : > { %13680 = vst [vmem:[#allocation47_spill] sm:$0xff] %v11593_v45  ;;  %v11598_v53 = vadd.f32 %v13681_v42, %v4941_v40  ;;  %5565 = vperm.xlu0 %8952, %v5560_v26   ;;  %v5057_v17 = vrot.slane %v5056_v6, 2  ;;  %v5595_v61 = vperm.slane %v10975_v55, 7  ;;  %v4969_v44 = vadd.f32 %v4968_v51, %v4967_v3 }
 0x3de   : > { %5572 = vperm.xlu1 %8953, %v5567_v22   ;;  %v4987_v36 = vrot.slane %v4986_v14, 2  ;;  %v4979_v16 = vadd.f32 %v4978_v34, %v4977_v18  ;;  %v4657_v38 = vmul.f32 %v4569_v12, %v4145_v63  ;;  %v4492_v40 = vpop.permute.xlu0 %4491  ;;  %v5588_v60 = vperm.slane %v10975_v55, 6 }
 0x3df   : > { %13682 = vst [vmem:[#allocation48_spill] sm:$0xff] %v11598_v53  ;;  %v5058_v57 = vadd.f32 %v5057_v17, %v5056_v6  ;;  %v4647_v26 = vmul.f32 %v4499_v11, %v4135_v59  ;;  %v4646_v42 = vmul.f32 %v4492_v40, %v4134_v27  ;;  %v4962_v5 = vadd.f32 %v4961_v32, %v4960_v46  ;;  %v4148_v27 = vld [vmem:[#allocation6 + $0x1f0] sm:$0xff] }
 0x3e0   : > { %v4988_v22 = vadd.f32 %v4987_v36, %v4986_v14  ;;  %v4980_v56 = vrot.slane %v4979_v16, 2  ;;  %v5075_v48 = vsel %vm774_vm6, %v4657_v38, 0.0  ;;  %v5581_v23 = vperm.slane %v10975_v55, 5  ;;  %v4137_v38 = vld [vmem:[#allocation6 + $0x198] sm:$0xff] }
 0x3e1   : > { %v5059_v7 = vrot.slane %v5058_v57, 1  ;;  %v5076_v53 = vrot.slane %v5075_v48, 4  ;;  %v5005_v3 = vsel %vm774_vm6, %v4647_v26, 0.0  ;;  %v13683_v51 = vrot.slane %v11512_v62, 5  ;;  %v11624_v26 = vld [vmem:[%s13447_s9 + $0x1] ss:$0 sm:$0xff] }
 0x3e2   : > { %v4989_v41 = vrot.slane %v4988_v22, 1  ;;  %v4981_v63 = vadd.f32 %v4980_v56, %v4979_v16  ;;  %v5006_v6 = vrot.slane %v5005_v3, 4  ;;  %v4998_v14 = vsel %vm774_vm6, %v4646_v42, 0.0  ;;  %v4138_v16 = vld [vmem:[#allocation6 + $0x1a0] sm:$0xff] }
 0x3e3   : > { %v11608_v18 = vadd.f32 %v13683_v51, %v5039_v15  ;;  %v13685_v46 = vrot.slane %v11417_v35, 3  ;;  %v5077_v34 = vadd.f32 %v5076_v53, %v5075_v48  ;;  %v4999_v59 = vrot.slane %v4998_v14, 4 }
 0x3e4   : > { %5600 = vperm.xlu2 %8954, %v5595_v61   ;;  %v13687_v17 = vrot.slane %v11417_v35, 2  ;;  %v4982_v15 = vrot.slane %v4981_v63, 1  ;;  %v5007_v12 = vadd.f32 %v5006_v6, %v5005_v3  ;;  %v4990_v11 = vadd.f32 %v4989_v41, %v4988_v22  ;;  %v4590_v61 = vpop.permute.xlu2 %4589  ;;  %v4520_v48 = vpop.permute.xlu1 %4519 }
 0x3e5   : > { %13684 = vst [vmem:[#allocation49_spill] sm:$0xff] %v11608_v18  ;;  %v11613_v32 = vadd.f32 %v13685_v46, %v4969_v44  ;;  %5586 = vperm.xlu0 %8952, %v5581_v23   ;;  %v5060_v44 = vadd.f32 %v5059_v7, %v5058_v57  ;;  %v5078_v53 = vrot.slane %v5077_v34, 2  ;;  %v5000_v40 = vadd.f32 %v4999_v59, %v4998_v14  ;;  %v4140_v18 = vld [vmem:[#allocation6 + $0x1b0] sm:$0xff] }
 0x3e6   : > { %v11618_v36 = vadd.f32 %v13687_v17, %v4962_v5  ;;  %5593 = vperm.xlu1 %8953, %v5588_v60   ;;  %v5008_v5 = vrot.slane %v5007_v12, 2  ;;  %v4660_v42 = vmul.f32 %v4590_v61, %v4148_v27  ;;  %v4513_v3 = vpop.permute.xlu0 %4512  ;;  %v5616_v60 = vperm.slane %v10998_v10, 2 }
 0x3e7   : > { %13686 = vst [vmem:[#allocation50_spill] sm:$0xff] %v11613_v32  ;;  %v5609_v23 = vperm.slane %v10998_v10, 1  ;;  %v5079_v51 = vadd.f32 %v5078_v53, %v5077_v34  ;;  %v5001_v6 = vrot.slane %v5000_v40, 2  ;;  %v4650_v7 = vmul.f32 %v4520_v48, %v4138_v16  ;;  %v5315_v53 = vld [vmem:[#allocation7 + $0x8] sm:$0xff]  ;;  %v13692_v48 = vld [vmem:[#allocation8_spill] sm:$0xff] }
 0x3e8   : > { %13688 = vst [vmem:[#allocation51_spill] sm:$0xff] %v11618_v36  ;;  %v4649_v41 = vmul.f32 %v4513_v3, %v4137_v38  ;;  %v4983_v57 = vadd.f32 %v4982_v15, %v4981_v63  ;;  %v5009_v22 = vadd.f32 %v5008_v5, %v5007_v12  ;;  %v5096_v14 = vsel %vm774_vm6, %v4660_v42, 0.0 }
 0x3e9   : > { %v5602_v46 = vperm.slane %v10998_v10, 0  ;;  %v5002_v59 = vadd.f32 %v5001_v6, %v5000_v40  ;;  %v5097_v17 = vrot.slane %v5096_v14, 4  ;;  %v5026_v27 = vsel %vm774_vm6, %v4650_v7, 0.0  ;;  %v4141_v6 = vld [vmem:[#allocation6 + $0x1b8] sm:$0xff] }
 0x3ea   : > { %v11633_v61 = vmul.f32 %v11624_v26, %v9555_v28  ;;  %v5080_v56 = vrot.slane %v5079_v51, 1  ;;  %v5027_v55 = vrot.slane %v5026_v27, 4  ;;  %v5019_v16 = vsel %vm774_vm6, %v4649_v41, 0.0 }
 0x3eb   : > { %v11638_v63 = vadd.f32 %v11570_v47, %v5060_v44  ;;  %v5010_v15 = vrot.slane %v5009_v22, 1  ;;  %v5098_v12 = vadd.f32 %v5097_v17, %v5096_v14  ;;  %v5020_v38 = vrot.slane %v5019_v16, 4 }
 0x3ec   : > { %5621 = vperm.xlu2 %8954, %v5616_v60   ;;  %v13690_v40 = vrot.slane %v11417_v35, 6  ;;  %v5003_v28 = vrot.slane %v5002_v59, 1  ;;  %v5028_v42 = vadd.f32 %v5027_v55, %v5026_v27  ;;  %v6671_v3 = vsub.f32 0.0, %v13692_v48  ;;  %v5391_v17 = vpop.permute.xlu2 %5390 }
 0x3ed   : > { %13689 = vst [vmem:[#allocation52_spill] sm:$0xff] %v11638_v63  ;;  %5607 = vperm.xlu0 %8952, %v5602_v46   ;;  %v13693_v7 = vrot.slane %v11417_v35, 5  ;;  %v5099_v41 = vrot.slane %v5098_v12, 2  ;;  %v5021_v14 = vadd.f32 %v5020_v38, %v5019_v16  ;;  %v5081_v34 = vadd.f32 %v5080_v56, %v5079_v51 }
 0x3ee   : > { %v11642_v5 = vadd.f32 %v13690_v40, %v4990_v11  ;;  %5614 = vperm.xlu1 %8953, %v5609_v23   ;;  %v5029_v1 = vrot.slane %v5028_v42, 2  ;;  %v6679_v11 = vmul.f32 1.442695, %v6671_v3  ;;  %v5827_v40 = vmul.f32 %v5391_v17, %v5315_v53  ;;  %v4534_v55 = vpop.permute.xlu0 %4533 }
 0x3ef   : > { %v11647_v44 = vadd.f32 %v13693_v7, %v4983_v57  ;;  %v5011_v23 = vadd.f32 %v5010_v15, %v5009_v22  ;;  %v5100_v46 = vadd.f32 %v5099_v41, %v5098_v12  ;;  %v5022_v27 = vrot.slane %v5021_v14, 2 }
 0x3f0   : > { %13691 = vst [vmem:[#allocation53_spill] sm:$0xff] %v11642_v5  ;;  %v4541_v5 = vpop.permute.xlu1 %4540  ;;  %v5004_v36 = vadd.f32 %v5003_v28, %v5002_v59  ;;  %v5030_v35 = vadd.f32 %v5029_v1, %v5028_v42  ;;  %8959 = vpow2.f32 %v6679_v11  ;;  %v5897_v57 = vsel %vm774_vm6, %v5827_v40, 0.0  ;;  %v5318_v1 = vld [vmem:[#allocation7 + $0x20] sm:$0xff] }
 0x3f1   : > { %13694 = vst [vmem:[#allocation8_spill] sm:$0xff] %v11647_v44  ;;  %v4653_v45 = vmul.f32 %v4541_v5, %v4141_v6  ;;  %v5101_v16 = vrot.slane %v5100_v46, 1  ;;  %v5023_v38 = vadd.f32 %v5022_v27, %v5021_v14  ;;  %v5898_v7 = vrot.slane %v5897_v57, 4 }
 0x3f2   : > { %v5031_v51 = vrot.slane %v5030_v35, 1  ;;  %v4652_v53 = vmul.f32 %v4534_v55, %v4140_v18  ;;  %v5637_v17 = vperm.slane %v10998_v10, 5  ;;  %v5630_v59 = vperm.slane %v10998_v10, 4  ;;  %v4144_v55 = vld [vmem:[#allocation6 + $0x1d0] sm:$0xff] }
 0x3f3   : > { %v5047_v56 = vsel %vm774_vm6, %v4653_v45, 0.0  ;;  %v5024_v22 = vrot.slane %v5023_v38, 1  ;;  %v5899_v15 = vadd.f32 %v5898_v7, %v5897_v57  ;;  %v13695_v5 = vrot.slane %v11570_v47, 3 }
 0x3f4   : > { %v5048_v3 = vrot.slane %v5047_v56, 4  ;;  %v5040_v6 = vsel %vm774_vm6, %v4652_v53, 0.0  ;;  %5642 = vperm.xlu2 %8954, %v5637_v17   ;;  %v5623_v45 = vperm.slane %v10998_v10, 3  ;;  %v5102_v18 = vadd.f32 %v5101_v16, %v5100_v46  ;;  %v5412_v40 = vpop.permute.xlu2 %5411 }
 0x3f5   : > { %v11657_v28 = vadd.f32 %v13695_v5, %v5081_v34  ;;  %v5032_v41 = vadd.f32 %v5031_v51, %v5030_v35  ;;  %v5900_v14 = vrot.slane %v5899_v15, 2  ;;  %v5041_v11 = vrot.slane %v5040_v6, 4 }
 0x3f6   : > { %v5049_v42 = vadd.f32 %v5048_v3, %v5047_v56  ;;  %5635 = vperm.xlu1 %8953, %v5630_v59   ;;  %v8960_v27 = vpop.eup %8959  ;;  %v13697_v57 = vrot.slane %v11512_v62, 1  ;;  %v11666_v34 = vadd.f32 %v11512_v62, %v5004_v36  ;;  %5628 = vperm.xlu0 %8952, %v5623_v45   ;;  %v5830_v3 = vmul.f32 %v5412_v40, %v5318_v1 }
 0x3f7   : > { %13696 = vst [vmem:[#allocation54_spill] sm:$0xff] %v11657_v28  ;;  %v5025_v17 = vadd.f32 %v5024_v22, %v5023_v38  ;;  %v11668_v46 = vadd.f32 1.0, %v8960_v27  ;;  %v5901_v35 = vadd.f32 %v5900_v14, %v5899_v15  ;;  %v5042_v16 = vadd.f32 %v5041_v11, %v5040_v6  ;;  %v4143_v14 = vld [vmem:[#allocation6 + $0x1c8] sm:$0xff] }
 0x3f8   : > { %v11663_v7 = vadd.f32 %v13697_v57, %v5011_v23  ;;  %13698 = vst [vmem:[#allocation55_spill] sm:$0xff] %v11666_v34  ;;  %v5050_v56 = vrot.slane %v5049_v42, 2  ;;  %v4562_v53 = vpop.permute.xlu1 %4561  ;;  %v5918_v5 = vsel %vm774_vm6, %v5830_v3, 0.0  ;;  %v4555_v23 = vpop.permute.xlu0 %4554  ;;  %v13699_v57 = vrot.slane %v11570_v47, 6 }
 0x3f9   : > { %v4656_v12 = vmul.f32 %v4562_v53, %v4144_v55  ;;  %v13701_v45 = vrot.slane %v11512_v62, 4  ;;  %8961 = vrcp.f32 %v11668_v46  ;;  %v6712_v38 = vand.u32 2147483647, %v11668_v46 }
 0x3fa   : > { %v5051_v51 = vadd.f32 %v5050_v56, %v5049_v42  ;;  %v11674_v36 = vadd.f32 %v13699_v57, %v5102_v18  ;;  %v5902_v22 = vrot.slane %v5901_v35, 1  ;;  %v5043_v42 = vrot.slane %v5042_v16, 2 }
 0x3fb   : > { %v11678_v1 = vadd.f32 %v13701_v45, %v5032_v41  ;;  %v5919_v6 = vrot.slane %v5918_v5, 4  ;;  %v13703_v11 = vrot.slane %v11512_v62, 3  ;;  %v6714_v18 = vand.u32 2147483648, %v11668_v46 }
 0x3fc   : > { %13700 = vst [vmem:[#allocation56_spill] sm:$0xff] %v11674_v36  ;;  %v5052_v15 = vrot.slane %v5051_v51, 1  ;;  %v6362_v55 = vrot.slane %v11633_v61, 4  ;;  %v5068_v41 = vsel %vm774_vm6, %v4656_v12, 0.0  ;;  %v5903_v27 = vadd.f32 %v5902_v22, %v5901_v35  ;;  %v5321_v12 = vld [vmem:[#allocation7 + $0x38] sm:$0xff]  ;;  %v5433_v35 = vpop.permute.xlu2 %5432 }
 0x3fd   : > { %13702 = vst [vmem:[#allocation57_spill] sm:$0xff] %v11678_v1  ;;  %v11684_v40 = vadd.f32 %v13703_v11, %v5025_v17  ;;  %v5920_v3 = vadd.f32 %v5919_v6, %v5918_v5  ;;  %v5069_v57 = vrot.slane %v5068_v41, 4  ;;  %v4655_v45 = vmul.f32 %v4555_v23, %v4143_v14 }
 0x3fe   : > { %v5053_v56 = vadd.f32 %v5052_v15, %v5051_v51  ;;  %v5721_v59 = vperm.slane %v11022_v24, 1  ;;  %v5665_v60 = vperm.slane %v11010_v25, 1  ;;  %vm6708_vm2 = vweird.f32 %v11668_v46 }
 0x3ff   : > { %13704 = vst [vmem:[#allocation58_spill] sm:$0xff] %v11684_v40  ;;  %vm11693_vm3 = vcmp.eq.f32.partialorder %v6712_v38, 8.507059e+37  ;;  %v5044_v11 = vadd.f32 %v5043_v42, %v5042_v16  ;;  %v5921_v36 = vrot.slane %v5920_v3, 2  ;;  %v8962_v51 = vpop.eup %8961  ;;  %v6715_v5 = vor.u32 1.1754944e-38, %v6714_v18 }
 0x400   : > { %v5070_v22 = vadd.f32 %v5069_v57, %v5068_v41  ;;  %v5061_v15 = vsel %vm774_vm6, %v4655_v45, 0.0  ;;  %5726 = vperm.xlu2 %8954, %v5721_v59   ;;  %5670 = vperm.xlu1 %8953, %v5665_v60   ;;  %v5644_v23 = vperm.slane %v10998_v10, 6  ;;  %v6704_v6 = vmul.f32 %v8962_v51, %v11668_v46  ;;  %v4583_v44 = vpop.permute.xlu1 %4582  ;;  %v4147_v60 = vld [vmem:[#allocation6 + $0x1e8] sm:$0xff]  ;;  %v4576_v40 = vpop.permute.xlu0 %4575 }
 0x401   : > { %v13707_v38 = vrot.slane %v11633_v61, 1  ;;  %v13708_v53 = vrot.slane %v11512_v62, 7  ;;  %v5922_v18 = vadd.f32 %v5921_v36, %v5920_v3  ;;  %v5062_v57 = vrot.slane %v5061_v15, 4 }
 0x402   : > { %v5071_v41 = vrot.slane %v5070_v22, 2  ;;  %5649 = vperm.xlu0 %8952, %v5644_v23   ;;  %v5833_v59 = vmul.f32 %v5433_v35, %v5321_v12  ;;  %v6705_v45 = vsub.f32 1.0, %v6704_v6  ;;  %vm6709_vm8 = vweird.f32 %v8962_v51  ;;  %v5314_v12 = vld [vmem:[#allocation7] sm:$0xff] }
 0x403   : > { %v6480_v14 = vadd.f32 %v13707_v38, %v5903_v27  ;;  %v11704_v16 = vadd.f32 %v13708_v53, %v5053_v56  ;;  %v5045_v28 = vrot.slane %v5044_v11, 1  ;;  %v4146_v27 = vld [vmem:[#allocation6 + $0x1e0] sm:$0xff]  ;;  %v5923_v38 = vrot.slane %v5922_v18, 1  ;;  %vm11712_vm9 = vmor %vm6708_vm2, %vm6709_vm8 }
 0x404   : > { %v5072_v1 = vadd.f32 %v5071_v41, %v5070_v22  ;;  %v5063_v56 = vadd.f32 %v5062_v57, %v5061_v15  ;;  %v5939_v53 = vsel %vm774_vm6, %v5833_v59, 0.0  ;;  %v6706_v42 = vmul.f32 %v8962_v51, %v6705_v45 }
 0x405   : > { %13709 = vst [vmem:[#allocation59_spill] sm:$0xff] %v11704_v16  ;;  %v6544_v36 = vadd.f32 %v6480_v14, %v11301_v20  ;;  %v5940_v3 = vrot.slane %v5939_v53, 4  ;;  %v4659_v16 = vmul.f32 %v4583_v44, %v4147_v60  ;;  %v5924_v35 = vadd.f32 %v5923_v38, %v5922_v18 }
 0x406   : > { %v5073_v23 = vrot.slane %v5072_v1, 1  ;;  %v5064_v6 = vrot.slane %v5063_v56, 2  ;;  %v4658_v34 = vmul.f32 %v4576_v40, %v4146_v27  ;;  %v6707_v63 = vadd.f32 %v8962_v51, %v6706_v42  ;;  %v5454_v40 = vpop.permute.xlu2 %5453 }
 0x407   : > { %v5941_v22 = vadd.f32 %v5940_v3, %v5939_v53  ;;  %v5089_v15 = vsel %vm774_vm6, %v4659_v16, 0.0  ;;  %v5728_v41 = vperm.slane %v11022_v24, 2  ;;  %v5046_v57 = vadd.f32 %v5045_v28, %v5044_v11 }
 0x408   : > { %v6483_v20 = vadd.f32 %v6362_v55, %v5924_v35  ;;  %v5065_v14 = vadd.f32 %v5064_v6, %v5063_v56  ;;  %v5090_v44 = vrot.slane %v5089_v15, 4  ;;  %v6711_v46 = vsel %vm11712_vm9, %v8962_v51, %v6707_v63  ;;  %v5384_v51 = vpop.permute.xlu1 %5383  ;;  %v13716_v6 = vld [vmem:[#allocation9_spill] sm:$0xff] }
 0x409   : > { %v5942_v59 = vrot.slane %v5941_v22, 2  ;;  %v5082_v60 = vsel %vm774_vm6, %v4658_v34, 0.0  ;;  %5733 = vperm.xlu2 %8954, %v5728_v41   ;;  %v5672_v18 = vperm.slane %v11010_v25, 2  ;;  %v6716_v42 = vsel %vm11693_vm3, %v6715_v5, %v6711_v46 }
 0x40a   : > { %v6547_v16 = vadd.f32 %v6483_v20, %v11223_v49  ;;  %v5074_v45 = vadd.f32 %v5073_v23, %v5072_v1  ;;  %v5066_v28 = vrot.slane %v5065_v14, 1  ;;  %v11726_v55 = vmul.f32 %v6716_v42, %v13692_v48  ;;  %v5324_v48 = vld [vmem:[#allocation7 + $0x50] sm:$0xff] }
 0x40b   : > { %v5943_v11 = vadd.f32 %v5942_v59, %v5941_v22  ;;  %v5091_v27 = vadd.f32 %v5090_v44, %v5089_v15  ;;  %v5083_v63 = vrot.slane %v5082_v60, 4  ;;  %5677 = vperm.xlu1 %8953, %v5672_v18   ;;  %v6608_v34 = vmul.f32 0.5, %v6544_v36  ;;  %v4597_v59 = vpop.permute.xlu0 %4596  ;;  %v4149_v18 = vld [vmem:[#allocation6 + $0x1f8] sm:$0xff] }
 0x40c   : > { %v13712_v38 = vrot.slane %v11512_v62, 6  ;;  %v5183_v17 = vrot.slane %v11570_v47, 5  ;;  %v5777_v5 = vperm.slane %v11028_v54, 1  ;;  %v6839_v49 = vrot.slane %v11726_v55, 1 }
 0x40d   : > { %v5067_v1 = vadd.f32 %v5066_v28, %v5065_v14  ;;  %v5092_v53 = vrot.slane %v5091_v27, 2  ;;  %v11737_v3 = vmul.f32 %v11624_v26, %v9587_v50  ;;  %v13714_v36 = vrot.slane %v11570_v47, 2 }
 0x40e   : > { %v11730_v56 = vadd.f32 %v13712_v38, %v5046_v57  ;;  %v5084_v23 = vadd.f32 %v5083_v63, %v5082_v60  ;;  %5782 = vperm.xlu0 %8952, %v5777_v5   ;;  %v6672_v22 = vsub.f32 0.0, %v13716_v6  ;;  %v6842_v15 = vrot.slane %v11726_v55, 4 }
 0x40f   : > { %v11741_v35 = vadd.f32 %v13714_v36, %v5074_v45  ;;  %v6611_v41 = vmul.f32 0.5, %v6547_v16  ;;  %v5944_v57 = vrot.slane %v5943_v11, 1  ;;  %v5093_v20 = vadd.f32 %v5092_v53, %v5091_v27 }
 0x410   : > { %13713 = vst [vmem:[#allocation60_spill] sm:$0xff] %v11730_v56  ;;  %v5085_v14 = vrot.slane %v5084_v23, 2  ;;  %v6681_v44 = vmul.f32 1.442695, %v6672_v22  ;;  %v5836_v50 = vmul.f32 %v5454_v40, %v5324_v48  ;;  %v5826_v46 = vmul.f32 %v5384_v51, %v5314_v12  ;;  %v5327_v48 = vld [vmem:[#allocation7 + $0x68] sm:$0xff] }
 0x411   : > { %13715 = vst [vmem:[#allocation61_spill] sm:$0xff] %v11741_v35  ;;  %v11746_v42 = vmul.f32 %v6839_v49, %v6608_v34  ;;  %v13717_v45 = vrot.slane %v11570_v47, 1  ;;  %v5094_v60 = vrot.slane %v5093_v20, 1  ;;  %v5945_v5 = vadd.f32 %v5944_v57, %v5943_v11  ;;  %v5475_v34 = vpop.permute.xlu2 %5474  ;;  %v5405_v11 = vpop.permute.xlu1 %5404 }
 0x412   : > { %v5086_v38 = vadd.f32 %v5085_v14, %v5084_v23  ;;  %8963 = vpow2.f32 %v6681_v44  ;;  %v5960_v16 = vsel %vm774_vm6, %v5836_v50, 0.0  ;;  %v5890_v27 = vsel %vm774_vm6, %v5826_v46, 0.0  ;;  %v5317_v50 = vld [vmem:[#allocation7 + $0x18] sm:$0xff] }
 0x413   : > { %v11750_v28 = vadd.f32 %v13717_v45, %v5067_v1  ;;  %v5961_v40 = vrot.slane %v5960_v16, 4  ;;  %v5891_v51 = vrot.slane %v5890_v27, 4  ;;  %v4661_v53 = vmul.f32 %v4597_v59, %v4149_v18 }
 0x414   : > { %v5087_v49 = vrot.slane %v5086_v38, 1  ;;  %v5679_v12 = vperm.slane %v11010_v25, 3  ;;  %v5658_v1 = vperm.slane %v11010_v25, 0  ;;  %v5784_v36 = vperm.slane %v11028_v54, 2 }
 0x415   : > { %13718 = vst [vmem:[#allocation9_spill] sm:$0xff] %v11750_v28  ;;  %v11758_v22 = vmul.f32 %v6842_v15, %v6611_v41  ;;  %v5962_v23 = vadd.f32 %v5961_v40, %v5960_v16  ;;  %v5892_v14 = vadd.f32 %v5891_v51, %v5890_v27  ;;  %v5103_v44 = vsel %vm774_vm6, %v4661_v53, 0.0 }
 0x416   : > { %v5095_v46 = vadd.f32 %v5094_v60, %v5093_v20  ;;  %v5104_v59 = vrot.slane %v5103_v44, 4  ;;  %5684 = vperm.xlu2 %8954, %v5679_v12   ;;  %5663 = vperm.xlu1 %8953, %v5658_v1   ;;  %v5839_v18 = vmul.f32 %v5475_v34, %v5327_v48  ;;  %v13720_v45 = vrot.slane %v11633_v61, 7  ;;  %v5316_v1 = vld [vmem:[#allocation7 + $0x10] sm:$0xff] }
 0x417   : > { %13719 = vst [vmem:[#allocation62_spill] sm:$0xff] %v11758_v22  ;;  %v5088_v62 = vadd.f32 %v5087_v49, %v5086_v38  ;;  %v5963_v15 = vrot.slane %v5962_v23, 2  ;;  %v5893_v41 = vrot.slane %v5892_v14, 2  ;;  %5789 = vperm.xlu0 %8952, %v5784_v36   ;;  %v5829_v53 = vmul.f32 %v5405_v11, %v5317_v50  ;;  %v5398_v36 = vpop.permute.xlu0 %5397 }
 0x418   : > { %v11764_v63 = vadd.f32 %v13720_v45, %v5945_v5  ;;  %v8964_v16 = vpop.eup %8963  ;;  %v5105_v40 = vadd.f32 %v5104_v59, %v5103_v44  ;;  %v5981_v51 = vsel %vm774_vm6, %v5839_v18, 0.0  ;;  %v11772_v5 = vadd.f32 %v5183_v17, %v5095_v46 }
 0x419   : > { %v11768_v20 = vadd.f32 1.0, %v8964_v16  ;;  %v5964_v60 = vadd.f32 %v5963_v15, %v5962_v23  ;;  %v5894_v12 = vadd.f32 %v5893_v41, %v5892_v14  ;;  %v5982_v48 = vrot.slane %v5981_v51, 4  ;;  %v5426_v33 = vpop.permute.xlu1 %5425 }
 0x41a   : > { %13721 = vst [vmem:[#allocation63_spill] sm:$0xff] %v11772_v5  ;;  %v5106_v38 = vrot.slane %v5105_v40, 2  ;;  %v5911_v49 = vsel %vm774_vm6, %v5829_v53, 0.0  ;;  %v13722_v44 = vrot.slane %v11570_v47, 4  ;;  %v5828_v41 = vmul.f32 %v5398_v36, %v5316_v1  ;;  %v13727_v5 = vld [vmem:[#allocation10_spill] sm:$0xff] }
 0x41b   : > { %8965 = vrcp.f32 %v11768_v20  ;;  %v5965_v50 = vrot.slane %v5964_v60, 1  ;;  %v5895_v17 = vrot.slane %v5894_v12, 1  ;;  %v5983_v46 = vadd.f32 %v5982_v48, %v5981_v51 }
 0x41c   : > { %v11778_v59 = vadd.f32 %v13722_v44, %v5088_v62  ;;  %v5107_v11 = vadd.f32 %v5106_v38, %v5105_v40  ;;  %v6727_v18 = vand.u32 2147483647, %v11768_v20  ;;  %v6729_v45 = vand.u32 2147483648, %v11768_v20 }
 0x41d   : > { %v5912_v15 = vrot.slane %v5911_v49, 4  ;;  %v5966_v16 = vadd.f32 %v5965_v50, %v5964_v60  ;;  %v5896_v53 = vadd.f32 %v5895_v17, %v5894_v12  ;;  %v5984_v44 = vrot.slane %v5983_v46, 2 }
 0x41e   : > { %13723 = vst [vmem:[#allocation64_spill] sm:$0xff] %v11778_v59  ;;  %v5108_v62 = vrot.slane %v5107_v11, 1  ;;  %v5904_v34 = vsel %vm774_vm6, %v5828_v41, 0.0  ;;  %v5770_v23 = vperm.slane %v11028_v54, 0  ;;  %v5735_v14 = vperm.slane %v11022_v24, 3  ;;  %v5496_v41 = vpop.permute.xlu2 %5495 }
 0x41f   : > { %v5913_v57 = vadd.f32 %v5912_v15, %v5911_v49  ;;  %v13724_v40 = vrot.slane %v11737_v3, 2  ;;  %v5985_v48 = vadd.f32 %v5984_v44, %v5983_v46  ;;  %v6360_v38 = vrot.slane %v11633_v61, 2  ;;  %v5330_v15 = vld [vmem:[#allocation7 + $0x80] sm:$0xff] }
 0x420   : > { %vm6723_vm10 = vweird.f32 %v11768_v20  ;;  %v5905_v12 = vrot.slane %v5904_v34, 4  ;;  %5775 = vperm.xlu2 %8954, %v5770_v23   ;;  %5740 = vperm.xlu1 %8953, %v5735_v14   ;;  %v5714_v49 = vperm.slane %v11022_v24, 0  ;;  %vm11795_vm11 = vcmp.eq.f32.partialorder %v6727_v18, 8.507059e+37 }
 0x421   : > { %v6489_v51 = vadd.f32 %v13724_v40, %v5966_v16  ;;  %v8966_v1 = vpop.eup %8965  ;;  %v5914_v60 = vrot.slane %v5913_v57, 2  ;;  %v6730_v17 = vor.u32 1.1754944e-38, %v6729_v45  ;;  %v6479_v46 = vadd.f32 %v11633_v61, %v5896_v53  ;;  %v5320_v45 = vld [vmem:[#allocation7 + $0x30] sm:$0xff] }
 0x422   : > { %v6719_v36 = vmul.f32 %v8966_v1, %v11768_v20  ;;  %v5109_v16 = vadd.f32 %v5108_v62, %v5107_v11  ;;  %v5986_v44 = vrot.slane %v5985_v48, 1  ;;  %v5906_v27 = vadd.f32 %v5905_v12, %v5904_v34  ;;  %5719 = vperm.xlu0 %8952, %v5714_v49   ;;  %v5419_v12 = vpop.permute.xlu0 %5418 }
 0x423   : > { %v5915_v40 = vadd.f32 %v5914_v60, %v5913_v57  ;;  %vm6724_vm12 = vweird.f32 %v8966_v1  ;;  %v6553_v14 = vadd.f32 %v6489_v51, %v11349_v29  ;;  %v6673_v59 = vsub.f32 0.0, %v13727_v5 }
 0x424   : > { %v6720_v23 = vsub.f32 1.0, %v6719_v36  ;;  %v5987_v18 = vadd.f32 %v5986_v44, %v5985_v48  ;;  %v5907_v35 = vrot.slane %v5906_v27, 2  ;;  %v5842_v28 = vmul.f32 %v5496_v41, %v5330_v15  ;;  %vm11809_vm13 = vmor %vm6723_vm10, %vm6724_vm12 }
 0x425   : > { %v5916_v56 = vrot.slane %v5915_v40, 1  ;;  %v6543_v32 = vadd.f32 %v6479_v46, %v11268_v13  ;;  %v11805_v57 = vmul.f32 %v11624_v26, %v9687_v9  ;;  %v6683_v34 = vmul.f32 1.442695, %v6673_v59  ;;  %v5319_v13 = vld [vmem:[#allocation7 + $0x28] sm:$0xff] }
 0x426   : > { %v6721_v53 = vmul.f32 %v8966_v1, %v6720_v23  ;;  %v13730_v11 = vrot.slane %v11570_v47, 7  ;;  %v5908_v48 = vadd.f32 %v5907_v35, %v5906_v27  ;;  %v6002_v60 = vsel %vm774_vm6, %v5842_v28, 0.0 }
 0x427   : > { %v5917_v51 = vadd.f32 %v5916_v56, %v5915_v40  ;;  %8967 = vpow2.f32 %v6683_v34  ;;  %v6003_v9 = vrot.slane %v6002_v60, 4  ;;  %v5832_v59 = vmul.f32 %v5426_v33, %v5320_v45 }
 0x428   : > { %v11815_v62 = vadd.f32 %v13730_v11, %v5109_v16  ;;  %v6722_v49 = vadd.f32 %v8966_v1, %v6721_v53  ;;  %v6617_v36 = vmul.f32 0.5, %v6553_v14  ;;  %v13732_v20 = vrot.slane %v11737_v3, 5 }
 0x429   : > { %v13733_v15 = vrot.slane %v11633_v61, 3  ;;  %v5909_v47 = vrot.slane %v5908_v48, 1  ;;  %v6004_v35 = vadd.f32 %v6003_v9, %v6002_v60  ;;  %v5932_v28 = vsel %vm774_vm6, %v5832_v59, 0.0 }
 0x42a   : > { %13731 = vst [vmem:[#allocation10_spill] sm:$0xff] %v11815_v62  ;;  %v6492_v46 = vadd.f32 %v13732_v20, %v5987_v18  ;;  %v6726_v56 = vsel %vm11809_vm13, %v8966_v1, %v6722_v49  ;;  %v5831_v27 = vmul.f32 %v5419_v12, %v5319_v13  ;;  %v6607_v44 = vmul.f32 0.5, %v6543_v32  ;;  %v5517_v49 = vpop.permute.xlu2 %5516  ;;  %v5333_v20 = vld [vmem:[#allocation7 + $0x98] sm:$0xff] }
 0x42b   : > { %v6482_v41 = vadd.f32 %v13733_v15, %v5917_v51  ;;  %v6731_v16 = vsel %vm11795_vm11, %v6730_v17, %v6726_v56  ;;  %v5910_v40 = vadd.f32 %v5909_v47, %v5908_v48  ;;  %v6005_v14 = vrot.slane %v6004_v35, 2 }
 0x42c   : > { %v11829_v23 = vmul.f32 %v6731_v16, %v13716_v6  ;;  %v5933_v18 = vrot.slane %v5932_v28, 4  ;;  %v5925_v45 = vsel %vm774_vm6, %v5831_v27, 0.0  ;;  %v6556_v1 = vadd.f32 %v6492_v46, %v11375_v21  ;;  %v5323_v16 = vld [vmem:[#allocation7 + $0x48] sm:$0xff] }
 0x42d   : > { %v6546_v33 = vadd.f32 %v6482_v41, %v11294_v8  ;;  %v6481_v53 = vadd.f32 %v6360_v38, %v5910_v40  ;;  %v5926_v34 = vrot.slane %v5925_v45, 4  ;;  %v5742_v29 = vperm.slane %v11022_v24, 4  ;;  %v8968_v11 = vpop.eup %8967 }
 0x42e   : > { %v6847_v50 = vrot.slane %v11829_v23, 2  ;;  %v6006_v32 = vadd.f32 %v6005_v14, %v6004_v35  ;;  %v5934_v17 = vadd.f32 %v5933_v18, %v5932_v28  ;;  %v5686_v8 = vperm.slane %v11010_v25, 4  ;;  %v5322_v18 = vld [vmem:[#allocation7 + $0x40] sm:$0xff] }
 0x42f   : > { %v6610_v51 = vmul.f32 0.5, %v6546_v33  ;;  %v6545_v6 = vadd.f32 %v6481_v53, %v11264_v31  ;;  %v11837_v48 = vadd.f32 1.0, %v8968_v11  ;;  %v5927_v60 = vadd.f32 %v5926_v34, %v5925_v45  ;;  %5747 = vperm.xlu2 %8954, %v5742_v29   ;;  %v5440_v45 = vpop.permute.xlu0 %5439 }
 0x430   : > { %v11840_v21 = vmul.f32 %v11726_v55, %v6607_v44  ;;  %v6007_v38 = vrot.slane %v6006_v32, 1  ;;  %v5935_v13 = vrot.slane %v5934_v17, 2  ;;  %5691 = vperm.xlu1 %8953, %v5686_v8   ;;  %v5791_v12 = vperm.slane %v11028_v54, 3  ;;  %v5447_v44 = vpop.permute.xlu1 %5446 }
 0x431   : > { %v11843_v9 = vmul.f32 %v6847_v50, %v6617_v36  ;;  %v6609_v59 = vmul.f32 0.5, %v6545_v6  ;;  %8969 = vrcp.f32 %v11837_v48  ;;  %v6364_v31 = vrot.slane %v11633_v61, 6 }
 0x432   : > { %v6742_v46 = vand.u32 2147483647, %v11837_v48  ;;  %v6744_v15 = vand.u32 2147483648, %v11837_v48  ;;  %v6008_v41 = vadd.f32 %v6007_v38, %v6006_v32  ;;  %v5936_v47 = vadd.f32 %v5935_v13, %v5934_v17  ;;  %5796 = vperm.xlu0 %8952, %v5791_v12  }
 0x433   : > { %13734 = vst [vmem:[#allocation65_spill] sm:$0xff] %v11843_v9  ;;  %v11849_v56 = vmul.f32 0.5, %v6556_v1  ;;  %v13735_v35 = vrot.slane %v11726_v55, 3  ;;  %v6363_v36 = vrot.slane %v11633_v61, 5  ;;  %v5928_v27 = vrot.slane %v5927_v60, 2 }
 0x434   : > { %vm6738_vm14 = vweird.f32 %v11837_v48  ;;  %v6495_v33 = vadd.f32 %v11805_v57, %v6008_v41  ;;  %v5937_v40 = vrot.slane %v5936_v47, 1  ;;  %v5845_v14 = vmul.f32 %v5517_v49, %v5333_v20 }
 0x435   : > { %v11853_v28 = vmul.f32 %v13735_v35, %v6610_v51  ;;  %v13737_v53 = vrot.slane %v11726_v55, 2  ;;  %v5929_v29 = vadd.f32 %v5928_v27, %v5927_v60  ;;  %v6375_v61 = vrot.slane %v11805_v57, 3 }
 0x436   : > { %vm11864_vm15 = vcmp.eq.f32.partialorder %v6742_v46, 8.507059e+37  ;;  %v6745_v50 = vor.u32 1.1754944e-38, %v6744_v15  ;;  %v5938_v32 = vadd.f32 %v5937_v40, %v5936_v47  ;;  %v6023_v17 = vsel %vm774_vm6, %v5845_v14, 0.0  ;;  %v5538_v40 = vpop.permute.xlu2 %5537 }
 0x437   : > { %13736 = vst [vmem:[#allocation66_spill] sm:$0xff] %v11853_v28  ;;  %v11861_v34 = vmul.f32 %v13737_v53, %v6609_v59  ;;  %v5835_v8 = vmul.f32 %v5447_v44, %v5323_v16  ;;  %v8970_v51 = vpop.eup %8969  ;;  %v5930_v6 = vrot.slane %v5929_v29, 1  ;;  %v6024_v38 = vrot.slane %v6023_v17, 4  ;;  %v5336_v44 = vld [vmem:[#allocation7 + $0xb0] sm:$0xff] }
 0x438   : > { %v5834_v13 = vmul.f32 %v5440_v45, %v5322_v18  ;;  %v5749_v12 = vperm.slane %v11022_v24, 5  ;;  %v6734_v49 = vmul.f32 %v8970_v51, %v11837_v48  ;;  %vm6739_vm0 = vweird.f32 %v8970_v51 }
 0x439   : > { %13738 = vst [vmem:[#allocation67_spill] sm:$0xff] %v11861_v34  ;;  %v6559_v60 = vadd.f32 %v6495_v33, %v11400_v2  ;;  %v6485_v59 = vadd.f32 %v6364_v31, %v5938_v32  ;;  %v5931_v20 = vadd.f32 %v5930_v6, %v5929_v29  ;;  %v6025_v46 = vadd.f32 %v6024_v38, %v6023_v17  ;;  %vm11881_vm1 = vmor %vm6738_vm14, %vm6739_vm0 }
 0x43a   : > { %v5953_v15 = vsel %vm774_vm6, %v5835_v8, 0.0  ;;  %v5946_v41 = vsel %vm774_vm6, %v5834_v13, 0.0  ;;  %5754 = vperm.xlu2 %8954, %v5749_v12   ;;  %v6735_v47 = vsub.f32 1.0, %v6734_v49  ;;  %v5693_v45 = vperm.slane %v11010_v25, 5  ;;  %v5326_v49 = vld [vmem:[#allocation7 + $0x60] sm:$0xff] }
 0x43b   : > { %v6549_v35 = vadd.f32 %v6485_v59, %v11327_v4  ;;  %v5954_v27 = vrot.slane %v5953_v15, 4  ;;  %v5947_v16 = vrot.slane %v5946_v41, 4  ;;  %v6484_v14 = vadd.f32 %v6363_v36, %v5931_v20  ;;  %v5468_v59 = vpop.permute.xlu1 %5467 }
 0x43c   : > { %v6026_v18 = vrot.slane %v6025_v46, 2  ;;  %v5798_v2 = vperm.slane %v11028_v54, 4  ;;  %v6736_v33 = vmul.f32 %v8970_v51, %v6735_v47  ;;  %v6366_v36 = vrot.slane %v11737_v3, 1  ;;  %5698 = vperm.xlu1 %8953, %v5693_v45  }
 0x43d   : > { %v5955_v53 = vadd.f32 %v5954_v27, %v5953_v15  ;;  %v5948_v29 = vadd.f32 %v5947_v16, %v5946_v41  ;;  %v6846_v17 = vrot.slane %v11829_v23, 1  ;;  %v5848_v8 = vmul.f32 %v5538_v40, %v5336_v44  ;;  %v5325_v44 = vld [vmem:[#allocation7 + $0x58] sm:$0xff] }
 0x43e   : > { %v6027_v32 = vadd.f32 %v6026_v18, %v6025_v46  ;;  %5803 = vperm.xlu0 %8952, %v5798_v2   ;;  %v6737_v6 = vadd.f32 %v8970_v51, %v6736_v33  ;;  %v11887_v38 = vmul.f32 0.5, %v6559_v60  ;;  %v11889_v48 = vmul.f32 0.5, %v6549_v35  ;;  %v5461_v60 = vpop.permute.xlu0 %5460 }
 0x43f   : > { %v5956_v13 = vrot.slane %v5955_v53, 2  ;;  %v5949_v12 = vrot.slane %v5948_v29, 2  ;;  %v6548_v20 = vadd.f32 %v6484_v14, %v11231_v30  ;;  %v6044_v46 = vsel %vm774_vm6, %v5848_v8, 0.0 }
 0x440   : > { %v6028_v15 = vrot.slane %v6027_v32, 1  ;;  %v6741_v41 = vsel %vm11881_vm1, %v8970_v51, %v6737_v6  ;;  %v6045_v16 = vrot.slane %v6044_v46, 4  ;;  %v6378_v35 = vrot.slane %v11805_v57, 6 }
 0x441   : > { %v5957_v47 = vadd.f32 %v5956_v13, %v5955_v53  ;;  %v5950_v27 = vadd.f32 %v5949_v12, %v5948_v29  ;;  %v6746_v40 = vsel %vm11864_vm15, %v6745_v50, %v6741_v41  ;;  %v5838_v45 = vmul.f32 %v5468_v59, %v5326_v49 }
 0x442   : > { %v6029_v18 = vadd.f32 %v6028_v15, %v6027_v32  ;;  %v6046_v14 = vadd.f32 %v6045_v16, %v6044_v46  ;;  %v6369_v33 = vrot.slane %v11737_v3, 4  ;;  %v11899_v8 = vmul.f32 0.5, %v6548_v20 }
 0x443   : > { %v5958_v2 = vrot.slane %v5957_v47, 1  ;;  %v5951_v30 = vrot.slane %v5950_v27, 1  ;;  %v5974_v53 = vsel %vm774_vm6, %v5838_v45, 0.0  ;;  %v5837_v29 = vmul.f32 %v5461_v60, %v5325_v44  ;;  %v5339_v60 = vld [vmem:[#allocation7 + $0xc8] sm:$0xff] }
 0x444   : > { %v6498_v51 = vadd.f32 %v6375_v61, %v6029_v18  ;;  %v11905_v11 = vmul.f32 %v6746_v40, %v13727_v5  ;;  %v6849_v32 = vrot.slane %v11829_v23, 4  ;;  %v6047_v13 = vrot.slane %v6046_v14, 2 }
 0x445   : > { %v5959_v50 = vadd.f32 %v5958_v2, %v5957_v47  ;;  %v5952_v4 = vadd.f32 %v5951_v30, %v5950_v27  ;;  %v5975_v12 = vrot.slane %v5974_v53, 4  ;;  %v5967_v49 = vsel %vm774_vm6, %v5837_v29, 0.0  ;;  %v5559_v27 = vpop.permute.xlu2 %5558 }
 0x446   : > { %v6562_v6 = vadd.f32 %v6498_v51, %v11429_v52  ;;  %v5968_v61 = vrot.slane %v5967_v49, 4  ;;  %v5756_v15 = vperm.slane %v11022_v24, 6  ;;  %v6855_v46 = vrot.slane %v11905_v11, 3 }
 0x447   : > { %v6488_v59 = vadd.f32 %v6366_v36, %v5959_v50  ;;  %v6487_v20 = vadd.f32 %v11737_v3, %v5952_v4  ;;  %v6048_v5 = vadd.f32 %v6047_v13, %v6046_v14  ;;  %v5976_v41 = vadd.f32 %v5975_v12, %v5974_v53  ;;  %v5489_v13 = vpop.permute.xlu1 %5488 }
 0x448   : > { %v5700_v47 = vperm.slane %v11010_v25, 6  ;;  %v5969_v44 = vadd.f32 %v5968_v61, %v5967_v49  ;;  %5761 = vperm.xlu2 %8954, %v5756_v15   ;;  %v5805_v36 = vperm.slane %v11028_v54, 5  ;;  %v6626_v40 = vmul.f32 0.5, %v6562_v6  ;;  %v5329_v49 = vld [vmem:[#allocation7 + $0x78] sm:$0xff] }
 0x449   : > { %v6552_v16 = vadd.f32 %v6488_v59, %v11356_v19  ;;  %v6551_v52 = vadd.f32 %v6487_v20, %v11242_v37  ;;  %v6049_v18 = vrot.slane %v6048_v5, 1  ;;  %v5977_v45 = vrot.slane %v5976_v41, 2  ;;  %v13743_v19 = vld [vmem:[#allocation11_spill] sm:$0xff] }
 0x44a   : > { %5705 = vperm.xlu1 %8953, %v5700_v47   ;;  %v11919_v2 = vmul.f32 %v11624_v26, %v9865_v43  ;;  %v6368_v14 = vrot.slane %v11737_v3, 3  ;;  %v5970_v51 = vrot.slane %v5969_v44, 2  ;;  %5810 = vperm.xlu0 %8952, %v5805_v36   ;;  %v6674_v37 = vsub.f32 0.0, %v13743_v19 }
 0x44b   : > { %v6616_v30 = vmul.f32 0.5, %v6552_v16  ;;  %v6615_v53 = vmul.f32 0.5, %v6551_v52  ;;  %v6050_v29 = vadd.f32 %v6049_v18, %v6048_v5  ;;  %v5978_v50 = vadd.f32 %v5977_v45, %v5976_v41  ;;  %v5328_v5 = vld [vmem:[#allocation7 + $0x70] sm:$0xff]  ;;  %v5482_v41 = vpop.permute.xlu0 %5481 }
 0x44c   : > { %v5851_v4 = vmul.f32 %v5559_v27, %v5339_v60  ;;  %v11925_v6 = vmul.f32 %v11905_v11, %v11887_v38  ;;  %v6848_v12 = vrot.slane %v11829_v23, 3  ;;  %v5971_v43 = vadd.f32 %v5970_v51, %v5969_v44 }
 0x44d   : > { %v6685_v26 = vmul.f32 1.442695, %v6674_v37  ;;  %v11928_v59 = vmul.f32 %v6855_v46, %v6626_v40  ;;  %v5979_v20 = vrot.slane %v5978_v50, 1  ;;  %v6380_v61 = vrot.slane %v11919_v2, 1  ;;  %v5342_v37 = vld [vmem:[#allocation7 + $0xe0] sm:$0xff] }
 0x44e   : > { %13744 = vst [vmem:[#allocation11_spill] sm:$0xff] %v11925_v6  ;;  %v6065_v15 = vsel %vm774_vm6, %v5851_v4, 0.0  ;;  %v11934_v47 = vmul.f32 %v6846_v17, %v6616_v30  ;;  %v5972_v38 = vrot.slane %v5971_v43, 1  ;;  %v11937_v16 = vmul.f32 %v11829_v23, %v6615_v53  ;;  %v5580_v53 = vpop.permute.xlu2 %5579 }
 0x44f   : > { %13745 = vst [vmem:[#allocation68_spill] sm:$0xff] %v11928_v59  ;;  %8971 = vpow2.f32 %v6685_v26  ;;  %v6066_v27 = vrot.slane %v6065_v15, 4  ;;  %v6501_v46 = vadd.f32 %v6378_v35, %v6050_v29  ;;  %v5980_v52 = vadd.f32 %v5979_v20, %v5978_v50 }
 0x450   : > { %13746 = vst [vmem:[#allocation69_spill] sm:$0xff] %v11934_v47  ;;  %v5841_v44 = vmul.f32 %v5489_v13, %v5329_v49  ;;  %v5973_v36 = vadd.f32 %v5972_v38, %v5971_v43  ;;  %v5840_v40 = vmul.f32 %v5482_v41, %v5328_v5  ;;  %v5707_v18 = vperm.slane %v11010_v25, 7  ;;  %v13748_v13 = vld [vmem:[#allocation32_spill] sm:$0xff]  ;;  %v13749_v25 = vld [vmem:[#allocation27_spill] sm:$0xff] }
 0x451   : > { %13747 = vst [vmem:[#allocation70_spill] sm:$0xff] %v11937_v16  ;;  %v6067_v60 = vadd.f32 %v6066_v27, %v6065_v15  ;;  %v6491_v17 = vadd.f32 %v6369_v33, %v5980_v52  ;;  %v5651_v51 = vperm.slane %v10998_v10, 7  ;;  %v6565_v43 = vadd.f32 %v6501_v46, %v13748_v13  ;;  %v13750_v15 = vld [vmem:[#allocation17_spill] sm:$0xff]  ;;  %v5510_v46 = vpop.permute.xlu1 %5509 }
 0x452   : > { %v5995_v30 = vsel %vm774_vm6, %v5841_v44, 0.0  ;;  %v6490_v4 = vadd.f32 %v6368_v14, %v5973_v36  ;;  %v5988_v50 = vsel %vm774_vm6, %v5840_v40, 0.0  ;;  %5712 = vperm.xlu2 %8954, %v5707_v18   ;;  %v5812_v33 = vperm.slane %v11028_v54, 6 }
 0x453   : > { %v6068_v35 = vrot.slane %v6067_v60, 2  ;;  %v5996_v29 = vrot.slane %v5995_v30, 4  ;;  %v6555_v26 = vadd.f32 %v6491_v17, %v13749_v25  ;;  %v5989_v49 = vrot.slane %v5988_v50, 4  ;;  %5656 = vperm.xlu1 %8953, %v5651_v51  }
 0x454   : > { %v6554_v5 = vadd.f32 %v6490_v4, %v13750_v15  ;;  %v5854_v38 = vmul.f32 %v5580_v53, %v5342_v37  ;;  %5817 = vperm.xlu0 %8952, %v5812_v33   ;;  %v6371_v18 = vrot.slane %v11737_v3, 6  ;;  %v11957_v51 = vmul.f32 0.5, %v6565_v43 }
 0x455   : > { %v8972_v20 = vpop.eup %8971  ;;  %v6069_v10 = vadd.f32 %v6068_v35, %v6067_v60  ;;  %v5997_v41 = vadd.f32 %v5996_v29, %v5995_v30  ;;  %v6619_v27 = vmul.f32 0.5, %v6555_v26  ;;  %v5990_v44 = vadd.f32 %v5989_v49, %v5988_v50  ;;  %v5332_v30 = vld [vmem:[#allocation7 + $0x90] sm:$0xff]  ;;  %v5331_v26 = vld [vmem:[#allocation7 + $0x88] sm:$0xff]  ;;  %v5503_v49 = vpop.permute.xlu0 %5502 }
 0x456   : > { %v11953_v52 = vadd.f32 1.0, %v8972_v20  ;;  %v6086_v17 = vsel %vm774_vm6, %v5854_v38, 0.0  ;;  %v6618_v4 = vmul.f32 0.5, %v6554_v5  ;;  %v5844_v15 = vmul.f32 %v5510_v46, %v5332_v30 }
 0x457   : > { %v6070_v36 = vrot.slane %v6069_v10, 1  ;;  %v5998_v40 = vrot.slane %v5997_v41, 2  ;;  %v11965_v50 = vmul.f32 %v6849_v32, %v6619_v27  ;;  %v5991_v13 = vrot.slane %v5990_v44, 2 }
 0x458   : > { %8973 = vrcp.f32 %v11953_v52  ;;  %v6757_v37 = vand.u32 2147483647, %v11953_v52  ;;  %v6759_v53 = vand.u32 2147483648, %v11953_v52  ;;  %v6087_v25 = vrot.slane %v6086_v17, 4 }
 0x459   : > { %v6071_v35 = vadd.f32 %v6070_v36, %v6069_v10  ;;  %v5999_v29 = vadd.f32 %v5998_v40, %v5997_v41  ;;  %13751 = vst [vmem:[#allocation32_spill] sm:$0xff] %v11965_v50  ;;  %vm6753_vm4 = vweird.f32 %v11953_v52  ;;  %v11973_v5 = vmul.f32 %v6848_v12, %v6618_v4  ;;  %v13755_v36 = vld [vmem:[#allocation35_spill] sm:$0xff] }
 0x45a   : > { %v5992_v10 = vadd.f32 %v5991_v13, %v5990_v44  ;;  %v6088_v32 = vadd.f32 %v6087_v25, %v6086_v17  ;;  %vm11976_vm5 = vcmp.eq.f32.partialorder %v6757_v37, 8.507059e+37  ;;  %v6760_v27 = vor.u32 1.1754944e-38, %v6759_v53  ;;  %v5345_v13 = vld [vmem:[#allocation7 + $0xf8] sm:$0xff]  ;;  %v5601_v53 = vpop.permute.xlu2 %5600 }
 0x45b   : > { %v6504_v33 = vadd.f32 %v6380_v61, %v6071_v35  ;;  %v6000_v20 = vrot.slane %v5999_v29, 1  ;;  %13752 = vst [vmem:[#allocation27_spill] sm:$0xff] %v11973_v5  ;;  %v6016_v1 = vsel %vm774_vm6, %v5844_v15, 0.0  ;;  %v5843_v61 = vmul.f32 %v5503_v49, %v5331_v26  ;;  %v5335_v49 = vld [vmem:[#allocation7 + $0xa8] sm:$0xff]  ;;  %v5531_v15 = vpop.permute.xlu1 %5530 }
 0x45c   : > { %v5993_v46 = vrot.slane %v5992_v10, 1  ;;  %v6089_v30 = vrot.slane %v6088_v32, 2  ;;  %v6017_v14 = vrot.slane %v6016_v1, 4  ;;  %v5819_v12 = vperm.slane %v11028_v54, 7 }
 0x45d   : > { %v6568_v40 = vadd.f32 %v6504_v33, %v13755_v36  ;;  %v6001_v17 = vadd.f32 %v6000_v20, %v5999_v29  ;;  %v6009_v26 = vsel %vm774_vm6, %v5843_v61, 0.0  ;;  %v5763_v41 = vperm.slane %v11022_v24, 7 }
 0x45e   : > { %v8974_v35 = vpop.eup %8973  ;;  %v5994_v25 = vadd.f32 %v5993_v46, %v5992_v10  ;;  %v6090_v33 = vadd.f32 %v6089_v30, %v6088_v32  ;;  %v6018_v36 = vadd.f32 %v6017_v14, %v6016_v1  ;;  %5824 = vperm.xlu1 %8953, %v5819_v12   ;;  %v6010_v54 = vrot.slane %v6009_v26, 4 }
 0x45f   : > { %v6749_v44 = vmul.f32 %v8974_v35, %v11953_v52  ;;  %vm6754_vm7 = vweird.f32 %v8974_v35  ;;  %v6632_v29 = vmul.f32 0.5, %v6568_v40  ;;  %v5857_v43 = vmul.f32 %v5601_v53, %v5345_v13  ;;  %5768 = vperm.xlu0 %8952, %v5763_v41  }
 0x460   : > { %v6091_v20 = vrot.slane %v6090_v33, 1  ;;  %v6019_v4 = vrot.slane %v6018_v36, 2  ;;  %v6493_v60 = vadd.f32 %v6371_v18, %v5994_v25  ;;  %v6011_v45 = vadd.f32 %v6010_v54, %v6009_v26  ;;  %vm11990_vm2 = vmor %vm6753_vm4, %vm6754_vm7 }
 0x461   : > { %v6750_v31 = vsub.f32 1.0, %v6749_v44  ;;  %v5847_v10 = vmul.f32 %v5531_v15, %v5335_v49  ;;  %v13758_v14 = vrot.slane %v11737_v3, 7  ;;  %v6107_v61 = vsel %vm774_vm6, %v5857_v43, 0.0  ;;  %v5334_v43 = vld [vmem:[#allocation7 + $0xa0] sm:$0xff] }
 0x462   : > { %v6092_v24 = vadd.f32 %v6091_v20, %v6090_v33  ;;  %v6020_v40 = vadd.f32 %v6019_v4, %v6018_v36  ;;  %v6108_v18 = vrot.slane %v6107_v61, 4  ;;  %v13759_v30 = vrot.slane %v11919_v2, 4  ;;  %v13761_v36 = vld [vmem:[#allocation38_spill] sm:$0xff]  ;;  %v5622_v1 = vpop.permute.xlu2 %5621 }
 0x463   : > { %v6751_v37 = vmul.f32 %v8974_v35, %v6750_v31  ;;  %v11996_v32 = vadd.f32 %v13758_v14, %v6001_v17  ;;  %v6012_v31 = vrot.slane %v6011_v45, 2  ;;  %v6037_v41 = vsel %vm774_vm6, %v5847_v10, 0.0  ;;  %v13760_v17 = vld [vmem:[#allocation22_spill] sm:$0xff] }
 0x464   : > { %v6507_v52 = vadd.f32 %v13759_v30, %v6092_v24  ;;  %v6021_v12 = vrot.slane %v6020_v40, 1  ;;  %v6038_v13 = vrot.slane %v6037_v41, 4  ;;  %v6557_v53 = vadd.f32 %v6493_v60, %v13760_v17 }
 0x465   : > { %v6752_v46 = vadd.f32 %v8974_v35, %v6751_v37  ;;  %v6013_v4 = vadd.f32 %v6012_v31, %v6011_v45  ;;  %v6109_v25 = vadd.f32 %v6108_v18, %v6107_v61  ;;  %v5524_v37 = vpop.permute.xlu0 %5523  ;;  %v13762_v45 = vrot.slane %v11805_v57, 2 }
 0x466   : > { %v6571_v26 = vadd.f32 %v6507_v52, %v13761_v36  ;;  %v6022_v49 = vadd.f32 %v6021_v12, %v6020_v40  ;;  %v6039_v15 = vadd.f32 %v6038_v13, %v6037_v41  ;;  %v5846_v61 = vmul.f32 %v5524_v37, %v5334_v43  ;;  %v5552_v52 = vpop.permute.xlu1 %5551  ;;  %v5348_v37 = vld [vmem:[#allocation7 + $0x110] sm:$0xff] }
 0x467   : > { %v6756_v3 = vsel %vm11990_vm2, %v8974_v35, %v6752_v46  ;;  %v6014_v20 = vrot.slane %v6013_v4, 1  ;;  %v6110_v10 = vrot.slane %v6109_v25, 2  ;;  %v6377_v35 = vrot.slane %v11805_v57, 5  ;;  %v13765_v36 = vld [vmem:[#allocation18_spill] sm:$0xff] }
 0x468   : > { %v6761_v33 = vsel %vm11976_vm5, %v6760_v27, %v6756_v3  ;;  %v6635_v60 = vmul.f32 0.5, %v6571_v26  ;;  %v6497_v14 = vadd.f32 %v13762_v45, %v6022_v49  ;;  %v6040_v24 = vrot.slane %v6039_v15, 2  ;;  %v5338_v49 = vld [vmem:[#allocation7 + $0xc0] sm:$0xff] }
 0x469   : > { %v12010_v54 = vmul.f32 %v6761_v33, %v13743_v19  ;;  %v6015_v40 = vadd.f32 %v6014_v20, %v6013_v4  ;;  %v6111_v46 = vadd.f32 %v6110_v10, %v6109_v25  ;;  %v12017_v31 = vmul.f32 0.5, %v6557_v53  ;;  %v13763_v19 = vld [vmem:[#allocation30_spill] sm:$0xff]  ;;  %v12028_v53 = vld [vmem:[%s13447_s9 + $0x1] ss:$0 sm:$0xff]  ;;  %v13768_v10 = vld [vmem:[#allocation23_spill] sm:$0xff] }
 0x46a   : > { %v6561_v18 = vadd.f32 %v6497_v14, %v13763_v19  ;;  %v6041_v41 = vadd.f32 %v6040_v24, %v6039_v15  ;;  %v6030_v30 = vsel %vm774_vm6, %v5846_v61, 0.0  ;;  %v13764_v12 = vrot.slane %v11805_v57, 1  ;;  %v13769_v14 = vld [vmem:[#allocation12_spill] sm:$0xff] }
 0x46b   : > { %v6860_v38 = vrot.slane %v12010_v54, 1  ;;  %v6863_v27 = vrot.slane %v12010_v54, 4  ;;  %v6112_v3 = vrot.slane %v6111_v46, 1  ;;  %v6376_v17 = vrot.slane %v11805_v57, 4 }
 0x46c   : > { %v6496_v13 = vadd.f32 %v13764_v12, %v6015_v40  ;;  %v6625_v33 = vmul.f32 0.5, %v6561_v18  ;;  %v6042_v4 = vrot.slane %v6041_v41, 1  ;;  %v6031_v25 = vrot.slane %v6030_v30, 4 }
 0x46d   : > { %v12032_v26 = vmul.f32 %v12028_v53, %v13765_v36  ;;  %v12034_v15 = vmul.f32 %v6860_v38, %v6632_v29  ;;  %v12036_v20 = vmul.f32 %v6863_v27, %v6635_v60  ;;  %v6675_v24 = vsub.f32 0.0, %v13769_v14  ;;  %v5337_v27 = vld [vmem:[#allocation7 + $0xb8] sm:$0xff] }
 0x46e   : > { %v6560_v45 = vadd.f32 %v6496_v13, %v13768_v10  ;;  %v6113_v61 = vadd.f32 %v6112_v3, %v6111_v46  ;;  %v6043_v40 = vadd.f32 %v6042_v4, %v6041_v41  ;;  %v6032_v19 = vadd.f32 %v6031_v25, %v6030_v30  ;;  %v5545_v13 = vpop.permute.xlu0 %5544  ;;  %v5351_v3 = vld [vmem:[#allocation7 + $0x128] sm:$0xff] }
 0x46f   : > { %13766 = vst [vmem:[#allocation17_spill] sm:$0xff] %v12034_v15  ;;  %v5860_v18 = vmul.f32 %v5622_v1, %v5348_v37  ;;  %v13770_v12 = vrot.slane %v11905_v11, 2  ;;  %v6687_v36 = vmul.f32 1.442695, %v6675_v24  ;;  %v5850_v62 = vmul.f32 %v5552_v52, %v5338_v49  ;;  %v5643_v37 = vpop.permute.xlu2 %5642  ;;  %v13776_v10 = vld [vmem:[#allocation33_spill] sm:$0xff] }
 0x470   : > { %13767 = vst [vmem:[#allocation35_spill] sm:$0xff] %v12036_v20  ;;  %v6624_v44 = vmul.f32 0.5, %v6560_v45  ;;  %v6500_v50 = vadd.f32 %v6377_v35, %v6043_v40  ;;  %v6033_v29 = vrot.slane %v6032_v19, 2  ;;  %v6388_v60 = vrot.slane %v12032_v26, 2 }
 0x471   : > { %v12042_v43 = vmul.f32 %v13770_v12, %v6625_v33  ;;  %v6128_v38 = vsel %vm774_vm6, %v5860_v18, 0.0  ;;  %v13772_v46 = vrot.slane %v11905_v11, 1  ;;  %8975 = vpow2.f32 %v6687_v36  ;;  %v5341_v36 = vld [vmem:[#allocation7 + $0xd8] sm:$0xff] }
 0x472   : > { %v6129_v1 = vrot.slane %v6128_v38, 4  ;;  %v6058_v30 = vsel %vm774_vm6, %v5850_v62, 0.0  ;;  %v13774_v35 = vrot.slane %v11919_v2, 7  ;;  %v6034_v4 = vadd.f32 %v6033_v29, %v6032_v19 }
 0x473   : > { %13771 = vst [vmem:[#allocation22_spill] sm:$0xff] %v12042_v43  ;;  %v12048_v41 = vmul.f32 %v13772_v46, %v6624_v44  ;;  %v6059_v25 = vrot.slane %v6058_v30, 4  ;;  %v6564_v45 = vadd.f32 %v6500_v50, %v13776_v10  ;;  %v5849_v24 = vmul.f32 %v5545_v13, %v5337_v27  ;;  %v5573_v46 = vpop.permute.xlu1 %5572 }
 0x474   : > { %v12054_v33 = vadd.f32 %v13774_v35, %v6113_v61  ;;  %v6130_v44 = vadd.f32 %v6129_v1, %v6128_v38  ;;  %v6035_v40 = vrot.slane %v6034_v4, 1  ;;  %v5863_v12 = vmul.f32 %v5643_v37, %v5351_v3 }
 0x475   : > { %13773 = vst [vmem:[#allocation38_spill] sm:$0xff] %v12048_v41  ;;  %v6060_v18 = vadd.f32 %v6059_v25, %v6058_v30  ;;  %v6051_v61 = vsel %vm774_vm6, %v5849_v24, 0.0  ;;  %v12063_v27 = vmul.f32 0.5, %v6564_v45  ;;  %v5853_v30 = vmul.f32 %v5573_v46, %v5341_v36 }
 0x476   : > { %13775 = vst [vmem:[#allocation30_spill] sm:$0xff] %v12054_v33  ;;  %v6131_v20 = vrot.slane %v6130_v44, 2  ;;  %v6036_v29 = vadd.f32 %v6035_v40, %v6034_v4  ;;  %v6052_v49 = vrot.slane %v6051_v61, 4  ;;  %v6149_v50 = vsel %vm774_vm6, %v5863_v12, 0.0  ;;  %v13777_v40 = vld [vmem:[#allocation25_spill] sm:$0xff]  ;;  %v5566_v36 = vpop.permute.xlu0 %5565 }
 0x477   : > { %v6061_v35 = vrot.slane %v6060_v18, 2  ;;  %v8976_v38 = vpop.eup %8975  ;;  %v6150_v1 = vrot.slane %v6149_v50, 4  ;;  %v6079_v4 = vsel %vm774_vm6, %v5853_v30, 0.0  ;;  %vm7088_vm13 = vcmask 1041409  }
 0x478   : > { %v6132_v13 = vadd.f32 %v6131_v20, %v6130_v44  ;;  %v6499_v3 = vadd.f32 %v6376_v17, %v6036_v29  ;;  %v12065_v37 = vadd.f32 1.0, %v8976_v38  ;;  %v6053_v10 = vadd.f32 %v6052_v49, %v6051_v61  ;;  %v5340_v49 = vld [vmem:[#allocation7 + $0xd0] sm:$0xff] }
 0x479   : > { %v6062_v25 = vadd.f32 %v6061_v35, %v6060_v18  ;;  %v6151_v24 = vadd.f32 %v6150_v1, %v6149_v50  ;;  %v6080_v61 = vrot.slane %v6079_v4, 4  ;;  %v5852_v20 = vmul.f32 %v5566_v36, %v5340_v49 }
 0x47a   : > { %v6133_v52 = vrot.slane %v6132_v13, 1  ;;  %v6563_v19 = vadd.f32 %v6499_v3, %v13777_v40  ;;  %8977 = vrcp.f32 %v12065_v37  ;;  %v6772_v45 = vand.u32 2147483647, %v12065_v37 }
 0x47b   : > { %v6774_v17 = vand.u32 2147483648, %v12065_v37  ;;  %v6063_v12 = vrot.slane %v6062_v25, 1  ;;  %v6054_v18 = vrot.slane %v6053_v10, 2  ;;  %v6152_v46 = vrot.slane %v6151_v24, 2  ;;  %v5594_v16 = vpop.permute.xlu1 %5593 }
 0x47c   : > { %v6134_v44 = vadd.f32 %v6133_v52, %v6132_v13  ;;  %v6627_v50 = vmul.f32 0.5, %v6563_v19  ;;  %vm6768_vm3 = vweird.f32 %v12065_v37  ;;  %v6081_v40 = vadd.f32 %v6080_v61, %v6079_v4 }
 0x47d   : > { %v6064_v1 = vadd.f32 %v6063_v12, %v6062_v25  ;;  %v6055_v30 = vadd.f32 %v6054_v18, %v6053_v10  ;;  %v6153_v3 = vadd.f32 %v6152_v46, %v6151_v24  ;;  %vm12077_vm8 = vcmp.eq.f32.partialorder %v6772_v45, 8.507059e+37  ;;  %v13780_v10 = vld [vmem:[#allocation14_spill] sm:$0xff]  ;;  %v13783_v12 = vld [vmem:[#allocation36_spill] sm:$0xff] }
 0x47e   : > { %v6513_v38 = vadd.f32 %v6388_v60, %v6134_v44  ;;  %v6775_v13 = vor.u32 1.1754944e-38, %v6774_v17  ;;  %v6082_v60 = vrot.slane %v6081_v40, 2  ;;  %v6072_v25 = vsel %vm774_vm6, %v5852_v20, 0.0  ;;  %v13784_v18 = vld [vmem:[#allocation20_spill] sm:$0xff]  ;;  %v5727_v20 = vpop.permute.xlu2 %5726 }
 0x47f   : > { %v6503_v29 = vadd.f32 %v11919_v2, %v6064_v1  ;;  %v6056_v15 = vrot.slane %v6055_v30, 1  ;;  %v6154_v19 = vrot.slane %v6153_v3, 1  ;;  %v6677_v44 = vsub.f32 0.0, %v13780_v10 }
 0x480   : > { %v6577_v62 = vadd.f32 %v6513_v38, %v11551_v58  ;;  %v8978_v35 = vpop.eup %8977  ;;  %v13781_v24 = vrot.slane %v11905_v11, 4  ;;  %v12093_v58 = vmul.f32 %v12028_v53, %v13784_v18  ;;  %v6083_v46 = vadd.f32 %v6082_v60, %v6081_v40  ;;  %v5363_v38 = vld [vmem:[#allocation7 + $0x188] sm:$0xff] }
 0x481   : > { %v6764_v45 = vmul.f32 %v8978_v35, %v12065_v37  ;;  %v6567_v17 = vadd.f32 %v6503_v29, %v13783_v12  ;;  %v6057_v49 = vadd.f32 %v6056_v15, %v6055_v30  ;;  %v6155_v36 = vadd.f32 %v6154_v19, %v6153_v3  ;;  %v5344_v12 = vld [vmem:[#allocation7 + $0xf0] sm:$0xff] }
 0x482   : > { %v12087_v4 = vmul.f32 %v13781_v24, %v6627_v50  ;;  %v6073_v61 = vrot.slane %v6072_v25, 4  ;;  %vm6769_vm9 = vweird.f32 %v8978_v35  ;;  %v6691_v9 = vmul.f32 1.442695, %v6677_v44  ;;  %v5343_v44 = vld [vmem:[#allocation7 + $0xe8] sm:$0xff] }
 0x483   : > { %v6765_v1 = vsub.f32 1.0, %v6764_v45  ;;  %v6631_v33 = vmul.f32 0.5, %v6567_v17  ;;  %v6641_v50 = vmul.f32 0.5, %v6577_v62  ;;  %v13785_v24 = vrot.slane %v12032_v26, 5  ;;  %vm12100_vm10 = vmor %vm6768_vm3, %vm6769_vm9  ;;  %v5587_v45 = vpop.permute.xlu0 %5586 }
 0x484   : > { %13782 = vst [vmem:[#allocation18_spill] sm:$0xff] %v12087_v4  ;;  %v6084_v47 = vrot.slane %v6083_v46, 1  ;;  %v6074_v29 = vadd.f32 %v6073_v61, %v6072_v25  ;;  %v6401_v15 = vrot.slane %v12093_v58, 1  ;;  %8979 = vpow2.f32 %v6691_v9 }
 0x485   : > { %v6516_v5 = vadd.f32 %v13785_v24, %v6155_v36  ;;  %v6766_v18 = vmul.f32 %v8978_v35, %v6765_v1  ;;  %v5875_v30 = vmul.f32 %v5727_v20, %v5363_v38  ;;  %v13788_v62 = vrot.slane %v11805_v57, 7 }
 0x486   : > { %v6085_v60 = vadd.f32 %v6084_v47, %v6083_v46  ;;  %v6075_v25 = vrot.slane %v6074_v29, 2  ;;  %v12110_v9 = vmul.f32 %v12010_v54, %v6631_v33  ;;  %v5856_v36 = vmul.f32 %v5594_v16, %v5344_v12  ;;  %v13791_v46 = vld [vmem:[#allocation24_spill] sm:$0xff]  ;;  %v13792_v16 = vld [vmem:[#allocation39_spill] sm:$0xff] }
 0x487   : > { %v12106_v40 = vadd.f32 %v13788_v62, %v6057_v49  ;;  %v6580_v19 = vadd.f32 %v6516_v5, %v11574_v0  ;;  %v6767_v17 = vadd.f32 %v8978_v35, %v6766_v18  ;;  %v6233_v37 = vsel %vm774_vm6, %v5875_v30, 0.0 }
 0x488   : > { %13789 = vst [vmem:[#allocation23_spill] sm:$0xff] %v12110_v9  ;;  %v13790_v61 = vrot.slane %v11919_v2, 3  ;;  %v6076_v20 = vadd.f32 %v6075_v25, %v6074_v29  ;;  %v6234_v57 = vrot.slane %v6233_v37, 4  ;;  %v6385_v49 = vrot.slane %v11919_v2, 6 }
 0x489   : > { %v6771_v0 = vsel %vm12100_vm10, %v8978_v35, %v6767_v17  ;;  %v6100_v47 = vsel %vm774_vm6, %v5856_v36, 0.0  ;;  %v5855_v5 = vmul.f32 %v5587_v45, %v5343_v44  ;;  %v6550_v33 = vadd.f32 %v11764_v63, %v13791_v46 }
 0x48a   : > { %v6506_v38 = vadd.f32 %v13790_v61, %v6085_v60  ;;  %v6776_v1 = vsel %vm12077_vm8, %v6775_v13, %v6771_v0  ;;  %v6077_v12 = vrot.slane %v6076_v20, 1  ;;  %v6235_v18 = vadd.f32 %v6234_v57, %v6233_v37  ;;  %v8980_v29 = vpop.eup %8979 }
 0x48b   : > { %v12125_v30 = vmul.f32 %v6776_v1, %v13769_v14  ;;  %v6101_v62 = vrot.slane %v6100_v47, 4  ;;  %v6384_v35 = vrot.slane %v11919_v2, 5  ;;  %v6093_v3 = vsel %vm774_vm6, %v5855_v5, 0.0 }
 0x48c   : > { %v6570_v24 = vadd.f32 %v6506_v38, %v13792_v16  ;;  %v12129_v60 = vmul.f32 0.5, %v6580_v19  ;;  %v6078_v25 = vadd.f32 %v6077_v12, %v6076_v20  ;;  %v6701_v63 = vadd.f32 1.0, %v8980_v29  ;;  %v13794_v20 = vld [vmem:[#allocation28_spill] sm:$0xff] }
 0x48d   : > { %v6236_v44 = vrot.slane %v6235_v18, 2  ;;  %v6868_v52 = vrot.slane %v12125_v30, 2  ;;  %v6102_v45 = vadd.f32 %v6101_v62, %v6100_v47  ;;  %v6094_v17 = vrot.slane %v6093_v3, 4 }
 0x48e   : > { %v6634_v13 = vmul.f32 0.5, %v6570_v24  ;;  %v13793_v37 = vrot.slane %v11919_v2, 2  ;;  %8981 = vrcp.f32 %v6701_v63  ;;  %v6614_v14 = vmul.f32 0.5, %v6550_v33 }
 0x48f   : > { %v6843_v61 = vrot.slane %v11726_v55, 5  ;;  %v12135_v38 = vmul.f32 %v6868_v52, %v6641_v50  ;;  %v6802_v57 = vand.u32 2147483647, %v6701_v63  ;;  %v6804_v19 = vand.u32 2147483648, %v6701_v63 }
 0x490   : > { %v6505_v36 = vadd.f32 %v13793_v37, %v6078_v25  ;;  %v6237_v0 = vadd.f32 %v6236_v44, %v6235_v18  ;;  %v6103_v46 = vrot.slane %v6102_v45, 2  ;;  %v6095_v1 = vadd.f32 %v6094_v17, %v6093_v3 }
 0x491   : > { %v6844_v16 = vrot.slane %v11726_v55, 6  ;;  %v13795_v24 = vrot.slane %v12010_v54, 3  ;;  %vm6798_vm11 = vweird.f32 %v6701_v63  ;;  %v6845_v25 = vrot.slane %v11726_v55, 7 }
 0x492   : > { %v6569_v5 = vadd.f32 %v6505_v36, %v13794_v20  ;;  %v6238_v33 = vrot.slane %v6237_v0, 1  ;;  %v6104_v50 = vadd.f32 %v6103_v46, %v6102_v45  ;;  %v6096_v62 = vrot.slane %v6095_v1, 2 }
 0x493   : > { %v12142_v12 = vmul.f32 %v13795_v24, %v6634_v13  ;;  %vm12145_vm12 = vcmp.eq.f32.partialorder %v6802_v57, 8.507059e+37  ;;  %v6805_v3 = vor.u32 1.1754944e-38, %v6804_v19  ;;  %v12150_v13 = vmul.f32 %v6843_v61, %v11899_v8 }
 0x494   : > { %v6633_v29 = vmul.f32 0.5, %v6569_v5  ;;  %v6239_v44 = vadd.f32 %v6238_v33, %v6237_v0  ;;  %v8982_v52 = vpop.eup %8981  ;;  %v6105_v17 = vrot.slane %v6104_v50, 1  ;;  %v6097_v37 = vadd.f32 %v6096_v62, %v6095_v1  ;;  %v5734_v33 = vpop.permute.xlu2 %5733 }
 0x495   : > { %13796 = vst [vmem:[#allocation12_spill] sm:$0xff] %v12142_v12  ;;  %v12153_v36 = vmul.f32 %v6844_v16, %v11889_v48  ;;  %v13801_v45 = vrot.slane %v12010_v54, 2  ;;  %v6794_v55 = vmul.f32 %v8982_v52, %v6701_v63  ;;  %v12161_v19 = vmul.f32 %v6845_v25, %v6614_v14 }
 0x496   : > { %13799 = vst [vmem:[#allocation33_spill] sm:$0xff] %v12150_v13  ;;  %v6528_v57 = vadd.f32 %v6401_v15, %v6239_v44  ;;  %v6106_v0 = vadd.f32 %v6105_v17, %v6104_v50  ;;  %v6098_v5 = vrot.slane %v6097_v37, 1  ;;  %v13804_v46 = vrot.slane %v11746_v42, 7  ;;  %v13808_v44 = vld [vmem:[#allocation42_spill] sm:$0xff] }
 0x497   : > { %13800 = vst [vmem:[#allocation25_spill] sm:$0xff] %v12153_v36  ;;  %v12157_v20 = vmul.f32 %v13801_v45, %v6633_v29  ;;  %vm7091_vm14 = vcmask 1042434   ;;  %v6795_v48 = vsub.f32 1.0, %v6794_v55  ;;  %vm6799_vm15 = vweird.f32 %v8982_v52  ;;  %v5615_v45 = vpop.permute.xlu1 %5614 }
 0x498   : > { %13803 = vst [vmem:[#allocation36_spill] sm:$0xff] %v12161_v19  ;;  %v7089_v8 = vsel %vm7088_vm13, %v13804_v46, %v11840_v21  ;;  %v13805_v61 = vrot.slane %v11861_v34, 6  ;;  %v7093_v16 = vrot.slane %v11853_v28, 5  ;;  %v6509_v15 = vadd.f32 %v6385_v49, %v6106_v0  ;;  %vm12177_vm4 = vmor %vm6798_vm11, %vm6799_vm15  ;;  %v5608_v0 = vpop.permute.xlu0 %5607 }
 0x499   : > { %13802 = vst [vmem:[#allocation14_spill] sm:$0xff] %v12157_v20  ;;  %v6099_v14 = vadd.f32 %v6098_v5, %v6097_v37  ;;  %vm7094_vm0 = vcmask 1043459   ;;  %v7096_v24 = vrot.slane %v11758_v22, 4  ;;  %v6796_v29 = vmul.f32 %v8982_v52, %v6795_v48  ;;  %v13809_v5 = vld [vmem:[#allocation16_spill] sm:$0xff] }
 0x49a   : > { %v7092_v1 = vsel %vm7091_vm14, %v13805_v61, %v7089_v8  ;;  %v6592_v50 = vadd.f32 %v6528_v57, %v11663_v7  ;;  %vm7097_vm1 = vcmask 1044484   ;;  %v6573_v17 = vadd.f32 %v6509_v15, %v13808_v44  ;;  %v5364_v57 = vld [vmem:[#allocation7 + $0x190] sm:$0xff]  ;;  %v5346_v15 = vld [vmem:[#allocation7 + $0x100] sm:$0xff] }
 0x49b   : > { %v7095_v62 = vsel %vm7094_vm0, %v7093_v16, %v7092_v1  ;;  %v6508_v2 = vadd.f32 %v6384_v35, %v6099_v14  ;;  %v7099_v37 = vrot.slane %v12150_v13, 3  ;;  %v6797_v55 = vadd.f32 %v8982_v52, %v6796_v29  ;;  %v5347_v16 = vld [vmem:[#allocation7 + $0x108] sm:$0xff] }
 0x49c   : > { %v7098_v49 = vsel %vm7097_vm1, %v7096_v24, %v7095_v62  ;;  %vm7100_vm5 = vcmask 1045509   ;;  %v7102_v7 = vrot.slane %v12153_v36, 2  ;;  %vm7103_vm7 = vcmask 1046534  }
 0x49d   : > { %v6572_v46 = vadd.f32 %v6508_v2, %v13809_v5  ;;  %v7101_v8 = vsel %vm7100_vm5, %v7099_v37, %v7098_v49  ;;  %v7105_v35 = vrot.slane %v12161_v19, 1  ;;  %v6801_v48 = vsel %vm12177_vm4, %v8982_v52, %v6797_v55  ;;  %v5357_v55 = vld [vmem:[#allocation7 + $0x158] sm:$0xff] }
 0x49e   : > { %v6656_v61 = vmul.f32 0.5, %v6592_v50  ;;  %v7104_v1 = vsel %vm7103_vm7, %v7102_v7, %v7101_v8  ;;  %vm7106_vm2 = vcmask 1047559   ;;  %v6806_v14 = vsel %vm12145_vm12, %v6805_v3, %v6801_v48  ;;  %v13810_v3 = vld [vmem:[#allocation19_spill] sm:$0xff]  ;;  %v13811_v7 = vld [vmem:[#allocation13_spill] sm:$0xff] }
 0x49f   : > { %v12194_v24 = vmul.f32 0.5, %v6573_v17  ;;  %v7107_v29 = vsel %vm7106_vm2, %v7105_v35, %v7104_v1  ;;  %v5876_v62 = vmul.f32 %v5734_v33, %v5364_v57  ;;  %v12198_v44 = vmul.f32 %v6806_v14, %v13780_v10 }
 0x4a0   : > { %v12200_v2 = vmul.f32 0.5, %v6572_v46  ;;  %v7214_v52 = vsel %vm774_vm6, %v7107_v29, 0.0  ;;  %v6402_v50 = vrot.slane %v12093_v58, 2  ;;  %v5859_v49 = vmul.f32 %v5615_v45, %v5347_v16  ;;  %v5629_v5 = vpop.permute.xlu0 %5628 }
 0x4a1   : > { %7215 = vadd.xlane.f32.xlu2 %v7214_v52  ;;  %v6240_v25 = vsel %vm774_vm6, %v5876_v62, 0.0  ;;  %v5858_v18 = vmul.f32 %v5608_v0, %v5346_v15  ;;  %v12207_v17 = vmul.f32 %v12028_v53, %v13810_v3  ;;  %v6881_v33 = vrot.slane %v12198_v44, 1  ;;  %v5685_v0 = vpop.permute.xlu2 %5684  ;;  %v5350_v62 = vld [vmem:[#allocation7 + $0x120] sm:$0xff]  ;;  %v5636_v52 = vpop.permute.xlu1 %5635 }
 0x4a2   : > { %v6241_v37 = vrot.slane %v6240_v25, 4  ;;  %v6387_v10 = vrot.slane %v12032_v26, 1  ;;  %v6676_v57 = vsub.f32 0.0, %v13811_v7  ;;  %v6121_v8 = vsel %vm774_vm6, %v5859_v49, 0.0 }
 0x4a3   : > { %v6114_v45 = vsel %vm774_vm6, %v5858_v18, 0.0  ;;  %v6122_v48 = vrot.slane %v6121_v8, 4  ;;  %v12217_v15 = vmul.f32 %v6881_v33, %v6656_v61  ;;  %v5869_v29 = vmul.f32 %v5685_v0, %v5357_v55  ;;  %v5349_v18 = vld [vmem:[#allocation7 + $0x118] sm:$0xff] }
 0x4a4   : > { %v6242_v35 = vadd.f32 %v6241_v37, %v6240_v25  ;;  %v6115_v1 = vrot.slane %v6114_v45, 4  ;;  %v6689_v14 = vmul.f32 1.442695, %v6676_v57  ;;  %v5862_v61 = vmul.f32 %v5636_v52, %v5350_v62 }
 0x4a5   : > { %v6123_v63 = vadd.f32 %v6122_v48, %v6121_v8  ;;  %v6191_v25 = vsel %vm774_vm6, %v5869_v29, 0.0  ;;  %v5861_v8 = vmul.f32 %v5629_v5, %v5349_v18  ;;  %v6859_v37 = vrot.slane %v11905_v11, 7 }
 0x4a6   : > { %v6243_v47 = vrot.slane %v6242_v35, 2  ;;  %v6116_v46 = vadd.f32 %v6115_v1, %v6114_v45  ;;  %8983 = vpow2.f32 %v6689_v14  ;;  %v6192_v0 = vrot.slane %v6191_v25, 4  ;;  %v13812_v45 = vld [vmem:[#allocation26_spill] sm:$0xff] }
 0x4a7   : > { %v6124_v57 = vrot.slane %v6123_v63, 2  ;;  %v6142_v3 = vsel %vm774_vm6, %v5862_v61, 0.0  ;;  %v6566_v48 = vadd.f32 %v12106_v40, %v13812_v45  ;;  %v6857_v40 = vrot.slane %v11905_v11, 5 }
 0x4a8   : > { %v6244_v33 = vadd.f32 %v6243_v47, %v6242_v35  ;;  %v6117_v55 = vrot.slane %v6116_v46, 2  ;;  %v6193_v19 = vadd.f32 %v6192_v0, %v6191_v25  ;;  %v6143_v29 = vrot.slane %v6142_v3, 4 }
 0x4a9   : > { %v6125_v49 = vadd.f32 %v6124_v57, %v6123_v63  ;;  %v6135_v35 = vsel %vm774_vm6, %v5861_v8, 0.0  ;;  %v6630_v13 = vmul.f32 0.5, %v6566_v48  ;;  %v6858_v47 = vrot.slane %v11905_v11, 6 }
 0x4aa   : > { %v6245_v1 = vrot.slane %v6244_v33, 1  ;;  %v6118_v14 = vadd.f32 %v6117_v55, %v6116_v46  ;;  %v6194_v36 = vrot.slane %v6193_v19, 2  ;;  %v6144_v5 = vadd.f32 %v6143_v29, %v6142_v3 }
 0x4ab   : > { %v6126_v52 = vrot.slane %v6125_v49, 1  ;;  %v6136_v18 = vrot.slane %v6135_v35, 4  ;;  %v13841_v11 = vrot.slane %v12125_v30, 3  ;;  %v6407_v28 = vrot.slane %v12093_v58, 7 }
 0x4ac   : > { %v6246_v62 = vadd.f32 %v6245_v1, %v6244_v33  ;;  %v6119_v16 = vrot.slane %v6118_v14, 1  ;;  %v8984_v61 = vpop.eup %8983  ;;  %v6195_v55 = vadd.f32 %v6194_v36, %v6193_v19  ;;  %v6145_v0 = vrot.slane %v6144_v5, 2 }
 0x4ad   : > { %v6127_v46 = vadd.f32 %v6126_v52, %v6125_v49  ;;  %v6700_v57 = vadd.f32 1.0, %v8984_v61  ;;  %v6137_v45 = vadd.f32 %v6136_v18, %v6135_v35  ;;  %v13813_v49 = vld [vmem:[#allocation44_spill] sm:$0xff] }
 0x4ae   : > { %v6529_v63 = vadd.f32 %v6402_v50, %v6246_v62  ;;  %v6120_v25 = vadd.f32 %v6119_v16, %v6118_v14  ;;  %v6196_v48 = vrot.slane %v6195_v55, 1  ;;  %v13814_v14 = vld [vmem:[#allocation31_spill] sm:$0xff]  ;;  %v6146_v19 = vadd.f32 %v6145_v0, %v6144_v5 }
 0x4af   : > { %v6512_v8 = vadd.f32 %v6387_v10, %v6127_v46  ;;  %8985 = vrcp.f32 %v6700_v57  ;;  %v6787_v3 = vand.u32 2147483647, %v6700_v57  ;;  %v6789_v29 = vand.u32 2147483648, %v6700_v57 }
 0x4b0   : > { %v6593_v33 = vadd.f32 %v6529_v63, %v11589_v39  ;;  %v6511_v1 = vadd.f32 %v12032_v26, %v6120_v25  ;;  %vm6783_vm3 = vweird.f32 %v6700_v57  ;;  %v6197_v35 = vadd.f32 %v6196_v48, %v6195_v55 }
 0x4b1   : > { %v6576_v16 = vadd.f32 %v6512_v8, %v13813_v49  ;;  %v6138_v62 = vrot.slane %v6137_v45, 2  ;;  %v12238_v39 = vmul.f32 %v6857_v40, %v12063_v27  ;;  %v13816_v10 = vrot.slane %v12198_v44, 2 }
 0x4b2   : > { %v6657_v50 = vmul.f32 0.5, %v6593_v33  ;;  %v6575_v36 = vadd.f32 %v6511_v1, %v13814_v14  ;;  %v6147_v63 = vrot.slane %v6146_v19, 1  ;;  %vm12244_vm8 = vcmp.eq.f32.partialorder %v6787_v3, 8.507059e+37 }
 0x4b3   : > { %13815 = vst [vmem:[#allocation20_spill] sm:$0xff] %v12238_v39  ;;  %v6640_v61 = vmul.f32 0.5, %v6576_v16  ;;  %v6790_v46 = vor.u32 1.1754944e-38, %v6789_v29  ;;  %v13819_v5 = vrot.slane %v12207_v17, 3  ;;  %v6139_v55 = vadd.f32 %v6138_v62, %v6137_v45  ;;  %v13823_v45 = vld [vmem:[#allocation50_spill] sm:$0xff] }
 0x4b4   : > { %v12242_v52 = vmul.f32 %v13816_v10, %v6657_v50  ;;  %v6639_v18 = vmul.f32 0.5, %v6575_v36  ;;  %v12251_v0 = vmul.f32 %v6858_v47, %v11957_v51  ;;  %v13821_v33 = vrot.slane %v12125_v30, 1  ;;  %v13827_v10 = vld [vmem:[#allocation46_spill] sm:$0xff] }
 0x4b5   : > { %v6522_v25 = vadd.f32 %v13819_v5, %v6197_v35  ;;  %v8986_v27 = vpop.eup %8985  ;;  %v6148_v1 = vadd.f32 %v6147_v63, %v6146_v19  ;;  %v12258_v3 = vmul.f32 %v6859_v37, %v6630_v13  ;;  %v6140_v50 = vrot.slane %v6139_v55, 1 }
 0x4b6   : > { %13820 = vst [vmem:[#allocation24_spill] sm:$0xff] %v12251_v0  ;;  %v12256_v8 = vmul.f32 %v13821_v33, %v6640_v61  ;;  %v12261_v48 = vmul.f32 %v12125_v30, %v6639_v18  ;;  %v6779_v29 = vmul.f32 %v8986_v27, %v6700_v57  ;;  %vm6784_vm9 = vweird.f32 %v8986_v27 }
 0x4b7   : > { %13822 = vst [vmem:[#allocation39_spill] sm:$0xff] %v12258_v3  ;;  %v6586_v49 = vadd.f32 %v6522_v25, %v13823_v45  ;;  %v13824_v51 = vrot.slane %v12032_v26, 4  ;;  %v13825_v16 = vrot.slane %v12048_v41, 7  ;;  %v7128_v36 = vrot.slane %v12087_v4, 4  ;;  %vm12287_vm10 = vmor %vm6783_vm3, %vm6784_vm9 }
 0x4b8   : > { %v6780_v37 = vsub.f32 1.0, %v6779_v29  ;;  %v6141_v19 = vadd.f32 %v6140_v50, %v6139_v55  ;;  %v13826_v35 = vrot.slane %v12042_v43, 6  ;;  %v13828_v18 = vrot.slane %v11928_v59, 5  ;;  %v5372_v43 = vld [vmem:[#allocation7 + $0x1d0] sm:$0xff] }
 0x4b9   : > { %v6515_v47 = vadd.f32 %v13824_v51, %v6148_v1  ;;  %v7123_v14 = vsel %vm7088_vm13, %v13825_v16, %v11925_v6  ;;  %v7130_v5 = vrot.slane %v12238_v39, 3  ;;  %v7132_v25 = vrot.slane %v12251_v0, 2  ;;  %v13832_v16 = vld [vmem:[#allocation29_spill] sm:$0xff]  ;;  %v13870_v6 = vld [vmem:[#allocation51_spill] sm:$0xff] }
 0x4ba   : > { %v7125_v62 = vsel %vm7091_vm14, %v13826_v35, %v7123_v14  ;;  %v6781_v33 = vmul.f32 %v8986_v27, %v6780_v37  ;;  %v13829_v1 = vrot.slane %v12032_v26, 3  ;;  %v7134_v29 = vrot.slane %v12258_v3, 1 }
 0x4bb   : > { %v6579_v61 = vadd.f32 %v6515_v47, %v13827_v10  ;;  %v7127_v63 = vsel %vm7094_vm0, %v13828_v18, %v7125_v62  ;;  %v6558_v14 = vadd.f32 %v11996_v32, %v13832_v16  ;;  %v6850_v37 = vrot.slane %v11829_v23, 5 }
 0x4bc   : > { %v6514_v45 = vadd.f32 %v13829_v1, %v6141_v19  ;;  %v7129_v55 = vsel %vm7097_vm1, %v7128_v36, %v7127_v63  ;;  %v6782_v35 = vadd.f32 %v8986_v27, %v6781_v33  ;;  %v13833_v19 = vld [vmem:[#allocation34_spill] sm:$0xff]  ;;  %v6851_v10 = vrot.slane %v11829_v23, 6 }
 0x4bd   : > { %v6643_v51 = vmul.f32 0.5, %v6579_v61  ;;  %v7131_v47 = vsel %vm7100_vm5, %v7130_v5, %v7129_v55  ;;  %v6650_v57 = vmul.f32 0.5, %v6586_v49  ;;  %v6622_v63 = vmul.f32 0.5, %v6558_v14  ;;  %v13837_v55 = vld [vmem:[#allocation70_spill] sm:$0xff]  ;;  %v5370_v14 = vld [vmem:[#allocation7 + $0x1c0] sm:$0xff] }
 0x4be   : > { %v6578_v62 = vadd.f32 %v6514_v45, %v13833_v19  ;;  %v7133_v36 = vsel %vm7103_vm7, %v7132_v25, %v7131_v47  ;;  %v6852_v61 = vrot.slane %v11829_v23, 7  ;;  %v6786_v5 = vsel %vm12287_vm10, %v8986_v27, %v6782_v35  ;;  %v13838_v23 = vld [vmem:[#allocation69_spill] sm:$0xff] }
 0x4bf   : > { %v7135_v18 = vsel %vm7106_vm2, %v7134_v29, %v7133_v36  ;;  %v12304_v33 = vmul.f32 %v6850_v37, %v11849_v56  ;;  %v6791_v25 = vsel %vm12244_vm8, %v6790_v46, %v6786_v5  ;;  %v12309_v49 = vmul.f32 %v6851_v10, %v12017_v31  ;;  %v13842_v31 = vld [vmem:[#allocation27_spill] sm:$0xff]  ;;  %v5776_v37 = vpop.permute.xlu2 %5775  ;;  %v13843_v35 = vld [vmem:[#allocation65_spill] sm:$0xff]  ;;  %v13845_v36 = vld [vmem:[#allocation32_spill] sm:$0xff] }
 0x4c0   : > { %v6642_v1 = vmul.f32 0.5, %v6578_v62  ;;  %v7220_v32 = vsel %vm774_vm6, %v7135_v18, 0.0  ;;  %v12311_v45 = vmul.f32 %v6852_v61, %v6622_v63  ;;  %v13839_v29 = vrot.slane %v13838_v23, 7  ;;  %v13846_v5 = vld [vmem:[#allocation15_spill] sm:$0xff] }
 0x4c1   : > { %13834 = vst [vmem:[#allocation28_spill] sm:$0xff] %v12304_v33  ;;  %7221 = vadd.xlane.f32.xlu1 %v7220_v32  ;;  %v12318_v50 = vmul.f32 %v6791_v25, %v13811_v7  ;;  %v13840_v56 = vrot.slane %v12125_v30, 4  ;;  %v7112_v16 = vrot.slane %v13842_v31, 5  ;;  %v13844_v19 = vrot.slane %v13843_v35, 6  ;;  %v5355_v32 = vld [vmem:[#allocation7 + $0x148] sm:$0xff]  ;;  %v5671_v25 = vpop.permute.xlu1 %5670  ;;  %v5376_v35 = vld [vmem:[#allocation7 + $0x1f0] sm:$0xff] }
 0x4c2   : > { %13835 = vst [vmem:[#allocation42_spill] sm:$0xff] %v12309_v49  ;;  %v7109_v27 = vsel %vm7088_vm13, %v13839_v29, %v13837_v55  ;;  %v12326_v46 = vmul.f32 %v13841_v11, %v6642_v1  ;;  %v7114_v10 = vrot.slane %v13845_v36, 4  ;;  %v7116_v7 = vrot.slane %v12304_v33, 3  ;;  %v5352_v29 = vld [vmem:[#allocation7 + $0x130] sm:$0xff]  ;;  %v13847_v11 = vld [vmem:[#allocation21_spill] sm:$0xff] }
 0x4c3   : > { %13836 = vst [vmem:[#allocation16_spill] sm:$0xff] %v12311_v45  ;;  %v12322_v47 = vmul.f32 %v13840_v56, %v6643_v51  ;;  %v7111_v62 = vsel %vm7091_vm14, %v13844_v19, %v7109_v27  ;;  %v7118_v18 = vrot.slane %v12309_v49, 2  ;;  %v6876_v51 = vrot.slane %v12318_v50, 3  ;;  %v5650_v56 = vpop.permute.xlu0 %5649 }
 0x4c4   : > { %v7113_v63 = vsel %vm7094_vm0, %v7112_v16, %v7111_v62  ;;  %v7120_v61 = vrot.slane %v12311_v45, 1  ;;  %v6678_v1 = vsub.f32 0.0, %v13846_v5  ;;  %v12342_v19 = vmul.f32 %v12028_v53, %v13847_v11 }
 0x4c5   : > { %v7115_v27 = vsel %vm7097_vm1, %v7114_v10, %v7113_v63  ;;  %v5882_v40 = vmul.f32 %v5776_v37, %v5370_v14  ;;  %v5867_v0 = vmul.f32 %v5671_v25, %v5355_v32  ;;  %v12347_v39 = vmul.f32 %v6876_v51, %v6650_v57  ;;  %v13849_v32 = vld [vmem:[#allocation30_spill] sm:$0xff] }
 0x4c6   : > { %v7117_v3 = vsel %vm7100_vm5, %v7116_v7, %v7115_v27  ;;  %v6693_v16 = vmul.f32 1.442695, %v6678_v1  ;;  %v5864_v10 = vmul.f32 %v5650_v56, %v5352_v29  ;;  %v13848_v27 = vld [vmem:[#allocation41_spill] sm:$0xff]  ;;  %v6866_v25 = vrot.slane %v12010_v54, 7 }
 0x4c7   : > { %v7119_v4 = vsel %vm7103_vm7, %v7118_v18, %v7117_v3  ;;  %v6282_v59 = vsel %vm774_vm6, %v5882_v40, 0.0  ;;  %v6177_v14 = vsel %vm774_vm6, %v5867_v0, 0.0  ;;  %v6574_v57 = vadd.f32 %v13849_v32, %v13848_v27  ;;  %v13850_v0 = vld [vmem:[#allocation17_spill] sm:$0xff] }
 0x4c8   : > { %v7121_v63 = vsel %vm7106_vm2, %v7120_v61, %v7119_v4  ;;  %8987 = vpow2.f32 %v6693_v16  ;;  %v6283_v53 = vrot.slane %v6282_v59, 4  ;;  %v6178_v7 = vrot.slane %v6177_v14, 4 }
 0x4c9   : > { %v7217_v37 = vsel %vm774_vm6, %v7121_v63, 0.0  ;;  %v6156_v1 = vsel %vm774_vm6, %v5864_v10, 0.0  ;;  %v6864_v40 = vrot.slane %v12010_v54, 5  ;;  %v6865_v18 = vrot.slane %v12010_v54, 6  ;;  %v5678_v63 = vpop.permute.xlu1 %5677 }
 0x4ca   : > { %7218 = vadd.xlane.f32.xlu0 %v7217_v37  ;;  %v6284_v51 = vadd.f32 %v6283_v53, %v6282_v59  ;;  %v6157_v3 = vrot.slane %v6156_v1, 4  ;;  %v6179_v4 = vadd.f32 %v6178_v7, %v6177_v14  ;;  %v6638_v61 = vmul.f32 0.5, %v6574_v57 }
 0x4cb   : > { %v13851_v29 = vrot.slane %v13850_v0, 7  ;;  %v12365_v10 = vmul.f32 %v6864_v40, %v12200_v2  ;;  %v12368_v59 = vmul.f32 %v6865_v18, %v12194_v24  ;;  %v13855_v14 = vrot.slane %v12157_v20, 6  ;;  %v5748_v40 = vpop.permute.xlu2 %5747  ;;  %v5783_v24 = vpop.permute.xlu0 %5782 }
 0x4cc   : > { %v6285_v11 = vrot.slane %v6284_v51, 2  ;;  %v6158_v16 = vadd.f32 %v6157_v3, %v6156_v1  ;;  %v6180_v53 = vrot.slane %v6179_v4, 2  ;;  %v12370_v37 = vmul.f32 %v6866_v25, %v6638_v61  ;;  %v13856_v1 = vld [vmem:[#allocation35_spill] sm:$0xff] }
 0x4cd   : > { %v7137_v56 = vsel %vm7088_vm13, %v13851_v29, %v12110_v9  ;;  %13852 = vst [vmem:[#allocation19_spill] sm:$0xff] %v12365_v10  ;;  %v7140_v7 = vrot.slane %v12142_v12, 5  ;;  %v7142_v3 = vrot.slane %v13856_v1, 4  ;;  %v7144_v2 = vrot.slane %v12365_v10, 3 }
 0x4ce   : > { %13853 = vst [vmem:[#allocation13_spill] sm:$0xff] %v12368_v59  ;;  %v7139_v54 = vsel %vm7091_vm14, %v13855_v14, %v7137_v56  ;;  %v8988_v27 = vpop.eup %8987  ;;  %v6286_v32 = vadd.f32 %v6285_v11, %v6284_v51  ;;  %v6159_v57 = vrot.slane %v6158_v16, 2  ;;  %v6181_v29 = vadd.f32 %v6180_v53, %v6179_v4 }
 0x4cf   : > { %13854 = vst [vmem:[#allocation26_spill] sm:$0xff] %v12370_v37  ;;  %v12378_v18 = vadd.f32 1.0, %v8988_v27  ;;  %v7141_v61 = vsel %vm7094_vm0, %v7140_v7, %v7139_v54  ;;  %v7146_v25 = vrot.slane %v12368_v59, 2  ;;  %v6392_v56 = vrot.slane %v12032_v26, 6  ;;  %v5366_v7 = vld [vmem:[#allocation7 + $0x1a0] sm:$0xff] }
 0x4d0   : > { %v6287_v62 = vrot.slane %v6286_v32, 1  ;;  %v6160_v14 = vadd.f32 %v6159_v57, %v6158_v16  ;;  %v7143_v51 = vsel %vm7097_vm1, %v7142_v3, %v7141_v61  ;;  %v7148_v27 = vrot.slane %v12370_v37, 1  ;;  %v5367_v57 = vld [vmem:[#allocation7 + $0x1a8] sm:$0xff] }
 0x4d1   : > { %8989 = vrcp.f32 %v12378_v18  ;;  %v6817_v11 = vand.u32 2147483647, %v12378_v18  ;;  %v6819_v13 = vand.u32 2147483648, %v12378_v18  ;;  %v6182_v4 = vrot.slane %v6181_v29, 1  ;;  %v5664_v12 = vpop.permute.xlu1 %5663 }
 0x4d2   : > { %v6288_v10 = vadd.f32 %v6287_v62, %v6286_v32  ;;  %v6161_v53 = vrot.slane %v6160_v14, 1  ;;  %v7145_v54 = vsel %vm7100_vm5, %v7144_v2, %v7143_v51  ;;  %vm6813_vm11 = vweird.f32 %v12378_v18  ;;  %v5356_v62 = vld [vmem:[#allocation7 + $0x150] sm:$0xff]  ;;  %v5371_v32 = vld [vmem:[#allocation7 + $0x1c8] sm:$0xff] }
 0x4d3   : > { %v12390_v59 = vor.u32 1.1754944e-38, %v6819_v13  ;;  %v7147_v16 = vsel %vm7103_vm7, %v7146_v25, %v7145_v54  ;;  %v6183_v61 = vadd.f32 %v6182_v4, %v6181_v29  ;;  %v5878_v20 = vmul.f32 %v5748_v40, %v5366_v7  ;;  %v13859_v54 = vld [vmem:[#allocation52_spill] sm:$0xff] }
 0x4d4   : > { %v6535_v3 = vadd.f32 %v12342_v19, %v6288_v10  ;;  %v6162_v1 = vadd.f32 %v6161_v53, %v6160_v14  ;;  %v7149_v37 = vsel %vm7106_vm2, %v7148_v27, %v7147_v16  ;;  %vm12399_vm12 = vcmp.eq.f32.partialorder %v6817_v11, 8.507059e+37  ;;  %v5790_v11 = vpop.permute.xlu0 %5789 }
 0x4d5   : > { %v7223_v2 = vsel %vm774_vm6, %v7149_v37, 0.0  ;;  %v13860_v29 = vrot.slane %v12207_v17, 1  ;;  %v6254_v37 = vsel %vm774_vm6, %v5878_v20, 0.0  ;;  %v5868_v16 = vmul.f32 %v5678_v63, %v5356_v62 }
 0x4d6   : > { %v6599_v10 = vadd.f32 %v6535_v3, %v13859_v54  ;;  %v6517_v27 = vadd.f32 %v6392_v56, %v6162_v1  ;;  %7224 = vadd.xlane.f32.xlu2 %v7223_v2  ;;  %v5883_v7 = vmul.f32 %v5783_v24, %v5371_v32  ;;  %v13861_v3 = vld [vmem:[#allocation40_spill] sm:$0xff]  ;;  %v13862_v1 = vld [vmem:[#allocation37_spill] sm:$0xff]  ;;  %v6255_v2 = vrot.slane %v6254_v37, 4 }
 0x4d7   : > { %v6520_v14 = vadd.f32 %v13860_v29, %v6183_v61  ;;  %v8990_v53 = vpop.eup %8989  ;;  %v5755_v61 = vpop.permute.xlu2 %5754  ;;  %v6184_v29 = vsel %vm774_vm6, %v5868_v16, 0.0  ;;  %v5354_v32 = vld [vmem:[#allocation7 + $0x140] sm:$0xff]  ;;  %v13863_v9 = vrot.slane %v12318_v50, 1  ;;  %v13889_v23 = vrot.slane %v12342_v19, 3 }
 0x4d8   : > { %v6809_v51 = vmul.f32 %v8990_v53, %v12378_v18  ;;  %vm6814_vm15 = vweird.f32 %v8990_v53  ;;  %v6663_v13 = vmul.f32 0.5, %v6599_v10  ;;  %v6581_v56 = vadd.f32 %v6517_v27, %v13862_v1 }
 0x4d9   : > { %v6584_v54 = vadd.f32 %v6520_v14, %v13861_v3  ;;  %v6289_v20 = vsel %vm774_vm6, %v5883_v7, 0.0  ;;  %v6185_v4 = vrot.slane %v6184_v29, 4  ;;  %v6256_v0 = vadd.f32 %v6255_v2, %v6254_v37  ;;  %v12421_v7 = vpop.permute.xlu1 %5740  ;;  %vm12426_vm4 = vmor %vm6813_vm11, %vm6814_vm15 }
 0x4da   : > { %v6810_v63 = vsub.f32 1.0, %v6809_v51  ;;  %v6290_v24 = vrot.slane %v6289_v20, 4  ;;  %v12414_v40 = vmul.f32 0.5, %v6581_v56  ;;  %v5879_v14 = vmul.f32 %v5755_v61, %v5367_v57  ;;  %v5359_v61 = vld [vmem:[#allocation7 + $0x168] sm:$0xff] }
 0x4db   : > { %v6648_v62 = vmul.f32 0.5, %v6584_v54  ;;  %v6186_v1 = vadd.f32 %v6185_v4, %v6184_v29  ;;  %v6257_v37 = vrot.slane %v6256_v0, 2  ;;  %v5866_v54 = vmul.f32 %v5664_v12, %v5354_v32 }
 0x4dc   : > { %v6811_v3 = vmul.f32 %v8990_v53, %v6810_v63  ;;  %v6291_v16 = vadd.f32 %v6290_v24, %v6289_v20  ;;  %v6261_v57 = vsel %vm774_vm6, %v5879_v14, 0.0  ;;  %v5884_v18 = vmul.f32 %v5790_v11, %v5372_v43  ;;  %v5720_v4 = vpop.permute.xlu0 %5719 }
 0x4dd   : > { %v12419_v27 = vmul.f32 %v13863_v9, %v6648_v62  ;;  %v6187_v56 = vrot.slane %v6186_v1, 2  ;;  %v6258_v29 = vadd.f32 %v6257_v37, %v6256_v0  ;;  %v6262_v20 = vrot.slane %v6261_v57, 4 }
 0x4de   : > { %v6812_v9 = vadd.f32 %v8990_v53, %v6811_v3  ;;  %v6292_v2 = vrot.slane %v6291_v16, 2  ;;  %v6170_v63 = vsel %vm774_vm6, %v5866_v54, 0.0  ;;  %v6296_v3 = vsel %vm774_vm6, %v5884_v18, 0.0 }
 0x4df   : > { %v6188_v24 = vadd.f32 %v6187_v56, %v6186_v1  ;;  %v6171_v41 = vrot.slane %v6170_v63, 4  ;;  %v6259_v32 = vrot.slane %v6258_v29, 1  ;;  %v6263_v14 = vadd.f32 %v6262_v20, %v6261_v57 }
 0x4e0   : > { %v6816_v62 = vsel %vm12426_vm4, %v8990_v53, %v6812_v9  ;;  %v6293_v10 = vadd.f32 %v6292_v2, %v6291_v16  ;;  %v6297_v1 = vrot.slane %v6296_v3, 4  ;;  %v5368_v16 = vld [vmem:[#allocation7 + $0x1b0] sm:$0xff]  ;;  %v5762_v9 = vpop.permute.xlu2 %5761  ;;  %v13867_v18 = vrot.slane %v12207_v17, 2 }
 0x4e1   : > { %v6821_v12 = vsel %vm12399_vm12, %v12390_v59, %v6816_v62  ;;  %v6189_v37 = vrot.slane %v6188_v24, 1  ;;  %v6172_v11 = vadd.f32 %v6171_v41, %v6170_v63  ;;  %v6260_v51 = vadd.f32 %v6259_v32, %v6258_v29  ;;  %v12448_v2 = vpop.permute.xlu1 %5691 }
 0x4e2   : > { %v12441_v0 = vmul.f32 %v6821_v12, %v13846_v5  ;;  %v6294_v43 = vrot.slane %v6293_v10, 1  ;;  %v6264_v53 = vrot.slane %v6263_v14, 2  ;;  %v13866_v5 = vrot.slane %v12093_v58, 4 }
 0x4e3   : > { %v6190_v25 = vadd.f32 %v6189_v37, %v6188_v24  ;;  %v6173_v29 = vrot.slane %v6172_v11, 2  ;;  %v13868_v12 = vrot.slane %v12342_v19, 1  ;;  %v6298_v32 = vadd.f32 %v6297_v1, %v6296_v3  ;;  %v13869_v37 = vld [vmem:[#allocation57_spill] sm:$0xff] }
 0x4e4   : > { %v12445_v59 = vmul.f32 %v12441_v0, %v6663_v13  ;;  %v6888_v57 = vrot.slane %v12441_v0, 1  ;;  %v6295_v56 = vadd.f32 %v6294_v43, %v6293_v10  ;;  %v6531_v20 = vadd.f32 %v13866_v5, %v6260_v51  ;;  %v5797_v3 = vpop.permute.xlu0 %5796 }
 0x4e5   : > { %v6265_v41 = vadd.f32 %v6264_v53, %v6263_v14  ;;  %v6521_v62 = vadd.f32 %v13867_v18, %v6190_v25  ;;  %v5880_v24 = vmul.f32 %v5762_v9, %v5368_v16  ;;  %v6174_v43 = vadd.f32 %v6173_v29, %v6172_v11  ;;  %v13871_v14 = vld [vmem:[#allocation9_spill] sm:$0xff] }
 0x4e6   : > { %v6536_v13 = vadd.f32 %v13868_v12, %v6295_v56  ;;  %v6595_v54 = vadd.f32 %v6531_v20, %v13869_v37  ;;  %v6299_v5 = vrot.slane %v6298_v32, 2  ;;  %v5365_v56 = vld [vmem:[#allocation7 + $0x198] sm:$0xff]  ;;  %v5362_v20 = vld [vmem:[#allocation7 + $0x180] sm:$0xff]  ;;  %v13872_v29 = vrot.slane %v12198_v44, 4 }
 0x4e7   : > { %v6266_v10 = vrot.slane %v6265_v41, 1  ;;  %v6585_v51 = vadd.f32 %v6521_v62, %v13870_v6  ;;  %v6268_v63 = vsel %vm774_vm6, %v5880_v24, 0.0  ;;  %v6175_v18 = vrot.slane %v6174_v43, 1 }
 0x4e8   : > { %v6600_v53 = vadd.f32 %v6536_v13, %v13871_v14  ;;  %v6659_v45 = vmul.f32 0.5, %v6595_v54  ;;  %v6269_v49 = vrot.slane %v6268_v63, 4  ;;  %v6300_v9 = vadd.f32 %v6299_v5, %v6298_v32  ;;  %v5713_v11 = vpop.permute.xlu2 %5712 }
 0x4e9   : > { %v6267_v25 = vadd.f32 %v6266_v10, %v6265_v41  ;;  %v6649_v1 = vmul.f32 0.5, %v6585_v51  ;;  %v13873_v62 = vrot.slane %v12093_v58, 5  ;;  %v6176_v13 = vadd.f32 %v6175_v18, %v6174_v43  ;;  %v13875_v51 = vld [vmem:[#allocation49_spill] sm:$0xff] }
 0x4ea   : > { %v6664_v16 = vmul.f32 0.5, %v6600_v53  ;;  %v12465_v6 = vmul.f32 %v13872_v29, %v6659_v45  ;;  %v6270_v54 = vadd.f32 %v6269_v49, %v6268_v63  ;;  %v13874_v41 = vrot.slane %v12318_v50, 2  ;;  %v5361_v29 = vld [vmem:[#allocation7 + $0x178] sm:$0xff] }
 0x4eb   : > { %v6532_v12 = vadd.f32 %v13873_v62, %v6267_v25  ;;  %v6301_v10 = vrot.slane %v6300_v9, 1  ;;  %v5877_v32 = vmul.f32 %v12421_v7, %v5365_v56  ;;  %v6519_v53 = vadd.f32 %v12207_v17, %v6176_v13  ;;  %v5699_v25 = vpop.permute.xlu1 %5698 }
 0x4ec   : > { %v12471_v24 = vmul.f32 %v13874_v41, %v6649_v1  ;;  %v12473_v37 = vmul.f32 %v6888_v57, %v6664_v16  ;;  %v6271_v45 = vrot.slane %v6270_v54, 2  ;;  %v5874_v5 = vmul.f32 %v5720_v4, %v5362_v20  ;;  %v13876_v1 = vld [vmem:[#allocation47_spill] sm:$0xff] }
 0x4ed   : > { %v6596_v14 = vadd.f32 %v6532_v12, %v13875_v51  ;;  %v6302_v43 = vadd.f32 %v6301_v10, %v6300_v9  ;;  %v6247_v57 = vsel %vm774_vm6, %v5877_v32, 0.0  ;;  %v6583_v7 = vadd.f32 %v6519_v53, %v13876_v1  ;;  %v5358_v10 = vld [vmem:[#allocation7 + $0x160] sm:$0xff]  ;;  %v5804_v32 = vpop.permute.xlu0 %5803 }
 0x4ee   : > { %v6272_v56 = vadd.f32 %v6271_v45, %v6270_v54  ;;  %v6248_v16 = vrot.slane %v6247_v57, 4  ;;  %v13877_v62 = vrot.slane %v12342_v19, 2  ;;  %v6226_v4 = vsel %vm774_vm6, %v5874_v5, 0.0 }
 0x4ef   : > { %v12481_v18 = vmul.f32 0.5, %v6596_v14  ;;  %v5873_v13 = vmul.f32 %v5713_v11, %v5361_v29  ;;  %v6647_v41 = vmul.f32 0.5, %v6583_v7  ;;  %v6227_v9 = vrot.slane %v6226_v4, 4  ;;  %v13878_v14 = vld [vmem:[#allocation61_spill] sm:$0xff]  ;;  %v5373_v29 = vld [vmem:[#allocation7 + $0x1d8] sm:$0xff] }
 0x4f0   : > { %v6537_v12 = vadd.f32 %v13877_v62, %v6302_v43  ;;  %v6273_v51 = vrot.slane %v6272_v56, 1  ;;  %v6249_v63 = vadd.f32 %v6248_v16, %v6247_v57  ;;  %v5870_v16 = vmul.f32 %v12448_v2, %v5358_v10 }
 0x4f1   : > { %v6219_v53 = vsel %vm774_vm6, %v5873_v13, 0.0  ;;  %v12493_v43 = vmul.f32 %v12318_v50, %v6647_v41  ;;  %v6228_v11 = vadd.f32 %v6227_v9, %v6226_v4  ;;  %v13880_v41 = vrot.slane %v12441_v0, 2 }
 0x4f2   : > { %v6601_v49 = vadd.f32 %v6537_v12, %v13878_v14  ;;  %v6274_v5 = vadd.f32 %v6273_v51, %v6272_v56  ;;  %v6250_v1 = vrot.slane %v6249_v63, 2  ;;  %v6220_v57 = vrot.slane %v6219_v53, 4  ;;  %v13881_v51 = vld [vmem:[#allocation60_spill] sm:$0xff] }
 0x4f3   : > { %v13879_v12 = vrot.slane %v12093_v58, 6  ;;  %v6229_v54 = vrot.slane %v6228_v11, 2  ;;  %v6198_v4 = vsel %vm774_vm6, %v5870_v16, 0.0  ;;  %v5706_v33 = vpop.permute.xlu1 %5705 }
 0x4f4   : > { %v6665_v7 = vmul.f32 0.5, %v6601_v49  ;;  %v6251_v14 = vadd.f32 %v6250_v1, %v6249_v63  ;;  %v6221_v56 = vadd.f32 %v6220_v57, %v6219_v53  ;;  %v5885_v49 = vmul.f32 %v5797_v3, %v5373_v29  ;;  %v5374_v3 = vld [vmem:[#allocation7 + $0x1e0] sm:$0xff] }
 0x4f5   : > { %v6533_v13 = vadd.f32 %v13879_v12, %v6274_v5  ;;  %v6230_v10 = vadd.f32 %v6229_v54, %v6228_v11  ;;  %v6199_v62 = vrot.slane %v6198_v4, 4  ;;  %v5811_v29 = vpop.permute.xlu0 %5810  ;;  %v5871_v54 = vmul.f32 %v5699_v25, %v5359_v61  ;;  %v5360_v25 = vld [vmem:[#allocation7 + $0x170] sm:$0xff] }
 0x4f6   : > { %v12502_v20 = vmul.f32 %v13880_v41, %v6665_v7  ;;  %v6252_v2 = vrot.slane %v6251_v14, 1  ;;  %v6222_v5 = vrot.slane %v6221_v56, 2  ;;  %v6303_v1 = vsel %vm774_vm6, %v5885_v49, 0.0 }
 0x4f7   : > { %v6597_v9 = vadd.f32 %v6533_v13, %v13881_v51  ;;  %v6231_v57 = vrot.slane %v6230_v10, 1  ;;  %v6200_v16 = vadd.f32 %v6199_v62, %v6198_v4  ;;  %v6304_v41 = vrot.slane %v6303_v1, 4  ;;  %v13883_v62 = vld [vmem:[#allocation58_spill] sm:$0xff] }
 0x4f8   : > { %v6253_v53 = vadd.f32 %v6252_v2, %v6251_v14  ;;  %v6223_v13 = vadd.f32 %v6222_v5, %v6221_v56  ;;  %v13882_v51 = vrot.slane %v12093_v58, 3  ;;  %v6205_v14 = vsel %vm774_vm6, %v5871_v54, 0.0 }
 0x4f9   : > { %v12509_v7 = vmul.f32 0.5, %v6597_v9  ;;  %v6232_v45 = vadd.f32 %v6231_v57, %v6230_v10  ;;  %v6201_v36 = vrot.slane %v6200_v16, 2  ;;  %v6305_v9 = vadd.f32 %v6304_v41, %v6303_v1 }
 0x4fa   : > { %v6530_v63 = vadd.f32 %v13882_v51, %v6253_v53  ;;  %v6224_v12 = vrot.slane %v6223_v13, 1  ;;  %v5886_v2 = vmul.f32 %v5804_v32, %v5374_v3  ;;  %v6206_v61 = vrot.slane %v6205_v14, 4  ;;  %v13884_v51 = vld [vmem:[#allocation55_spill] sm:$0xff] }
 0x4fb   : > { %v6527_v56 = vadd.f32 %v12093_v58, %v6232_v45  ;;  %v6202_v5 = vadd.f32 %v6201_v36, %v6200_v16  ;;  %v6306_v31 = vrot.slane %v6305_v9, 2  ;;  %v13885_v32 = vrot.slane %v12207_v17, 7 }
 0x4fc   : > { %v6594_v4 = vadd.f32 %v6530_v63, %v13883_v62  ;;  %v6225_v11 = vadd.f32 %v6224_v12, %v6223_v13  ;;  %v6310_v53 = vsel %vm774_vm6, %v5886_v2, 0.0  ;;  %v6207_v41 = vadd.f32 %v6206_v61, %v6205_v14  ;;  %v5375_v62 = vld [vmem:[#allocation7 + $0x1e8] sm:$0xff] }
 0x4fd   : > { %v6591_v49 = vadd.f32 %v6527_v56, %v13884_v51  ;;  %v6203_v1 = vrot.slane %v6202_v5, 1  ;;  %v6307_v63 = vadd.f32 %v6306_v31, %v6305_v9  ;;  %v6311_v45 = vrot.slane %v6310_v53, 4  ;;  %v5818_v51 = vpop.permute.xlu0 %5817 }
 0x4fe   : > { %v6658_v57 = vmul.f32 0.5, %v6594_v4  ;;  %v12523_v3 = vadd.f32 %v13885_v32, %v6225_v11  ;;  %v5872_v36 = vmul.f32 %v5706_v33, %v5360_v25  ;;  %v13886_v16 = vrot.slane %v12198_v44, 3  ;;  %v5657_v4 = vpop.permute.xlu1 %5656  ;;  %v5353_v11 = vld [vmem:[#allocation7 + $0x138] sm:$0xff] }
 0x4ff   : > { %v6655_v13 = vmul.f32 0.5, %v6591_v49  ;;  %v6204_v54 = vadd.f32 %v6203_v1, %v6202_v5  ;;  %v6208_v2 = vrot.slane %v6207_v41, 2  ;;  %v6308_v10 = vrot.slane %v6307_v63, 1 }
 0x500   : > { %v12527_v12 = vmul.f32 %v13886_v16, %v6658_v57  ;;  %v6312_v56 = vadd.f32 %v6311_v45, %v6310_v53  ;;  %v6212_v14 = vsel %vm774_vm6, %v5872_v36, 0.0  ;;  %v13887_v33 = vrot.slane %v12207_v17, 4  ;;  %v13888_v53 = vld [vmem:[#allocation43_spill] sm:$0xff] }
 0x501   : > { %v12532_v31 = vmul.f32 %v12198_v44, %v6655_v13  ;;  %v6209_v25 = vadd.f32 %v6208_v2, %v6207_v41  ;;  %v6213_v49 = vrot.slane %v6212_v14, 4  ;;  %v6309_v5 = vadd.f32 %v6308_v10, %v6307_v63  ;;  %v13890_v2 = vld [vmem:[#allocation54_spill] sm:$0xff] }
 0x502   : > { %v6523_v9 = vadd.f32 %v13887_v33, %v6204_v54  ;;  %v6313_v57 = vrot.slane %v6312_v56, 2  ;;  %v5887_v1 = vmul.f32 %v5811_v29, %v5375_v62  ;;  %v5865_v61 = vmul.f32 %v5657_v4, %v5353_v11 }
 0x503   : > { %v6210_v36 = vrot.slane %v6209_v25, 1  ;;  %v6214_v16 = vadd.f32 %v6213_v49, %v6212_v14  ;;  %v6538_v13 = vadd.f32 %v13889_v23, %v6309_v5  ;;  %v5888_v14 = vmul.f32 %v5818_v51, %v5376_v35  ;;  %v5377_v35 = vld [vmem:[#allocation7 + $0x1f8] sm:$0xff] }
 0x504   : > { %v6587_v45 = vadd.f32 %v6523_v9, %v13888_v53  ;;  %v6314_v55 = vadd.f32 %v6313_v57, %v6312_v56  ;;  %v6317_v22 = vsel %vm774_vm6, %v5887_v1, 0.0  ;;  %v6163_v9 = vsel %vm774_vm6, %v5865_v61, 0.0 }
 0x505   : > { %v6211_v10 = vadd.f32 %v6210_v36, %v6209_v25  ;;  %v6215_v63 = vrot.slane %v6214_v16, 2  ;;  %v6318_v29 = vrot.slane %v6317_v22, 4  ;;  %v6602_v62 = vadd.f32 %v6538_v13, %v13890_v2 }
 0x506   : > { %v6651_v54 = vmul.f32 0.5, %v6587_v45  ;;  %v6315_v33 = vrot.slane %v6314_v55, 1  ;;  %v13891_v4 = vrot.slane %v12318_v50, 4  ;;  %v13892_v23 = vrot.slane %v12207_v17, 5  ;;  %v13893_v45 = vld [vmem:[#allocation8_spill] sm:$0xff]  ;;  %v5825_v51 = vpop.permute.xlu1 %5824 }
 0x507   : > { %v6216_v49 = vadd.f32 %v6215_v63, %v6214_v16  ;;  %v6319_v5 = vadd.f32 %v6318_v29, %v6317_v22  ;;  %v6666_v57 = vmul.f32 0.5, %v6602_v62  ;;  %v6164_v25 = vrot.slane %v6163_v9, 4  ;;  %v5369_v63 = vld [vmem:[#allocation7 + $0x1b8] sm:$0xff]  ;;  %v5769_v29 = vpop.permute.xlu0 %5768 }
 0x508   : > { %v12546_v11 = vmul.f32 %v13891_v4, %v6651_v54  ;;  %v6524_v56 = vadd.f32 %v13892_v23, %v6211_v10  ;;  %v6316_v1 = vadd.f32 %v6315_v33, %v6314_v55  ;;  %v6324_v53 = vsel %vm774_vm6, %v5888_v14, 0.0 }
 0x509   : > { %v6217_v13 = vrot.slane %v6216_v49, 1  ;;  %v6320_v2 = vrot.slane %v6319_v5, 2  ;;  %v6325_v61 = vrot.slane %v6324_v53, 4  ;;  %v13894_v54 = vrot.slane %v12441_v0, 3 }
 0x50a   : > { %v6588_v36 = vadd.f32 %v6524_v56, %v13893_v45  ;;  %v13895_v10 = vrot.slane %v12342_v19, 4  ;;  %v6165_v22 = vadd.f32 %v6164_v25, %v6163_v9  ;;  %v13896_v56 = vld [vmem:[#allocation64_spill] sm:$0xff]  ;;  %v5889_v32 = vmul.f32 %v5825_v51, %v5377_v35 }
 0x50b   : > { %v12554_v4 = vmul.f32 %v13894_v54, %v6666_v57  ;;  %v6218_v33 = vadd.f32 %v6217_v13, %v6216_v49  ;;  %v6321_v14 = vadd.f32 %v6320_v2, %v6319_v5  ;;  %v6326_v23 = vadd.f32 %v6325_v61, %v6324_v53  ;;  %v13899_v5 = vld [vmem:[#allocation53_spill] sm:$0xff] }
 0x50c   : > { %v6539_v16 = vadd.f32 %v13895_v10, %v6316_v1  ;;  %v6652_v62 = vmul.f32 0.5, %v6588_v36  ;;  %v6166_v41 = vrot.slane %v6165_v22, 2  ;;  %v13897_v57 = vrot.slane %v12207_v17, 6  ;;  %v13898_v36 = vld [vmem:[#allocation45_spill] sm:$0xff] }
 0x50d   : > { %v6322_v34 = vrot.slane %v6321_v14, 1  ;;  %v6327_v1 = vrot.slane %v6326_v23, 2  ;;  %v5881_v9 = vmul.f32 %v5769_v29, %v5369_v63  ;;  %v6331_v55 = vsel %vm774_vm6, %v5889_v32, 0.0 }
 0x50e   : > { %v6603_v45 = vadd.f32 %v6539_v16, %v13896_v56  ;;  %v6525_v54 = vadd.f32 %v13897_v57, %v6218_v33  ;;  %v6167_v10 = vadd.f32 %v6166_v41, %v6165_v22  ;;  %v6590_v49 = vadd.f32 %v12523_v3, %v13898_v36 }
 0x50f   : > { %v6323_v13 = vadd.f32 %v6322_v34, %v6321_v14  ;;  %v6328_v2 = vadd.f32 %v6327_v1, %v6326_v23  ;;  %v6332_v61 = vrot.slane %v6331_v55, 4  ;;  %v13900_v35 = vrot.slane %v12441_v0, 4  ;;  %v13902_v23 = vld [vmem:[#allocation63_spill] sm:$0xff] }
 0x510   : > { %v6667_v25 = vmul.f32 0.5, %v6603_v45  ;;  %v6589_v53 = vadd.f32 %v6525_v54, %v13899_v5  ;;  %v6168_v17 = vrot.slane %v6167_v10, 1  ;;  %v6275_v16 = vsel %vm774_vm6, %v5881_v9, 0.0 }
 0x511   : > { %v6654_v63 = vmul.f32 0.5, %v6590_v49  ;;  %v13901_v41 = vrot.slane %v12342_v19, 5  ;;  %v6329_v22 = vrot.slane %v6328_v2, 1  ;;  %v6333_v33 = vadd.f32 %v6332_v61, %v6331_v55 }
 0x512   : > { %v12569_v51 = vmul.f32 %v13900_v35, %v6667_v25  ;;  %v6653_v29 = vmul.f32 0.5, %v6589_v53  ;;  %v6169_v3 = vadd.f32 %v6168_v17, %v6167_v10  ;;  %v6276_v56 = vrot.slane %v6275_v16, 4  ;;  %v13906_v17 = vld [vmem:[#allocation56_spill] sm:$0xff] }
 0x513   : > { %v6540_v32 = vadd.f32 %v13901_v41, %v6323_v13  ;;  %v6878_v34 = vrot.slane %v12318_v50, 5  ;;  %v6879_v14 = vrot.slane %v12318_v50, 6  ;;  %v6330_v57 = vadd.f32 %v6329_v22, %v6328_v2 }
 0x514   : > { %v6334_v54 = vrot.slane %v6333_v33, 2  ;;  %v6880_v1 = vrot.slane %v12318_v50, 7  ;;  %v13903_v9 = vrot.slane %v12032_v26, 7  ;;  %v6277_v36 = vadd.f32 %v6276_v56, %v6275_v16 }
 0x515   : > { %v6604_v45 = vadd.f32 %v6540_v32, %v13902_v23  ;;  %v12580_v49 = vmul.f32 %v6878_v34, %v6652_v62  ;;  %v12582_v5 = vmul.f32 %v6879_v14, %v6653_v29  ;;  %v13904_v10 = vrot.slane %v12342_v19, 6 }
 0x516   : > { %v6518_v25 = vadd.f32 %v13903_v9, %v6169_v3  ;;  %v6335_v13 = vadd.f32 %v6334_v54, %v6333_v33  ;;  %v12588_v61 = vmul.f32 %v6880_v1, %v6654_v63  ;;  %v6278_v2 = vrot.slane %v6277_v36, 2 }
 0x517   : > { %v12584_v55 = vmul.f32 0.5, %v6604_v45  ;;  %v6541_v53 = vadd.f32 %v13904_v10, %v6330_v57  ;;  %v13905_v50 = vrot.slane %v12419_v27, 7  ;;  %v7168_v35 = vrot.slane %v12347_v39, 5  ;;  %v13908_v45 = vld [vmem:[#allocation48_spill] sm:$0xff] }
 0x518   : > { %v7170_v62 = vrot.slane %v12546_v11, 4  ;;  %v6336_v29 = vrot.slane %v6335_v13, 1  ;;  %v13907_v41 = vrot.slane %v12471_v24, 6  ;;  %v7172_v63 = vrot.slane %v12580_v49, 3 }
 0x519   : > { %v7165_v26 = vsel %vm7088_vm13, %v13905_v50, %v12493_v43  ;;  %v6605_v16 = vadd.f32 %v6541_v53, %v13906_v17  ;;  %v6279_v22 = vadd.f32 %v6278_v2, %v6277_v36  ;;  %v7174_v3 = vrot.slane %v12582_v5, 2 }
 0x51a   : > { %v7167_v32 = vsel %vm7091_vm14, %v13907_v41, %v7165_v26  ;;  %v7176_v56 = vrot.slane %v12588_v61, 1  ;;  %v6337_v14 = vadd.f32 %v6336_v29, %v6335_v13  ;;  %v6582_v57 = vadd.f32 %v6518_v25, %v13908_v45 }
 0x51b   : > { %v7169_v33 = vsel %vm7094_vm0, %v7168_v35, %v7167_v32  ;;  %v6669_v34 = vmul.f32 0.5, %v6605_v16  ;;  %v6280_v54 = vrot.slane %v6279_v22, 1  ;;  %v6871_v9 = vrot.slane %v12125_v30, 5 }
 0x51c   : > { %v7171_v23 = vsel %vm7097_vm1, %v7170_v62, %v7169_v33  ;;  %v6872_v10 = vrot.slane %v12125_v30, 6  ;;  %v13909_v36 = vrot.slane %v12342_v19, 7  ;;  %v6646_v50 = vmul.f32 0.5, %v6582_v57 }
 0x51d   : > { %v7173_v1 = vsel %vm7100_vm5, %v7172_v63, %v7171_v23  ;;  %v6873_v26 = vrot.slane %v12125_v30, 7  ;;  %v6281_v13 = vadd.f32 %v6280_v54, %v6279_v22  ;;  %v12615_v25 = vmul.f32 %v6871_v9, %v12129_v60 }
 0x51e   : > { %v6542_v53 = vadd.f32 %v13909_v36, %v6337_v14  ;;  %v7175_v2 = vsel %vm7103_vm7, %v7174_v3, %v7173_v1  ;;  %v12618_v62 = vmul.f32 %v6872_v10, %v12414_v40  ;;  %v13910_v19 = vrot.slane %v12256_v8, 7 }
 0x51f   : > { %v7177_v35 = vsel %vm7106_vm2, %v7176_v56, %v7175_v2  ;;  %v12621_v16 = vmul.f32 %v6873_v26, %v6646_v50  ;;  %v7154_v30 = vrot.slane %v12326_v46, 5  ;;  %v6534_v41 = vadd.f32 %v6407_v28, %v6281_v13  ;;  %v13912_v28 = vld [vmem:[#allocation59_spill] sm:$0xff] }
 0x520   : > { %v7229_v17 = vsel %vm774_vm6, %v7177_v35, 0.0  ;;  %v7151_v29 = vsel %vm7088_vm13, %v13910_v19, %v12261_v48  ;;  %v13911_v60 = vrot.slane %v12135_v38, 6  ;;  %v7156_v32 = vrot.slane %v12322_v47, 4 }
 0x521   : > { %7230 = vadd.xlane.f32.xlu0 %v7229_v17  ;;  %v7158_v63 = vrot.slane %v12615_v25, 3  ;;  %v7160_v33 = vrot.slane %v12618_v62, 2  ;;  %v7162_v3 = vrot.slane %v12621_v16, 1  ;;  %v6885_v56 = vrot.slane %v12198_v44, 5 }
 0x522   : > { %v7153_v40 = vsel %vm7091_vm14, %v13911_v60, %v7151_v29  ;;  %v6598_v14 = vadd.f32 %v6534_v41, %v13912_v28  ;;  %v6886_v23 = vrot.slane %v12198_v44, 6  ;;  %v6887_v45 = vrot.slane %v12198_v44, 7 }
 0x523   : > { %v7155_v22 = vsel %vm7094_vm0, %v7154_v30, %v7153_v40  ;;  %v12645_v54 = vmul.f32 %v6885_v56, %v12481_v18  ;;  %v13913_v1 = vrot.slane %v12217_v15, 7  ;;  %v7182_v10 = vrot.slane %v12527_v12, 5 }
 0x524   : > { %v7157_v58 = vsel %vm7097_vm1, %v7156_v32, %v7155_v22  ;;  %v6662_v2 = vmul.f32 0.5, %v6598_v14  ;;  %v12654_v50 = vmul.f32 %v6886_v23, %v12509_v7  ;;  %v13914_v44 = vrot.slane %v12242_v52, 6  ;;  %v13915_v7 = vld [vmem:[#allocation10_spill] sm:$0xff] }
 0x525   : > { %v7159_v57 = vsel %vm7100_vm5, %v7158_v63, %v7157_v58  ;;  %v7179_v9 = vsel %vm7088_vm13, %v13913_v1, %v12532_v31  ;;  %v7184_v35 = vrot.slane %v12465_v6, 4  ;;  %v7186_v17 = vrot.slane %v12645_v54, 3 }
 0x526   : > { %v7161_v36 = vsel %vm7103_vm7, %v7160_v33, %v7159_v57  ;;  %v7181_v26 = vsel %vm7091_vm14, %v13914_v44, %v7179_v9  ;;  %v12664_v29 = vmul.f32 %v6887_v45, %v6662_v2  ;;  %v7188_v30 = vrot.slane %v12654_v50, 2 }
 0x527   : > { %v7163_v18 = vsel %vm7106_vm2, %v7162_v3, %v7161_v36  ;;  %v7183_v13 = vsel %vm7094_vm0, %v7182_v10, %v7181_v26  ;;  %v6606_v41 = vadd.f32 %v6542_v53, %v13915_v7  ;;  %v6892_v40 = vrot.slane %v12441_v0, 5 }
 0x528   : > { %v7226_v19 = vsel %vm774_vm6, %v7163_v18, 0.0  ;;  %v7185_v60 = vsel %vm7097_vm1, %v7184_v35, %v7183_v13  ;;  %v6893_v32 = vrot.slane %v12441_v0, 6  ;;  %v6894_v63 = vrot.slane %v12441_v0, 7 }
 0x529   : > { %7227 = vadd.xlane.f32.xlu2 %v7226_v19  ;;  %v7187_v22 = vsel %vm7100_vm5, %v7186_v17, %v7185_v60  ;;  %v7190_v33 = vrot.slane %v12664_v29, 1  ;;  %v6670_v3 = vmul.f32 0.5, %v6606_v41  ;;  %v13916_v56 = vrot.slane %v12473_v37, 7 }
 0x52a   : > { %v7189_v53 = vsel %vm7103_vm7, %v7188_v30, %v7187_v22  ;;  %v12680_v28 = vmul.f32 %v6892_v40, %v12584_v55  ;;  %v12682_v14 = vmul.f32 %v6893_v32, %v6669_v34  ;;  %v13917_v23 = vrot.slane %v12502_v20, 6  ;;  %v7216_v40 = vpop.xlane.xlu2 %7215 }
 0x52b   : > { %v7193_v58 = vsel %vm7088_vm13, %v13916_v56, %v12445_v59  ;;  %v7191_v45 = vsel %vm7106_vm2, %v7190_v33, %v7189_v53  ;;  %v12688_v57 = vmul.f32 %v6894_v63, %v6670_v3  ;;  %v7196_v1 = vrot.slane %v12554_v4, 5 }
 0x52c   : > { %v7195_v0 = vsel %vm7091_vm14, %v13917_v23, %v7193_v58  ;;  %v7198_v9 = vrot.slane %v12569_v51, 4  ;;  %v7232_v10 = vsel %vm774_vm6, %v7191_v45, 0.0  ;;  %v7200_v36 = vrot.slane %v12680_v28, 3 }
 0x52d   : > { %v7202_v55 = vrot.slane %v12682_v14, 2  ;;  %7233 = vadd.xlane.f32.xlu1 %v7232_v10  ;;  %v7197_v34 = vsel %vm7094_vm0, %v7196_v1, %v7195_v0  ;;  %v7204_v2 = vrot.slane %v12688_v57, 1  ;;  %v9043_v44 = vmov 32.0  }
 0x52e   : > { %8991 = vrcp.f32 %v9043_v44  ;;  %v7199_v26 = vsel %vm7097_vm1, %v7198_v9, %v7197_v34  ;;  %v13920_v34 = vld [vmem:[#allocation66_spill] sm:$0xff] }
 0x52f   : > { %v7201_v18 = vsel %vm7100_vm5, %v7200_v36, %v7199_v26  ;;  %v13918_v36 = vld [vmem:[#allocation67_spill] sm:$0xff]  ;;  %v13922_v44 = vld [vmem:[#allocation62_spill] sm:$0xff] }
 0x530   : > { %v7203_v13 = vsel %vm7103_vm7, %v7202_v55, %v7201_v18  ;;  %v13924_v18 = vld [vmem:[#allocation33_spill] sm:$0xff] }
 0x531   : > { %v7205_v35 = vsel %vm7106_vm2, %v7204_v2, %v7203_v13 }
 0x532   : > { %v7235_v17 = vsel %vm774_vm6, %v7205_v35, 0.0  ;;  %v13926_v35 = vld [vmem:[#allocation25_spill] sm:$0xff] }
 0x533   : > { %7236 = vadd.xlane.f32.xlu2 %v7235_v17 }
 0x534   : > { %v8992_v19 = vpop.eup %8991  ;;  %v7222_v53 = vpop.xlane.xlu1 %7221 }
 0x535   : > { %v7239_v30 = vmul.f32 32.0, %v8992_v19  ;;  %vm7243_vm3 = vweird.f32 %v8992_v19 }
 0x537   : > { %v7240_v7 = vsub.f32 1.0, %v7239_v30 }
 0x539   : > { %v7241_v41 = vmul.f32 %v8992_v19, %v7240_v7 }
 0x53b   : > { %v7242_v60 = vadd.f32 %v8992_v19, %v7241_v41 }
 0x53d   : > { %v12702_v32 = vsel %vm7243_vm3, %v8992_v19, %v7242_v60  ;;  %v7219_v22 = vpop.xlane.xlu0 %7218 }
 0x53e   : > { %v7245_v63 = vmul.f32 %v12702_v32, %v7216_v40  ;;  %v7246_v33 = vmul.f32 %v12702_v32, %v7219_v22 }
 0x540   : > { %v7261_v3 = vrot.slane %v7245_v63, 1  ;;  %v7262_v56 = vrot.slane %v7245_v63, 2  ;;  %v7263_v58 = vrot.slane %v7245_v63, 3  ;;  %v7264_v23 = vrot.slane %v7245_v63, 4 }
 0x541   : > { %v7265_v0 = vrot.slane %v7245_v63, 5  ;;  %v7266_v45 = vrot.slane %v7245_v63, 6  ;;  %v7267_v1 = vrot.slane %v7245_v63, 7  ;;  %v12707_v9 = vsub.f32 %v11840_v21, %v7245_v63  ;;  %v13928_v21 = vld [vmem:[#allocation36_spill] sm:$0xff] }
 0x542   : > { %v12710_v10 = vsub.f32 %v11746_v42, %v7261_v3  ;;  %v12713_v55 = vsub.f32 %v13918_v36, %v7262_v56  ;;  %v12716_v2 = vsub.f32 %v13920_v34, %v7263_v58  ;;  %v12719_v26 = vsub.f32 %v13922_v44, %v7264_v23 }
 0x543   : > { %v12722_v13 = vsub.f32 %v13924_v18, %v7265_v0  ;;  %v12725_v17 = vsub.f32 %v13926_v35, %v7266_v45  ;;  %v12728_v19 = vsub.f32 %v13928_v21, %v7267_v1  ;;  %v12731_v42 = vmul.f32 %v12702_v32, %v7222_v53 }
 0x544   : > { %13919 = vst [vmem:[#allocation44_spill] sm:$0xff] %v12713_v55  ;;  %v7446_v30 = vmul.f32 %v12710_v10, %v12710_v10  ;;  %v7447_v7 = vmul.f32 %v12713_v55, %v12713_v55  ;;  %v7448_v41 = vmul.f32 %v12716_v2, %v12716_v2  ;;  %v7445_v60 = vmul.f32 %v12707_v9, %v12707_v9 }
 0x545   : > { %13921 = vst [vmem:[#allocation31_spill] sm:$0xff] %v12716_v2  ;;  %v7449_v40 = vmul.f32 %v12719_v26, %v12719_v26  ;;  %v7450_v63 = vmul.f32 %v12722_v13, %v12722_v13  ;;  %v7451_v22 = vmul.f32 %v12725_v17, %v12725_v17  ;;  %v7452_v3 = vmul.f32 %v12728_v19, %v12728_v19  ;;  %v13938_v2 = vld [vmem:[#allocation28_spill] sm:$0xff] }
 0x546   : > { %13923 = vst [vmem:[#allocation50_spill] sm:$0xff] %v12719_v26  ;;  %v7573_v56 = vrot.slane %v7446_v30, 7  ;;  %v7575_v58 = vrot.slane %v7447_v7, 6  ;;  %v7268_v53 = vrot.slane %v7246_v33, 1  ;;  %v7577_v23 = vrot.slane %v7448_v41, 5  ;;  %v13931_v7 = vld [vmem:[#allocation69_spill] sm:$0xff] }
 0x547   : > { %13925 = vst [vmem:[#allocation46_spill] sm:$0xff] %v12722_v13  ;;  %v7579_v0 = vrot.slane %v7449_v40, 4  ;;  %v7581_v45 = vrot.slane %v7450_v63, 3  ;;  %v7583_v1 = vrot.slane %v7451_v22, 2  ;;  %v7269_v34 = vrot.slane %v7246_v33, 2  ;;  %v13932_v40 = vld [vmem:[#allocation65_spill] sm:$0xff] }
 0x548   : > { %13927 = vst [vmem:[#allocation29_spill] sm:$0xff] %v12725_v17  ;;  %v7574_v36 = vsel %vm7088_vm13, %v7573_v56, %v7445_v60  ;;  %v7270_v44 = vrot.slane %v7246_v33, 3  ;;  %v7271_v18 = vrot.slane %v7246_v33, 4  ;;  %v7272_v21 = vrot.slane %v7246_v33, 5  ;;  %v13934_v22 = vld [vmem:[#allocation27_spill] sm:$0xff] }
 0x549   : > { %13929 = vst [vmem:[#allocation34_spill] sm:$0xff] %v12728_v19  ;;  %v7576_v35 = vsel %vm7091_vm14, %v7575_v58, %v7574_v36  ;;  %v7273_v13 = vrot.slane %v7246_v33, 6  ;;  %v7274_v17 = vrot.slane %v7246_v33, 7  ;;  %v13930_v19 = vld [vmem:[#allocation70_spill] sm:$0xff]  ;;  %v12756_v41 = vsub.f32 %v13931_v7, %v7268_v53  ;;  %v13936_v58 = vld [vmem:[#allocation32_spill] sm:$0xff] }
 0x54a   : > { %v7578_v26 = vsel %vm7094_vm0, %v7577_v23, %v7576_v35  ;;  %v12753_v30 = vsub.f32 %v13930_v19, %v7246_v33  ;;  %v12759_v63 = vsub.f32 %v13932_v40, %v7269_v34  ;;  %v12763_v56 = vsub.f32 %v13934_v22, %v7270_v44  ;;  %v13940_v23 = vld [vmem:[#allocation42_spill] sm:$0xff]  ;;  %v13942_v35 = vld [vmem:[#allocation16_spill] sm:$0xff] }
 0x54b   : > { %v7580_v60 = vsel %vm7097_vm1, %v7579_v0, %v7578_v26  ;;  %v12766_v36 = vsub.f32 %v13936_v58, %v7271_v18  ;;  %v12769_v55 = vsub.f32 %v13938_v2, %v7272_v21  ;;  %v7585_v19 = vrot.slane %v7452_v3, 1 }
 0x54c   : > { %13933 = vst [vmem:[#allocation15_spill] sm:$0xff] %v12759_v63  ;;  %v7582_v33 = vsel %vm7100_vm5, %v7581_v45, %v7580_v60  ;;  %v12773_v53 = vsub.f32 %v13940_v23, %v7273_v13  ;;  %v12776_v34 = vsub.f32 %v13942_v35, %v7274_v17  ;;  %v7453_v0 = vmul.f32 %v12753_v30, %v12753_v30 }
 0x54d   : > { %13935 = vst [vmem:[#allocation21_spill] sm:$0xff] %v12763_v56  ;;  %v7584_v26 = vsel %vm7103_vm7, %v7583_v1, %v7582_v33  ;;  %v7454_v44 = vmul.f32 %v12756_v41, %v12756_v41  ;;  %v7455_v2 = vmul.f32 %v12759_v63, %v12759_v63  ;;  %v7456_v13 = vmul.f32 %v12763_v56, %v12763_v56  ;;  %v13954_v63 = vld [vmem:[#allocation20_spill] sm:$0xff] }
 0x54e   : > { %13937 = vst [vmem:[#allocation41_spill] sm:$0xff] %v12766_v36  ;;  %v7586_v45 = vsel %vm7106_vm2, %v7585_v19, %v7584_v26  ;;  %v7457_v17 = vmul.f32 %v12766_v36, %v12766_v36  ;;  %v7458_v3 = vmul.f32 %v12769_v55, %v12769_v55  ;;  %v7459_v18 = vmul.f32 %v12773_v53, %v12773_v53  ;;  %v13952_v36 = vld [vmem:[#allocation18_spill] sm:$0xff] }
 0x54f   : > { %13939 = vst [vmem:[#allocation30_spill] sm:$0xff] %v12769_v55  ;;  %v7693_v1 = vsel %vm774_vm6, %v7586_v45, 0.0  ;;  %v7460_v21 = vmul.f32 %v12776_v34, %v12776_v34  ;;  %v7587_v7 = vrot.slane %v7454_v44, 7  ;;  %v7589_v40 = vrot.slane %v7455_v2, 6  ;;  %v7225_v44 = vpop.xlane.xlu2 %7224 }
 0x550   : > { %13941 = vst [vmem:[#allocation52_spill] sm:$0xff] %v12773_v53  ;;  %7694 = vadd.xlane.f32.xlu0 %v7693_v1  ;;  %v7591_v60 = vrot.slane %v7456_v13, 5  ;;  %v7593_v22 = vrot.slane %v7457_v17, 4  ;;  %v7595_v58 = vrot.slane %v7458_v3, 3  ;;  %v7597_v19 = vrot.slane %v7459_v18, 2  ;;  %v13944_v1 = vld [vmem:[#allocation11_spill] sm:$0xff] }
 0x551   : > { %13943 = vst [vmem:[#allocation40_spill] sm:$0xff] %v12776_v34  ;;  %v7588_v33 = vsel %vm7088_vm13, %v7587_v7, %v7453_v0  ;;  %v7599_v23 = vrot.slane %v7460_v21, 1  ;;  %v7275_v35 = vrot.slane %v12731_v42, 1  ;;  %v7276_v45 = vrot.slane %v12731_v42, 2  ;;  %v13946_v21 = vld [vmem:[#allocation38_spill] sm:$0xff] }
 0x552   : > { %v7590_v26 = vsel %vm7091_vm14, %v7589_v40, %v7588_v33  ;;  %v7277_v53 = vrot.slane %v12731_v42, 3  ;;  %v7278_v34 = vrot.slane %v12731_v42, 4  ;;  %v7279_v13 = vrot.slane %v12731_v42, 5  ;;  %v13948_v40 = vld [vmem:[#allocation22_spill] sm:$0xff] }
 0x553   : > { %v7592_v2 = vsel %vm7094_vm0, %v7591_v60, %v7590_v26  ;;  %v7280_v17 = vrot.slane %v12731_v42, 6  ;;  %v7281_v0 = vrot.slane %v12731_v42, 7  ;;  %v12810_v18 = vsub.f32 %v13944_v1, %v12731_v42  ;;  %v13950_v26 = vld [vmem:[#allocation68_spill] sm:$0xff] }
 0x554   : > { %v7594_v3 = vsel %vm7097_vm1, %v7593_v22, %v7592_v2  ;;  %v12813_v7 = vsub.f32 %v13946_v21, %v7275_v35  ;;  %v12816_v33 = vsub.f32 %v13948_v40, %v7276_v45  ;;  %v12820_v55 = vsub.f32 %v13950_v26, %v7277_v53  ;;  %v13956_v35 = vld [vmem:[#allocation24_spill] sm:$0xff]  ;;  %v13958_v45 = vld [vmem:[#allocation39_spill] sm:$0xff] }
 0x555   : > { %13945 = vst [vmem:[#allocation37_spill] sm:$0xff] %v12810_v18  ;;  %v7596_v60 = vsel %vm7100_vm5, %v7595_v58, %v7594_v3  ;;  %v12823_v56 = vsub.f32 %v13952_v36, %v7278_v34  ;;  %v12826_v22 = vsub.f32 %v13954_v63, %v7279_v13  ;;  %v7248_v42 = vmul.f32 %v12702_v32, %v7225_v44 }
 0x556   : > { %13947 = vst [vmem:[#allocation57_spill] sm:$0xff] %v12813_v7  ;;  %v7598_v2 = vsel %vm7103_vm7, %v7597_v19, %v7596_v60  ;;  %v12831_v1 = vsub.f32 %v13956_v35, %v7280_v17  ;;  %v12834_v21 = vsub.f32 %v13958_v45, %v7281_v0  ;;  %v7462_v53 = vmul.f32 %v12813_v7, %v12813_v7 }
 0x557   : > { %13949 = vst [vmem:[#allocation51_spill] sm:$0xff] %v12816_v33  ;;  %v7600_v58 = vsel %vm7106_vm2, %v7599_v23, %v7598_v2  ;;  %v7463_v36 = vmul.f32 %v12816_v33, %v12816_v33  ;;  %v7464_v63 = vmul.f32 %v12820_v55, %v12820_v55  ;;  %v7465_v19 = vmul.f32 %v12823_v56, %v12823_v56 }
 0x558   : > { %13951 = vst [vmem:[#allocation9_spill] sm:$0xff] %v12820_v55  ;;  %v7696_v34 = vsel %vm774_vm6, %v7600_v58, 0.0  ;;  %v7466_v44 = vmul.f32 %v12826_v22, %v12826_v22  ;;  %v7467_v23 = vmul.f32 %v12831_v1, %v12831_v1  ;;  %v7461_v13 = vmul.f32 %v12810_v18, %v12810_v18  ;;  %v13965_v18 = vld [vmem:[#allocation19_spill] sm:$0xff] }
 0x559   : > { %13953 = vst [vmem:[#allocation49_spill] sm:$0xff] %v12823_v56  ;;  %7697 = vadd.xlane.f32.xlu1 %v7696_v34  ;;  %v7468_v17 = vmul.f32 %v12834_v21, %v12834_v21  ;;  %v7601_v0 = vrot.slane %v7462_v53, 7  ;;  %v7603_v3 = vrot.slane %v7463_v36, 6  ;;  %v7605_v40 = vrot.slane %v7464_v63, 5  ;;  %v13961_v36 = vld [vmem:[#allocation17_spill] sm:$0xff] }
 0x55a   : > { %13955 = vst [vmem:[#allocation47_spill] sm:$0xff] %v12826_v22  ;;  %v7607_v60 = vrot.slane %v7465_v19, 4  ;;  %v7609_v26 = vrot.slane %v7466_v44, 3  ;;  %v7282_v2 = vrot.slane %v7248_v42, 1  ;;  %v7611_v45 = vrot.slane %v7467_v23, 2  ;;  %v13962_v44 = vld [vmem:[#allocation14_spill] sm:$0xff] }
 0x55b   : > { %13957 = vst [vmem:[#allocation61_spill] sm:$0xff] %v12831_v1  ;;  %v7602_v35 = vsel %vm7088_vm13, %v7601_v0, %v7461_v13  ;;  %v7283_v58 = vrot.slane %v7248_v42, 2  ;;  %v7284_v22 = vrot.slane %v7248_v42, 3  ;;  %v7285_v34 = vrot.slane %v7248_v42, 4  ;;  %v13963_v13 = vld [vmem:[#allocation12_spill] sm:$0xff] }
 0x55c   : > { %13959 = vst [vmem:[#allocation60_spill] sm:$0xff] %v12834_v21  ;;  %v7604_v1 = vsel %vm7091_vm14, %v7603_v3, %v7602_v35  ;;  %v7286_v56 = vrot.slane %v7248_v42, 5  ;;  %v7287_v55 = vrot.slane %v7248_v42, 6  ;;  %v7288_v7 = vrot.slane %v7248_v42, 7  ;;  %v13960_v21 = vld [vmem:[#allocation23_spill] sm:$0xff] }
 0x55d   : > { %v7606_v33 = vsel %vm7094_vm0, %v7605_v40, %v7604_v1  ;;  %v12858_v53 = vsub.f32 %v13960_v21, %v7248_v42  ;;  %v12861_v63 = vsub.f32 %v13961_v36, %v7282_v2  ;;  %v12865_v23 = vsub.f32 %v13962_v44, %v7283_v58  ;;  %v13964_v3 = vld [vmem:[#allocation35_spill] sm:$0xff]  ;;  %v13966_v21 = vld [vmem:[#allocation13_spill] sm:$0xff] }
 0x55e   : > { %v7608_v19 = vsel %vm7097_vm1, %v7607_v60, %v7606_v33  ;;  %v12868_v0 = vsub.f32 %v13963_v13, %v7284_v22  ;;  %v12871_v35 = vsub.f32 %v13964_v3, %v7285_v34  ;;  %v7613_v40 = vrot.slane %v7468_v17, 1  ;;  %v13968_v60 = vld [vmem:[#allocation26_spill] sm:$0xff] }
 0x55f   : > { %v7610_v1 = vsel %vm7100_vm5, %v7609_v26, %v7608_v19  ;;  %v12875_v42 = vsub.f32 %v13965_v18, %v7286_v56  ;;  %v12878_v2 = vsub.f32 %v13966_v21, %v7287_v55  ;;  %v12882_v58 = vsub.f32 %v13968_v60, %v7288_v7 }
 0x560   : > { %v7612_v33 = vsel %vm7103_vm7, %v7611_v45, %v7610_v1  ;;  %v7470_v22 = vmul.f32 %v12861_v63, %v12861_v63  ;;  %v7471_v34 = vmul.f32 %v12865_v23, %v12865_v23  ;;  %v7472_v56 = vmul.f32 %v12868_v0, %v12868_v0 }
 0x561   : > { %13967 = vst [vmem:[#allocation58_spill] sm:$0xff] %v12878_v2  ;;  %v7614_v26 = vsel %vm7106_vm2, %v7613_v40, %v7612_v33  ;;  %v7473_v55 = vmul.f32 %v12871_v35, %v12871_v35  ;;  %v7469_v7 = vmul.f32 %v12858_v53, %v12858_v53  ;;  %v7474_v17 = vmul.f32 %v12875_v42, %v12875_v42 }
 0x562   : > { %13969 = vst [vmem:[#allocation55_spill] sm:$0xff] %v12882_v58  ;;  %v7699_v18 = vsel %vm774_vm6, %v7614_v26, 0.0  ;;  %v7615_v45 = vrot.slane %v7470_v22, 7  ;;  %v7475_v36 = vmul.f32 %v12878_v2, %v12878_v2  ;;  %v7617_v19 = vrot.slane %v7471_v34, 6 }
 0x563   : > { %7700 = vadd.xlane.f32.xlu2 %v7699_v18  ;;  %v7476_v44 = vmul.f32 %v12882_v58, %v12882_v58  ;;  %v7619_v3 = vrot.slane %v7472_v56, 5  ;;  %v7621_v40 = vrot.slane %v7473_v55, 4  ;;  %v7623_v33 = vrot.slane %v7474_v17, 3 }
 0x564   : > { %v7616_v13 = vsel %vm7088_vm13, %v7615_v45, %v7469_v7  ;;  %v7625_v22 = vrot.slane %v7475_v36, 2 }
 0x565   : > { %v7618_v1 = vsel %vm7091_vm14, %v7617_v19, %v7616_v13  ;;  %v7627_v18 = vrot.slane %v7476_v44, 1 }
 0x566   : > { %v7620_v21 = vsel %vm7094_vm0, %v7619_v3, %v7618_v1 }
 0x567   : > { %v7622_v60 = vsel %vm7097_vm1, %v7621_v40, %v7620_v21 }
 0x568   : > { %v7624_v26 = vsel %vm7100_vm5, %v7623_v33, %v7622_v60 }
 0x569   : > { %v7626_v34 = vsel %vm7103_vm7, %v7625_v22, %v7624_v26 }
 0x56a   : > { %v7628_v2 = vsel %vm7106_vm2, %v7627_v18, %v7626_v34 }
 0x56b   : > { %v7702_v58 = vsel %vm774_vm6, %v7628_v2, 0.0 }
 0x56c   : > { %7703 = vadd.xlane.f32.xlu0 %v7702_v58 }
 0x594   : > { %v7231_v56 = vpop.xlane.xlu0 %7230 }
 0x595   : > { %v7250_v7 = vmul.f32 %v12702_v32, %v7231_v56 }
 0x597   : > { %v7296_v55 = vrot.slane %v7250_v7, 1  ;;  %v7297_v45 = vrot.slane %v7250_v7, 2  ;;  %v7298_v19 = vrot.slane %v7250_v7, 3  ;;  %v7299_v17 = vrot.slane %v7250_v7, 4 }
 0x598   : > { %v7300_v13 = vrot.slane %v7250_v7, 5  ;;  %v7301_v3 = vrot.slane %v7250_v7, 6  ;;  %v7302_v36 = vrot.slane %v7250_v7, 7  ;;  %v12912_v1 = vsub.f32 %v12493_v43, %v7250_v7 }
 0x599   : > { %v12915_v44 = vsub.f32 %v12419_v27, %v7296_v55  ;;  %v12918_v40 = vsub.f32 %v12471_v24, %v7297_v45  ;;  %v12921_v2 = vsub.f32 %v12347_v39, %v7298_v19  ;;  %v12924_v58 = vsub.f32 %v12546_v11, %v7299_v17 }
 0x59a   : > { %v12927_v21 = vsub.f32 %v12580_v49, %v7300_v13  ;;  %v12930_v33 = vsub.f32 %v12582_v5, %v7301_v3  ;;  %v12933_v43 = vsub.f32 %v12588_v61, %v7302_v36  ;;  %v7485_v27 = vmul.f32 %v12912_v1, %v12912_v1 }
 0x59b   : > { %13970 = vst [vmem:[#allocation43_spill] sm:$0xff] %v12918_v40  ;;  %v7486_v39 = vmul.f32 %v12915_v44, %v12915_v44  ;;  %v7487_v11 = vmul.f32 %v12918_v40, %v12918_v40  ;;  %v7488_v49 = vmul.f32 %v12921_v2, %v12921_v2  ;;  %v7489_v5 = vmul.f32 %v12924_v58, %v12924_v58 }
 0x59c   : > { %13971 = vst [vmem:[#allocation54_spill] sm:$0xff] %v12921_v2  ;;  %v7228_v24 = vpop.xlane.xlu2 %7227  ;;  %v7490_v61 = vmul.f32 %v12927_v21, %v12927_v21  ;;  %v7491_v22 = vmul.f32 %v12930_v33, %v12930_v33  ;;  %v7492_v26 = vmul.f32 %v12933_v43, %v12933_v43 }
 0x59d   : > { %13972 = vst [vmem:[#allocation8_spill] sm:$0xff] %v12924_v58  ;;  %v7249_v60 = vmul.f32 %v12702_v32, %v7228_v24  ;;  %v7643_v18 = vrot.slane %v7486_v39, 7  ;;  %v7645_v34 = vrot.slane %v7487_v11, 6  ;;  %v7647_v56 = vrot.slane %v7488_v49, 5 }
 0x59e   : > { %13973 = vst [vmem:[#allocation64_spill] sm:$0xff] %v12927_v21  ;;  %v7649_v7 = vrot.slane %v7489_v5, 4  ;;  %v7651_v55 = vrot.slane %v7490_v61, 3  ;;  %v7653_v45 = vrot.slane %v7491_v22, 2  ;;  %v7655_v19 = vrot.slane %v7492_v26, 1 }
 0x59f   : > { %13974 = vst [vmem:[#allocation45_spill] sm:$0xff] %v12930_v33  ;;  %v7289_v17 = vrot.slane %v7249_v60, 1  ;;  %v7644_v13 = vsel %vm7088_vm13, %v7643_v18, %v7485_v27  ;;  %v7290_v3 = vrot.slane %v7249_v60, 2  ;;  %v7291_v36 = vrot.slane %v7249_v60, 3 }
 0x5a0   : > { %v7292_v24 = vrot.slane %v7249_v60, 4  ;;  %v7234_v21 = vpop.xlane.xlu1 %7233  ;;  %v7646_v58 = vsel %vm7091_vm14, %v7645_v34, %v7644_v13  ;;  %v7293_v33 = vrot.slane %v7249_v60, 5  ;;  %v7294_v2 = vrot.slane %v7249_v60, 6 }
 0x5a1   : > { %v7295_v40 = vrot.slane %v7249_v60, 7  ;;  %v7251_v39 = vmul.f32 %v12702_v32, %v7234_v21  ;;  %v7648_v11 = vsel %vm7094_vm0, %v7647_v56, %v7646_v58  ;;  %v12957_v49 = vsub.f32 %v12261_v48, %v7249_v60 }
 0x5a2   : > { %v12960_v5 = vsub.f32 %v12256_v8, %v7289_v17  ;;  %v7650_v27 = vsel %vm7097_vm1, %v7649_v7, %v7648_v11  ;;  %v12964_v61 = vsub.f32 %v12135_v38, %v7290_v3  ;;  %v12967_v22 = vsub.f32 %v12326_v46, %v7291_v36 }
 0x5a3   : > { %v12970_v26 = vsub.f32 %v12322_v47, %v7292_v24  ;;  %v7652_v21 = vsel %vm7100_vm5, %v7651_v55, %v7650_v27  ;;  %v12974_v58 = vsub.f32 %v12615_v25, %v7293_v33  ;;  %v12977_v48 = vsub.f32 %v12618_v62, %v7294_v2 }
 0x5a4   : > { %v12980_v8 = vsub.f32 %v12621_v16, %v7295_v40  ;;  %v7654_v38 = vsel %vm7103_vm7, %v7653_v45, %v7652_v21  ;;  %v7477_v46 = vmul.f32 %v12957_v49, %v12957_v49  ;;  %v7478_v47 = vmul.f32 %v12960_v5, %v12960_v5 }
 0x5a5   : > { %v7479_v60 = vmul.f32 %v12964_v61, %v12964_v61  ;;  %v7656_v25 = vsel %vm7106_vm2, %v7655_v19, %v7654_v38  ;;  %v7480_v62 = vmul.f32 %v12967_v22, %v12967_v22  ;;  %v7481_v16 = vmul.f32 %v12970_v26, %v12970_v26 }
 0x5a6   : > { %v7482_v40 = vmul.f32 %v12974_v58, %v12974_v58  ;;  %v7237_v2 = vpop.xlane.xlu2 %7236  ;;  %v7708_v33 = vsel %vm774_vm6, %v7656_v25, 0.0  ;;  %v7483_v18 = vmul.f32 %v12977_v48, %v12977_v48  ;;  %v7484_v34 = vmul.f32 %v12980_v8, %v12980_v8 }
 0x5a7   : > { %v7629_v56 = vrot.slane %v7478_v47, 7  ;;  %v13002_v7 = vmul.f32 %v12702_v32, %v7237_v2  ;;  %7709 = vadd.xlane.f32.xlu2 %v7708_v33  ;;  %v7631_v55 = vrot.slane %v7479_v60, 6  ;;  %v7633_v45 = vrot.slane %v7480_v62, 5 }
 0x5a8   : > { %v7635_v19 = vrot.slane %v7481_v16, 4  ;;  %v7637_v13 = vrot.slane %v7482_v40, 3  ;;  %v7639_v3 = vrot.slane %v7483_v18, 2  ;;  %v7641_v36 = vrot.slane %v7484_v34, 1 }
 0x5a9   : > { %v7630_v17 = vsel %vm7088_vm13, %v7629_v56, %v7477_v46  ;;  %v7303_v11 = vrot.slane %v7251_v39, 1  ;;  %v7304_v27 = vrot.slane %v7251_v39, 2  ;;  %v7305_v21 = vrot.slane %v7251_v39, 3 }
 0x5aa   : > { %v7632_v24 = vsel %vm7091_vm14, %v7631_v55, %v7630_v17  ;;  %v7306_v47 = vrot.slane %v7251_v39, 4  ;;  %v7307_v25 = vrot.slane %v7251_v39, 5  ;;  %v7308_v2 = vrot.slane %v7251_v39, 6 }
 0x5ab   : > { %v7634_v38 = vsel %vm7094_vm0, %v7633_v45, %v7632_v24  ;;  %v7309_v60 = vrot.slane %v7251_v39, 7  ;;  %v13009_v62 = vsub.f32 %v12532_v31, %v7251_v39  ;;  %v13012_v46 = vsub.f32 %v12217_v15, %v7303_v11 }
 0x5ac   : > { %v7636_v33 = vsel %vm7097_vm1, %v7635_v19, %v7634_v38  ;;  %v13016_v40 = vsub.f32 %v12242_v52, %v7304_v27  ;;  %v13019_v18 = vsub.f32 %v12527_v12, %v7305_v21  ;;  %v13022_v34 = vsub.f32 %v12465_v6, %v7306_v47 }
 0x5ad   : > { %v7638_v16 = vsel %vm7100_vm5, %v7637_v13, %v7636_v33  ;;  %v13026_v55 = vsub.f32 %v12645_v54, %v7307_v25  ;;  %v13029_v31 = vsub.f32 %v12654_v50, %v7308_v2  ;;  %v13032_v15 = vsub.f32 %v12664_v29, %v7309_v60 }
 0x5ae   : > { %v7640_v56 = vsel %vm7103_vm7, %v7639_v3, %v7638_v16  ;;  %v7493_v12 = vmul.f32 %v13009_v62, %v13009_v62  ;;  %v7494_v6 = vmul.f32 %v13012_v46, %v13012_v46  ;;  %v7495_v39 = vmul.f32 %v13016_v40, %v13016_v40 }
 0x5af   : > { %v7642_v52 = vsel %vm7106_vm2, %v7641_v36, %v7640_v56  ;;  %v7496_v50 = vmul.f32 %v13019_v18, %v13019_v18  ;;  %v7497_v29 = vmul.f32 %v13022_v34, %v13022_v34  ;;  %v7498_v45 = vmul.f32 %v13026_v55, %v13026_v55 }
 0x5b0   : > { %v7705_v54 = vsel %vm774_vm6, %v7642_v52, 0.0  ;;  %v7499_v19 = vmul.f32 %v13029_v31, %v13029_v31  ;;  %v7500_v17 = vmul.f32 %v13032_v15, %v13032_v15  ;;  %v7657_v13 = vrot.slane %v7494_v6, 7 }
 0x5b1   : > { %7706 = vadd.xlane.f32.xlu1 %v7705_v54  ;;  %v7659_v3 = vrot.slane %v7495_v39, 6  ;;  %v7661_v36 = vrot.slane %v7496_v50, 5  ;;  %v7663_v24 = vrot.slane %v7497_v29, 4  ;;  %v7310_v11 = vrot.slane %v13002_v7, 1 }
 0x5b2   : > { %v7658_v27 = vsel %vm7088_vm13, %v7657_v13, %v7493_v12  ;;  %v7665_v21 = vrot.slane %v7498_v45, 3  ;;  %v7667_v38 = vrot.slane %v7499_v19, 2  ;;  %v7311_v47 = vrot.slane %v13002_v7, 2 }
 0x5b3   : > { %v7660_v25 = vsel %vm7091_vm14, %v7659_v3, %v7658_v27  ;;  %v7312_v2 = vrot.slane %v13002_v7, 3  ;;  %v7313_v33 = vrot.slane %v13002_v7, 4  ;;  %v7314_v60 = vrot.slane %v13002_v7, 5 }
 0x5b4   : > { %v7662_v16 = vsel %vm7094_vm0, %v7661_v36, %v7660_v25  ;;  %v7669_v56 = vrot.slane %v7500_v17, 1  ;;  %v7315_v52 = vrot.slane %v13002_v7, 6  ;;  %v7316_v6 = vrot.slane %v13002_v7, 7 }
 0x5b5   : > { %v7664_v12 = vsel %vm7097_vm1, %v7663_v24, %v7662_v16  ;;  %v13064_v39 = vsub.f32 %v12473_v37, %v7310_v11  ;;  %v13067_v54 = vsub.f32 %v12502_v20, %v7311_v47  ;;  %v13070_v50 = vsub.f32 %v12554_v4, %v7312_v2 }
 0x5b6   : > { %v7666_v29 = vsel %vm7100_vm5, %v7665_v21, %v7664_v12  ;;  %v13075_v45 = vsub.f32 %v12445_v59, %v13002_v7  ;;  %v13078_v19 = vsub.f32 %v12569_v51, %v7313_v33  ;;  %v13081_v17 = vsub.f32 %v12680_v28, %v7314_v60 }
 0x5b7   : > { %v7668_v37 = vsel %vm7103_vm7, %v7667_v38, %v7666_v29  ;;  %v13085_v20 = vsub.f32 %v12682_v14, %v7315_v52  ;;  %v7502_v4 = vmul.f32 %v13064_v39, %v13064_v39  ;;  %v13091_v3 = vsub.f32 %v12688_v57, %v7316_v6 }
 0x5b8   : > { %v7670_v13 = vsel %vm7106_vm2, %v7669_v56, %v7668_v37  ;;  %v7503_v59 = vmul.f32 %v13067_v54, %v13067_v54  ;;  %v7504_v51 = vmul.f32 %v13070_v50, %v13070_v50  ;;  %v7505_v14 = vmul.f32 %v13078_v19, %v13078_v19 }
 0x5b9   : > { %13975 = vst [vmem:[#allocation53_spill] sm:$0xff] %v13091_v3  ;;  %v7711_v28 = vsel %vm774_vm6, %v7670_v13, 0.0  ;;  %v7501_v7 = vmul.f32 %v13075_v45, %v13075_v45  ;;  %v7506_v36 = vmul.f32 %v13081_v17, %v13081_v17  ;;  %v7671_v57 = vrot.slane %v7502_v4, 7 }
 0x5ba   : > { %7712 = vadd.xlane.f32.xlu0 %v7711_v28  ;;  %v7673_v24 = vrot.slane %v7503_v59, 6  ;;  %v7507_v11 = vmul.f32 %v13085_v20, %v13085_v20  ;;  %v7508_v27 = vmul.f32 %v13091_v3, %v13091_v3  ;;  %v7675_v38 = vrot.slane %v7504_v51, 5 }
 0x5bb   : > { %v7672_v21 = vsel %vm7088_vm13, %v7671_v57, %v7501_v7  ;;  %v7677_v25 = vrot.slane %v7505_v14, 4  ;;  %v7679_v33 = vrot.slane %v7506_v36, 3 }
 0x5bc   : > { %v7674_v47 = vsel %vm7091_vm14, %v7673_v24, %v7672_v21  ;;  %v7681_v16 = vrot.slane %v7507_v11, 2  ;;  %v7683_v52 = vrot.slane %v7508_v27, 1  ;;  %v13126_v21 = vld [vmem:[%s13448_s10] ss:$0 sm:$0xff] }
 0x5bd   : > { %v7676_v2 = vsel %vm7094_vm0, %v7675_v38, %v7674_v47 }
 0x5be   : > { %v7678_v60 = vsel %vm7097_vm1, %v7677_v25, %v7676_v2 }
 0x5bf   : > { %v7680_v56 = vsel %vm7100_vm5, %v7679_v33, %v7678_v60 }
 0x5c0   : > { %v7682_v6 = vsel %vm7103_vm7, %v7681_v16, %v7680_v56 }
 0x5c1   : > { %v7684_v12 = vsel %vm7106_vm2, %v7683_v52, %v7682_v6 }
 0x5c2   : > { %v7714_v37 = vsel %vm774_vm6, %v7684_v12, 0.0 }
 0x5c3   : > { %v7695_v29 = vpop.xlane.xlu0 %7694  ;;  %7715 = vadd.xlane.f32.xlu1 %v7714_v37 }
 0x5c4   : > { %v7717_v4 = vmul.f32 %v7695_v29, %v12702_v32  ;;  %v13976_v29 = vld [vmem:[#allocation44_spill] sm:$0xff] }
 0x5c6   : > { %v7725_v13 = vadd.f32 1e-05, %v7717_v4  ;;  %v13977_v4 = vld [vmem:[#allocation31_spill] sm:$0xff] }
 0x5c8   : > { %8993 = vrsqrt.f32 %v7725_v13  ;;  %vm7739_vm9 = vweird.f32 %v7725_v13 }
 0x5cc   : > { %v7698_v59 = vpop.xlane.xlu1 %7697 }
 0x5cd   : > { %v7718_v51 = vmul.f32 %v7698_v59, %v12702_v32  ;;  %v13978_v59 = vld [vmem:[#allocation50_spill] sm:$0xff] }
 0x5ce   : > { %v8994_v28 = vpop.eup %8993 }
 0x5cf   : > { %v7734_v14 = vmul.f32 %v8994_v28, %v7725_v13  ;;  %v13118_v7 = vadd.f32 1e-05, %v7718_v51  ;;  %vm7740_vm8 = vweird.f32 %v8994_v28 }
 0x5d0   : > { %vm7741_vm10 = vmor %vm7739_vm9, %vm7740_vm8 }
 0x5d1   : > { %v7735_v36 = vmul.f32 %v8994_v28, %v7734_v14  ;;  %8995 = vrsqrt.f32 %v13118_v7  ;;  %vm7749_vm12 = vweird.f32 %v13118_v7 }
 0x5d3   : > { %v7736_v57 = vmul.f32 0.5, %v7735_v36  ;;  %v13980_v36 = vld [vmem:[#allocation29_spill] sm:$0xff] }
 0x5d5   : > { %v7737_v24 = vsub.f32 1.5, %v7736_v57 }
 0x5d7   : > { %v13121_v11 = vpop.eup %8995  ;;  %v7738_v27 = vmul.f32 %v8994_v28, %v7737_v24  ;;  %v13981_v24 = vld [vmem:[#allocation34_spill] sm:$0xff] }
 0x5d8   : > { %v7744_v47 = vmul.f32 %v13121_v11, %v13118_v7  ;;  %vm7750_vm11 = vweird.f32 %v13121_v11 }
 0x5d9   : > { %v7742_v38 = vsel %vm7741_vm10, %v8994_v28, %v7738_v27  ;;  %v13979_v28 = vld [vmem:[#allocation46_spill] sm:$0xff]  ;;  %vm7751_vm15 = vmor %vm7749_vm12, %vm7750_vm11 }
 0x5da   : > { %v7821_v25 = vrot.slane %v7742_v38, 1  ;;  %v7822_v2 = vrot.slane %v7742_v38, 2  ;;  %v7823_v33 = vrot.slane %v7742_v38, 3  ;;  %v7824_v60 = vrot.slane %v7742_v38, 4 }
 0x5db   : > { %v7825_v16 = vrot.slane %v7742_v38, 5  ;;  %v7826_v56 = vrot.slane %v7742_v38, 6  ;;  %v7827_v52 = vrot.slane %v7742_v38, 7  ;;  %v7941_v6 = vmul.f32 %v7742_v38, %v12707_v9  ;;  %v13142_v9 = vld [vmem:[%s13449_s11] ss:$0 sm:$0xff] }
 0x5dc   : > { %v7942_v12 = vmul.f32 %v7821_v25, %v12710_v10  ;;  %v7943_v37 = vmul.f32 %v7822_v2, %v13976_v29  ;;  %v7944_v13 = vmul.f32 %v7823_v33, %v13977_v4  ;;  %v7945_v51 = vmul.f32 %v7824_v60, %v13978_v59 }
 0x5dd   : > { %v7946_v14 = vmul.f32 %v7825_v16, %v13979_v28  ;;  %v7947_v57 = vmul.f32 %v7826_v56, %v13980_v36  ;;  %v7948_v27 = vmul.f32 %v7827_v52, %v13981_v24  ;;  %v8009_v3 = vmul.f32 %v13126_v21, %v7941_v6 }
 0x5de   : > { %v8010_v10 = vmul.f32 %v13126_v21, %v7942_v12  ;;  %v8011_v38 = vmul.f32 %v13126_v21, %v7943_v37  ;;  %v8012_v25 = vmul.f32 %v13126_v21, %v7944_v13  ;;  %v8013_v2 = vmul.f32 %v13126_v21, %v7945_v51  ;;  %v7701_v37 = vpop.xlane.xlu2 %7700 }
 0x5df   : > { %v8014_v33 = vmul.f32 %v13126_v21, %v7946_v14  ;;  %v8015_v60 = vmul.f32 %v13126_v21, %v7947_v57  ;;  %v8016_v16 = vmul.f32 %v13126_v21, %v7948_v27  ;;  %v7745_v29 = vmul.f32 %v13121_v11, %v7744_v47 }
 0x5e0   : > { %v8078_v56 = vadd.f32 %v13142_v9, %v8010_v10  ;;  %v8079_v52 = vadd.f32 %v13142_v9, %v8011_v38  ;;  %v8080_v6 = vadd.f32 %v13142_v9, %v8012_v25  ;;  %v8081_v12 = vadd.f32 %v13142_v9, %v8013_v2 }
 0x5e1   : > { %v8077_v4 = vadd.f32 %v13142_v9, %v8009_v3  ;;  %v8082_v13 = vadd.f32 %v13142_v9, %v8014_v33  ;;  %v8083_v28 = vadd.f32 %v13142_v9, %v8015_v60  ;;  %v7746_v14 = vmul.f32 0.5, %v7745_v29 }
 0x5e2   : > { %v8205_v59 = vrot.slane %v8078_v56, 7  ;;  %v8207_v51 = vrot.slane %v8079_v52, 6  ;;  %v8084_v36 = vadd.f32 %v13142_v9, %v8016_v16  ;;  %v8209_v24 = vrot.slane %v8080_v6, 5 }
 0x5e3   : > { %v7719_v27 = vmul.f32 %v7701_v37, %v12702_v32  ;;  %v8211_v47 = vrot.slane %v8081_v12, 4  ;;  %v7747_v38 = vsub.f32 1.5, %v7746_v14  ;;  %v8213_v25 = vrot.slane %v8082_v13, 3 }
 0x5e4   : > { %v8206_v57 = vsel %vm7088_vm13, %v8205_v59, %v8077_v4  ;;  %v8215_v60 = vrot.slane %v8083_v28, 2  ;;  %v8217_v52 = vrot.slane %v8084_v36, 1 }
 0x5e5   : > { %v8208_v10 = vsel %vm7091_vm14, %v8207_v51, %v8206_v57  ;;  %v13165_v2 = vadd.f32 1e-05, %v7719_v27  ;;  %v7748_v16 = vmul.f32 %v13121_v11, %v7747_v38  ;;  %v13982_v57 = vld [vmem:[#allocation15_spill] sm:$0xff]  ;;  %v13985_v38 = vld [vmem:[#allocation30_spill] sm:$0xff] }
 0x5e6   : > { %v8210_v3 = vsel %vm7094_vm0, %v8209_v24, %v8208_v10  ;;  %v13984_v10 = vld [vmem:[#allocation41_spill] sm:$0xff] }
 0x5e7   : > { %v8212_v33 = vsel %vm7097_vm1, %v8211_v47, %v8210_v3  ;;  %v7752_v12 = vsel %vm7751_vm15, %v13121_v11, %v7748_v16  ;;  %8997 = vrsqrt.f32 %v13165_v2  ;;  %v13983_v11 = vld [vmem:[#allocation21_spill] sm:$0xff]  ;;  %vm7759_vm3 = vweird.f32 %v13165_v2 }
 0x5e8   : > { %v8214_v56 = vsel %vm7100_vm5, %v8213_v25, %v8212_v33  ;;  %v7828_v37 = vrot.slane %v7752_v12, 1  ;;  %v7829_v4 = vrot.slane %v7752_v12, 2  ;;  %v7830_v13 = vrot.slane %v7752_v12, 3  ;;  %v13986_v25 = vld [vmem:[#allocation52_spill] sm:$0xff] }
 0x5e9   : > { %v8216_v6 = vsel %vm7103_vm7, %v8215_v60, %v8214_v56  ;;  %v7831_v59 = vrot.slane %v7752_v12, 4  ;;  %v7832_v51 = vrot.slane %v7752_v12, 5  ;;  %v7833_v7 = vrot.slane %v7752_v12, 6  ;;  %v13987_v60 = vld [vmem:[#allocation40_spill] sm:$0xff] }
 0x5ea   : > { %v8218_v29 = vsel %vm7106_vm2, %v8217_v52, %v8216_v6  ;;  %v7834_v28 = vrot.slane %v7752_v12, 7  ;;  %v7949_v14 = vmul.f32 %v7752_v12, %v12753_v30  ;;  %v7950_v36 = vmul.f32 %v7828_v37, %v12756_v41 }
 0x5eb   : > { %8325 = vst.msk [vmem:[%s9143_s26] sm:$0xff] %vm774_vm6, %v8218_v29  ;;  %v7951_v24 = vmul.f32 %v7829_v4, %v13982_v57  ;;  %v7952_v27 = vmul.f32 %v7830_v13, %v13983_v11  ;;  %v7953_v47 = vmul.f32 %v7831_v59, %v13984_v10  ;;  %v7954_v3 = vmul.f32 %v7832_v51, %v13985_v38 }
 0x5ec   : > { %v7955_v33 = vmul.f32 %v7833_v7, %v13986_v25  ;;  %v7956_v16 = vmul.f32 %v7834_v28, %v13987_v60  ;;  %v8017_v56 = vmul.f32 %v13126_v21, %v7949_v14  ;;  %v8018_v52 = vmul.f32 %v13126_v21, %v7950_v36  ;;  %v7704_v14 = vpop.xlane.xlu0 %7703 }
 0x5ed   : > { %v8019_v30 = vmul.f32 %v13126_v21, %v7951_v24  ;;  %v8020_v41 = vmul.f32 %v13126_v21, %v7952_v27  ;;  %v8998_v6 = vpop.eup %8997  ;;  %v8021_v12 = vmul.f32 %v13126_v21, %v7953_v47  ;;  %v8022_v29 = vmul.f32 %v13126_v21, %v7954_v3 }
 0x5ee   : > { %v8023_v37 = vmul.f32 %v13126_v21, %v7955_v33  ;;  %v8024_v4 = vmul.f32 %v13126_v21, %v7956_v16  ;;  %v8086_v13 = vadd.f32 %v13142_v9, %v8018_v52  ;;  %v8085_v7 = vadd.f32 %v13142_v9, %v8017_v56 }
 0x5ef   : > { %v8087_v59 = vadd.f32 %v13142_v9, %v8019_v30  ;;  %v8088_v51 = vadd.f32 %v13142_v9, %v8020_v41  ;;  %v8089_v28 = vadd.f32 %v13142_v9, %v8021_v12  ;;  %v8090_v36 = vadd.f32 %v13142_v9, %v8022_v29 }
 0x5f0   : > { %v8219_v57 = vrot.slane %v8086_v13, 7  ;;  %v7754_v11 = vmul.f32 %v8998_v6, %v13165_v2  ;;  %v8091_v27 = vadd.f32 %v13142_v9, %v8023_v37  ;;  %v8092_v10 = vadd.f32 %v13142_v9, %v8024_v4  ;;  %v13991_v2 = vld [vmem:[#allocation9_spill] sm:$0xff] }
 0x5f1   : > { %v8221_v24 = vrot.slane %v8087_v59, 6  ;;  %v8223_v38 = vrot.slane %v8088_v51, 5  ;;  %v7720_v25 = vmul.f32 %v7704_v14, %v12702_v32  ;;  %v8225_v60 = vrot.slane %v8089_v28, 4 }
 0x5f2   : > { %v8220_v47 = vsel %vm7088_vm13, %v8219_v57, %v8085_v7  ;;  %v7755_v3 = vmul.f32 %v8998_v6, %v7754_v11  ;;  %v8227_v56 = vrot.slane %v8090_v36, 3  ;;  %v8229_v41 = vrot.slane %v8091_v27, 2 }
 0x5f3   : > { %v8222_v33 = vsel %vm7091_vm14, %v8221_v24, %v8220_v47  ;;  %v13207_v12 = vadd.f32 1e-05, %v7720_v25  ;;  %v8231_v37 = vrot.slane %v8092_v10, 1  ;;  %vm7760_vm4 = vweird.f32 %v8998_v6  ;;  %v13988_v10 = vld [vmem:[#allocation37_spill] sm:$0xff]  ;;  %v13990_v25 = vld [vmem:[#allocation51_spill] sm:$0xff] }
 0x5f4   : > { %v8224_v16 = vsel %vm7094_vm0, %v8223_v38, %v8222_v33  ;;  %v7756_v52 = vmul.f32 0.5, %v7755_v3  ;;  %vm7761_vm8 = vmor %vm7759_vm3, %vm7760_vm4  ;;  %v13989_v38 = vld [vmem:[#allocation57_spill] sm:$0xff] }
 0x5f5   : > { %v8226_v30 = vsel %vm7097_vm1, %v8225_v60, %v8224_v16  ;;  %8999 = vrsqrt.f32 %v13207_v12  ;;  %v13992_v16 = vld [vmem:[#allocation49_spill] sm:$0xff]  ;;  %vm7769_vm10 = vweird.f32 %v13207_v12 }
 0x5f6   : > { %v8228_v29 = vsel %vm7100_vm5, %v8227_v56, %v8226_v30  ;;  %v7757_v4 = vsub.f32 1.5, %v7756_v52  ;;  %v13993_v52 = vld [vmem:[#allocation47_spill] sm:$0xff] }
 0x5f7   : > { %v8230_v13 = vsel %vm7103_vm7, %v8229_v41, %v8228_v29  ;;  %v13995_v29 = vld [vmem:[#allocation60_spill] sm:$0xff] }
 0x5f8   : > { %v8232_v59 = vsel %vm7106_vm2, %v8231_v37, %v8230_v13  ;;  %v7758_v51 = vmul.f32 %v8998_v6, %v7757_v4 }
 0x5f9   : > { %8326 = vst.msk [vmem:[%s9143_s26 + $0x8] sm:$0xff] %vm774_vm6, %v8232_v59 }
 0x5fa   : > { %v7762_v7 = vsel %vm7761_vm8, %v8998_v6, %v7758_v51  ;;  %v13994_v6 = vld [vmem:[#allocation61_spill] sm:$0xff] }
 0x5fb   : > { %v7835_v28 = vrot.slane %v7762_v7, 1  ;;  %v7836_v14 = vrot.slane %v7762_v7, 2  ;;  %v7837_v36 = vrot.slane %v7762_v7, 3  ;;  %v7838_v57 = vrot.slane %v7762_v7, 4  ;;  %v9000_v13 = vpop.eup %8999 }
 0x5fc   : > { %v7839_v24 = vrot.slane %v7762_v7, 5  ;;  %v7840_v11 = vrot.slane %v7762_v7, 6  ;;  %v7841_v27 = vrot.slane %v7762_v7, 7  ;;  %v7957_v47 = vmul.f32 %v7762_v7, %v13988_v10 }
 0x5fd   : > { %v7958_v3 = vmul.f32 %v7835_v28, %v13989_v38  ;;  %v7959_v33 = vmul.f32 %v7836_v14, %v13990_v25  ;;  %v7960_v60 = vmul.f32 %v7837_v36, %v13991_v2  ;;  %v7961_v56 = vmul.f32 %v7838_v57, %v13992_v16 }
 0x5fe   : > { %v7962_v30 = vmul.f32 %v7839_v24, %v13993_v52  ;;  %v7963_v41 = vmul.f32 %v7840_v11, %v13994_v6  ;;  %v7964_v37 = vmul.f32 %v7841_v27, %v13995_v29  ;;  %v8025_v4 = vmul.f32 %v13126_v21, %v7957_v47 }
 0x5ff   : > { %v8026_v59 = vmul.f32 %v13126_v21, %v7958_v3  ;;  %v8027_v51 = vmul.f32 %v13126_v21, %v7959_v33  ;;  %v8028_v7 = vmul.f32 %v13126_v21, %v7960_v60  ;;  %v8029_v28 = vmul.f32 %v13126_v21, %v7961_v56 }
 0x600   : > { %v8030_v14 = vmul.f32 %v13126_v21, %v7962_v30  ;;  %v8031_v36 = vmul.f32 %v13126_v21, %v7963_v41  ;;  %v8032_v57 = vmul.f32 %v13126_v21, %v7964_v37  ;;  %v7764_v47 = vmul.f32 %v9000_v13, %v13207_v12 }
 0x601   : > { %v8094_v24 = vadd.f32 %v13142_v9, %v8026_v59  ;;  %v8095_v11 = vadd.f32 %v13142_v9, %v8027_v51  ;;  %v8096_v27 = vadd.f32 %v13142_v9, %v8028_v7  ;;  %v8097_v10 = vadd.f32 %v13142_v9, %v8029_v28 }
 0x602   : > { %v8093_v38 = vadd.f32 %v13142_v9, %v8025_v4  ;;  %v8098_v3 = vadd.f32 %v13142_v9, %v8030_v14  ;;  %v8099_v2 = vadd.f32 %v13142_v9, %v8031_v36  ;;  %v7765_v60 = vmul.f32 %v9000_v13, %v7764_v47 }
 0x603   : > { %v8233_v25 = vrot.slane %v8094_v24, 7  ;;  %v8235_v33 = vrot.slane %v8095_v11, 6  ;;  %v8100_v16 = vadd.f32 %v13142_v9, %v8032_v57  ;;  %v8237_v52 = vrot.slane %v8096_v27, 5 }
 0x604   : > { %v8239_v6 = vrot.slane %v8097_v10, 4  ;;  %v7766_v41 = vmul.f32 0.5, %v7765_v60  ;;  %v8241_v37 = vrot.slane %v8098_v3, 3  ;;  %v8243_v59 = vrot.slane %v8099_v2, 2 }
 0x605   : > { %v8234_v56 = vsel %vm7088_vm13, %v8233_v25, %v8093_v38  ;;  %vm7770_vm9 = vweird.f32 %v9000_v13  ;;  %v8245_v28 = vrot.slane %v8100_v16, 1 }
 0x606   : > { %v8236_v30 = vsel %vm7091_vm14, %v8235_v33, %v8234_v56  ;;  %v7767_v51 = vsub.f32 1.5, %v7766_v41  ;;  %vm7771_vm11 = vmor %vm7769_vm10, %vm7770_vm9 }
 0x607   : > { %v8238_v29 = vsel %vm7094_vm0, %v8237_v52, %v8236_v30  ;;  %v13997_v30 = vld [vmem:[#allocation55_spill] sm:$0xff] }
 0x608   : > { %v8240_v4 = vsel %vm7097_vm1, %v8239_v6, %v8238_v29  ;;  %v7768_v36 = vmul.f32 %v9000_v13, %v7767_v51 }
 0x609   : > { %v8242_v7 = vsel %vm7100_vm5, %v8241_v37, %v8240_v4 }
 0x60a   : > { %v8244_v14 = vsel %vm7103_vm7, %v8243_v59, %v8242_v7  ;;  %v7772_v24 = vsel %vm7771_vm11, %v9000_v13, %v7768_v36  ;;  %v13996_v13 = vld [vmem:[#allocation58_spill] sm:$0xff] }
 0x60b   : > { %v8246_v57 = vsel %vm7106_vm2, %v8245_v28, %v8244_v14  ;;  %v7842_v11 = vrot.slane %v7772_v24, 1  ;;  %v7843_v27 = vrot.slane %v7772_v24, 2  ;;  %v7844_v10 = vrot.slane %v7772_v24, 3 }
 0x60c   : > { %8327 = vst.msk [vmem:[%s9143_s26 + $0x10] sm:$0xff] %vm774_vm6, %v8246_v57  ;;  %v7845_v47 = vrot.slane %v7772_v24, 4  ;;  %v7846_v38 = vrot.slane %v7772_v24, 5  ;;  %v7847_v3 = vrot.slane %v7772_v24, 6  ;;  %v7848_v25 = vrot.slane %v7772_v24, 7 }
 0x60d   : > { %v7965_v33 = vmul.f32 %v7772_v24, %v12858_v53  ;;  %v7966_v2 = vmul.f32 %v7842_v11, %v12861_v63  ;;  %v7967_v60 = vmul.f32 %v7843_v27, %v12865_v23  ;;  %v7968_v12 = vmul.f32 %v7844_v10, %v12868_v0 }
 0x60e   : > { %v7969_v16 = vmul.f32 %v7845_v47, %v12871_v35  ;;  %v7970_v56 = vmul.f32 %v7846_v38, %v12875_v42  ;;  %v7971_v52 = vmul.f32 %v7847_v3, %v13996_v13  ;;  %v7972_v6 = vmul.f32 %v7848_v25, %v13997_v30 }
 0x60f   : > { %v8033_v41 = vmul.f32 %v13126_v21, %v7965_v33  ;;  %v8034_v29 = vmul.f32 %v13126_v21, %v7966_v2  ;;  %v8035_v53 = vmul.f32 %v13126_v21, %v7967_v60  ;;  %v8036_v63 = vmul.f32 %v13126_v21, %v7968_v12 }
 0x610   : > { %v8037_v23 = vmul.f32 %v13126_v21, %v7969_v16  ;;  %v8038_v0 = vmul.f32 %v13126_v21, %v7970_v56  ;;  %v8039_v35 = vmul.f32 %v13126_v21, %v7971_v52  ;;  %v8040_v42 = vmul.f32 %v13126_v21, %v7972_v6 }
 0x611   : > { %v8102_v37 = vadd.f32 %v13142_v9, %v8034_v29  ;;  %v8103_v4 = vadd.f32 %v13142_v9, %v8035_v53  ;;  %v8104_v59 = vadd.f32 %v13142_v9, %v8036_v63  ;;  %v8101_v7 = vadd.f32 %v13142_v9, %v8033_v41 }
 0x612   : > { %v8105_v51 = vadd.f32 %v13142_v9, %v8037_v23  ;;  %v8106_v28 = vadd.f32 %v13142_v9, %v8038_v0  ;;  %v8107_v57 = vadd.f32 %v13142_v9, %v8039_v35  ;;  %v8108_v24 = vadd.f32 %v13142_v9, %v8040_v42 }
 0x613   : > { %v8247_v14 = vrot.slane %v8102_v37, 7  ;;  %v8249_v36 = vrot.slane %v8103_v4, 6  ;;  %v8251_v27 = vrot.slane %v8104_v59, 5 }
 0x614   : > { %v8253_v47 = vrot.slane %v8105_v51, 4  ;;  %v8255_v3 = vrot.slane %v8106_v28, 3  ;;  %v8257_v2 = vrot.slane %v8107_v57, 2  ;;  %v8259_v16 = vrot.slane %v8108_v24, 1 }
 0x615   : > { %v8248_v11 = vsel %vm7088_vm13, %v8247_v14, %v8101_v7 }
 0x616   : > { %v8250_v10 = vsel %vm7091_vm14, %v8249_v36, %v8248_v11 }
 0x617   : > { %v8252_v38 = vsel %vm7094_vm0, %v8251_v27, %v8250_v10  ;;  %v13998_v27 = vld [vmem:[#allocation43_spill] sm:$0xff] }
 0x618   : > { %v8254_v33 = vsel %vm7097_vm1, %v8253_v47, %v8252_v38  ;;  %v13999_v47 = vld [vmem:[#allocation54_spill] sm:$0xff] }
 0x619   : > { %v8256_v12 = vsel %vm7100_vm5, %v8255_v3, %v8254_v33  ;;  %v14000_v3 = vld [vmem:[#allocation8_spill] sm:$0xff] }
 0x61a   : > { %v7710_v25 = vpop.xlane.xlu2 %7709  ;;  %v8258_v56 = vsel %vm7103_vm7, %v8257_v2, %v8256_v12  ;;  %v14001_v33 = vld [vmem:[#allocation64_spill] sm:$0xff] }
 0x61b   : > { %v7722_v60 = vmul.f32 %v7710_v25, %v12702_v32  ;;  %v8260_v52 = vsel %vm7106_vm2, %v8259_v16, %v8258_v56 }
 0x61c   : > { %8328 = vst.msk [vmem:[%s9143_s26 + $0x18] sm:$0xff] %vm774_vm6, %v8260_v52 }
 0x61d   : > { %v7730_v13 = vadd.f32 1e-05, %v7722_v60  ;;  %v14002_v60 = vld [vmem:[#allocation45_spill] sm:$0xff] }
 0x61f   : > { %9001 = vrsqrt.f32 %v7730_v13  ;;  %vm7789_vm15 = vweird.f32 %v7730_v13 }
 0x624   : > { %v7707_v30 = vpop.xlane.xlu1 %7706 }
 0x625   : > { %v7721_v6 = vmul.f32 %v7707_v30, %v12702_v32  ;;  %v9002_v41 = vpop.eup %9001 }
 0x626   : > { %v7784_v29 = vmul.f32 %v9002_v41, %v7730_v13  ;;  %vm7790_vm12 = vweird.f32 %v9002_v41 }
 0x627   : > { %v13286_v53 = vadd.f32 1e-05, %v7721_v6  ;;  %vm7791_vm4 = vmor %vm7789_vm15, %vm7790_vm12 }
 0x628   : > { %v7785_v63 = vmul.f32 %v9002_v41, %v7784_v29 }
 0x629   : > { %9003 = vrsqrt.f32 %v13286_v53  ;;  %vm7779_vm8 = vweird.f32 %v13286_v53 }
 0x62a   : > { %v7786_v23 = vmul.f32 0.5, %v7785_v63 }
 0x62c   : > { %v7787_v0 = vsub.f32 1.5, %v7786_v23 }
 0x62e   : > { %v7788_v42 = vmul.f32 %v9002_v41, %v7787_v0 }
 0x62f   : > { %v9004_v35 = vpop.eup %9003 }
 0x630   : > { %v7792_v37 = vsel %vm7791_vm4, %v9002_v41, %v7788_v42  ;;  %v7774_v4 = vmul.f32 %v9004_v35, %v13286_v53  ;;  %v7713_v42 = vpop.xlane.xlu0 %7712  ;;  %vm7780_vm3 = vweird.f32 %v9004_v35 }
 0x631   : > { %v7856_v59 = vrot.slane %v7792_v37, 1  ;;  %v7857_v51 = vrot.slane %v7792_v37, 2  ;;  %v7858_v7 = vrot.slane %v7792_v37, 3  ;;  %v7859_v28 = vrot.slane %v7792_v37, 4  ;;  %vm7781_vm9 = vmor %vm7779_vm8, %vm7780_vm3 }
 0x632   : > { %v7860_v14 = vrot.slane %v7792_v37, 5  ;;  %v7861_v36 = vrot.slane %v7792_v37, 6  ;;  %v7862_v57 = vrot.slane %v7792_v37, 7  ;;  %v7981_v24 = vmul.f32 %v7792_v37, %v12912_v1 }
 0x633   : > { %v7982_v11 = vmul.f32 %v7856_v59, %v12915_v44  ;;  %v7983_v10 = vmul.f32 %v7857_v51, %v13998_v27  ;;  %v7984_v38 = vmul.f32 %v7858_v7, %v13999_v47  ;;  %v7985_v25 = vmul.f32 %v7859_v28, %v14000_v3 }
 0x634   : > { %v7986_v2 = vmul.f32 %v7860_v14, %v14001_v33  ;;  %v7987_v12 = vmul.f32 %v7861_v36, %v14002_v60  ;;  %v7988_v16 = vmul.f32 %v7862_v57, %v12933_v43  ;;  %v8049_v56 = vmul.f32 %v13126_v21, %v7981_v24 }
 0x635   : > { %v8050_v13 = vmul.f32 %v13126_v21, %v7982_v11  ;;  %v8051_v1 = vmul.f32 %v13126_v21, %v7983_v10  ;;  %v8052_v44 = vmul.f32 %v13126_v21, %v7984_v38  ;;  %v8053_v52 = vmul.f32 %v13126_v21, %v7985_v25 }
 0x636   : > { %v8054_v30 = vmul.f32 %v13126_v21, %v7986_v2  ;;  %v8055_v6 = vmul.f32 %v13126_v21, %v7987_v12  ;;  %v8056_v41 = vmul.f32 %v13126_v21, %v7988_v16  ;;  %v7775_v0 = vmul.f32 %v9004_v35, %v7774_v4 }
 0x637   : > { %v8118_v29 = vadd.f32 %v13142_v9, %v8050_v13  ;;  %v8119_v43 = vadd.f32 %v13142_v9, %v8051_v1  ;;  %v8120_v63 = vadd.f32 %v13142_v9, %v8052_v44  ;;  %v8121_v23 = vadd.f32 %v13142_v9, %v8053_v52 }
 0x638   : > { %v8117_v37 = vadd.f32 %v13142_v9, %v8049_v56  ;;  %v8122_v59 = vadd.f32 %v13142_v9, %v8054_v30  ;;  %v8123_v28 = vadd.f32 %v13142_v9, %v8055_v6  ;;  %v7776_v14 = vmul.f32 0.5, %v7775_v0 }
 0x639   : > { %v8275_v51 = vrot.slane %v8118_v29, 7  ;;  %v8277_v7 = vrot.slane %v8119_v43, 6  ;;  %v8124_v36 = vadd.f32 %v13142_v9, %v8056_v41  ;;  %v8279_v24 = vrot.slane %v8120_v63, 5 }
 0x63a   : > { %v7723_v11 = vmul.f32 %v7713_v42, %v12702_v32  ;;  %v8281_v4 = vrot.slane %v8121_v23, 4  ;;  %v7777_v10 = vsub.f32 1.5, %v7776_v14  ;;  %v8283_v38 = vrot.slane %v8122_v59, 3 }
 0x63b   : > { %v8276_v57 = vsel %vm7088_vm13, %v8275_v51, %v8117_v37  ;;  %v8285_v33 = vrot.slane %v8123_v28, 2  ;;  %v8287_v12 = vrot.slane %v8124_v36, 1 }
 0x63c   : > { %v8278_v27 = vsel %vm7091_vm14, %v8277_v7, %v8276_v57  ;;  %v13318_v3 = vadd.f32 1e-05, %v7723_v11  ;;  %v7778_v2 = vmul.f32 %v9004_v35, %v7777_v10  ;;  %v7716_v57 = vpop.xlane.xlu1 %7715 }
 0x63d   : > { %v8280_v47 = vsel %vm7094_vm0, %v8279_v24, %v8278_v27 }
 0x63e   : > { %v8282_v25 = vsel %vm7097_vm1, %v8281_v4, %v8280_v47  ;;  %v7782_v56 = vsel %vm7781_vm9, %v9004_v35, %v7778_v2  ;;  %9005 = vrsqrt.f32 %v13318_v3  ;;  %v7724_v2 = vmul.f32 %v7716_v57, %v12702_v32 }
 0x63f   : > { %v8284_v60 = vsel %vm7100_vm5, %v8283_v38, %v8282_v25  ;;  %v7849_v1 = vrot.slane %v7782_v56, 1  ;;  %v7850_v44 = vrot.slane %v7782_v56, 2  ;;  %v7851_v52 = vrot.slane %v7782_v56, 3 }
 0x640   : > { %v8286_v16 = vsel %vm7103_vm7, %v8285_v33, %v8284_v60  ;;  %v7852_v30 = vrot.slane %v7782_v56, 4  ;;  %v7853_v6 = vrot.slane %v7782_v56, 5  ;;  %v7854_v41 = vrot.slane %v7782_v56, 6 }
 0x641   : > { %v8288_v13 = vsel %vm7106_vm2, %v8287_v12, %v8286_v16  ;;  %v7855_v53 = vrot.slane %v7782_v56, 7  ;;  %v7973_v29 = vmul.f32 %v7782_v56, %v12957_v49  ;;  %v7974_v43 = vmul.f32 %v7849_v1, %v12960_v5 }
 0x642   : > { %8330 = vst.msk [vmem:[%s9143_s26 + $0x28] sm:$0xff] %vm774_vm6, %v8288_v13  ;;  %v7975_v63 = vmul.f32 %v7850_v44, %v12964_v61  ;;  %v7976_v35 = vmul.f32 %v7851_v52, %v12967_v22  ;;  %v7977_v23 = vmul.f32 %v7852_v30, %v12970_v26  ;;  %v7978_v0 = vmul.f32 %v7853_v6, %v12974_v58 }
 0x643   : > { %v7979_v42 = vmul.f32 %v7854_v41, %v12977_v48  ;;  %v7980_v37 = vmul.f32 %v7855_v53, %v12980_v8  ;;  %v8041_v59 = vmul.f32 %v13126_v21, %v7973_v29  ;;  %v8042_v51 = vmul.f32 %v13126_v21, %v7974_v43 }
 0x644   : > { %v8043_v49 = vmul.f32 %v13126_v21, %v7975_v63  ;;  %v8044_v5 = vmul.f32 %v13126_v21, %v7976_v35  ;;  %v9006_v7 = vpop.eup %9005  ;;  %v8045_v61 = vmul.f32 %v13126_v21, %v7977_v23  ;;  %v8046_v22 = vmul.f32 %v13126_v21, %v7978_v0 }
 0x645   : > { %v8047_v26 = vmul.f32 %v13126_v21, %v7979_v42  ;;  %v8048_v58 = vmul.f32 %v13126_v21, %v7980_v37  ;;  %v8110_v48 = vadd.f32 %v13142_v9, %v8042_v51  ;;  %v8109_v14 = vadd.f32 %v13142_v9, %v8041_v59 }
 0x646   : > { %v8111_v8 = vadd.f32 %v13142_v9, %v8043_v49  ;;  %v8112_v28 = vadd.f32 %v13142_v9, %v8044_v5  ;;  %v8113_v36 = vadd.f32 %v13142_v9, %v8045_v61  ;;  %v8114_v24 = vadd.f32 %v13142_v9, %v8046_v22 }
 0x647   : > { %v8261_v11 = vrot.slane %v8110_v48, 7  ;;  %v7794_v4 = vmul.f32 %v9006_v7, %v13318_v3  ;;  %v8115_v10 = vadd.f32 %v13142_v9, %v8047_v26  ;;  %v8116_v47 = vadd.f32 %v13142_v9, %v8048_v58 }
 0x648   : > { %v8263_v27 = vrot.slane %v8111_v8, 6  ;;  %v8265_v25 = vrot.slane %v8112_v28, 5  ;;  %v8267_v12 = vrot.slane %v8113_v36, 4  ;;  %v8269_v56 = vrot.slane %v8114_v24, 3 }
 0x649   : > { %v8262_v38 = vsel %vm7088_vm13, %v8261_v11, %v8109_v14  ;;  %v7795_v33 = vmul.f32 %v9006_v7, %v7794_v4  ;;  %v8271_v44 = vrot.slane %v8115_v10, 2  ;;  %v13358_v52 = vadd.f32 1e-05, %v7724_v2 }
 0x64a   : > { %v8264_v60 = vsel %vm7091_vm14, %v8263_v27, %v8262_v38  ;;  %v8273_v6 = vrot.slane %v8116_v47, 1  ;;  %vm7800_vm10 = vweird.f32 %v9006_v7  ;;  %vm7799_vm11 = vweird.f32 %v13318_v3 }
 0x64b   : > { %v8266_v16 = vsel %vm7094_vm0, %v8265_v25, %v8264_v60  ;;  %v7796_v13 = vmul.f32 0.5, %v7795_v33  ;;  %vm7801_vm12 = vmor %vm7799_vm11, %vm7800_vm10  ;;  %9007 = vrsqrt.f32 %v13358_v52  ;;  %vm7809_vm4 = vweird.f32 %v13358_v52 }
 0x64c   : > { %v8268_v1 = vsel %vm7097_vm1, %v8267_v12, %v8266_v16 }
 0x64d   : > { %v8270_v30 = vsel %vm7100_vm5, %v8269_v56, %v8268_v1  ;;  %v7797_v41 = vsub.f32 1.5, %v7796_v13 }
 0x64e   : > { %v8272_v32 = vsel %vm7103_vm7, %v8271_v44, %v8270_v30 }
 0x64f   : > { %v8274_v53 = vsel %vm7106_vm2, %v8273_v6, %v8272_v32  ;;  %v7798_v29 = vmul.f32 %v9006_v7, %v7797_v41 }
 0x650   : > { %8329 = vst.msk [vmem:[%s9143_s26 + $0x20] sm:$0xff] %vm774_vm6, %v8274_v53 }
 0x651   : > { %v7802_v43 = vsel %vm7801_vm12, %v9006_v7, %v7798_v29  ;;  %v9008_v48 = vpop.eup %9007 }
 0x652   : > { %v7863_v63 = vrot.slane %v7802_v43, 1  ;;  %v7864_v35 = vrot.slane %v7802_v43, 2  ;;  %v7865_v23 = vrot.slane %v7802_v43, 3  ;;  %v7866_v0 = vrot.slane %v7802_v43, 4 }
 0x653   : > { %v7867_v42 = vrot.slane %v7802_v43, 5  ;;  %v7868_v37 = vrot.slane %v7802_v43, 6  ;;  %v7869_v59 = vrot.slane %v7802_v43, 7  ;;  %v7989_v51 = vmul.f32 %v7802_v43, %v13009_v62 }
 0x654   : > { %v7990_v49 = vmul.f32 %v7863_v63, %v13012_v46  ;;  %v7991_v5 = vmul.f32 %v7864_v35, %v13016_v40  ;;  %v7992_v3 = vmul.f32 %v7865_v23, %v13019_v18  ;;  %v7993_v61 = vmul.f32 %v7866_v0, %v13022_v34 }
 0x655   : > { %v7994_v22 = vmul.f32 %v7867_v42, %v13026_v55  ;;  %v7995_v7 = vmul.f32 %v7868_v37, %v13029_v31  ;;  %v7996_v26 = vmul.f32 %v7869_v59, %v13032_v15  ;;  %v8057_v58 = vmul.f32 %v13126_v21, %v7989_v51 }
 0x656   : > { %v8058_v8 = vmul.f32 %v13126_v21, %v7990_v49  ;;  %v8059_v62 = vmul.f32 %v13126_v21, %v7991_v5  ;;  %v8060_v46 = vmul.f32 %v13126_v21, %v7992_v3  ;;  %v8061_v40 = vmul.f32 %v13126_v21, %v7993_v61  ;;  %v14003_v61 = vld [vmem:[#allocation53_spill] sm:$0xff] }
 0x657   : > { %v8062_v18 = vmul.f32 %v13126_v21, %v7994_v22  ;;  %v8063_v34 = vmul.f32 %v13126_v21, %v7995_v7  ;;  %v8064_v55 = vmul.f32 %v13126_v21, %v7996_v26  ;;  %v7804_v36 = vmul.f32 %v9008_v48, %v13358_v52 }
 0x658   : > { %v8126_v31 = vadd.f32 %v13142_v9, %v8058_v8  ;;  %v8127_v15 = vadd.f32 %v13142_v9, %v8059_v62  ;;  %v8128_v28 = vadd.f32 %v13142_v9, %v8060_v46  ;;  %v8129_v14 = vadd.f32 %v13142_v9, %v8061_v40 }
 0x659   : > { %v8125_v57 = vadd.f32 %v13142_v9, %v8057_v58  ;;  %v8130_v24 = vadd.f32 %v13142_v9, %v8062_v18  ;;  %v8131_v4 = vadd.f32 %v13142_v9, %v8063_v34  ;;  %v7805_v10 = vmul.f32 %v9008_v48, %v7804_v36 }
 0x65a   : > { %v8289_v11 = vrot.slane %v8126_v31, 7  ;;  %v8291_v27 = vrot.slane %v8127_v15, 6  ;;  %v8132_v47 = vadd.f32 %v13142_v9, %v8064_v55  ;;  %v8293_v25 = vrot.slane %v8128_v28, 5 }
 0x65b   : > { %v8295_v2 = vrot.slane %v8129_v14, 4  ;;  %v7806_v60 = vmul.f32 0.5, %v7805_v10  ;;  %v8297_v16 = vrot.slane %v8130_v24, 3  ;;  %v8299_v13 = vrot.slane %v8131_v4, 2 }
 0x65c   : > { %v8290_v38 = vsel %vm7088_vm13, %v8289_v11, %v8125_v57  ;;  %vm7810_vm15 = vweird.f32 %v9008_v48  ;;  %v8301_v30 = vrot.slane %v8132_v47, 1 }
 0x65d   : > { %v8292_v33 = vsel %vm7091_vm14, %v8291_v27, %v8290_v38  ;;  %v7807_v1 = vsub.f32 1.5, %v7806_v60  ;;  %vm7811_vm3 = vmor %vm7809_vm4, %vm7810_vm15 }
 0x65e   : > { %v8294_v12 = vsel %vm7094_vm0, %v8293_v25, %v8292_v33 }
 0x65f   : > { %v8296_v56 = vsel %vm7097_vm1, %v8295_v2, %v8294_v12  ;;  %v7808_v41 = vmul.f32 %v9008_v48, %v7807_v1 }
 0x660   : > { %v8298_v44 = vsel %vm7100_vm5, %v8297_v16, %v8296_v56 }
 0x661   : > { %v8300_v6 = vsel %vm7103_vm7, %v8299_v13, %v8298_v44  ;;  %v7812_v53 = vsel %vm7811_vm3, %v9008_v48, %v7808_v41 }
 0x662   : > { %v8302_v32 = vsel %vm7106_vm2, %v8301_v30, %v8300_v6  ;;  %v7870_v29 = vrot.slane %v7812_v53, 1  ;;  %v7871_v43 = vrot.slane %v7812_v53, 2  ;;  %v7872_v63 = vrot.slane %v7812_v53, 3 }
 0x663   : > { %8331 = vst.msk [vmem:[%s9143_s26 + $0x30] sm:$0xff] %vm774_vm6, %v8302_v32  ;;  %v7873_v35 = vrot.slane %v7812_v53, 4  ;;  %v7874_v23 = vrot.slane %v7812_v53, 5  ;;  %v7875_v0 = vrot.slane %v7812_v53, 6  ;;  %v7876_v42 = vrot.slane %v7812_v53, 7 }
 0x664   : > { %v7997_v37 = vmul.f32 %v7812_v53, %v13075_v45  ;;  %v7998_v59 = vmul.f32 %v7870_v29, %v13064_v39  ;;  %v7999_v51 = vmul.f32 %v7871_v43, %v13067_v54  ;;  %v8000_v52 = vmul.f32 %v7872_v63, %v13070_v50 }
 0x665   : > { %v8001_v49 = vmul.f32 %v7873_v35, %v13078_v19  ;;  %v8002_v5 = vmul.f32 %v7874_v23, %v13081_v17  ;;  %v8003_v3 = vmul.f32 %v7875_v0, %v13085_v20  ;;  %v8004_v22 = vmul.f32 %v7876_v42, %v14003_v61 }
 0x666   : > { %v8065_v7 = vmul.f32 %v13126_v21, %v7997_v37  ;;  %v8066_v26 = vmul.f32 %v13126_v21, %v7998_v59  ;;  %v8067_v45 = vmul.f32 %v13126_v21, %v7999_v51  ;;  %v8068_v39 = vmul.f32 %v13126_v21, %v8000_v52 }
 0x667   : > { %v8069_v54 = vmul.f32 %v13126_v21, %v8001_v49  ;;  %v8070_v50 = vmul.f32 %v13126_v21, %v8002_v5  ;;  %v8071_v19 = vmul.f32 %v13126_v21, %v8003_v3  ;;  %v8072_v17 = vmul.f32 %v13126_v21, %v8004_v22 }
 0x668   : > { %v8134_v20 = vadd.f32 %v13142_v9, %v8066_v26  ;;  %v8135_v58 = vadd.f32 %v13142_v9, %v8067_v45  ;;  %v8136_v48 = vadd.f32 %v13142_v9, %v8068_v39  ;;  %v8133_v62 = vadd.f32 %v13142_v9, %v8065_v7 }
 0x669   : > { %v8137_v8 = vadd.f32 %v13142_v9, %v8069_v54  ;;  %v8138_v46 = vadd.f32 %v13142_v9, %v8070_v50  ;;  %v8139_v34 = vadd.f32 %v13142_v9, %v8071_v19  ;;  %v8140_v55 = vadd.f32 %v13142_v9, %v8072_v17 }
 0x66a   : > { %v8303_v40 = vrot.slane %v8134_v20, 7  ;;  %v8305_v18 = vrot.slane %v8135_v58, 6  ;;  %v8307_v31 = vrot.slane %v8136_v48, 5 }
 0x66b   : > { %v8309_v28 = vrot.slane %v8137_v8, 4  ;;  %v8311_v36 = vrot.slane %v8138_v46, 3  ;;  %v8313_v24 = vrot.slane %v8139_v34, 2  ;;  %v8315_v27 = vrot.slane %v8140_v55, 1 }
 0x66c   : > { %v8304_v21 = vsel %vm7088_vm13, %v8303_v40, %v8133_v62 }
 0x66d   : > { %v8306_v15 = vsel %vm7091_vm14, %v8305_v18, %v8304_v21 }
 0x66e   : > { %v8308_v14 = vsel %vm7094_vm0, %v8307_v31, %v8306_v15 }
 0x66f   : > { %v8310_v57 = vsel %vm7097_vm1, %v8309_v28, %v8308_v14 }
 0x670   : > { %v8312_v11 = vsel %vm7100_vm5, %v8311_v36, %v8310_v57 }
 0x671   : > { %v8314_v4 = vsel %vm7103_vm7, %v8313_v24, %v8312_v11 }
 0x672   : > { %v8316_v10 = vsel %vm7106_vm2, %v8315_v27, %v8314_v4 }
 0x673   : > { %8332 = vst.msk [vmem:[%s9143_s26 + $0x38] sm:$0xff] %vm774_vm6, %v8316_v10 }
 0x674 PF: > { %s22_s21 = sadd.s32 1, %s9029_s21  }
 0x675   : > { %p19_p5 = scmp.ge.s32.totalorder %s22_s21, 4  }
 0x677   :  { %21 = sbr.rel (!%p19_p5) target bundleno = 1 (0x1), region = 133 }

</bundles_post_ra>
